<compile_context>
chip_gen: v7x
topology: tpu7x:2x2x1
jax: 0.10.0
libtpu: 0.0.40
codegen_flags: <defaults>
</compile_context>

<pallas_src>
import math
import functools

import jax
import jax.numpy as jnp
from jax import lax
from jax.experimental import pallas as pl
from jax.experimental.pallas import tpu as pltpu


# ----------------------------------------------------------------------------
# small helpers
# ----------------------------------------------------------------------------

def _round_up(x, m):
    return ((x + m - 1) // m) * m


def _ln(x, g, b, eps=1e-5):
    # torch.nn.LayerNorm over the last axis (biased variance, centered two-pass).
    mu = jnp.mean(x, axis=-1, keepdims=True)
    xc = x - mu
    var = jnp.mean(xc * xc, axis=-1, keepdims=True)
    return xc * lax.rsqrt(var + eps) * g + b


def _erf(x):
    # Abramowitz & Stegun 7.1.26 (|err| ~ 1.5e-7); reciprocal on the EUP slot.
    a1, a2, a3, a4, a5 = 0.254829592, -0.284496736, 1.421413741, -1.453152027, 1.061405429
    pp = 0.3275911
    ax = jnp.abs(x)
    t = pl.reciprocal(1.0 + pp * ax, approx=True)
    poly = ((((a5 * t + a4) * t + a3) * t + a2) * t + a1) * t
    y = 1.0 - poly * jnp.exp(-ax * ax)
    return jnp.where(x >= 0, y, -y)


def _gelu(x):
    # torch nn.GELU() default = exact (erf) gelu
    return 0.5 * x * (1.0 + _erf(x * 0.7071067811865476))


def _mha(q_src, kv_src, heads, wqT, qb, wkT, kb, wvT, vb, projw, projb):
    """Multi-head attention + output projection (head concat fused into proj).

    q_src: [T, W] (already LayerNorm'ed, f32); kv_src: [S, W].
    wqT/wkT/wvT: [W_out, W_in] bf16 (prep-transposed, scale folded into q);
    qb/kb/vb: [W, 1] f32; projw: [H, C, W] bf16; projb: [1, W] f32.
    Returns [T, W] f32 (residual contribution, bias included).
    """
    T, W = q_src.shape
    S = kv_src.shape[0]
    C = W // heads
    qs = q_src.astype(jnp.bfloat16)
    ks = kv_src.astype(jnp.bfloat16)
    dn = (((1,), (1,)), ((), ()))  # contract last dims -> transposed-output GEMM
    qT = lax.dot_general(wqT, qs, dn, preferred_element_type=jnp.float32) + qb   # [W, T]
    kT = lax.dot_general(wkT, ks, dn, preferred_element_type=jnp.float32) + kb   # [W, S]
    vT = lax.dot_general(wvT, ks, dn, preferred_element_type=jnp.float32) + vb   # [W, S]

    # free head split (leading/sublane dim split, C is a multiple of 8)
    q3 = qT.reshape(heads, C, T)                                                  # [H, C, T]
    k3 = kT.reshape(heads, C, S).astype(jnp.bfloat16)                             # [H, C, S]
    v3 = vT.reshape(heads, C, S).astype(jnp.bfloat16)                             # [H, C, S]
    # per-head 2-D transpose (doc-proven op) to put the contraction dim on lanes for q
    qh = jnp.stack([q3[h].T for h in range(heads)], axis=0).astype(jnp.bfloat16)  # [H, T, C]

    s = jnp.einsum('htc,hcs->hts', qh, k3, preferred_element_type=jnp.float32)    # [H, T, S]
    m = jnp.max(s, axis=-1, keepdims=True)
    p = jnp.exp(s - m)
    p = p * pl.reciprocal(jnp.sum(p, axis=-1, keepdims=True), approx=True)
    o = jnp.einsum('hts,hcs->htc', p.astype(jnp.bfloat16), v3,
                   preferred_element_type=jnp.float32)                            # [H, T, C]

    # head-concat fused into the output projection (f32 accumulator over heads)
    ob = o.astype(jnp.bfloat16)
    acc = jnp.zeros((T, W), jnp.float32)
    for h in range(heads):
        acc = acc + jnp.dot(ob[h], projw[h], preferred_element_type=jnp.float32)
    return acc + projb


def _mlp(x, g, b, fcw, fcb, fpw, fpb):
    h = _ln(x, g, b).astype(jnp.bfloat16)
    hid = _gelu(jnp.dot(h, fcw, preferred_element_type=jnp.float32) + fcb)
    return jnp.dot(hid.astype(jnp.bfloat16), fpw,
                   preferred_element_type=jnp.float32) + fpb


# weight ordering used by both the wrappers and the kernel signatures
_SELF_WNAMES = ("ln1_g", "ln1_b", "wqT", "qb", "wkT", "kb", "wvT", "vb",
                "projw", "projb", "ln2_g", "ln2_b", "fcw", "fcb", "fpw", "fpb")
_CROSS_WNAMES = ("ln1_g", "ln1_b", "ln2_g", "ln2_b", "wqT", "qb", "wkT", "kb",
                 "wvT", "vb", "projw", "projb", "ln3_g", "ln3_b",
                 "fcw", "fcb", "fpw", "fpb")
_GEO_EXTRA = ("lnp_g", "lnp_b", "outwT", "outb")


# ----------------------------------------------------------------------------
# Pallas kernels
# ----------------------------------------------------------------------------

def _linear_kernel(x_ref, w_ref, b_ref, o_ref):
    o_ref[...] = (jnp.dot(x_ref[...].astype(jnp.bfloat16), w_ref[...],
                          preferred_element_type=jnp.float32) + b_ref[...])


def _self_stack_kernel(x_ref,
                       ln1_g, ln1_b, wqT, qb, wkT, kb, wvT, vb,
                       projw, projb, ln2_g, ln2_b, fcw, fcb, fpw, fpb,
                       o_ref, *, heads):
    # Whole stack of ResidualAttentionBlocks: grid=(B, L); activation block stays
    # resident in the output buffer across the (arbitrary) layer axis.
    layer = pl.program_id(1)

    @pl.when(layer == 0)
    def _():
        o_ref[...] = x_ref[...]

    x = o_ref[0]                                                  # [N, W] f32
    h1 = _ln(x, ln1_g[0], ln1_b[0])
    x = x + _mha(h1, h1, heads,
                 wqT[0], qb[0], wkT[0], kb[0], wvT[0], vb[0], projw[0], projb[0])
    x = x + _mlp(x, ln2_g[0], ln2_b[0], fcw[0], fcb[0], fpw[0], fpb[0])
    o_ref[0] = x


def _cross_block_kernel(x_ref, d_ref,
                        ln1_g, ln1_b, ln2_g, ln2_b, wqT, qb, wkT, kb, wvT, vb,
                        projw, projb, ln3_g, ln3_b, fcw, fcb, fpw, fpb,
                        o_ref, *, heads):
    # One ResidualCrossAttentionBlock for one batch element.
    x = x_ref[0]                                                  # [T, W]
    d = d_ref[0]                                                  # [S, W]
    x = x + _mha(_ln(x, ln1_g[...], ln1_b[...]),
                 _ln(d, ln2_g[...], ln2_b[...]), heads,
                 wqT[...], qb[...], wkT[...], kb[...], wvT[...], vb[...],
                 projw[...], projb[...])
    x = x + _mlp(x, ln3_g[...], ln3_b[...], fcw[...], fcb[...], fpw[...], fpb[...])
    o_ref[0] = x


def _geo_decoder_kernel(x_ref, d_ref,
                        ln1_g, ln1_b, ln2_g, ln2_b, wqT, qb, wkT, kb, wvT, vb,
                        projw, projb, ln3_g, ln3_b, fcw, fcb, fpw, fpb,
                        lnp_g, lnp_b, outwT, outb,
                        o_ref, *, heads):
    # Fused geometry decoder tail for one (batch, query-tile):
    # cross-attn block -> ln_post -> output_proj[W,1], emitted lane-dense.
    x = x_ref[0]                                                  # [tile_P, W]
    d = d_ref[0]                                                  # [S, W]
    x = x + _mha(_ln(x, ln1_g[...], ln1_b[...]),
                 _ln(d, ln2_g[...], ln2_b[...]), heads,
                 wqT[...], qb[...], wkT[...], kb[...], wvT[...], vb[...],
                 projw[...], projb[...])
    x = x + _mlp(x, ln3_g[...], ln3_b[...], fcw[...], fcb[...], fpw[...], fpb[...])
    y = _ln(x, lnp_g[...], lnp_b[...]).astype(jnp.bfloat16)
    # transposed 1xW GEMM -> logits already laid out along lanes
    logits_t = lax.dot_general(outwT[...], y, (((1,), (1,)), ((), ())),
                               preferred_element_type=jnp.float32)    # [1, tile_P]
    o_ref[0] = logits_t + outb[...]


def _kl_kernel(x_ref, noise_ref, mw_ref, mb_ref, lw_ref, lb_ref, pw_ref, pb_ref,
               mean_ref, logvar_ref, o_ref, *, sample):
    # pre_kl (split into mean / logvar GEMMs) -> DiagonalGaussian -> post_kl.
    xb = x_ref[...].astype(jnp.bfloat16)
    mean = jnp.dot(xb, mw_ref[...], preferred_element_type=jnp.float32) + mb_ref[...]
    logvar = jnp.clip(
        jnp.dot(xb, lw_ref[...], preferred_element_type=jnp.float32) + lb_ref[...],
        -30.0, 20.0)
    mean_ref[...] = mean
    logvar_ref[...] = logvar
    if sample:
        z = mean + jnp.exp(0.5 * logvar) * noise_ref[...]
    else:
        z = mean
    o_ref[...] = (jnp.dot(z.astype(jnp.bfloat16), pw_ref[...],
                          preferred_element_type=jnp.float32) + pb_ref[...])


# ----------------------------------------------------------------------------
# pallas_call wrappers
# ----------------------------------------------------------------------------

def pallas_linear(x, w, b, *, tile_m=1024):
    """y = x @ w + b over the last axis (nn.Linear), row-tiled & pipelined."""
    lead = x.shape[:-1]
    K = x.shape[-1]
    N = w.shape[-1]
    x2 = x.reshape(-1, K)
    M = x2.shape[0]
    tm = min(tile_m, _round_up(M, 8))
    out = pl.pallas_call(
        _linear_kernel,
        out_shape=jax.ShapeDtypeStruct((M, N), jnp.float32),
        grid=(pl.cdiv(M, tm),),
        in_specs=[pl.BlockSpec((tm, K), lambda i: (i, 0)),
                  pl.BlockSpec((K, N), lambda i: (0, 0)),
                  pl.BlockSpec((1, N), lambda i: (0, 0))],
        out_specs=pl.BlockSpec((tm, N), lambda i: (i, 0)),
        compiler_params=pltpu.CompilerParams(dimension_semantics=("parallel",)),
    )(x2, w, b.reshape(1, N))
    return out.reshape(*lead, N)


def _stack_spec(arr):
    zeros = (0,) * (arr.ndim - 1)
    return pl.BlockSpec((1,) + arr.shape[1:], lambda b, l, _z=zeros: (l,) + _z)


def _const_spec1(arr):
    zeros = (0,) * arr.ndim
    return pl.BlockSpec(arr.shape, lambda b, _z=zeros: _z)


def _const_spec2(arr):
    zeros = (0,) * arr.ndim
    return pl.BlockSpec(arr.shape, lambda b, t, _z=zeros: _z)


def pallas_self_stack(x, stack, heads):
    """Full Transformer stack (L ResidualAttentionBlocks) in one pallas_call."""
    if stack is None:
        return x
    B, T, W = x.shape
    L = stack["wqT"].shape[0]
    ws = [stack[n] for n in _SELF_WNAMES]
    in_specs = ([pl.BlockSpec((1, T, W), lambda b, l: (b, 0, 0))]
                + [_stack_spec(w) for w in ws])
    return pl.pallas_call(
        functools.partial(_self_stack_kernel, heads=heads),
        out_shape=jax.ShapeDtypeStruct((B, T, W), jnp.float32),
        grid=(B, L),
        in_specs=in_specs,
        out_specs=pl.BlockSpec((1, T, W), lambda b, l: (b, 0, 0)),
        compiler_params=pltpu.CompilerParams(
            dimension_semantics=("parallel", "arbitrary")),
    )(x, *ws)


def pallas_cross_block(x, data, p, heads):
    B, T, W = x.shape
    S = data.shape[1]
    ws = [p[n] for n in _CROSS_WNAMES]
    in_specs = ([pl.BlockSpec((1, T, W), lambda b: (b, 0, 0)),
                 pl.BlockSpec((1, S, W), lambda b: (b, 0, 0))]
                + [_const_spec1(w) for w in ws])
    return pl.pallas_call(
        functools.partial(_cross_block_kernel, heads=heads),
        out_shape=jax.ShapeDtypeStruct((B, T, W), jnp.float32),
        grid=(B,),
        in_specs=in_specs,
        out_specs=pl.BlockSpec((1, T, W), lambda b: (b, 0, 0)),
        compiler_params=pltpu.CompilerParams(dimension_semantics=("parallel",)),
    )(x, data, *ws)


def pallas_geo_decoder(q, latents, geo, heads, *, tile_p=512):
    """Fused CrossAttentionDecoder: cross block + ln_post + output_proj -> logits."""
    B, P, W = q.shape
    S = latents.shape[1]
    tp = min(tile_p, _round_up(P, 8))
    n_pt = pl.cdiv(P, tp)
    p_pad = n_pt * tp
    if p_pad != P:
        q = jnp.pad(q, ((0, 0), (0, p_pad - P), (0, 0)))
    ws = [geo["cross"][n] for n in _CROSS_WNAMES] + [geo[n] for n in _GEO_EXTRA]
    in_specs = ([pl.BlockSpec((1, tp, W), lambda b, t: (b, t, 0)),
                 pl.BlockSpec((1, S, W), lambda b, t: (b, 0, 0))]
                + [_const_spec2(w) for w in ws])
    out = pl.pallas_call(
        functools.partial(_geo_decoder_kernel, heads=heads),
        out_shape=jax.ShapeDtypeStruct((B, n_pt, tp), jnp.float32),
        grid=(B, n_pt),
        in_specs=in_specs,
        out_specs=pl.BlockSpec((1, 1, tp), lambda b, t: (b, t, 0)),
        compiler_params=pltpu.CompilerParams(
            dimension_semantics=("parallel", "parallel")),
    )(q, latents, *ws)
    return out.reshape(B, p_pad)[:, :P]


def pallas_kl_bottleneck(latents, noise, kl, *, sample, tile_m=1024):
    B, M, W = latents.shape
    E = kl["mean_w"].shape[1]
    rows = B * M
    x2 = latents.reshape(rows, W)
    n2 = noise.reshape(rows, E)
    tm = min(tile_m, _round_up(rows, 8))
    mean, logvar, out = pl.pallas_call(
        functools.partial(_kl_kernel, sample=sample),
        out_shape=(jax.ShapeDtypeStruct((rows, E), jnp.float32),
                   jax.ShapeDtypeStruct((rows, E), jnp.float32),
                   jax.ShapeDtypeStruct((rows, W), jnp.float32)),
        grid=(pl.cdiv(rows, tm),),
        in_specs=[pl.BlockSpec((tm, W), lambda i: (i, 0)),
                  pl.BlockSpec((tm, E), lambda i: (i, 0)),
                  pl.BlockSpec((W, E), lambda i: (0, 0)),
                  pl.BlockSpec((1, E), lambda i: (0, 0)),
                  pl.BlockSpec((W, E), lambda i: (0, 0)),
                  pl.BlockSpec((1, E), lambda i: (0, 0)),
                  pl.BlockSpec((E, W), lambda i: (0, 0)),
                  pl.BlockSpec((1, W), lambda i: (0, 0))],
        out_specs=(pl.BlockSpec((tm, E), lambda i: (i, 0)),
                   pl.BlockSpec((tm, E), lambda i: (i, 0)),
                   pl.BlockSpec((tm, W), lambda i: (i, 0))),
        compiler_params=pltpu.CompilerParams(dimension_semantics=("parallel",)),
    )(x2, n2, kl["mean_w"], kl["mean_b"], kl["logvar_w"], kl["logvar_b"],
      kl["post_w"], kl["post_b"])
    return (mean.reshape(B, M, E), logvar.reshape(B, M, E), out.reshape(B, M, W))


# ----------------------------------------------------------------------------
# Model (plain-JAX glue around the fused Pallas kernels)
# ----------------------------------------------------------------------------

NUM_FREQS = 8
FOURIER_DIM = 3 * (2 * NUM_FREQS + 1)  # include_input + sin + cos -> 51 for 3D


def fourier_embed(x, num_freqs=NUM_FREQS, include_pi=True):
    freqs = 2.0 ** jnp.arange(num_freqs, dtype=jnp.float32)
    if include_pi:
        freqs = freqs * jnp.pi
    embed = (x[..., None] * freqs).reshape(*x.shape[:-1], x.shape[-1] * num_freqs)
    return jnp.concatenate([x, jnp.sin(embed), jnp.cos(embed)], axis=-1)


def shape_as_latent_perceiver_forward(
    prep, pc, feats, volume_queries, noise, *, heads, sample_posterior=True
):
    """Full forward: (logits [B,P], center_pos [B,N,3], posterior=(mean, logvar))."""
    B = pc.shape[0]

    # ----- CrossAttentionEncoder -----
    data = fourier_embed(pc)                                    # [B,N,51]
    data = jnp.concatenate([data, feats], axis=-1)              # [B,N,51+F]
    data = pallas_linear(data, prep["enc"]["in_w"], prep["enc"]["in_b"])
    query = jnp.broadcast_to(prep["enc"]["query"][None],
                             (B,) + prep["enc"]["query"].shape)
    latents = pallas_cross_block(query, data, prep["enc"]["cross"], heads)
    latents = pallas_self_stack(latents, prep["enc"]["self_stack"], heads)
    # use_ln_post=False (default), so no ln_post here.

    # ----- KL bottleneck (embed_dim > 0): fused pre_kl + sample + post_kl -----
    mean, logvar, latents = pallas_kl_bottleneck(
        latents, noise, prep["kl"], sample=sample_posterior)
    posterior = (mean, logvar)

    # ----- decode: decoder Transformer -----
    latents = pallas_self_stack(latents, prep["dec_stack"], heads)

    # ----- query_geometry: CrossAttentionDecoder (fused, query-tiled, lane-dense) ----
    q = pallas_linear(fourier_embed(volume_queries),
                      prep["geo"]["q_w"], prep["geo"]["q_b"])
    logits = pallas_geo_decoder(q, latents, prep["geo"], heads)   # [B, P]

    return logits, pc, posterior


# ----------------------------------------------------------------------------
# Parameter construction (torch layout) and one-time kernel-friendly repack
# ----------------------------------------------------------------------------

def init_params(key, *, num_latents, point_feats, embed_dim, width,
                num_enc_layers, num_dec_layers):
    keys = iter(jax.random.split(key, 512))

    def lin(i, o, scale=0.02):
        w = jax.random.normal(next(keys), (i, o), jnp.float32) * scale
        b = jax.random.normal(next(keys), (o,), jnp.float32) * scale
        return w, b

    def ln(d):
        return jnp.ones((d,), jnp.float32), jnp.zeros((d,), jnp.float32)

    def mlp_p(w):
        fw, fb = lin(w, 4 * w)
        pw, pb = lin(4 * w, w)
        return dict(fc_w=fw, fc_b=fb, proj_w=pw, proj_b=pb)

    def self_block(w):
        g1, b1 = ln(w)
        g2, b2 = ln(w)
        qkvw, qkvb = lin(w, 3 * w)
        pw, pb = lin(w, w)
        return dict(ln1_g=g1, ln1_b=b1, qkv_w=qkvw, qkv_b=qkvb,
                    attn_proj_w=pw, attn_proj_b=pb, ln2_g=g2, ln2_b=b2, mlp=mlp_p(w))

    def cross_block(w):
        g1, b1 = ln(w)
        g2, b2 = ln(w)
        g3, b3 = ln(w)
        qw, qb = lin(w, w)
        kvw, kvb = lin(w, 2 * w)
        pw, pb = lin(w, w)
        return dict(ln1_g=g1, ln1_b=b1, ln2_g=g2, ln2_b=b2, ln3_g=g3, ln3_b=b3,
                    q_w=qw, q_b=qb, kv_w=kvw, kv_b=kvb,
                    attn_proj_w=pw, attn_proj_b=pb, mlp=mlp_p(w))

    enc_in_w, enc_in_b = lin(FOURIER_DIM + point_feats, width)
    pre_kl_w, pre_kl_b = lin(width, 2 * embed_dim)
    post_kl_w, post_kl_b = lin(embed_dim, width)
    geo_q_w, geo_q_b = lin(FOURIER_DIM, width)
    geo_out_w, geo_out_b = lin(width, 1)
    geo_ln_g, geo_ln_b = ln(width)

    return dict(
        enc=dict(
            query=jax.random.normal(next(keys), (num_latents, width), jnp.float32) * 0.02,
            in_w=enc_in_w, in_b=enc_in_b,
            cross=cross_block(width),
            self_layers=[self_block(width) for _ in range(num_enc_layers)],
        ),
        pre_kl_w=pre_kl_w, pre_kl_b=pre_kl_b,
        post_kl_w=post_kl_w, post_kl_b=post_kl_b,
        dec_layers=[self_block(width) for _ in range(num_dec_layers)],
        geo=dict(q_w=geo_q_w, q_b=geo_q_b, cross=cross_block(width),
                 ln_g=geo_ln_g, ln_b=geo_ln_b, out_w=geo_out_w, out_b=geo_out_b),
    )


def _prep_self(p, heads):
    # torch qkv layout is per-head interleaved [q_h | k_h | v_h] (reshape(B,N,H,3C)+split)
    W = p["attn_proj_w"].shape[0]
    C = W // heads
    scale = 1.0 / math.sqrt(C)                     # fold full 1/sqrt(C) into q
    qkv_w = p["qkv_w"].reshape(W, heads, 3, C)
    qkv_b = p["qkv_b"].reshape(heads, 3, C)
    wq = qkv_w[:, :, 0, :].reshape(W, W) * scale
    wk = qkv_w[:, :, 1, :].reshape(W, W)
    wv = qkv_w[:, :, 2, :].reshape(W, W)
    qb = qkv_b[:, 0, :].reshape(W) * scale
    kb = qkv_b[:, 1, :].reshape(W)
    vb = qkv_b[:, 2, :].reshape(W)
    bf = jnp.bfloat16
    return dict(
        ln1_g=p["ln1_g"].reshape(1, W), ln1_b=p["ln1_b"].reshape(1, W),
        wqT=wq.T.astype(bf), qb=qb.reshape(W, 1),
        wkT=wk.T.astype(bf), kb=kb.reshape(W, 1),
        wvT=wv.T.astype(bf), vb=vb.reshape(W, 1),
        projw=p["attn_proj_w"].reshape(heads, C, W).astype(bf),
        projb=p["attn_proj_b"].reshape(1, W),
        ln2_g=p["ln2_g"].reshape(1, W), ln2_b=p["ln2_b"].reshape(1, W),
        fcw=p["mlp"]["fc_w"].astype(bf), fcb=p["mlp"]["fc_b"].reshape(1, -1),
        fpw=p["mlp"]["proj_w"].astype(bf), fpb=p["mlp"]["proj_b"].reshape(1, -1),
    )


def _prep_cross(p, heads):
    W = p["attn_proj_w"].shape[0]
    C = W // heads
    scale = 1.0 / math.sqrt(C)
    kv_w = p["kv_w"].reshape(W, heads, 2, C)        # per-head interleaved [k_h | v_h]
    kv_b = p["kv_b"].reshape(heads, 2, C)
    wk = kv_w[:, :, 0, :].reshape(W, W)
    wv = kv_w[:, :, 1, :].reshape(W, W)
    kb = kv_b[:, 0, :].reshape(W)
    vb = kv_b[:, 1, :].reshape(W)
    wq = p["q_w"] * scale
    qb = p["q_b"] * scale
    bf = jnp.bfloat16
    return dict(
        ln1_g=p["ln1_g"].reshape(1, W), ln1_b=p["ln1_b"].reshape(1, W),
        ln2_g=p["ln2_g"].reshape(1, W), ln2_b=p["ln2_b"].reshape(1, W),
        wqT=wq.T.astype(bf), qb=qb.reshape(W, 1),
        wkT=wk.T.astype(bf), kb=kb.reshape(W, 1),
        wvT=wv.T.astype(bf), vb=vb.reshape(W, 1),
        projw=p["attn_proj_w"].reshape(heads, C, W).astype(bf),
        projb=p["attn_proj_b"].reshape(1, W),
        ln3_g=p["ln3_g"].reshape(1, W), ln3_b=p["ln3_b"].reshape(1, W),
        fcw=p["mlp"]["fc_w"].astype(bf), fcb=p["mlp"]["fc_b"].reshape(1, -1),
        fpw=p["mlp"]["proj_w"].astype(bf), fpb=p["mlp"]["proj_b"].reshape(1, -1),
    )


def _stack_layers(layers):
    if not layers:
        return None
    return jax.tree_util.tree_map(lambda *xs: jnp.stack(xs, axis=0), *layers)


def prepare_params(params, heads):
    """One-time repack: de-interleave qkv/kv, fold attention scale into q, transpose
    weights for the transposed-output GEMMs, stack per-layer weights, cast to bf16."""
    bf = jnp.bfloat16
    W = params["enc"]["in_w"].shape[1]
    E = params["post_kl_w"].shape[0]
    enc = params["enc"]
    geo = params["geo"]
    return dict(
        enc=dict(
            query=enc["query"],
            in_w=enc["in_w"].astype(bf), in_b=enc["in_b"],
            cross=_prep_cross(enc["cross"], heads),
            self_stack=_stack_layers([_prep_self(p, heads) for p in enc["self_layers"]]),
        ),
        kl=dict(
            mean_w=params["pre_kl_w"][:, :E].astype(bf),
            mean_b=params["pre_kl_b"][:E].reshape(1, E),
            logvar_w=params["pre_kl_w"][:, E:].astype(bf),
            logvar_b=params["pre_kl_b"][E:].reshape(1, E),
            post_w=params["post_kl_w"].astype(bf),
            post_b=params["post_kl_b"].reshape(1, W),
        ),
        dec_stack=_stack_layers([_prep_self(p, heads) for p in params["dec_layers"]]),
        geo=dict(
            q_w=geo["q_w"].astype(bf), q_b=geo["q_b"],
            cross=_prep_cross(geo["cross"], heads),
            lnp_g=geo["ln_g"].reshape(1, W), lnp_b=geo["ln_b"].reshape(1, W),
            outwT=geo["out_w"].reshape(1, W).astype(bf),
            outb=geo["out_b"].reshape(1, 1),
        ),
    )


# ----------------------------------------------------------------------------
# Main
# ----------------------------------------------------------------------------

if __name__ == "__main__":
    B, N, P = 2, 64, 32            # batch, points, volume queries
    num_latents = 16
    point_feats = 4
    embed_dim = 8
    width, heads = 32, 4
    num_enc_layers, num_dec_layers = 2, 2

    key = jax.random.PRNGKey(0)
    k_par, k_pc, k_ft, k_q, k_noise = jax.random.split(key, 5)

    params = init_params(
        k_par, num_latents=num_latents, point_feats=point_feats,
        embed_dim=embed_dim, width=width,
        num_enc_layers=num_enc_layers, num_dec_layers=num_dec_layers)
    prep = prepare_params(params, heads)   # one-time repack, outside jit

    pc = jax.random.uniform(k_pc, (B, N, 3), jnp.float32, -1.0, 1.0)
    feats = jax.random.normal(k_ft, (B, N, point_feats), jnp.float32)
    volume_queries = jax.random.uniform(k_q, (B, P, 3), jnp.float32, -1.0, 1.0)
    # deterministic stand-in for torch.randn_like in DiagonalGaussianDistribution.sample()
    noise = jax.random.normal(k_noise, (B, num_latents, embed_dim), jnp.float32)

    fwd = jax.jit(functools.partial(shape_as_latent_perceiver_forward,
                                    heads=heads, sample_posterior=True))
    logits, center_pos, posterior = fwd(prep, pc, feats, volume_queries, noise)
    jax.block_until_ready(logits)

    assert logits.shape == (B, P)
    assert center_pos.shape == (B, N, 3)
    assert posterior[0].shape == (B, num_latents, embed_dim)
    assert bool(jnp.all(jnp.isfinite(logits)))
    print("KERNEL_OK")
</pallas_src>

<mosaic_0001>
module attributes {stable_mosaic.version = 11 : i64} {
  func.func @_linear_kernel(%arg0: i32, %arg1: memref<128x55xf32, #tpu.memory_space<vmem>>, %arg2: memref<55x32xbf16, #tpu.memory_space<vmem>>, %arg3: memref<1x32xf32, #tpu.memory_space<vmem>>, %arg4: memref<128x32xf32, #tpu.memory_space<vmem>>) attributes {dimension_semantics = [#tpu.dimension_semantics<parallel>], iteration_bounds = array<i64: 1>, scalar_prefetch = 0 : i64, scratch_operands = 0 : i64, tpu.core_type = #tpu.core_type<tc>, window_params = [{transform_indices = @transform_0, window_bounds = array<i64: 128, 55>}, {pipeline_mode = #tpu.pipeline_mode<synchronous>, transform_indices = @transform_1, window_bounds = array<i64: 55, 32>}, {pipeline_mode = #tpu.pipeline_mode<synchronous>, transform_indices = @transform_2, window_bounds = array<i64: 1, 32>}, {transform_indices = @transform_3, window_bounds = array<i64: 128, 32>}]} {
    %c0 = arith.constant 0 : index
    %c0_0 = arith.constant 0 : index
    %0 = vector.load %arg1[%c0, %c0_0] : memref<128x55xf32, #tpu.memory_space<vmem>>, vector<128x55xf32>
    %1 = arith.truncf %0 : vector<128x55xf32> to vector<128x55xbf16>
    %c0_1 = arith.constant 0 : index
    %c0_2 = arith.constant 0 : index
    %2 = vector.load %arg2[%c0_1, %c0_2] : memref<55x32xbf16, #tpu.memory_space<vmem>>, vector<55x32xbf16>
    %cst = arith.constant dense<0.000000e+00> : vector<128x32xf32>
    %3 = tpu.matmul %1, %2, %cst {dimension_numbers = #tpu.dot_dimension_numbers<[1], [0], [0], [1], [0, 0, 1, 1], [], []>} : vector<128x55xbf16>, vector<55x32xbf16>, vector<128x32xf32> -> vector<128x32xf32>
    %c0_3 = arith.constant 0 : index
    %c0_4 = arith.constant 0 : index
    %4 = vector.load %arg3[%c0_3, %c0_4] : memref<1x32xf32, #tpu.memory_space<vmem>>, vector<1x32xf32>
    %5 = vector.broadcast %4 : vector<1x32xf32> to vector<128x32xf32>
    %6 = arith.addf %3, %5 : vector<128x32xf32>
    %c0_5 = arith.constant 0 : index
    %c0_6 = arith.constant 0 : index
    %7 = vector.load %arg4[%c0_5, %c0_6] : memref<128x32xf32, #tpu.memory_space<vmem>>, vector<128x32xf32>
    tpu.vector_store %arg4[%c0_5, %c0_6], %6 {strides = array<i32>} : memref<128x32xf32, #tpu.memory_space<vmem>>, vector<128x32xf32>,
    return
  }
  func.func @transform_0(%arg0: i32) -> (i32, i32) {
    %c0_i32 = arith.constant 0 : i32
    %c0_i32_0 = arith.constant 0 : i32
    return %arg0, %c0_i32 : i32, i32
  }
  func.func @transform_1(%arg0: i32) -> (i32, i32) {
    %c0_i32 = arith.constant 0 : i32
    %c0_i32_0 = arith.constant 0 : i32
    %c0_i32_1 = arith.constant 0 : i32
    return %c0_i32, %c0_i32_0 : i32, i32
  }
  func.func @transform_2(%arg0: i32) -> (i32, i32) {
    %c0_i32 = arith.constant 0 : i32
    %c0_i32_0 = arith.constant 0 : i32
    %c0_i32_1 = arith.constant 0 : i32
    return %c0_i32, %c0_i32_0 : i32, i32
  }
  func.func @transform_3(%arg0: i32) -> (i32, i32) {
    %c0_i32 = arith.constant 0 : i32
    %c0_i32_0 = arith.constant 0 : i32
    return %arg0, %c0_i32 : i32, i32
  }
}

module attributes {stable_mosaic.version = 11 : i64} {
  func.func @_cross_block_kernel(%arg0: i32, %arg1: memref<1x16x32xf32, #tpu.memory_space<vmem>>, %arg2: memref<1x64x32xf32, #tpu.memory_space<vmem>>, %arg3: memref<1x32xf32, #tpu.memory_space<vmem>>, %arg4: memref<1x32xf32, #tpu.memory_space<vmem>>, %arg5: memref<1x32xf32, #tpu.memory_space<vmem>>, %arg6: memref<1x32xf32, #tpu.memory_space<vmem>>, %arg7: memref<32x32xbf16, #tpu.memory_space<vmem>>, %arg8: memref<32x1xf32, #tpu.memory_space<vmem>>, %arg9: memref<32x32xbf16, #tpu.memory_space<vmem>>, %arg10: memref<32x1xf32, #tpu.memory_space<vmem>>, %arg11: memref<32x32xbf16, #tpu.memory_space<vmem>>, %arg12: memref<32x1xf32, #tpu.memory_space<vmem>>, %arg13: memref<4x8x32xbf16, #tpu.memory_space<vmem>>, %arg14: memref<1x32xf32, #tpu.memory_space<vmem>>, %arg15: memref<1x32xf32, #tpu.memory_space<vmem>>, %arg16: memref<1x32xf32, #tpu.memory_space<vmem>>, %arg17: memref<32x128xbf16, #tpu.memory_space<vmem>>, %arg18: memref<1x128xf32, #tpu.memory_space<vmem>>, %arg19: memref<128x32xbf16, #tpu.memory_space<vmem>>, %arg20: memref<1x32xf32, #tpu.memory_space<vmem>>, %arg21: memref<1x16x32xf32, #tpu.memory_space<vmem>>) attributes {dimension_semantics = [#tpu.dimension_semantics<parallel>], iteration_bounds = array<i64: 2>, scalar_prefetch = 0 : i64, scratch_operands = 0 : i64, tpu.core_type = #tpu.core_type<tc>, window_params = [{transform_indices = @transform_0, window_bounds = array<i64: 1, 16, 32>}, {transform_indices = @transform_1, window_bounds = array<i64: 1, 64, 32>}, {pipeline_mode = #tpu.pipeline_mode<synchronous>, transform_indices = @transform_2, window_bounds = array<i64: 1, 32>}, {pipeline_mode = #tpu.pipeline_mode<synchronous>, transform_indices = @transform_3, window_bounds = array<i64: 1, 32>}, {pipeline_mode = #tpu.pipeline_mode<synchronous>, transform_indices = @transform_4, window_bounds = array<i64: 1, 32>}, {pipeline_mode = #tpu.pipeline_mode<synchronous>, transform_indices = @transform_5, window_bounds = array<i64: 1, 32>}, {pipeline_mode = #tpu.pipeline_mode<synchronous>, transform_indices = @transform_6, window_bounds = array<i64: 32, 32>}, {pipeline_mode = #tpu.pipeline_mode<synchronous>, transform_indices = @transform_7, window_bounds = array<i64: 32, 1>}, {pipeline_mode = #tpu.pipeline_mode<synchronous>, transform_indices = @transform_8, window_bounds = array<i64: 32, 32>}, {pipeline_mode = #tpu.pipeline_mode<synchronous>, transform_indices = @transform_9, window_bounds = array<i64: 32, 1>}, {pipeline_mode = #tpu.pipeline_mode<synchronous>, transform_indices = @transform_10, window_bounds = array<i64: 32, 32>}, {pipeline_mode = #tpu.pipeline_mode<synchronous>, transform_indices = @transform_11, window_bounds = array<i64: 32, 1>}, {pipeline_mode = #tpu.pipeline_mode<synchronous>, transform_indices = @transform_12, window_bounds = array<i64: 4, 8, 32>}, {pipeline_mode = #tpu.pipeline_mode<synchronous>, transform_indices = @transform_13, window_bounds = array<i64: 1, 32>}, {pipeline_mode = #tpu.pipeline_mode<synchronous>, transform_indices = @transform_14, window_bounds = array<i64: 1, 32>}, {pipeline_mode = #tpu.pipeline_mode<synchronous>, transform_indices = @transform_15, window_bounds = array<i64: 1, 32>}, {pipeline_mode = #tpu.pipeline_mode<synchronous>, transform_indices = @transform_16, window_bounds = array<i64: 32, 128>}, {pipeline_mode = #tpu.pipeline_mode<synchronous>, transform_indices = @transform_17, window_bounds = array<i64: 1, 128>}, {pipeline_mode = #tpu.pipeline_mode<synchronous>, transform_indices = @transform_18, window_bounds = array<i64: 128, 32>}, {pipeline_mode = #tpu.pipeline_mode<synchronous>, transform_indices = @transform_19, window_bounds = array<i64: 1, 32>}, {transform_indices = @transform_20, window_bounds = array<i64: 1, 16, 32>}]} {
    %c0 = arith.constant 0 : index
    %c0_0 = arith.constant 0 : index
    %c0_1 = arith.constant 0 : index
    %0 = vector.load %arg1[%c0, %c0_0, %c0_1] : memref<1x16x32xf32, #tpu.memory_space<vmem>>, vector<1x16x32xf32>
    %1 = vector.shape_cast %0 : vector<1x16x32xf32> to vector<16x32xf32>
    %c0_2 = arith.constant 0 : index
    %c0_3 = arith.constant 0 : index
    %c0_4 = arith.constant 0 : index
    %2 = vector.load %arg2[%c0_2, %c0_3, %c0_4] : memref<1x64x32xf32, #tpu.memory_space<vmem>>, vector<1x64x32xf32>
    %3 = vector.shape_cast %2 : vector<1x64x32xf32> to vector<64x32xf32>
    %c0_5 = arith.constant 0 : index
    %c0_6 = arith.constant 0 : index
    %4 = vector.load %arg3[%c0_5, %c0_6] : memref<1x32xf32, #tpu.memory_space<vmem>>, vector<1x32xf32>
    %c0_7 = arith.constant 0 : index
    %c0_8 = arith.constant 0 : index
    %5 = vector.load %arg4[%c0_7, %c0_8] : memref<1x32xf32, #tpu.memory_space<vmem>>, vector<1x32xf32>
    %cst = arith.constant dense<0.000000e+00> : vector<16xf32>
    %6 = vector.multi_reduction <add>, %1, %cst [1] : vector<16x32xf32> to vector<16xf32>
    %7 = vector.shape_cast %6 : vector<16xf32> to vector<16x1xf32>
    %cst_9 = arith.constant 3.200000e+01 : f32
    %8 = vector.broadcast %cst_9 : f32 to vector<16x1xf32>
    %9 = arith.divf %7, %8 : vector<16x1xf32>
    %10 = vector.broadcast %9 : vector<16x1xf32> to vector<16x32xf32>
    %11 = arith.subf %1, %10 : vector<16x32xf32>
    %12 = arith.mulf %11, %11 : vector<16x32xf32>
    %cst_10 = arith.constant dense<0.000000e+00> : vector<16xf32>
    %13 = vector.multi_reduction <add>, %12, %cst_10 [1] : vector<16x32xf32> to vector<16xf32>
    %14 = vector.shape_cast %13 : vector<16xf32> to vector<16x1xf32>
    %cst_11 = arith.constant 3.200000e+01 : f32
    %15 = vector.broadcast %cst_11 : f32 to vector<16x1xf32>
    %16 = arith.divf %14, %15 : vector<16x1xf32>
    %cst_12 = arith.constant 9.99999974E-6 : f32
    %17 = vector.broadcast %cst_12 : f32 to vector<16x1xf32>
    %18 = arith.addf %16, %17 : vector<16x1xf32>
    %19 = math.rsqrt %18 : vector<16x1xf32>
    %20 = vector.broadcast %19 : vector<16x1xf32> to vector<16x32xf32>
    %21 = arith.mulf %11, %20 : vector<16x32xf32>
    %22 = vector.broadcast %4 : vector<1x32xf32> to vector<16x32xf32>
    %23 = arith.mulf %21, %22 : vector<16x32xf32>
    %24 = vector.broadcast %5 : vector<1x32xf32> to vector<16x32xf32>
    %25 = arith.addf %23, %24 : vector<16x32xf32>
    %c0_13 = arith.constant 0 : index
    %c0_14 = arith.constant 0 : index
    %26 = vector.load %arg5[%c0_13, %c0_14] : memref<1x32xf32, #tpu.memory_space<vmem>>, vector<1x32xf32>
    %c0_15 = arith.constant 0 : index
    %c0_16 = arith.constant 0 : index
    %27 = vector.load %arg6[%c0_15, %c0_16] : memref<1x32xf32, #tpu.memory_space<vmem>>, vector<1x32xf32>
    %cst_17 = arith.constant dense<0.000000e+00> : vector<64xf32>
    %28 = vector.multi_reduction <add>, %3, %cst_17 [1] : vector<64x32xf32> to vector<64xf32>
    %29 = vector.shape_cast %28 : vector<64xf32> to vector<64x1xf32>
    %cst_18 = arith.constant 3.200000e+01 : f32
    %30 = vector.broadcast %cst_18 : f32 to vector<64x1xf32>
    %31 = arith.divf %29, %30 : vector<64x1xf32>
    %32 = vector.broadcast %31 : vector<64x1xf32> to vector<64x32xf32>
    %33 = arith.subf %3, %32 : vector<64x32xf32>
    %34 = arith.mulf %33, %33 : vector<64x32xf32>
    %cst_19 = arith.constant dense<0.000000e+00> : vector<64xf32>
    %35 = vector.multi_reduction <add>, %34, %cst_19 [1] : vector<64x32xf32> to vector<64xf32>
    %36 = vector.shape_cast %35 : vector<64xf32> to vector<64x1xf32>
    %cst_20 = arith.constant 3.200000e+01 : f32
    %37 = vector.broadcast %cst_20 : f32 to vector<64x1xf32>
    %38 = arith.divf %36, %37 : vector<64x1xf32>
    %cst_21 = arith.constant 9.99999974E-6 : f32
    %39 = vector.broadcast %cst_21 : f32 to vector<64x1xf32>
    %40 = arith.addf %38, %39 : vector<64x1xf32>
    %41 = math.rsqrt %40 : vector<64x1xf32>
    %42 = vector.broadcast %41 : vector<64x1xf32> to vector<64x32xf32>
    %43 = arith.mulf %33, %42 : vector<64x32xf32>
    %44 = vector.broadcast %26 : vector<1x32xf32> to vector<64x32xf32>
    %45 = arith.mulf %43, %44 : vector<64x32xf32>
    %46 = vector.broadcast %27 : vector<1x32xf32> to vector<64x32xf32>
    %47 = arith.addf %45, %46 : vector<64x32xf32>
    %c0_22 = arith.constant 0 : index
    %c0_23 = arith.constant 0 : index
    %48 = vector.load %arg7[%c0_22, %c0_23] : memref<32x32xbf16, #tpu.memory_space<vmem>>, vector<32x32xbf16>
    %c0_24 = arith.constant 0 : index
    %c0_25 = arith.constant 0 : index
    %49 = vector.load %arg8[%c0_24, %c0_25] : memref<32x1xf32, #tpu.memory_space<vmem>>, vector<32x1xf32>
    %c0_26 = arith.constant 0 : index
    %c0_27 = arith.constant 0 : index
    %50 = vector.load %arg9[%c0_26, %c0_27] : memref<32x32xbf16, #tpu.memory_space<vmem>>, vector<32x32xbf16>
    %c0_28 = arith.constant 0 : index
    %c0_29 = arith.constant 0 : index
    %51 = vector.load %arg10[%c0_28, %c0_29] : memref<32x1xf32, #tpu.memory_space<vmem>>, vector<32x1xf32>
    %c0_30 = arith.constant 0 : index
    %c0_31 = arith.constant 0 : index
    %52 = vector.load %arg11[%c0_30, %c0_31] : memref<32x32xbf16, #tpu.memory_space<vmem>>, vector<32x32xbf16>
    %c0_32 = arith.constant 0 : index
    %c0_33 = arith.constant 0 : index
    %53 = vector.load %arg12[%c0_32, %c0_33] : memref<32x1xf32, #tpu.memory_space<vmem>>, vector<32x1xf32>
    %c0_34 = arith.constant 0 : index
    %c0_35 = arith.constant 0 : index
    %c0_36 = arith.constant 0 : index
    %54 = vector.load %arg13[%c0_34, %c0_35, %c0_36] : memref<4x8x32xbf16, #tpu.memory_space<vmem>>, vector<4x8x32xbf16>
    %c0_37 = arith.constant 0 : index
    %c0_38 = arith.constant 0 : index
    %55 = vector.load %arg14[%c0_37, %c0_38] : memref<1x32xf32, #tpu.memory_space<vmem>>, vector<1x32xf32>
    %56 = arith.truncf %25 : vector<16x32xf32> to vector<16x32xbf16>
    %57 = arith.truncf %47 : vector<64x32xf32> to vector<64x32xbf16>
    %cst_39 = arith.constant dense<0.000000e+00> : vector<32x16xf32>
    %58 = tpu.matmul %48, %56, %cst_39 {dimension_numbers = #tpu.dot_dimension_numbers<[1], [1], [0], [0], [0, 0, 1, 0], [], []>} : vector<32x32xbf16>, vector<16x32xbf16>, vector<32x16xf32> -> vector<32x16xf32>
    %59 = vector.broadcast %49 : vector<32x1xf32> to vector<32x16xf32>
    %60 = arith.addf %58, %59 : vector<32x16xf32>
    %cst_40 = arith.constant dense<0.000000e+00> : vector<32x64xf32>
    %61 = tpu.matmul %50, %57, %cst_40 {dimension_numbers = #tpu.dot_dimension_numbers<[1], [1], [0], [0], [0, 0, 1, 0], [], []>} : vector<32x32xbf16>, vector<64x32xbf16>, vector<32x64xf32> -> vector<32x64xf32>
    %62 = vector.broadcast %51 : vector<32x1xf32> to vector<32x64xf32>
    %63 = arith.addf %61, %62 : vector<32x64xf32>
    %cst_41 = arith.constant dense<0.000000e+00> : vector<32x64xf32>
    %64 = tpu.matmul %52, %57, %cst_41 {dimension_numbers = #tpu.dot_dimension_numbers<[1], [1], [0], [0], [0, 0, 1, 0], [], []>} : vector<32x32xbf16>, vector<64x32xbf16>, vector<32x64xf32> -> vector<32x64xf32>
    %65 = vector.broadcast %53 : vector<32x1xf32> to vector<32x64xf32>
    %66 = arith.addf %64, %65 : vector<32x64xf32>
    %67 = vector.shape_cast %60 : vector<32x16xf32> to vector<4x8x16xf32>
    %68 = vector.shape_cast %63 : vector<32x64xf32> to vector<4x8x64xf32>
    %69 = arith.truncf %68 : vector<4x8x64xf32> to vector<4x8x64xbf16>
    %70 = vector.shape_cast %66 : vector<32x64xf32> to vector<4x8x64xf32>
    %71 = arith.truncf %70 : vector<4x8x64xf32> to vector<4x8x64xbf16>
    %72 = vector.extract_strided_slice %67 {offsets = [0, 0, 0], sizes = [1, 8, 16], strides = [1, 1, 1]} : vector<4x8x16xf32> to vector<1x8x16xf32>
    %73 = vector.shape_cast %72 : vector<1x8x16xf32> to vector<8x16xf32>
    %74 = tpu.transpose %73, [1, 0] : vector<8x16xf32> -> vector<16x8xf32>
    %75 = vector.extract_strided_slice %67 {offsets = [1, 0, 0], sizes = [1, 8, 16], strides = [1, 1, 1]} : vector<4x8x16xf32> to vector<1x8x16xf32>
    %76 = vector.shape_cast %75 : vector<1x8x16xf32> to vector<8x16xf32>
    %77 = tpu.transpose %76, [1, 0] : vector<8x16xf32> -> vector<16x8xf32>
    %78 = vector.extract_strided_slice %67 {offsets = [2, 0, 0], sizes = [1, 8, 16], strides = [1, 1, 1]} : vector<4x8x16xf32> to vector<1x8x16xf32>
    %79 = vector.shape_cast %78 : vector<1x8x16xf32> to vector<8x16xf32>
    %80 = tpu.transpose %79, [1, 0] : vector<8x16xf32> -> vector<16x8xf32>
    %81 = vector.extract_strided_slice %67 {offsets = [3, 0, 0], sizes = [1, 8, 16], strides = [1, 1, 1]} : vector<4x8x16xf32> to vector<1x8x16xf32>
    %82 = vector.shape_cast %81 : vector<1x8x16xf32> to vector<8x16xf32>
    %83 = tpu.transpose %82, [1, 0] : vector<8x16xf32> -> vector<16x8xf32>
    %84 = vector.shape_cast %74 : vector<16x8xf32> to vector<1x16x8xf32>
    %85 = vector.shape_cast %77 : vector<16x8xf32> to vector<1x16x8xf32>
    %86 = vector.shape_cast %80 : vector<16x8xf32> to vector<1x16x8xf32>
    %87 = vector.shape_cast %83 : vector<16x8xf32> to vector<1x16x8xf32>
    %88 = tpu.concatenate %84, %85, %86, %87 in 0 : vector<1x16x8xf32>, vector<1x16x8xf32>, vector<1x16x8xf32>, vector<1x16x8xf32> -> vector<4x16x8xf32>
    %89 = arith.truncf %88 : vector<4x16x8xf32> to vector<4x16x8xbf16>
    "tpu.trace_start"() <{level = 10 : i32, message = "htc,hcs->hts"}> : () -> ()
    %cst_42 = arith.constant dense<0.000000e+00> : vector<4x16x64xf32>
    %90 = tpu.matmul %89, %69, %cst_42 {dimension_numbers = #tpu.dot_dimension_numbers<[2], [1], [1], [2], [0, 0, 0, 1, 1, 2], [0], [0]>} : vector<4x16x8xbf16>, vector<4x8x64xbf16>, vector<4x16x64xf32> -> vector<4x16x64xf32>
    "tpu.trace_stop"() : () -> ()
    %cst_43 = arith.constant dense<0xFF800000> : vector<4x16xf32>
    %91 = vector.multi_reduction <maximumf>, %90, %cst_43 [2] : vector<4x16x64xf32> to vector<4x16xf32>
    %92 = vector.shape_cast %91 : vector<4x16xf32> to vector<4x16x1xf32>
    %93 = vector.broadcast %92 : vector<4x16x1xf32> to vector<4x16x64xf32>
    %94 = arith.subf %90, %93 : vector<4x16x64xf32>
    %95 = math.exp %94 : vector<4x16x64xf32>
    %cst_44 = arith.constant dense<0.000000e+00> : vector<4x16xf32>
    %96 = vector.multi_reduction <add>, %95, %cst_44 [2] : vector<4x16x64xf32> to vector<4x16xf32>
    %97 = vector.shape_cast %96 : vector<4x16xf32> to vector<4x16x1xf32>
    %98 = tpu.reciprocal %97 {approx = true} : vector<4x16x1xf32> -> vector<4x16x1xf32>
    %99 = vector.broadcast %98 : vector<4x16x1xf32> to vector<4x16x64xf32>
    %100 = arith.mulf %95, %99 : vector<4x16x64xf32>
    %101 = arith.truncf %100 : vector<4x16x64xf32> to vector<4x16x64xbf16>
    "tpu.trace_start"() <{level = 10 : i32, message = "hts,hcs->htc"}> : () -> ()
    %cst_45 = arith.constant dense<0.000000e+00> : vector<4x16x8xf32>
    %102 = tpu.matmul %101, %71, %cst_45 {dimension_numbers = #tpu.dot_dimension_numbers<[2], [2], [1], [1], [0, 0, 0, 1, 1, 1], [0], [0]>} : vector<4x16x64xbf16>, vector<4x8x64xbf16>, vector<4x16x8xf32> -> vector<4x16x8xf32>
    "tpu.trace_stop"() : () -> ()
    %103 = arith.truncf %102 : vector<4x16x8xf32> to vector<4x16x8xbf16>
    %cst_46 = arith.constant 0.000000e+00 : f32
    %104 = vector.broadcast %cst_46 : f32 to vector<16x32xf32>
    %105 = vector.extract_strided_slice %103 {offsets = [0, 0, 0], sizes = [1, 16, 8], strides = [1, 1, 1]} : vector<4x16x8xbf16> to vector<1x16x8xbf16>
    %106 = vector.shape_cast %105 : vector<1x16x8xbf16> to vector<16x8xbf16>
    %107 = vector.extract_strided_slice %54 {offsets = [0, 0, 0], sizes = [1, 8, 32], strides = [1, 1, 1]} : vector<4x8x32xbf16> to vector<1x8x32xbf16>
    %108 = vector.shape_cast %107 : vector<1x8x32xbf16> to vector<8x32xbf16>
    %cst_47 = arith.constant dense<0.000000e+00> : vector<16x32xf32>
    %109 = tpu.matmul %106, %108, %cst_47 {dimension_numbers = #tpu.dot_dimension_numbers<[1], [0], [0], [1], [0, 0, 1, 1], [], []>} : vector<16x8xbf16>, vector<8x32xbf16>, vector<16x32xf32> -> vector<16x32xf32>
    %110 = arith.addf %104, %109 : vector<16x32xf32>
    %111 = vector.extract_strided_slice %103 {offsets = [1, 0, 0], sizes = [1, 16, 8], strides = [1, 1, 1]} : vector<4x16x8xbf16> to vector<1x16x8xbf16>
    %112 = vector.shape_cast %111 : vector<1x16x8xbf16> to vector<16x8xbf16>
    %113 = vector.extract_strided_slice %54 {offsets = [1, 0, 0], sizes = [1, 8, 32], strides = [1, 1, 1]} : vector<4x8x32xbf16> to vector<1x8x32xbf16>
    %114 = vector.shape_cast %113 : vector<1x8x32xbf16> to vector<8x32xbf16>
    %cst_48 = arith.constant dense<0.000000e+00> : vector<16x32xf32>
    %115 = tpu.matmul %112, %114, %cst_48 {dimension_numbers = #tpu.dot_dimension_numbers<[1], [0], [0], [1], [0, 0, 1, 1], [], []>} : vector<16x8xbf16>, vector<8x32xbf16>, vector<16x32xf32> -> vector<16x32xf32>
    %116 = arith.addf %110, %115 : vector<16x32xf32>
    %117 = vector.extract_strided_slice %103 {offsets = [2, 0, 0], sizes = [1, 16, 8], strides = [1, 1, 1]} : vector<4x16x8xbf16> to vector<1x16x8xbf16>
    %118 = vector.shape_cast %117 : vector<1x16x8xbf16> to vector<16x8xbf16>
    %119 = vector.extract_strided_slice %54 {offsets = [2, 0, 0], sizes = [1, 8, 32], strides = [1, 1, 1]} : vector<4x8x32xbf16> to vector<1x8x32xbf16>
    %120 = vector.shape_cast %119 : vector<1x8x32xbf16> to vector<8x32xbf16>
    %cst_49 = arith.constant dense<0.000000e+00> : vector<16x32xf32>
    %121 = tpu.matmul %118, %120, %cst_49 {dimension_numbers = #tpu.dot_dimension_numbers<[1], [0], [0], [1], [0, 0, 1, 1], [], []>} : vector<16x8xbf16>, vector<8x32xbf16>, vector<16x32xf32> -> vector<16x32xf32>
    %122 = arith.addf %116, %121 : vector<16x32xf32>
    %123 = vector.extract_strided_slice %103 {offsets = [3, 0, 0], sizes = [1, 16, 8], strides = [1, 1, 1]} : vector<4x16x8xbf16> to vector<1x16x8xbf16>
    %124 = vector.shape_cast %123 : vector<1x16x8xbf16> to vector<16x8xbf16>
    %125 = vector.extract_strided_slice %54 {offsets = [3, 0, 0], sizes = [1, 8, 32], strides = [1, 1, 1]} : vector<4x8x32xbf16> to vector<1x8x32xbf16>
    %126 = vector.shape_cast %125 : vector<1x8x32xbf16> to vector<8x32xbf16>
    %cst_50 = arith.constant dense<0.000000e+00> : vector<16x32xf32>
    %127 = tpu.matmul %124, %126, %cst_50 {dimension_numbers = #tpu.dot_dimension_numbers<[1], [0], [0], [1], [0, 0, 1, 1], [], []>} : vector<16x8xbf16>, vector<8x32xbf16>, vector<16x32xf32> -> vector<16x32xf32>
    %128 = arith.addf %122, %127 : vector<16x32xf32>
    %129 = vector.broadcast %55 : vector<1x32xf32> to vector<16x32xf32>
    %130 = arith.addf %128, %129 : vector<16x32xf32>
    %131 = arith.addf %1, %130 : vector<16x32xf32>
    %c0_51 = arith.constant 0 : index
    %c0_52 = arith.constant 0 : index
    %132 = vector.load %arg15[%c0_51, %c0_52] : memref<1x32xf32, #tpu.memory_space<vmem>>, vector<1x32xf32>
    %c0_53 = arith.constant 0 : index
    %c0_54 = arith.constant 0 : index
    %133 = vector.load %arg16[%c0_53, %c0_54] : memref<1x32xf32, #tpu.memory_space<vmem>>, vector<1x32xf32>
    %c0_55 = arith.constant 0 : index
    %c0_56 = arith.constant 0 : index
    %134 = vector.load %arg17[%c0_55, %c0_56] : memref<32x128xbf16, #tpu.memory_space<vmem>>, vector<32x128xbf16>
    %c0_57 = arith.constant 0 : index
    %c0_58 = arith.constant 0 : index
    %135 = vector.load %arg18[%c0_57, %c0_58] : memref<1x128xf32, #tpu.memory_space<vmem>>, vector<1x128xf32>
    %c0_59 = arith.constant 0 : index
    %c0_60 = arith.constant 0 : index
    %136 = vector.load %arg19[%c0_59, %c0_60] : memref<128x32xbf16, #tpu.memory_space<vmem>>, vector<128x32xbf16>
    %c0_61 = arith.constant 0 : index
    %c0_62 = arith.constant 0 : index
    %137 = vector.load %arg20[%c0_61, %c0_62] : memref<1x32xf32, #tpu.memory_space<vmem>>, vector<1x32xf32>
    %cst_63 = arith.constant dense<0.000000e+00> : vector<16xf32>
    %138 = vector.multi_reduction <add>, %131, %cst_63 [1] : vector<16x32xf32> to vector<16xf32>
    %139 = vector.shape_cast %138 : vector<16xf32> to vector<16x1xf32>
    %cst_64 = arith.constant 3.200000e+01 : f32
    %140 = vector.broadcast %cst_64 : f32 to vector<16x1xf32>
    %141 = arith.divf %139, %140 : vector<16x1xf32>
    %142 = vector.broadcast %141 : vector<16x1xf32> to vector<16x32xf32>
    %143 = arith.subf %131, %142 : vector<16x32xf32>
    %144 = arith.mulf %143, %143 : vector<16x32xf32>
    %cst_65 = arith.constant dense<0.000000e+00> : vector<16xf32>
    %145 = vector.multi_reduction <add>, %144, %cst_65 [1] : vector<16x32xf32> to vector<16xf32>
    %146 = vector.shape_cast %145 : vector<16xf32> to vector<16x1xf32>
    %cst_66 = arith.constant 3.200000e+01 : f32
    %147 = vector.broadcast %cst_66 : f32 to vector<16x1xf32>
    %148 = arith.divf %146, %147 : vector<16x1xf32>
    %cst_67 = arith.constant 9.99999974E-6 : f32
    %149 = vector.broadcast %cst_67 : f32 to vector<16x1xf32>
    %150 = arith.addf %148, %149 : vector<16x1xf32>
    %151 = math.rsqrt %150 : vector<16x1xf32>
    %152 = vector.broadcast %151 : vector<16x1xf32> to vector<16x32xf32>
    %153 = arith.mulf %143, %152 : vector<16x32xf32>
    %154 = vector.broadcast %132 : vector<1x32xf32> to vector<16x32xf32>
    %155 = arith.mulf %153, %154 : vector<16x32xf32>
    %156 = vector.broadcast %133 : vector<1x32xf32> to vector<16x32xf32>
    %157 = arith.addf %155, %156 : vector<16x32xf32>
    %158 = arith.truncf %157 : vector<16x32xf32> to vector<16x32xbf16>
    %cst_68 = arith.constant dense<0.000000e+00> : vector<16x128xf32>
    %159 = tpu.matmul %158, %134, %cst_68 {dimension_numbers = #tpu.dot_dimension_numbers<[1], [0], [0], [1], [0, 0, 1, 1], [], []>} : vector<16x32xbf16>, vector<32x128xbf16>, vector<16x128xf32> -> vector<16x128xf32>
    %160 = vector.broadcast %135 : vector<1x128xf32> to vector<16x128xf32>
    %161 = arith.addf %159, %160 : vector<16x128xf32>
    %cst_69 = arith.constant 5.000000e-01 : f32
    %162 = vector.broadcast %cst_69 : f32 to vector<16x128xf32>
    %163 = arith.mulf %162, %161 : vector<16x128xf32>
    %cst_70 = arith.constant 0.707106769 : f32
    %164 = vector.broadcast %cst_70 : f32 to vector<16x128xf32>
    %165 = arith.mulf %161, %164 : vector<16x128xf32>
    %166 = math.absf %165 : vector<16x128xf32>
    %cst_71 = arith.constant 0.327591091 : f32
    %167 = vector.broadcast %cst_71 : f32 to vector<16x128xf32>
    %168 = arith.mulf %167, %166 : vector<16x128xf32>
    %cst_72 = arith.constant 1.000000e+00 : f32
    %169 = vector.broadcast %cst_72 : f32 to vector<16x128xf32>
    %170 = arith.addf %169, %168 : vector<16x128xf32>
    %171 = tpu.reciprocal %170 {approx = true} : vector<16x128xf32> -> vector<16x128xf32>
    %cst_73 = arith.constant 1.06140542 : f32
    %172 = vector.broadcast %cst_73 : f32 to vector<16x128xf32>
    %173 = arith.mulf %172, %171 : vector<16x128xf32>
    %cst_74 = arith.constant -1.45315206 : f32
    %174 = vector.broadcast %cst_74 : f32 to vector<16x128xf32>
    %175 = arith.addf %173, %174 : vector<16x128xf32>
    %176 = arith.mulf %175, %171 : vector<16x128xf32>
    %cst_75 = arith.constant 1.42141378 : f32
    %177 = vector.broadcast %cst_75 : f32 to vector<16x128xf32>
    %178 = arith.addf %176, %177 : vector<16x128xf32>
    %179 = arith.mulf %178, %171 : vector<16x128xf32>
    %cst_76 = arith.constant -0.284496725 : f32
    %180 = vector.broadcast %cst_76 : f32 to vector<16x128xf32>
    %181 = arith.addf %179, %180 : vector<16x128xf32>
    %182 = arith.mulf %181, %171 : vector<16x128xf32>
    %cst_77 = arith.constant 0.254829586 : f32
    %183 = vector.broadcast %cst_77 : f32 to vector<16x128xf32>
    %184 = arith.addf %182, %183 : vector<16x128xf32>
    %185 = arith.mulf %184, %171 : vector<16x128xf32>
    %cst_78 = arith.constant 0.000000e+00 : f32
    %186 = vector.broadcast %cst_78 : f32 to vector<16x128xf32>
    %187 = arith.subf %186, %166 : vector<16x128xf32>
    %188 = arith.mulf %187, %166 : vector<16x128xf32>
    %189 = math.exp %188 : vector<16x128xf32>
    %190 = arith.mulf %185, %189 : vector<16x128xf32>
    %cst_79 = arith.constant 1.000000e+00 : f32
    %191 = vector.broadcast %cst_79 : f32 to vector<16x128xf32>
    %192 = arith.subf %191, %190 : vector<16x128xf32>
    %cst_80 = arith.constant 0.000000e+00 : f32
    %193 = vector.broadcast %cst_80 : f32 to vector<16x128xf32>
    %194 = arith.cmpf oge, %165, %193 : vector<16x128xf32>
    %cst_81 = arith.constant 0.000000e+00 : f32
    %195 = vector.broadcast %cst_81 : f32 to vector<16x128xf32>
    %196 = arith.subf %195, %192 : vector<16x128xf32>
    %197 = arith.select %194, %192, %196 : vector<16x128xi1>, vector<16x128xf32>
    %cst_82 = arith.constant 1.000000e+00 : f32
    %198 = vector.broadcast %cst_82 : f32 to vector<16x128xf32>
    %199 = arith.addf %198, %197 : vector<16x128xf32>
    %200 = arith.mulf %163, %199 : vector<16x128xf32>
    %201 = arith.truncf %200 : vector<16x128xf32> to vector<16x128xbf16>
    %cst_83 = arith.constant dense<0.000000e+00> : vector<16x32xf32>
    %202 = tpu.matmul %201, %136, %cst_83 {dimension_numbers = #tpu.dot_dimension_numbers<[1], [0], [0], [1], [0, 0, 1, 1], [], []>} : vector<16x128xbf16>, vector<128x32xbf16>, vector<16x32xf32> -> vector<16x32xf32>
    %203 = vector.broadcast %137 : vector<1x32xf32> to vector<16x32xf32>
    %204 = arith.addf %202, %203 : vector<16x32xf32>
    %205 = arith.addf %131, %204 : vector<16x32xf32>
    %c0_84 = arith.constant 0 : index
    %c0_85 = arith.constant 0 : index
    %c0_86 = arith.constant 0 : index
    %206 = vector.load %arg21[%c0_84, %c0_85, %c0_86] : memref<1x16x32xf32, #tpu.memory_space<vmem>>, vector<1x16x32xf32>
    %207 = vector.shape_cast %206 : vector<1x16x32xf32> to vector<16x32xf32>
    %208 = vector.shape_cast %205 : vector<16x32xf32> to vector<1x16x32xf32>
    tpu.vector_store %arg21[%c0_84, %c0_85, %c0_86], %208 {strides = array<i32>} : memref<1x16x32xf32, #tpu.memory_space<vmem>>, vector<1x16x32xf32>,
    return
  }
  func.func @transform_0(%arg0: i32) -> (i32, i32, i32) {
    %c0_i32 = arith.constant 0 : i32
    %c0_i32_0 = arith.constant 0 : i32
    %c0_i32_1 = arith.constant 0 : i32
    return %arg0, %c0_i32, %c0_i32_0 : i32, i32, i32
  }
  func.func @transform_1(%arg0: i32) -> (i32, i32, i32) {
    %c0_i32 = arith.constant 0 : i32
    %c0_i32_0 = arith.constant 0 : i32
    %c0_i32_1 = arith.constant 0 : i32
    return %arg0, %c0_i32, %c0_i32_0 : i32, i32, i32
  }
  func.func @transform_2(%arg0: i32) -> (i32, i32) {
    %c0_i32 = arith.constant 0 : i32
    %c0_i32_0 = arith.constant 0 : i32
    %c0_i32_1 = arith.constant 0 : i32
    return %c0_i32, %c0_i32_0 : i32, i32
  }
  func.func @transform_3(%arg0: i32) -> (i32, i32) {
    %c0_i32 = arith.constant 0 : i32
    %c0_i32_0 = arith.constant 0 : i32
    %c0_i32_1 = arith.constant 0 : i32
    return %c0_i32, %c0_i32_0 : i32, i32
  }
  func.func @transform_4(%arg0: i32) -> (i32, i32) {
    %c0_i32 = arith.constant 0 : i32
    %c0_i32_0 = arith.constant 0 : i32
    %c0_i32_1 = arith.constant 0 : i32
    return %c0_i32, %c0_i32_0 : i32, i32
  }
  func.func @transform_5(%arg0: i32) -> (i32, i32) {
    %c0_i32 = arith.constant 0 : i32
    %c0_i32_0 = arith.constant 0 : i32
    %c0_i32_1 = arith.constant 0 : i32
    return %c0_i32, %c0_i32_0 : i32, i32
  }
  func.func @transform_6(%arg0: i32) -> (i32, i32) {
    %c0_i32 = arith.constant 0 : i32
    %c0_i32_0 = arith.constant 0 : i32
    %c0_i32_1 = arith.constant 0 : i32
    return %c0_i32, %c0_i32_0 : i32, i32
  }
  func.func @transform_7(%arg0: i32) -> (i32, i32) {
    %c0_i32 = arith.constant 0 : i32
    %c0_i32_0 = arith.constant 0 : i32
    %c0_i32_1 = arith.constant 0 : i32
    return %c0_i32, %c0_i32_0 : i32, i32
  }
  func.func @transform_8(%arg0: i32) -> (i32, i32) {
    %c0_i32 = arith.constant 0 : i32
    %c0_i32_0 = arith.constant 0 : i32
    %c0_i32_1 = arith.constant 0 : i32
    return %c0_i32, %c0_i32_0 : i32, i32
  }
  func.func @transform_9(%arg0: i32) -> (i32, i32) {
    %c0_i32 = arith.constant 0 : i32
    %c0_i32_0 = arith.constant 0 : i32
    %c0_i32_1 = arith.constant 0 : i32
    return %c0_i32, %c0_i32_0 : i32, i32
  }
  func.func @transform_10(%arg0: i32) -> (i32, i32) {
    %c0_i32 = arith.constant 0 : i32
    %c0_i32_0 = arith.constant 0 : i32
    %c0_i32_1 = arith.constant 0 : i32
    return %c0_i32, %c0_i32_0 : i32, i32
  }
  func.func @transform_11(%arg0: i32) -> (i32, i32) {
    %c0_i32 = arith.constant 0 : i32
    %c0_i32_0 = arith.constant 0 : i32
    %c0_i32_1 = arith.constant 0 : i32
    return %c0_i32, %c0_i32_0 : i32, i32
  }
  func.func @transform_12(%arg0: i32) -> (i32, i32, i32) {
    %c0_i32 = arith.constant 0 : i32
    %c0_i32_0 = arith.constant 0 : i32
    %c0_i32_1 = arith.constant 0 : i32
    %c0_i32_2 = arith.constant 0 : i32
    return %c0_i32, %c0_i32_0, %c0_i32_1 : i32, i32, i32
  }
  func.func @transform_13(%arg0: i32) -> (i32, i32) {
    %c0_i32 = arith.constant 0 : i32
    %c0_i32_0 = arith.constant 0 : i32
    %c0_i32_1 = arith.constant 0 : i32
    return %c0_i32, %c0_i32_0 : i32, i32
  }
  func.func @transform_14(%arg0: i32) -> (i32, i32) {
    %c0_i32 = arith.constant 0 : i32
    %c0_i32_0 = arith.constant 0 : i32
    %c0_i32_1 = arith.constant 0 : i32
    return %c0_i32, %c0_i32_0 : i32, i32
  }
  func.func @transform_15(%arg0: i32) -> (i32, i32) {
    %c0_i32 = arith.constant 0 : i32
    %c0_i32_0 = arith.constant 0 : i32
    %c0_i32_1 = arith.constant 0 : i32
    return %c0_i32, %c0_i32_0 : i32, i32
  }
  func.func @transform_16(%arg0: i32) -> (i32, i32) {
    %c0_i32 = arith.constant 0 : i32
    %c0_i32_0 = arith.constant 0 : i32
    %c0_i32_1 = arith.constant 0 : i32
    return %c0_i32, %c0_i32_0 : i32, i32
  }
  func.func @transform_17(%arg0: i32) -> (i32, i32) {
    %c0_i32 = arith.constant 0 : i32
    %c0_i32_0 = arith.constant 0 : i32
    %c0_i32_1 = arith.constant 0 : i32
    return %c0_i32, %c0_i32_0 : i32, i32
  }
  func.func @transform_18(%arg0: i32) -> (i32, i32) {
    %c0_i32 = arith.constant 0 : i32
    %c0_i32_0 = arith.constant 0 : i32
    %c0_i32_1 = arith.constant 0 : i32
    return %c0_i32, %c0_i32_0 : i32, i32
  }
  func.func @transform_19(%arg0: i32) -> (i32, i32) {
    %c0_i32 = arith.constant 0 : i32
    %c0_i32_0 = arith.constant 0 : i32
    %c0_i32_1 = arith.constant 0 : i32
    return %c0_i32, %c0_i32_0 : i32, i32
  }
  func.func @transform_20(%arg0: i32) -> (i32, i32, i32) {
    %c0_i32 = arith.constant 0 : i32
    %c0_i32_0 = arith.constant 0 : i32
    %c0_i32_1 = arith.constant 0 : i32
    return %arg0, %c0_i32, %c0_i32_0 : i32, i32, i32
  }
}

module attributes {stable_mosaic.version = 11 : i64} {
  func.func @_self_stack_kernel(%arg0: i32, %arg1: i32, %arg2: memref<1x16x32xf32, #tpu.memory_space<vmem>>, %arg3: memref<1x1x32xf32, #tpu.memory_space<vmem>>, %arg4: memref<1x1x32xf32, #tpu.memory_space<vmem>>, %arg5: memref<1x32x32xbf16, #tpu.memory_space<vmem>>, %arg6: memref<1x32x1xf32, #tpu.memory_space<vmem>>, %arg7: memref<1x32x32xbf16, #tpu.memory_space<vmem>>, %arg8: memref<1x32x1xf32, #tpu.memory_space<vmem>>, %arg9: memref<1x32x32xbf16, #tpu.memory_space<vmem>>, %arg10: memref<1x32x1xf32, #tpu.memory_space<vmem>>, %arg11: memref<1x4x8x32xbf16, #tpu.memory_space<vmem>>, %arg12: memref<1x1x32xf32, #tpu.memory_space<vmem>>, %arg13: memref<1x1x32xf32, #tpu.memory_space<vmem>>, %arg14: memref<1x1x32xf32, #tpu.memory_space<vmem>>, %arg15: memref<1x32x128xbf16, #tpu.memory_space<vmem>>, %arg16: memref<1x1x128xf32, #tpu.memory_space<vmem>>, %arg17: memref<1x128x32xbf16, #tpu.memory_space<vmem>>, %arg18: memref<1x1x32xf32, #tpu.memory_space<vmem>>, %arg19: memref<1x16x32xf32, #tpu.memory_space<vmem>>) attributes {dimension_semantics = [#tpu.dimension_semantics<parallel>, #tpu.dimension_semantics<arbitrary>], iteration_bounds = array<i64: 2, 2>, scalar_prefetch = 0 : i64, scratch_operands = 0 : i64, tpu.core_type = #tpu.core_type<tc>, window_params = [{transform_indices = @transform_0, window_bounds = array<i64: 1, 16, 32>}, {transform_indices = @transform_1, window_bounds = array<i64: 1, 1, 32>}, {transform_indices = @transform_2, window_bounds = array<i64: 1, 1, 32>}, {transform_indices = @transform_3, window_bounds = array<i64: 1, 32, 32>}, {transform_indices = @transform_4, window_bounds = array<i64: 1, 32, 1>}, {transform_indices = @transform_5, window_bounds = array<i64: 1, 32, 32>}, {transform_indices = @transform_6, window_bounds = array<i64: 1, 32, 1>}, {transform_indices = @transform_7, window_bounds = array<i64: 1, 32, 32>}, {transform_indices = @transform_8, window_bounds = array<i64: 1, 32, 1>}, {transform_indices = @transform_9, window_bounds = array<i64: 1, 4, 8, 32>}, {transform_indices = @transform_10, window_bounds = array<i64: 1, 1, 32>}, {transform_indices = @transform_11, window_bounds = array<i64: 1, 1, 32>}, {transform_indices = @transform_12, window_bounds = array<i64: 1, 1, 32>}, {transform_indices = @transform_13, window_bounds = array<i64: 1, 32, 128>}, {transform_indices = @transform_14, window_bounds = array<i64: 1, 1, 128>}, {transform_indices = @transform_15, window_bounds = array<i64: 1, 128, 32>}, {transform_indices = @transform_16, window_bounds = array<i64: 1, 1, 32>}, {transform_indices = @transform_17, window_bounds = array<i64: 1, 16, 32>}]} {
    %c0_i32 = arith.constant 0 : i32
    %0 = arith.cmpi eq, %arg1, %c0_i32 : i32
    %1 = arith.extui %0 : i1 to i32
    %c0_i32_0 = arith.constant 0 : i32
    %2 = arith.cmpi ne, %1, %c0_i32_0 : i32
    scf.if %2 {
      %c0_92 = arith.constant 0 : index
      %c0_93 = arith.constant 0 : index
      %c0_94 = arith.constant 0 : index
      %204 = vector.load %arg2[%c0_92, %c0_93, %c0_94] : memref<1x16x32xf32, #tpu.memory_space<vmem>>, vector<1x16x32xf32>
      %c0_95 = arith.constant 0 : index
      %c0_96 = arith.constant 0 : index
      %c0_97 = arith.constant 0 : index
      %205 = vector.load %arg19[%c0_95, %c0_96, %c0_97] : memref<1x16x32xf32, #tpu.memory_space<vmem>>, vector<1x16x32xf32>
      tpu.vector_store %arg19[%c0_95, %c0_96, %c0_97], %204 {strides = array<i32>} : memref<1x16x32xf32, #tpu.memory_space<vmem>>, vector<1x16x32xf32>,
    } else {
    }
    %c0 = arith.constant 0 : index
    %c0_1 = arith.constant 0 : index
    %c0_2 = arith.constant 0 : index
    %3 = vector.load %arg19[%c0, %c0_1, %c0_2] : memref<1x16x32xf32, #tpu.memory_space<vmem>>, vector<1x16x32xf32>
    %4 = vector.shape_cast %3 : vector<1x16x32xf32> to vector<16x32xf32>
    %c0_3 = arith.constant 0 : index
    %c0_4 = arith.constant 0 : index
    %c0_5 = arith.constant 0 : index
    %5 = vector.load %arg3[%c0_3, %c0_4, %c0_5] : memref<1x1x32xf32, #tpu.memory_space<vmem>>, vector<1x1x32xf32>
    %6 = vector.shape_cast %5 : vector<1x1x32xf32> to vector<1x32xf32>
    %c0_6 = arith.constant 0 : index
    %c0_7 = arith.constant 0 : index
    %c0_8 = arith.constant 0 : index
    %7 = vector.load %arg4[%c0_6, %c0_7, %c0_8] : memref<1x1x32xf32, #tpu.memory_space<vmem>>, vector<1x1x32xf32>
    %8 = vector.shape_cast %7 : vector<1x1x32xf32> to vector<1x32xf32>
    %cst = arith.constant dense<0.000000e+00> : vector<16xf32>
    %9 = vector.multi_reduction <add>, %4, %cst [1] : vector<16x32xf32> to vector<16xf32>
    %10 = vector.shape_cast %9 : vector<16xf32> to vector<16x1xf32>
    %cst_9 = arith.constant 3.200000e+01 : f32
    %11 = vector.broadcast %cst_9 : f32 to vector<16x1xf32>
    %12 = arith.divf %10, %11 : vector<16x1xf32>
    %13 = vector.broadcast %12 : vector<16x1xf32> to vector<16x32xf32>
    %14 = arith.subf %4, %13 : vector<16x32xf32>
    %15 = arith.mulf %14, %14 : vector<16x32xf32>
    %cst_10 = arith.constant dense<0.000000e+00> : vector<16xf32>
    %16 = vector.multi_reduction <add>, %15, %cst_10 [1] : vector<16x32xf32> to vector<16xf32>
    %17 = vector.shape_cast %16 : vector<16xf32> to vector<16x1xf32>
    %cst_11 = arith.constant 3.200000e+01 : f32
    %18 = vector.broadcast %cst_11 : f32 to vector<16x1xf32>
    %19 = arith.divf %17, %18 : vector<16x1xf32>
    %cst_12 = arith.constant 9.99999974E-6 : f32
    %20 = vector.broadcast %cst_12 : f32 to vector<16x1xf32>
    %21 = arith.addf %19, %20 : vector<16x1xf32>
    %22 = math.rsqrt %21 : vector<16x1xf32>
    %23 = vector.broadcast %22 : vector<16x1xf32> to vector<16x32xf32>
    %24 = arith.mulf %14, %23 : vector<16x32xf32>
    %25 = vector.broadcast %6 : vector<1x32xf32> to vector<16x32xf32>
    %26 = arith.mulf %24, %25 : vector<16x32xf32>
    %27 = vector.broadcast %8 : vector<1x32xf32> to vector<16x32xf32>
    %28 = arith.addf %26, %27 : vector<16x32xf32>
    %c0_13 = arith.constant 0 : index
    %c0_14 = arith.constant 0 : index
    %c0_15 = arith.constant 0 : index
    %29 = vector.load %arg5[%c0_13, %c0_14, %c0_15] : memref<1x32x32xbf16, #tpu.memory_space<vmem>>, vector<1x32x32xbf16>
    %30 = vector.shape_cast %29 : vector<1x32x32xbf16> to vector<32x32xbf16>
    %c0_16 = arith.constant 0 : index
    %c0_17 = arith.constant 0 : index
    %c0_18 = arith.constant 0 : index
    %31 = vector.load %arg6[%c0_16, %c0_17, %c0_18] : memref<1x32x1xf32, #tpu.memory_space<vmem>>, vector<1x32x1xf32>
    %32 = vector.shape_cast %31 : vector<1x32x1xf32> to vector<32x1xf32>
    %c0_19 = arith.constant 0 : index
    %c0_20 = arith.constant 0 : index
    %c0_21 = arith.constant 0 : index
    %33 = vector.load %arg7[%c0_19, %c0_20, %c0_21] : memref<1x32x32xbf16, #tpu.memory_space<vmem>>, vector<1x32x32xbf16>
    %34 = vector.shape_cast %33 : vector<1x32x32xbf16> to vector<32x32xbf16>
    %c0_22 = arith.constant 0 : index
    %c0_23 = arith.constant 0 : index
    %c0_24 = arith.constant 0 : index
    %35 = vector.load %arg8[%c0_22, %c0_23, %c0_24] : memref<1x32x1xf32, #tpu.memory_space<vmem>>, vector<1x32x1xf32>
    %36 = vector.shape_cast %35 : vector<1x32x1xf32> to vector<32x1xf32>
    %c0_25 = arith.constant 0 : index
    %c0_26 = arith.constant 0 : index
    %c0_27 = arith.constant 0 : index
    %37 = vector.load %arg9[%c0_25, %c0_26, %c0_27] : memref<1x32x32xbf16, #tpu.memory_space<vmem>>, vector<1x32x32xbf16>
    %38 = vector.shape_cast %37 : vector<1x32x32xbf16> to vector<32x32xbf16>
    %c0_28 = arith.constant 0 : index
    %c0_29 = arith.constant 0 : index
    %c0_30 = arith.constant 0 : index
    %39 = vector.load %arg10[%c0_28, %c0_29, %c0_30] : memref<1x32x1xf32, #tpu.memory_space<vmem>>, vector<1x32x1xf32>
    %40 = vector.shape_cast %39 : vector<1x32x1xf32> to vector<32x1xf32>
    %c0_31 = arith.constant 0 : index
    %c0_32 = arith.constant 0 : index
    %c0_33 = arith.constant 0 : index
    %c0_34 = arith.constant 0 : index
    %41 = vector.load %arg11[%c0_31, %c0_32, %c0_33, %c0_34] : memref<1x4x8x32xbf16, #tpu.memory_space<vmem>>, vector<1x4x8x32xbf16>
    %42 = vector.shape_cast %41 : vector<1x4x8x32xbf16> to vector<4x8x32xbf16>
    %c0_35 = arith.constant 0 : index
    %c0_36 = arith.constant 0 : index
    %c0_37 = arith.constant 0 : index
    %43 = vector.load %arg12[%c0_35, %c0_36, %c0_37] : memref<1x1x32xf32, #tpu.memory_space<vmem>>, vector<1x1x32xf32>
    %44 = vector.shape_cast %43 : vector<1x1x32xf32> to vector<1x32xf32>
    %45 = arith.truncf %28 : vector<16x32xf32> to vector<16x32xbf16>
    %46 = arith.truncf %28 : vector<16x32xf32> to vector<16x32xbf16>
    %cst_38 = arith.constant dense<0.000000e+00> : vector<32x16xf32>
    %47 = tpu.matmul %30, %45, %cst_38 {dimension_numbers = #tpu.dot_dimension_numbers<[1], [1], [0], [0], [0, 0, 1, 0], [], []>} : vector<32x32xbf16>, vector<16x32xbf16>, vector<32x16xf32> -> vector<32x16xf32>
    %48 = vector.broadcast %32 : vector<32x1xf32> to vector<32x16xf32>
    %49 = arith.addf %47, %48 : vector<32x16xf32>
    %cst_39 = arith.constant dense<0.000000e+00> : vector<32x16xf32>
    %50 = tpu.matmul %34, %46, %cst_39 {dimension_numbers = #tpu.dot_dimension_numbers<[1], [1], [0], [0], [0, 0, 1, 0], [], []>} : vector<32x32xbf16>, vector<16x32xbf16>, vector<32x16xf32> -> vector<32x16xf32>
    %51 = vector.broadcast %36 : vector<32x1xf32> to vector<32x16xf32>
    %52 = arith.addf %50, %51 : vector<32x16xf32>
    %cst_40 = arith.constant dense<0.000000e+00> : vector<32x16xf32>
    %53 = tpu.matmul %38, %46, %cst_40 {dimension_numbers = #tpu.dot_dimension_numbers<[1], [1], [0], [0], [0, 0, 1, 0], [], []>} : vector<32x32xbf16>, vector<16x32xbf16>, vector<32x16xf32> -> vector<32x16xf32>
    %54 = vector.broadcast %40 : vector<32x1xf32> to vector<32x16xf32>
    %55 = arith.addf %53, %54 : vector<32x16xf32>
    %56 = vector.shape_cast %49 : vector<32x16xf32> to vector<4x8x16xf32>
    %57 = vector.shape_cast %52 : vector<32x16xf32> to vector<4x8x16xf32>
    %58 = arith.truncf %57 : vector<4x8x16xf32> to vector<4x8x16xbf16>
    %59 = vector.shape_cast %55 : vector<32x16xf32> to vector<4x8x16xf32>
    %60 = arith.truncf %59 : vector<4x8x16xf32> to vector<4x8x16xbf16>
    %61 = vector.extract_strided_slice %56 {offsets = [0, 0, 0], sizes = [1, 8, 16], strides = [1, 1, 1]} : vector<4x8x16xf32> to vector<1x8x16xf32>
    %62 = vector.shape_cast %61 : vector<1x8x16xf32> to vector<8x16xf32>
    %63 = tpu.transpose %62, [1, 0] : vector<8x16xf32> -> vector<16x8xf32>
    %64 = vector.extract_strided_slice %56 {offsets = [1, 0, 0], sizes = [1, 8, 16], strides = [1, 1, 1]} : vector<4x8x16xf32> to vector<1x8x16xf32>
    %65 = vector.shape_cast %64 : vector<1x8x16xf32> to vector<8x16xf32>
    %66 = tpu.transpose %65, [1, 0] : vector<8x16xf32> -> vector<16x8xf32>
    %67 = vector.extract_strided_slice %56 {offsets = [2, 0, 0], sizes = [1, 8, 16], strides = [1, 1, 1]} : vector<4x8x16xf32> to vector<1x8x16xf32>
    %68 = vector.shape_cast %67 : vector<1x8x16xf32> to vector<8x16xf32>
    %69 = tpu.transpose %68, [1, 0] : vector<8x16xf32> -> vector<16x8xf32>
    %70 = vector.extract_strided_slice %56 {offsets = [3, 0, 0], sizes = [1, 8, 16], strides = [1, 1, 1]} : vector<4x8x16xf32> to vector<1x8x16xf32>
    %71 = vector.shape_cast %70 : vector<1x8x16xf32> to vector<8x16xf32>
    %72 = tpu.transpose %71, [1, 0] : vector<8x16xf32> -> vector<16x8xf32>
    %73 = vector.shape_cast %63 : vector<16x8xf32> to vector<1x16x8xf32>
    %74 = vector.shape_cast %66 : vector<16x8xf32> to vector<1x16x8xf32>
    %75 = vector.shape_cast %69 : vector<16x8xf32> to vector<1x16x8xf32>
    %76 = vector.shape_cast %72 : vector<16x8xf32> to vector<1x16x8xf32>
    %77 = tpu.concatenate %73, %74, %75, %76 in 0 : vector<1x16x8xf32>, vector<1x16x8xf32>, vector<1x16x8xf32>, vector<1x16x8xf32> -> vector<4x16x8xf32>
    %78 = arith.truncf %77 : vector<4x16x8xf32> to vector<4x16x8xbf16>
    "tpu.trace_start"() <{level = 10 : i32, message = "htc,hcs->hts"}> : () -> ()
    %cst_41 = arith.constant dense<0.000000e+00> : vector<4x16x16xf32>
    %79 = tpu.matmul %78, %58, %cst_41 {dimension_numbers = #tpu.dot_dimension_numbers<[2], [1], [1], [2], [0, 0, 0, 1, 1, 2], [0], [0]>} : vector<4x16x8xbf16>, vector<4x8x16xbf16>, vector<4x16x16xf32> -> vector<4x16x16xf32>
    "tpu.trace_stop"() : () -> ()
    %cst_42 = arith.constant dense<0xFF800000> : vector<4x16xf32>
    %80 = vector.multi_reduction <maximumf>, %79, %cst_42 [2] : vector<4x16x16xf32> to vector<4x16xf32>
    %81 = vector.shape_cast %80 : vector<4x16xf32> to vector<4x16x1xf32>
    %82 = vector.broadcast %81 : vector<4x16x1xf32> to vector<4x16x16xf32>
    %83 = arith.subf %79, %82 : vector<4x16x16xf32>
    %84 = math.exp %83 : vector<4x16x16xf32>
    %cst_43 = arith.constant dense<0.000000e+00> : vector<4x16xf32>
    %85 = vector.multi_reduction <add>, %84, %cst_43 [2] : vector<4x16x16xf32> to vector<4x16xf32>
    %86 = vector.shape_cast %85 : vector<4x16xf32> to vector<4x16x1xf32>
    %87 = tpu.reciprocal %86 {approx = true} : vector<4x16x1xf32> -> vector<4x16x1xf32>
    %88 = vector.broadcast %87 : vector<4x16x1xf32> to vector<4x16x16xf32>
    %89 = arith.mulf %84, %88 : vector<4x16x16xf32>
    %90 = arith.truncf %89 : vector<4x16x16xf32> to vector<4x16x16xbf16>
    "tpu.trace_start"() <{level = 10 : i32, message = "hts,hcs->htc"}> : () -> ()
    %cst_44 = arith.constant dense<0.000000e+00> : vector<4x16x8xf32>
    %91 = tpu.matmul %90, %60, %cst_44 {dimension_numbers = #tpu.dot_dimension_numbers<[2], [2], [1], [1], [0, 0, 0, 1, 1, 1], [0], [0]>} : vector<4x16x16xbf16>, vector<4x8x16xbf16>, vector<4x16x8xf32> -> vector<4x16x8xf32>
    "tpu.trace_stop"() : () -> ()
    %92 = arith.truncf %91 : vector<4x16x8xf32> to vector<4x16x8xbf16>
    %cst_45 = arith.constant 0.000000e+00 : f32
    %93 = vector.broadcast %cst_45 : f32 to vector<16x32xf32>
    %94 = vector.extract_strided_slice %92 {offsets = [0, 0, 0], sizes = [1, 16, 8], strides = [1, 1, 1]} : vector<4x16x8xbf16> to vector<1x16x8xbf16>
    %95 = vector.shape_cast %94 : vector<1x16x8xbf16> to vector<16x8xbf16>
    %96 = vector.extract_strided_slice %42 {offsets = [0, 0, 0], sizes = [1, 8, 32], strides = [1, 1, 1]} : vector<4x8x32xbf16> to vector<1x8x32xbf16>
    %97 = vector.shape_cast %96 : vector<1x8x32xbf16> to vector<8x32xbf16>
    %cst_46 = arith.constant dense<0.000000e+00> : vector<16x32xf32>
    %98 = tpu.matmul %95, %97, %cst_46 {dimension_numbers = #tpu.dot_dimension_numbers<[1], [0], [0], [1], [0, 0, 1, 1], [], []>} : vector<16x8xbf16>, vector<8x32xbf16>, vector<16x32xf32> -> vector<16x32xf32>
    %99 = arith.addf %93, %98 : vector<16x32xf32>
    %100 = vector.extract_strided_slice %92 {offsets = [1, 0, 0], sizes = [1, 16, 8], strides = [1, 1, 1]} : vector<4x16x8xbf16> to vector<1x16x8xbf16>
    %101 = vector.shape_cast %100 : vector<1x16x8xbf16> to vector<16x8xbf16>
    %102 = vector.extract_strided_slice %42 {offsets = [1, 0, 0], sizes = [1, 8, 32], strides = [1, 1, 1]} : vector<4x8x32xbf16> to vector<1x8x32xbf16>
    %103 = vector.shape_cast %102 : vector<1x8x32xbf16> to vector<8x32xbf16>
    %cst_47 = arith.constant dense<0.000000e+00> : vector<16x32xf32>
    %104 = tpu.matmul %101, %103, %cst_47 {dimension_numbers = #tpu.dot_dimension_numbers<[1], [0], [0], [1], [0, 0, 1, 1], [], []>} : vector<16x8xbf16>, vector<8x32xbf16>, vector<16x32xf32> -> vector<16x32xf32>
    %105 = arith.addf %99, %104 : vector<16x32xf32>
    %106 = vector.extract_strided_slice %92 {offsets = [2, 0, 0], sizes = [1, 16, 8], strides = [1, 1, 1]} : vector<4x16x8xbf16> to vector<1x16x8xbf16>
    %107 = vector.shape_cast %106 : vector<1x16x8xbf16> to vector<16x8xbf16>
    %108 = vector.extract_strided_slice %42 {offsets = [2, 0, 0], sizes = [1, 8, 32], strides = [1, 1, 1]} : vector<4x8x32xbf16> to vector<1x8x32xbf16>
    %109 = vector.shape_cast %108 : vector<1x8x32xbf16> to vector<8x32xbf16>
    %cst_48 = arith.constant dense<0.000000e+00> : vector<16x32xf32>
    %110 = tpu.matmul %107, %109, %cst_48 {dimension_numbers = #tpu.dot_dimension_numbers<[1], [0], [0], [1], [0, 0, 1, 1], [], []>} : vector<16x8xbf16>, vector<8x32xbf16>, vector<16x32xf32> -> vector<16x32xf32>
    %111 = arith.addf %105, %110 : vector<16x32xf32>
    %112 = vector.extract_strided_slice %92 {offsets = [3, 0, 0], sizes = [1, 16, 8], strides = [1, 1, 1]} : vector<4x16x8xbf16> to vector<1x16x8xbf16>
    %113 = vector.shape_cast %112 : vector<1x16x8xbf16> to vector<16x8xbf16>
    %114 = vector.extract_strided_slice %42 {offsets = [3, 0, 0], sizes = [1, 8, 32], strides = [1, 1, 1]} : vector<4x8x32xbf16> to vector<1x8x32xbf16>
    %115 = vector.shape_cast %114 : vector<1x8x32xbf16> to vector<8x32xbf16>
    %cst_49 = arith.constant dense<0.000000e+00> : vector<16x32xf32>
    %116 = tpu.matmul %113, %115, %cst_49 {dimension_numbers = #tpu.dot_dimension_numbers<[1], [0], [0], [1], [0, 0, 1, 1], [], []>} : vector<16x8xbf16>, vector<8x32xbf16>, vector<16x32xf32> -> vector<16x32xf32>
    %117 = arith.addf %111, %116 : vector<16x32xf32>
    %118 = vector.broadcast %44 : vector<1x32xf32> to vector<16x32xf32>
    %119 = arith.addf %117, %118 : vector<16x32xf32>
    %120 = arith.addf %4, %119 : vector<16x32xf32>
    %c0_50 = arith.constant 0 : index
    %c0_51 = arith.constant 0 : index
    %c0_52 = arith.constant 0 : index
    %121 = vector.load %arg13[%c0_50, %c0_51, %c0_52] : memref<1x1x32xf32, #tpu.memory_space<vmem>>, vector<1x1x32xf32>
    %122 = vector.shape_cast %121 : vector<1x1x32xf32> to vector<1x32xf32>
    %c0_53 = arith.constant 0 : index
    %c0_54 = arith.constant 0 : index
    %c0_55 = arith.constant 0 : index
    %123 = vector.load %arg14[%c0_53, %c0_54, %c0_55] : memref<1x1x32xf32, #tpu.memory_space<vmem>>, vector<1x1x32xf32>
    %124 = vector.shape_cast %123 : vector<1x1x32xf32> to vector<1x32xf32>
    %c0_56 = arith.constant 0 : index
    %c0_57 = arith.constant 0 : index
    %c0_58 = arith.constant 0 : index
    %125 = vector.load %arg15[%c0_56, %c0_57, %c0_58] : memref<1x32x128xbf16, #tpu.memory_space<vmem>>, vector<1x32x128xbf16>
    %126 = vector.shape_cast %125 : vector<1x32x128xbf16> to vector<32x128xbf16>
    %c0_59 = arith.constant 0 : index
    %c0_60 = arith.constant 0 : index
    %c0_61 = arith.constant 0 : index
    %127 = vector.load %arg16[%c0_59, %c0_60, %c0_61] : memref<1x1x128xf32, #tpu.memory_space<vmem>>, vector<1x1x128xf32>
    %128 = vector.shape_cast %127 : vector<1x1x128xf32> to vector<1x128xf32>
    %c0_62 = arith.constant 0 : index
    %c0_63 = arith.constant 0 : index
    %c0_64 = arith.constant 0 : index
    %129 = vector.load %arg17[%c0_62, %c0_63, %c0_64] : memref<1x128x32xbf16, #tpu.memory_space<vmem>>, vector<1x128x32xbf16>
    %130 = vector.shape_cast %129 : vector<1x128x32xbf16> to vector<128x32xbf16>
    %c0_65 = arith.constant 0 : index
    %c0_66 = arith.constant 0 : index
    %c0_67 = arith.constant 0 : index
    %131 = vector.load %arg18[%c0_65, %c0_66, %c0_67] : memref<1x1x32xf32, #tpu.memory_space<vmem>>, vector<1x1x32xf32>
    %132 = vector.shape_cast %131 : vector<1x1x32xf32> to vector<1x32xf32>
    %cst_68 = arith.constant dense<0.000000e+00> : vector<16xf32>
    %133 = vector.multi_reduction <add>, %120, %cst_68 [1] : vector<16x32xf32> to vector<16xf32>
    %134 = vector.shape_cast %133 : vector<16xf32> to vector<16x1xf32>
    %cst_69 = arith.constant 3.200000e+01 : f32
    %135 = vector.broadcast %cst_69 : f32 to vector<16x1xf32>
    %136 = arith.divf %134, %135 : vector<16x1xf32>
    %137 = vector.broadcast %136 : vector<16x1xf32> to vector<16x32xf32>
    %138 = arith.subf %120, %137 : vector<16x32xf32>
    %139 = arith.mulf %138, %138 : vector<16x32xf32>
    %cst_70 = arith.constant dense<0.000000e+00> : vector<16xf32>
    %140 = vector.multi_reduction <add>, %139, %cst_70 [1] : vector<16x32xf32> to vector<16xf32>
    %141 = vector.shape_cast %140 : vector<16xf32> to vector<16x1xf32>
    %cst_71 = arith.constant 3.200000e+01 : f32
    %142 = vector.broadcast %cst_71 : f32 to vector<16x1xf32>
    %143 = arith.divf %141, %142 : vector<16x1xf32>
    %cst_72 = arith.constant 9.99999974E-6 : f32
    %144 = vector.broadcast %cst_72 : f32 to vector<16x1xf32>
    %145 = arith.addf %143, %144 : vector<16x1xf32>
    %146 = math.rsqrt %145 : vector<16x1xf32>
    %147 = vector.broadcast %146 : vector<16x1xf32> to vector<16x32xf32>
    %148 = arith.mulf %138, %147 : vector<16x32xf32>
    %149 = vector.broadcast %122 : vector<1x32xf32> to vector<16x32xf32>
    %150 = arith.mulf %148, %149 : vector<16x32xf32>
    %151 = vector.broadcast %124 : vector<1x32xf32> to vector<16x32xf32>
    %152 = arith.addf %150, %151 : vector<16x32xf32>
    %153 = arith.truncf %152 : vector<16x32xf32> to vector<16x32xbf16>
    %cst_73 = arith.constant dense<0.000000e+00> : vector<16x128xf32>
    %154 = tpu.matmul %153, %126, %cst_73 {dimension_numbers = #tpu.dot_dimension_numbers<[1], [0], [0], [1], [0, 0, 1, 1], [], []>} : vector<16x32xbf16>, vector<32x128xbf16>, vector<16x128xf32> -> vector<16x128xf32>
    %155 = vector.broadcast %128 : vector<1x128xf32> to vector<16x128xf32>
    %156 = arith.addf %154, %155 : vector<16x128xf32>
    %cst_74 = arith.constant 5.000000e-01 : f32
    %157 = vector.broadcast %cst_74 : f32 to vector<16x128xf32>
    %158 = arith.mulf %157, %156 : vector<16x128xf32>
    %cst_75 = arith.constant 0.707106769 : f32
    %159 = vector.broadcast %cst_75 : f32 to vector<16x128xf32>
    %160 = arith.mulf %156, %159 : vector<16x128xf32>
    %161 = math.absf %160 : vector<16x128xf32>
    %cst_76 = arith.constant 0.327591091 : f32
    %162 = vector.broadcast %cst_76 : f32 to vector<16x128xf32>
    %163 = arith.mulf %162, %161 : vector<16x128xf32>
    %cst_77 = arith.constant 1.000000e+00 : f32
    %164 = vector.broadcast %cst_77 : f32 to vector<16x128xf32>
    %165 = arith.addf %164, %163 : vector<16x128xf32>
    %166 = tpu.reciprocal %165 {approx = true} : vector<16x128xf32> -> vector<16x128xf32>
    %cst_78 = arith.constant 1.06140542 : f32
    %167 = vector.broadcast %cst_78 : f32 to vector<16x128xf32>
    %168 = arith.mulf %167, %166 : vector<16x128xf32>
    %cst_79 = arith.constant -1.45315206 : f32
    %169 = vector.broadcast %cst_79 : f32 to vector<16x128xf32>
    %170 = arith.addf %168, %169 : vector<16x128xf32>
    %171 = arith.mulf %170, %166 : vector<16x128xf32>
    %cst_80 = arith.constant 1.42141378 : f32
    %172 = vector.broadcast %cst_80 : f32 to vector<16x128xf32>
    %173 = arith.addf %171, %172 : vector<16x128xf32>
    %174 = arith.mulf %173, %166 : vector<16x128xf32>
    %cst_81 = arith.constant -0.284496725 : f32
    %175 = vector.broadcast %cst_81 : f32 to vector<16x128xf32>
    %176 = arith.addf %174, %175 : vector<16x128xf32>
    %177 = arith.mulf %176, %166 : vector<16x128xf32>
    %cst_82 = arith.constant 0.254829586 : f32
    %178 = vector.broadcast %cst_82 : f32 to vector<16x128xf32>
    %179 = arith.addf %177, %178 : vector<16x128xf32>
    %180 = arith.mulf %179, %166 : vector<16x128xf32>
    %cst_83 = arith.constant 0.000000e+00 : f32
    %181 = vector.broadcast %cst_83 : f32 to vector<16x128xf32>
    %182 = arith.subf %181, %161 : vector<16x128xf32>
    %183 = arith.mulf %182, %161 : vector<16x128xf32>
    %184 = math.exp %183 : vector<16x128xf32>
    %185 = arith.mulf %180, %184 : vector<16x128xf32>
    %cst_84 = arith.constant 1.000000e+00 : f32
    %186 = vector.broadcast %cst_84 : f32 to vector<16x128xf32>
    %187 = arith.subf %186, %185 : vector<16x128xf32>
    %cst_85 = arith.constant 0.000000e+00 : f32
    %188 = vector.broadcast %cst_85 : f32 to vector<16x128xf32>
    %189 = arith.cmpf oge, %160, %188 : vector<16x128xf32>
    %cst_86 = arith.constant 0.000000e+00 : f32
    %190 = vector.broadcast %cst_86 : f32 to vector<16x128xf32>
    %191 = arith.subf %190, %187 : vector<16x128xf32>
    %192 = arith.select %189, %187, %191 : vector<16x128xi1>, vector<16x128xf32>
    %cst_87 = arith.constant 1.000000e+00 : f32
    %193 = vector.broadcast %cst_87 : f32 to vector<16x128xf32>
    %194 = arith.addf %193, %192 : vector<16x128xf32>
    %195 = arith.mulf %158, %194 : vector<16x128xf32>
    %196 = arith.truncf %195 : vector<16x128xf32> to vector<16x128xbf16>
    %cst_88 = arith.constant dense<0.000000e+00> : vector<16x32xf32>
    %197 = tpu.matmul %196, %130, %cst_88 {dimension_numbers = #tpu.dot_dimension_numbers<[1], [0], [0], [1], [0, 0, 1, 1], [], []>} : vector<16x128xbf16>, vector<128x32xbf16>, vector<16x32xf32> -> vector<16x32xf32>
    %198 = vector.broadcast %132 : vector<1x32xf32> to vector<16x32xf32>
    %199 = arith.addf %197, %198 : vector<16x32xf32>
    %200 = arith.addf %120, %199 : vector<16x32xf32>
    %c0_89 = arith.constant 0 : index
    %c0_90 = arith.constant 0 : index
    %c0_91 = arith.constant 0 : index
    %201 = vector.load %arg19[%c0_89, %c0_90, %c0_91] : memref<1x16x32xf32, #tpu.memory_space<vmem>>, vector<1x16x32xf32>
    %202 = vector.shape_cast %201 : vector<1x16x32xf32> to vector<16x32xf32>
    %203 = vector.shape_cast %200 : vector<16x32xf32> to vector<1x16x32xf32>
    tpu.vector_store %arg19[%c0_89, %c0_90, %c0_91], %203 {strides = array<i32>} : memref<1x16x32xf32, #tpu.memory_space<vmem>>, vector<1x16x32xf32>,
    return
  }
  func.func @transform_0(%arg0: i32, %arg1: i32) -> (i32, i32, i32) {
    %c0_i32 = arith.constant 0 : i32
    %c0_i32_0 = arith.constant 0 : i32
    %c0_i32_1 = arith.constant 0 : i32
    return %arg0, %c0_i32, %c0_i32_0 : i32, i32, i32
  }
  func.func @transform_1(%arg0: i32, %arg1: i32) -> (i32, i32, i32) {
    %c0_i32 = arith.constant 0 : i32
    %c0_i32_0 = arith.constant 0 : i32
    %c0_i32_1 = arith.constant 0 : i32
    return %arg1, %c0_i32, %c0_i32_0 : i32, i32, i32
  }
  func.func @transform_2(%arg0: i32, %arg1: i32) -> (i32, i32, i32) {
    %c0_i32 = arith.constant 0 : i32
    %c0_i32_0 = arith.constant 0 : i32
    %c0_i32_1 = arith.constant 0 : i32
    return %arg1, %c0_i32, %c0_i32_0 : i32, i32, i32
  }
  func.func @transform_3(%arg0: i32, %arg1: i32) -> (i32, i32, i32) {
    %c0_i32 = arith.constant 0 : i32
    %c0_i32_0 = arith.constant 0 : i32
    %c0_i32_1 = arith.constant 0 : i32
    return %arg1, %c0_i32, %c0_i32_0 : i32, i32, i32
  }
  func.func @transform_4(%arg0: i32, %arg1: i32) -> (i32, i32, i32) {
    %c0_i32 = arith.constant 0 : i32
    %c0_i32_0 = arith.constant 0 : i32
    %c0_i32_1 = arith.constant 0 : i32
    return %arg1, %c0_i32, %c0_i32_0 : i32, i32, i32
  }
  func.func @transform_5(%arg0: i32, %arg1: i32) -> (i32, i32, i32) {
    %c0_i32 = arith.constant 0 : i32
    %c0_i32_0 = arith.constant 0 : i32
    %c0_i32_1 = arith.constant 0 : i32
    return %arg1, %c0_i32, %c0_i32_0 : i32, i32, i32
  }
  func.func @transform_6(%arg0: i32, %arg1: i32) -> (i32, i32, i32) {
    %c0_i32 = arith.constant 0 : i32
    %c0_i32_0 = arith.constant 0 : i32
    %c0_i32_1 = arith.constant 0 : i32
    return %arg1, %c0_i32, %c0_i32_0 : i32, i32, i32
  }
  func.func @transform_7(%arg0: i32, %arg1: i32) -> (i32, i32, i32) {
    %c0_i32 = arith.constant 0 : i32
    %c0_i32_0 = arith.constant 0 : i32
    %c0_i32_1 = arith.constant 0 : i32
    return %arg1, %c0_i32, %c0_i32_0 : i32, i32, i32
  }
  func.func @transform_8(%arg0: i32, %arg1: i32) -> (i32, i32, i32) {
    %c0_i32 = arith.constant 0 : i32
    %c0_i32_0 = arith.constant 0 : i32
    %c0_i32_1 = arith.constant 0 : i32
    return %arg1, %c0_i32, %c0_i32_0 : i32, i32, i32
  }
  func.func @transform_9(%arg0: i32, %arg1: i32) -> (i32, i32, i32, i32) {
    %c0_i32 = arith.constant 0 : i32
    %c0_i32_0 = arith.constant 0 : i32
    %c0_i32_1 = arith.constant 0 : i32
    %c0_i32_2 = arith.constant 0 : i32
    return %arg1, %c0_i32, %c0_i32_0, %c0_i32_1 : i32, i32, i32, i32
  }
  func.func @transform_10(%arg0: i32, %arg1: i32) -> (i32, i32, i32) {
    %c0_i32 = arith.constant 0 : i32
    %c0_i32_0 = arith.constant 0 : i32
    %c0_i32_1 = arith.constant 0 : i32
    return %arg1, %c0_i32, %c0_i32_0 : i32, i32, i32
  }
  func.func @transform_11(%arg0: i32, %arg1: i32) -> (i32, i32, i32) {
    %c0_i32 = arith.constant 0 : i32
    %c0_i32_0 = arith.constant 0 : i32
    %c0_i32_1 = arith.constant 0 : i32
    return %arg1, %c0_i32, %c0_i32_0 : i32, i32, i32
  }
  func.func @transform_12(%arg0: i32, %arg1: i32) -> (i32, i32, i32) {
    %c0_i32 = arith.constant 0 : i32
    %c0_i32_0 = arith.constant 0 : i32
    %c0_i32_1 = arith.constant 0 : i32
    return %arg1, %c0_i32, %c0_i32_0 : i32, i32, i32
  }
  func.func @transform_13(%arg0: i32, %arg1: i32) -> (i32, i32, i32) {
    %c0_i32 = arith.constant 0 : i32
    %c0_i32_0 = arith.constant 0 : i32
    %c0_i32_1 = arith.constant 0 : i32
    return %arg1, %c0_i32, %c0_i32_0 : i32, i32, i32
  }
  func.func @transform_14(%arg0: i32, %arg1: i32) -> (i32, i32, i32) {
    %c0_i32 = arith.constant 0 : i32
    %c0_i32_0 = arith.constant 0 : i32
    %c0_i32_1 = arith.constant 0 : i32
    return %arg1, %c0_i32, %c0_i32_0 : i32, i32, i32
  }
  func.func @transform_15(%arg0: i32, %arg1: i32) -> (i32, i32, i32) {
    %c0_i32 = arith.constant 0 : i32
    %c0_i32_0 = arith.constant 0 : i32
    %c0_i32_1 = arith.constant 0 : i32
    return %arg1, %c0_i32, %c0_i32_0 : i32, i32, i32
  }
  func.func @transform_16(%arg0: i32, %arg1: i32) -> (i32, i32, i32) {
    %c0_i32 = arith.constant 0 : i32
    %c0_i32_0 = arith.constant 0 : i32
    %c0_i32_1 = arith.constant 0 : i32
    return %arg1, %c0_i32, %c0_i32_0 : i32, i32, i32
  }
  func.func @transform_17(%arg0: i32, %arg1: i32) -> (i32, i32, i32) {
    %c0_i32 = arith.constant 0 : i32
    %c0_i32_0 = arith.constant 0 : i32
    %c0_i32_1 = arith.constant 0 : i32
    return %arg0, %c0_i32, %c0_i32_0 : i32, i32, i32
  }
}

module attributes {stable_mosaic.version = 11 : i64} {
  func.func @_kl_kernel(%arg0: i32, %arg1: memref<32x32xf32, #tpu.memory_space<vmem>>, %arg2: memref<32x8xf32, #tpu.memory_space<vmem>>, %arg3: memref<32x8xbf16, #tpu.memory_space<vmem>>, %arg4: memref<1x8xf32, #tpu.memory_space<vmem>>, %arg5: memref<32x8xbf16, #tpu.memory_space<vmem>>, %arg6: memref<1x8xf32, #tpu.memory_space<vmem>>, %arg7: memref<8x32xbf16, #tpu.memory_space<vmem>>, %arg8: memref<1x32xf32, #tpu.memory_space<vmem>>, %arg9: memref<32x8xf32, #tpu.memory_space<vmem>>, %arg10: memref<32x8xf32, #tpu.memory_space<vmem>>, %arg11: memref<32x32xf32, #tpu.memory_space<vmem>>) attributes {dimension_semantics = [#tpu.dimension_semantics<parallel>], iteration_bounds = array<i64: 1>, scalar_prefetch = 0 : i64, scratch_operands = 0 : i64, tpu.core_type = #tpu.core_type<tc>, window_params = [{transform_indices = @transform_0, window_bounds = array<i64: 32, 32>}, {transform_indices = @transform_1, window_bounds = array<i64: 32, 8>}, {pipeline_mode = #tpu.pipeline_mode<synchronous>, transform_indices = @transform_2, window_bounds = array<i64: 32, 8>}, {pipeline_mode = #tpu.pipeline_mode<synchronous>, transform_indices = @transform_3, window_bounds = array<i64: 1, 8>}, {pipeline_mode = #tpu.pipeline_mode<synchronous>, transform_indices = @transform_4, window_bounds = array<i64: 32, 8>}, {pipeline_mode = #tpu.pipeline_mode<synchronous>, transform_indices = @transform_5, window_bounds = array<i64: 1, 8>}, {pipeline_mode = #tpu.pipeline_mode<synchronous>, transform_indices = @transform_6, window_bounds = array<i64: 8, 32>}, {pipeline_mode = #tpu.pipeline_mode<synchronous>, transform_indices = @transform_7, window_bounds = array<i64: 1, 32>}, {transform_indices = @transform_8, window_bounds = array<i64: 32, 8>}, {transform_indices = @transform_9, window_bounds = array<i64: 32, 8>}, {transform_indices = @transform_10, window_bounds = array<i64: 32, 32>}]} {
    %c0 = arith.constant 0 : index
    %c0_0 = arith.constant 0 : index
    %0 = vector.load %arg1[%c0, %c0_0] : memref<32x32xf32, #tpu.memory_space<vmem>>, vector<32x32xf32>
    %1 = arith.truncf %0 : vector<32x32xf32> to vector<32x32xbf16>
    %c0_1 = arith.constant 0 : index
    %c0_2 = arith.constant 0 : index
    %2 = vector.load %arg3[%c0_1, %c0_2] : memref<32x8xbf16, #tpu.memory_space<vmem>>, vector<32x8xbf16>
    %cst = arith.constant dense<0.000000e+00> : vector<32x8xf32>
    %3 = tpu.matmul %1, %2, %cst {dimension_numbers = #tpu.dot_dimension_numbers<[1], [0], [0], [1], [0, 0, 1, 1], [], []>} : vector<32x32xbf16>, vector<32x8xbf16>, vector<32x8xf32> -> vector<32x8xf32>
    %c0_3 = arith.constant 0 : index
    %c0_4 = arith.constant 0 : index
    %4 = vector.load %arg4[%c0_3, %c0_4] : memref<1x8xf32, #tpu.memory_space<vmem>>, vector<1x8xf32>
    %5 = vector.broadcast %4 : vector<1x8xf32> to vector<32x8xf32>
    %6 = arith.addf %3, %5 : vector<32x8xf32>
    %c0_5 = arith.constant 0 : index
    %c0_6 = arith.constant 0 : index
    %7 = vector.load %arg5[%c0_5, %c0_6] : memref<32x8xbf16, #tpu.memory_space<vmem>>, vector<32x8xbf16>
    %cst_7 = arith.constant dense<0.000000e+00> : vector<32x8xf32>
    %8 = tpu.matmul %1, %7, %cst_7 {dimension_numbers = #tpu.dot_dimension_numbers<[1], [0], [0], [1], [0, 0, 1, 1], [], []>} : vector<32x32xbf16>, vector<32x8xbf16>, vector<32x8xf32> -> vector<32x8xf32>
    %c0_8 = arith.constant 0 : index
    %c0_9 = arith.constant 0 : index
    %9 = vector.load %arg6[%c0_8, %c0_9] : memref<1x8xf32, #tpu.memory_space<vmem>>, vector<1x8xf32>
    %10 = vector.broadcast %9 : vector<1x8xf32> to vector<32x8xf32>
    %11 = arith.addf %8, %10 : vector<32x8xf32>
    %cst_10 = arith.constant -3.000000e+01 : f32
    %cst_11 = arith.constant 2.000000e+01 : f32
    %12 = vector.broadcast %cst_10 : f32 to vector<32x8xf32>
    %13 = arith.maximumf %12, %11 : vector<32x8xf32>
    %14 = vector.broadcast %cst_11 : f32 to vector<32x8xf32>
    %15 = arith.minimumf %14, %13 : vector<32x8xf32>
    %c0_12 = arith.constant 0 : index
    %c0_13 = arith.constant 0 : index
    %16 = vector.load %arg9[%c0_12, %c0_13] : memref<32x8xf32, #tpu.memory_space<vmem>>, vector<32x8xf32>
    tpu.vector_store %arg9[%c0_12, %c0_13], %6 {strides = array<i32>} : memref<32x8xf32, #tpu.memory_space<vmem>>, vector<32x8xf32>,
    %c0_14 = arith.constant 0 : index
    %c0_15 = arith.constant 0 : index
    %17 = vector.load %arg10[%c0_14, %c0_15] : memref<32x8xf32, #tpu.memory_space<vmem>>, vector<32x8xf32>
    tpu.vector_store %arg10[%c0_14, %c0_15], %15 {strides = array<i32>} : memref<32x8xf32, #tpu.memory_space<vmem>>, vector<32x8xf32>,
    %cst_16 = arith.constant 5.000000e-01 : f32
    %18 = vector.broadcast %cst_16 : f32 to vector<32x8xf32>
    %19 = arith.mulf %18, %15 : vector<32x8xf32>
    %20 = math.exp %19 : vector<32x8xf32>
    %c0_17 = arith.constant 0 : index
    %c0_18 = arith.constant 0 : index
    %21 = vector.load %arg2[%c0_17, %c0_18] : memref<32x8xf32, #tpu.memory_space<vmem>>, vector<32x8xf32>
    %22 = arith.mulf %20, %21 : vector<32x8xf32>
    %23 = arith.addf %6, %22 : vector<32x8xf32>
    %24 = arith.truncf %23 : vector<32x8xf32> to vector<32x8xbf16>
    %c0_19 = arith.constant 0 : index
    %c0_20 = arith.constant 0 : index
    %25 = vector.load %arg7[%c0_19, %c0_20] : memref<8x32xbf16, #tpu.memory_space<vmem>>, vector<8x32xbf16>
    %cst_21 = arith.constant dense<0.000000e+00> : vector<32x32xf32>
    %26 = tpu.matmul %24, %25, %cst_21 {dimension_numbers = #tpu.dot_dimension_numbers<[1], [0], [0], [1], [0, 0, 1, 1], [], []>} : vector<32x8xbf16>, vector<8x32xbf16>, vector<32x32xf32> -> vector<32x32xf32>
    %c0_22 = arith.constant 0 : index
    %c0_23 = arith.constant 0 : index
    %27 = vector.load %arg8[%c0_22, %c0_23] : memref<1x32xf32, #tpu.memory_space<vmem>>, vector<1x32xf32>
    %28 = vector.broadcast %27 : vector<1x32xf32> to vector<32x32xf32>
    %29 = arith.addf %26, %28 : vector<32x32xf32>
    %c0_24 = arith.constant 0 : index
    %c0_25 = arith.constant 0 : index
    %30 = vector.load %arg11[%c0_24, %c0_25] : memref<32x32xf32, #tpu.memory_space<vmem>>, vector<32x32xf32>
    tpu.vector_store %arg11[%c0_24, %c0_25], %29 {strides = array<i32>} : memref<32x32xf32, #tpu.memory_space<vmem>>, vector<32x32xf32>,
    return
  }
  func.func @transform_0(%arg0: i32) -> (i32, i32) {
    %c0_i32 = arith.constant 0 : i32
    %c0_i32_0 = arith.constant 0 : i32
    return %arg0, %c0_i32 : i32, i32
  }
  func.func @transform_1(%arg0: i32) -> (i32, i32) {
    %c0_i32 = arith.constant 0 : i32
    %c0_i32_0 = arith.constant 0 : i32
    return %arg0, %c0_i32 : i32, i32
  }
  func.func @transform_2(%arg0: i32) -> (i32, i32) {
    %c0_i32 = arith.constant 0 : i32
    %c0_i32_0 = arith.constant 0 : i32
    %c0_i32_1 = arith.constant 0 : i32
    return %c0_i32, %c0_i32_0 : i32, i32
  }
  func.func @transform_3(%arg0: i32) -> (i32, i32) {
    %c0_i32 = arith.constant 0 : i32
    %c0_i32_0 = arith.constant 0 : i32
    %c0_i32_1 = arith.constant 0 : i32
    return %c0_i32, %c0_i32_0 : i32, i32
  }
  func.func @transform_4(%arg0: i32) -> (i32, i32) {
    %c0_i32 = arith.constant 0 : i32
    %c0_i32_0 = arith.constant 0 : i32
    %c0_i32_1 = arith.constant 0 : i32
    return %c0_i32, %c0_i32_0 : i32, i32
  }
  func.func @transform_5(%arg0: i32) -> (i32, i32) {
    %c0_i32 = arith.constant 0 : i32
    %c0_i32_0 = arith.constant 0 : i32
    %c0_i32_1 = arith.constant 0 : i32
    return %c0_i32, %c0_i32_0 : i32, i32
  }
  func.func @transform_6(%arg0: i32) -> (i32, i32) {
    %c0_i32 = arith.constant 0 : i32
    %c0_i32_0 = arith.constant 0 : i32
    %c0_i32_1 = arith.constant 0 : i32
    return %c0_i32, %c0_i32_0 : i32, i32
  }
  func.func @transform_7(%arg0: i32) -> (i32, i32) {
    %c0_i32 = arith.constant 0 : i32
    %c0_i32_0 = arith.constant 0 : i32
    %c0_i32_1 = arith.constant 0 : i32
    return %c0_i32, %c0_i32_0 : i32, i32
  }
  func.func @transform_8(%arg0: i32) -> (i32, i32) {
    %c0_i32 = arith.constant 0 : i32
    %c0_i32_0 = arith.constant 0 : i32
    return %arg0, %c0_i32 : i32, i32
  }
  func.func @transform_9(%arg0: i32) -> (i32, i32) {
    %c0_i32 = arith.constant 0 : i32
    %c0_i32_0 = arith.constant 0 : i32
    return %arg0, %c0_i32 : i32, i32
  }
  func.func @transform_10(%arg0: i32) -> (i32, i32) {
    %c0_i32 = arith.constant 0 : i32
    %c0_i32_0 = arith.constant 0 : i32
    return %arg0, %c0_i32 : i32, i32
  }
}

module attributes {stable_mosaic.version = 11 : i64} {
  func.func @_linear_kernel(%arg0: i32, %arg1: memref<64x51xf32, #tpu.memory_space<vmem>>, %arg2: memref<51x32xbf16, #tpu.memory_space<vmem>>, %arg3: memref<1x32xf32, #tpu.memory_space<vmem>>, %arg4: memref<64x32xf32, #tpu.memory_space<vmem>>) attributes {dimension_semantics = [#tpu.dimension_semantics<parallel>], iteration_bounds = array<i64: 1>, scalar_prefetch = 0 : i64, scratch_operands = 0 : i64, tpu.core_type = #tpu.core_type<tc>, window_params = [{transform_indices = @transform_0, window_bounds = array<i64: 64, 51>}, {pipeline_mode = #tpu.pipeline_mode<synchronous>, transform_indices = @transform_1, window_bounds = array<i64: 51, 32>}, {pipeline_mode = #tpu.pipeline_mode<synchronous>, transform_indices = @transform_2, window_bounds = array<i64: 1, 32>}, {transform_indices = @transform_3, window_bounds = array<i64: 64, 32>}]} {
    %c0 = arith.constant 0 : index
    %c0_0 = arith.constant 0 : index
    %0 = vector.load %arg1[%c0, %c0_0] : memref<64x51xf32, #tpu.memory_space<vmem>>, vector<64x51xf32>
    %1 = arith.truncf %0 : vector<64x51xf32> to vector<64x51xbf16>
    %c0_1 = arith.constant 0 : index
    %c0_2 = arith.constant 0 : index
    %2 = vector.load %arg2[%c0_1, %c0_2] : memref<51x32xbf16, #tpu.memory_space<vmem>>, vector<51x32xbf16>
    %cst = arith.constant dense<0.000000e+00> : vector<64x32xf32>
    %3 = tpu.matmul %1, %2, %cst {dimension_numbers = #tpu.dot_dimension_numbers<[1], [0], [0], [1], [0, 0, 1, 1], [], []>} : vector<64x51xbf16>, vector<51x32xbf16>, vector<64x32xf32> -> vector<64x32xf32>
    %c0_3 = arith.constant 0 : index
    %c0_4 = arith.constant 0 : index
    %4 = vector.load %arg3[%c0_3, %c0_4] : memref<1x32xf32, #tpu.memory_space<vmem>>, vector<1x32xf32>
    %5 = vector.broadcast %4 : vector<1x32xf32> to vector<64x32xf32>
    %6 = arith.addf %3, %5 : vector<64x32xf32>
    %c0_5 = arith.constant 0 : index
    %c0_6 = arith.constant 0 : index
    %7 = vector.load %arg4[%c0_5, %c0_6] : memref<64x32xf32, #tpu.memory_space<vmem>>, vector<64x32xf32>
    tpu.vector_store %arg4[%c0_5, %c0_6], %6 {strides = array<i32>} : memref<64x32xf32, #tpu.memory_space<vmem>>, vector<64x32xf32>,
    return
  }
  func.func @transform_0(%arg0: i32) -> (i32, i32) {
    %c0_i32 = arith.constant 0 : i32
    %c0_i32_0 = arith.constant 0 : i32
    return %arg0, %c0_i32 : i32, i32
  }
  func.func @transform_1(%arg0: i32) -> (i32, i32) {
    %c0_i32 = arith.constant 0 : i32
    %c0_i32_0 = arith.constant 0 : i32
    %c0_i32_1 = arith.constant 0 : i32
    return %c0_i32, %c0_i32_0 : i32, i32
  }
  func.func @transform_2(%arg0: i32) -> (i32, i32) {
    %c0_i32 = arith.constant 0 : i32
    %c0_i32_0 = arith.constant 0 : i32
    %c0_i32_1 = arith.constant 0 : i32
    return %c0_i32, %c0_i32_0 : i32, i32
  }
  func.func @transform_3(%arg0: i32) -> (i32, i32) {
    %c0_i32 = arith.constant 0 : i32
    %c0_i32_0 = arith.constant 0 : i32
    return %arg0, %c0_i32 : i32, i32
  }
}

module attributes {stable_mosaic.version = 11 : i64} {
  func.func @_geo_decoder_kernel(%arg0: i32, %arg1: i32, %arg2: memref<1x32x32xf32, #tpu.memory_space<vmem>>, %arg3: memref<1x16x32xf32, #tpu.memory_space<vmem>>, %arg4: memref<1x32xf32, #tpu.memory_space<vmem>>, %arg5: memref<1x32xf32, #tpu.memory_space<vmem>>, %arg6: memref<1x32xf32, #tpu.memory_space<vmem>>, %arg7: memref<1x32xf32, #tpu.memory_space<vmem>>, %arg8: memref<32x32xbf16, #tpu.memory_space<vmem>>, %arg9: memref<32x1xf32, #tpu.memory_space<vmem>>, %arg10: memref<32x32xbf16, #tpu.memory_space<vmem>>, %arg11: memref<32x1xf32, #tpu.memory_space<vmem>>, %arg12: memref<32x32xbf16, #tpu.memory_space<vmem>>, %arg13: memref<32x1xf32, #tpu.memory_space<vmem>>, %arg14: memref<4x8x32xbf16, #tpu.memory_space<vmem>>, %arg15: memref<1x32xf32, #tpu.memory_space<vmem>>, %arg16: memref<1x32xf32, #tpu.memory_space<vmem>>, %arg17: memref<1x32xf32, #tpu.memory_space<vmem>>, %arg18: memref<32x128xbf16, #tpu.memory_space<vmem>>, %arg19: memref<1x128xf32, #tpu.memory_space<vmem>>, %arg20: memref<128x32xbf16, #tpu.memory_space<vmem>>, %arg21: memref<1x32xf32, #tpu.memory_space<vmem>>, %arg22: memref<1x32xf32, #tpu.memory_space<vmem>>, %arg23: memref<1x32xf32, #tpu.memory_space<vmem>>, %arg24: memref<1x32xbf16, #tpu.memory_space<vmem>>, %arg25: memref<1x1xf32, #tpu.memory_space<vmem>>, %arg26: memref<1x1x32xf32, #tpu.memory_space<vmem>>) attributes {dimension_semantics = [#tpu.dimension_semantics<parallel>, #tpu.dimension_semantics<parallel>], iteration_bounds = array<i64: 2, 1>, scalar_prefetch = 0 : i64, scratch_operands = 0 : i64, tpu.core_type = #tpu.core_type<tc>, window_params = [{transform_indices = @transform_0, window_bounds = array<i64: 1, 32, 32>}, {transform_indices = @transform_1, window_bounds = array<i64: 1, 16, 32>}, {pipeline_mode = #tpu.pipeline_mode<synchronous>, transform_indices = @transform_2, window_bounds = array<i64: 1, 32>}, {pipeline_mode = #tpu.pipeline_mode<synchronous>, transform_indices = @transform_3, window_bounds = array<i64: 1, 32>}, {pipeline_mode = #tpu.pipeline_mode<synchronous>, transform_indices = @transform_4, window_bounds = array<i64: 1, 32>}, {pipeline_mode = #tpu.pipeline_mode<synchronous>, transform_indices = @transform_5, window_bounds = array<i64: 1, 32>}, {pipeline_mode = #tpu.pipeline_mode<synchronous>, transform_indices = @transform_6, window_bounds = array<i64: 32, 32>}, {pipeline_mode = #tpu.pipeline_mode<synchronous>, transform_indices = @transform_7, window_bounds = array<i64: 32, 1>}, {pipeline_mode = #tpu.pipeline_mode<synchronous>, transform_indices = @transform_8, window_bounds = array<i64: 32, 32>}, {pipeline_mode = #tpu.pipeline_mode<synchronous>, transform_indices = @transform_9, window_bounds = array<i64: 32, 1>}, {pipeline_mode = #tpu.pipeline_mode<synchronous>, transform_indices = @transform_10, window_bounds = array<i64: 32, 32>}, {pipeline_mode = #tpu.pipeline_mode<synchronous>, transform_indices = @transform_11, window_bounds = array<i64: 32, 1>}, {pipeline_mode = #tpu.pipeline_mode<synchronous>, transform_indices = @transform_12, window_bounds = array<i64: 4, 8, 32>}, {pipeline_mode = #tpu.pipeline_mode<synchronous>, transform_indices = @transform_13, window_bounds = array<i64: 1, 32>}, {pipeline_mode = #tpu.pipeline_mode<synchronous>, transform_indices = @transform_14, window_bounds = array<i64: 1, 32>}, {pipeline_mode = #tpu.pipeline_mode<synchronous>, transform_indices = @transform_15, window_bounds = array<i64: 1, 32>}, {pipeline_mode = #tpu.pipeline_mode<synchronous>, transform_indices = @transform_16, window_bounds = array<i64: 32, 128>}, {pipeline_mode = #tpu.pipeline_mode<synchronous>, transform_indices = @transform_17, window_bounds = array<i64: 1, 128>}, {pipeline_mode = #tpu.pipeline_mode<synchronous>, transform_indices = @transform_18, window_bounds = array<i64: 128, 32>}, {pipeline_mode = #tpu.pipeline_mode<synchronous>, transform_indices = @transform_19, window_bounds = array<i64: 1, 32>}, {pipeline_mode = #tpu.pipeline_mode<synchronous>, transform_indices = @transform_20, window_bounds = array<i64: 1, 32>}, {pipeline_mode = #tpu.pipeline_mode<synchronous>, transform_indices = @transform_21, window_bounds = array<i64: 1, 32>}, {pipeline_mode = #tpu.pipeline_mode<synchronous>, transform_indices = @transform_22, window_bounds = array<i64: 1, 32>}, {pipeline_mode = #tpu.pipeline_mode<synchronous>, transform_indices = @transform_23, window_bounds = array<i64: 1, 1>}, {transform_indices = @transform_24, window_bounds = array<i64: 1, 1, 32>}]} {
    %c0 = arith.constant 0 : index
    %c0_0 = arith.constant 0 : index
    %c0_1 = arith.constant 0 : index
    %0 = vector.load %arg2[%c0, %c0_0, %c0_1] : memref<1x32x32xf32, #tpu.memory_space<vmem>>, vector<1x32x32xf32>
    %1 = vector.shape_cast %0 : vector<1x32x32xf32> to vector<32x32xf32>
    %c0_2 = arith.constant 0 : index
    %c0_3 = arith.constant 0 : index
    %c0_4 = arith.constant 0 : index
    %2 = vector.load %arg3[%c0_2, %c0_3, %c0_4] : memref<1x16x32xf32, #tpu.memory_space<vmem>>, vector<1x16x32xf32>
    %3 = vector.shape_cast %2 : vector<1x16x32xf32> to vector<16x32xf32>
    %c0_5 = arith.constant 0 : index
    %c0_6 = arith.constant 0 : index
    %4 = vector.load %arg4[%c0_5, %c0_6] : memref<1x32xf32, #tpu.memory_space<vmem>>, vector<1x32xf32>
    %c0_7 = arith.constant 0 : index
    %c0_8 = arith.constant 0 : index
    %5 = vector.load %arg5[%c0_7, %c0_8] : memref<1x32xf32, #tpu.memory_space<vmem>>, vector<1x32xf32>
    %cst = arith.constant dense<0.000000e+00> : vector<32xf32>
    %6 = vector.multi_reduction <add>, %1, %cst [1] : vector<32x32xf32> to vector<32xf32>
    %7 = vector.shape_cast %6 : vector<32xf32> to vector<32x1xf32>
    %cst_9 = arith.constant 3.200000e+01 : f32
    %8 = vector.broadcast %cst_9 : f32 to vector<32x1xf32>
    %9 = arith.divf %7, %8 : vector<32x1xf32>
    %10 = vector.broadcast %9 : vector<32x1xf32> to vector<32x32xf32>
    %11 = arith.subf %1, %10 : vector<32x32xf32>
    %12 = arith.mulf %11, %11 : vector<32x32xf32>
    %cst_10 = arith.constant dense<0.000000e+00> : vector<32xf32>
    %13 = vector.multi_reduction <add>, %12, %cst_10 [1] : vector<32x32xf32> to vector<32xf32>
    %14 = vector.shape_cast %13 : vector<32xf32> to vector<32x1xf32>
    %cst_11 = arith.constant 3.200000e+01 : f32
    %15 = vector.broadcast %cst_11 : f32 to vector<32x1xf32>
    %16 = arith.divf %14, %15 : vector<32x1xf32>
    %cst_12 = arith.constant 9.99999974E-6 : f32
    %17 = vector.broadcast %cst_12 : f32 to vector<32x1xf32>
    %18 = arith.addf %16, %17 : vector<32x1xf32>
    %19 = math.rsqrt %18 : vector<32x1xf32>
    %20 = vector.broadcast %19 : vector<32x1xf32> to vector<32x32xf32>
    %21 = arith.mulf %11, %20 : vector<32x32xf32>
    %22 = vector.broadcast %4 : vector<1x32xf32> to vector<32x32xf32>
    %23 = arith.mulf %21, %22 : vector<32x32xf32>
    %24 = vector.broadcast %5 : vector<1x32xf32> to vector<32x32xf32>
    %25 = arith.addf %23, %24 : vector<32x32xf32>
    %c0_13 = arith.constant 0 : index
    %c0_14 = arith.constant 0 : index
    %26 = vector.load %arg6[%c0_13, %c0_14] : memref<1x32xf32, #tpu.memory_space<vmem>>, vector<1x32xf32>
    %c0_15 = arith.constant 0 : index
    %c0_16 = arith.constant 0 : index
    %27 = vector.load %arg7[%c0_15, %c0_16] : memref<1x32xf32, #tpu.memory_space<vmem>>, vector<1x32xf32>
    %cst_17 = arith.constant dense<0.000000e+00> : vector<16xf32>
    %28 = vector.multi_reduction <add>, %3, %cst_17 [1] : vector<16x32xf32> to vector<16xf32>
    %29 = vector.shape_cast %28 : vector<16xf32> to vector<16x1xf32>
    %cst_18 = arith.constant 3.200000e+01 : f32
    %30 = vector.broadcast %cst_18 : f32 to vector<16x1xf32>
    %31 = arith.divf %29, %30 : vector<16x1xf32>
    %32 = vector.broadcast %31 : vector<16x1xf32> to vector<16x32xf32>
    %33 = arith.subf %3, %32 : vector<16x32xf32>
    %34 = arith.mulf %33, %33 : vector<16x32xf32>
    %cst_19 = arith.constant dense<0.000000e+00> : vector<16xf32>
    %35 = vector.multi_reduction <add>, %34, %cst_19 [1] : vector<16x32xf32> to vector<16xf32>
    %36 = vector.shape_cast %35 : vector<16xf32> to vector<16x1xf32>
    %cst_20 = arith.constant 3.200000e+01 : f32
    %37 = vector.broadcast %cst_20 : f32 to vector<16x1xf32>
    %38 = arith.divf %36, %37 : vector<16x1xf32>
    %cst_21 = arith.constant 9.99999974E-6 : f32
    %39 = vector.broadcast %cst_21 : f32 to vector<16x1xf32>
    %40 = arith.addf %38, %39 : vector<16x1xf32>
    %41 = math.rsqrt %40 : vector<16x1xf32>
    %42 = vector.broadcast %41 : vector<16x1xf32> to vector<16x32xf32>
    %43 = arith.mulf %33, %42 : vector<16x32xf32>
    %44 = vector.broadcast %26 : vector<1x32xf32> to vector<16x32xf32>
    %45 = arith.mulf %43, %44 : vector<16x32xf32>
    %46 = vector.broadcast %27 : vector<1x32xf32> to vector<16x32xf32>
    %47 = arith.addf %45, %46 : vector<16x32xf32>
    %c0_22 = arith.constant 0 : index
    %c0_23 = arith.constant 0 : index
    %48 = vector.load %arg8[%c0_22, %c0_23] : memref<32x32xbf16, #tpu.memory_space<vmem>>, vector<32x32xbf16>
    %c0_24 = arith.constant 0 : index
    %c0_25 = arith.constant 0 : index
    %49 = vector.load %arg9[%c0_24, %c0_25] : memref<32x1xf32, #tpu.memory_space<vmem>>, vector<32x1xf32>
    %c0_26 = arith.constant 0 : index
    %c0_27 = arith.constant 0 : index
    %50 = vector.load %arg10[%c0_26, %c0_27] : memref<32x32xbf16, #tpu.memory_space<vmem>>, vector<32x32xbf16>
    %c0_28 = arith.constant 0 : index
    %c0_29 = arith.constant 0 : index
    %51 = vector.load %arg11[%c0_28, %c0_29] : memref<32x1xf32, #tpu.memory_space<vmem>>, vector<32x1xf32>
    %c0_30 = arith.constant 0 : index
    %c0_31 = arith.constant 0 : index
    %52 = vector.load %arg12[%c0_30, %c0_31] : memref<32x32xbf16, #tpu.memory_space<vmem>>, vector<32x32xbf16>
    %c0_32 = arith.constant 0 : index
    %c0_33 = arith.constant 0 : index
    %53 = vector.load %arg13[%c0_32, %c0_33] : memref<32x1xf32, #tpu.memory_space<vmem>>, vector<32x1xf32>
    %c0_34 = arith.constant 0 : index
    %c0_35 = arith.constant 0 : index
    %c0_36 = arith.constant 0 : index
    %54 = vector.load %arg14[%c0_34, %c0_35, %c0_36] : memref<4x8x32xbf16, #tpu.memory_space<vmem>>, vector<4x8x32xbf16>
    %c0_37 = arith.constant 0 : index
    %c0_38 = arith.constant 0 : index
    %55 = vector.load %arg15[%c0_37, %c0_38] : memref<1x32xf32, #tpu.memory_space<vmem>>, vector<1x32xf32>
    %56 = arith.truncf %25 : vector<32x32xf32> to vector<32x32xbf16>
    %57 = arith.truncf %47 : vector<16x32xf32> to vector<16x32xbf16>
    %cst_39 = arith.constant dense<0.000000e+00> : vector<32x32xf32>
    %58 = tpu.matmul %48, %56, %cst_39 {dimension_numbers = #tpu.dot_dimension_numbers<[1], [1], [0], [0], [0, 0, 1, 0], [], []>} : vector<32x32xbf16>, vector<32x32xbf16>, vector<32x32xf32> -> vector<32x32xf32>
    %59 = vector.broadcast %49 : vector<32x1xf32> to vector<32x32xf32>
    %60 = arith.addf %58, %59 : vector<32x32xf32>
    %cst_40 = arith.constant dense<0.000000e+00> : vector<32x16xf32>
    %61 = tpu.matmul %50, %57, %cst_40 {dimension_numbers = #tpu.dot_dimension_numbers<[1], [1], [0], [0], [0, 0, 1, 0], [], []>} : vector<32x32xbf16>, vector<16x32xbf16>, vector<32x16xf32> -> vector<32x16xf32>
    %62 = vector.broadcast %51 : vector<32x1xf32> to vector<32x16xf32>
    %63 = arith.addf %61, %62 : vector<32x16xf32>
    %cst_41 = arith.constant dense<0.000000e+00> : vector<32x16xf32>
    %64 = tpu.matmul %52, %57, %cst_41 {dimension_numbers = #tpu.dot_dimension_numbers<[1], [1], [0], [0], [0, 0, 1, 0], [], []>} : vector<32x32xbf16>, vector<16x32xbf16>, vector<32x16xf32> -> vector<32x16xf32>
    %65 = vector.broadcast %53 : vector<32x1xf32> to vector<32x16xf32>
    %66 = arith.addf %64, %65 : vector<32x16xf32>
    %67 = vector.shape_cast %60 : vector<32x32xf32> to vector<4x8x32xf32>
    %68 = vector.shape_cast %63 : vector<32x16xf32> to vector<4x8x16xf32>
    %69 = arith.truncf %68 : vector<4x8x16xf32> to vector<4x8x16xbf16>
    %70 = vector.shape_cast %66 : vector<32x16xf32> to vector<4x8x16xf32>
    %71 = arith.truncf %70 : vector<4x8x16xf32> to vector<4x8x16xbf16>
    %72 = vector.extract_strided_slice %67 {offsets = [0, 0, 0], sizes = [1, 8, 32], strides = [1, 1, 1]} : vector<4x8x32xf32> to vector<1x8x32xf32>
    %73 = vector.shape_cast %72 : vector<1x8x32xf32> to vector<8x32xf32>
    %74 = tpu.transpose %73, [1, 0] : vector<8x32xf32> -> vector<32x8xf32>
    %75 = vector.extract_strided_slice %67 {offsets = [1, 0, 0], sizes = [1, 8, 32], strides = [1, 1, 1]} : vector<4x8x32xf32> to vector<1x8x32xf32>
    %76 = vector.shape_cast %75 : vector<1x8x32xf32> to vector<8x32xf32>
    %77 = tpu.transpose %76, [1, 0] : vector<8x32xf32> -> vector<32x8xf32>
    %78 = vector.extract_strided_slice %67 {offsets = [2, 0, 0], sizes = [1, 8, 32], strides = [1, 1, 1]} : vector<4x8x32xf32> to vector<1x8x32xf32>
    %79 = vector.shape_cast %78 : vector<1x8x32xf32> to vector<8x32xf32>
    %80 = tpu.transpose %79, [1, 0] : vector<8x32xf32> -> vector<32x8xf32>
    %81 = vector.extract_strided_slice %67 {offsets = [3, 0, 0], sizes = [1, 8, 32], strides = [1, 1, 1]} : vector<4x8x32xf32> to vector<1x8x32xf32>
    %82 = vector.shape_cast %81 : vector<1x8x32xf32> to vector<8x32xf32>
    %83 = tpu.transpose %82, [1, 0] : vector<8x32xf32> -> vector<32x8xf32>
    %84 = vector.shape_cast %74 : vector<32x8xf32> to vector<1x32x8xf32>
    %85 = vector.shape_cast %77 : vector<32x8xf32> to vector<1x32x8xf32>
    %86 = vector.shape_cast %80 : vector<32x8xf32> to vector<1x32x8xf32>
    %87 = vector.shape_cast %83 : vector<32x8xf32> to vector<1x32x8xf32>
    %88 = tpu.concatenate %84, %85, %86, %87 in 0 : vector<1x32x8xf32>, vector<1x32x8xf32>, vector<1x32x8xf32>, vector<1x32x8xf32> -> vector<4x32x8xf32>
    %89 = arith.truncf %88 : vector<4x32x8xf32> to vector<4x32x8xbf16>
    "tpu.trace_start"() <{level = 10 : i32, message = "htc,hcs->hts"}> : () -> ()
    %cst_42 = arith.constant dense<0.000000e+00> : vector<4x32x16xf32>
    %90 = tpu.matmul %89, %69, %cst_42 {dimension_numbers = #tpu.dot_dimension_numbers<[2], [1], [1], [2], [0, 0, 0, 1, 1, 2], [0], [0]>} : vector<4x32x8xbf16>, vector<4x8x16xbf16>, vector<4x32x16xf32> -> vector<4x32x16xf32>
    "tpu.trace_stop"() : () -> ()
    %cst_43 = arith.constant dense<0xFF800000> : vector<4x32xf32>
    %91 = vector.multi_reduction <maximumf>, %90, %cst_43 [2] : vector<4x32x16xf32> to vector<4x32xf32>
    %92 = vector.shape_cast %91 : vector<4x32xf32> to vector<4x32x1xf32>
    %93 = vector.broadcast %92 : vector<4x32x1xf32> to vector<4x32x16xf32>
    %94 = arith.subf %90, %93 : vector<4x32x16xf32>
    %95 = math.exp %94 : vector<4x32x16xf32>
    %cst_44 = arith.constant dense<0.000000e+00> : vector<4x32xf32>
    %96 = vector.multi_reduction <add>, %95, %cst_44 [2] : vector<4x32x16xf32> to vector<4x32xf32>
    %97 = vector.shape_cast %96 : vector<4x32xf32> to vector<4x32x1xf32>
    %98 = tpu.reciprocal %97 {approx = true} : vector<4x32x1xf32> -> vector<4x32x1xf32>
    %99 = vector.broadcast %98 : vector<4x32x1xf32> to vector<4x32x16xf32>
    %100 = arith.mulf %95, %99 : vector<4x32x16xf32>
    %101 = arith.truncf %100 : vector<4x32x16xf32> to vector<4x32x16xbf16>
    "tpu.trace_start"() <{level = 10 : i32, message = "hts,hcs->htc"}> : () -> ()
    %cst_45 = arith.constant dense<0.000000e+00> : vector<4x32x8xf32>
    %102 = tpu.matmul %101, %71, %cst_45 {dimension_numbers = #tpu.dot_dimension_numbers<[2], [2], [1], [1], [0, 0, 0, 1, 1, 1], [0], [0]>} : vector<4x32x16xbf16>, vector<4x8x16xbf16>, vector<4x32x8xf32> -> vector<4x32x8xf32>
    "tpu.trace_stop"() : () -> ()
    %103 = arith.truncf %102 : vector<4x32x8xf32> to vector<4x32x8xbf16>
    %cst_46 = arith.constant 0.000000e+00 : f32
    %104 = vector.broadcast %cst_46 : f32 to vector<32x32xf32>
    %105 = vector.extract_strided_slice %103 {offsets = [0, 0, 0], sizes = [1, 32, 8], strides = [1, 1, 1]} : vector<4x32x8xbf16> to vector<1x32x8xbf16>
    %106 = vector.shape_cast %105 : vector<1x32x8xbf16> to vector<32x8xbf16>
    %107 = vector.extract_strided_slice %54 {offsets = [0, 0, 0], sizes = [1, 8, 32], strides = [1, 1, 1]} : vector<4x8x32xbf16> to vector<1x8x32xbf16>
    %108 = vector.shape_cast %107 : vector<1x8x32xbf16> to vector<8x32xbf16>
    %cst_47 = arith.constant dense<0.000000e+00> : vector<32x32xf32>
    %109 = tpu.matmul %106, %108, %cst_47 {dimension_numbers = #tpu.dot_dimension_numbers<[1], [0], [0], [1], [0, 0, 1, 1], [], []>} : vector<32x8xbf16>, vector<8x32xbf16>, vector<32x32xf32> -> vector<32x32xf32>
    %110 = arith.addf %104, %109 : vector<32x32xf32>
    %111 = vector.extract_strided_slice %103 {offsets = [1, 0, 0], sizes = [1, 32, 8], strides = [1, 1, 1]} : vector<4x32x8xbf16> to vector<1x32x8xbf16>
    %112 = vector.shape_cast %111 : vector<1x32x8xbf16> to vector<32x8xbf16>
    %113 = vector.extract_strided_slice %54 {offsets = [1, 0, 0], sizes = [1, 8, 32], strides = [1, 1, 1]} : vector<4x8x32xbf16> to vector<1x8x32xbf16>
    %114 = vector.shape_cast %113 : vector<1x8x32xbf16> to vector<8x32xbf16>
    %cst_48 = arith.constant dense<0.000000e+00> : vector<32x32xf32>
    %115 = tpu.matmul %112, %114, %cst_48 {dimension_numbers = #tpu.dot_dimension_numbers<[1], [0], [0], [1], [0, 0, 1, 1], [], []>} : vector<32x8xbf16>, vector<8x32xbf16>, vector<32x32xf32> -> vector<32x32xf32>
    %116 = arith.addf %110, %115 : vector<32x32xf32>
    %117 = vector.extract_strided_slice %103 {offsets = [2, 0, 0], sizes = [1, 32, 8], strides = [1, 1, 1]} : vector<4x32x8xbf16> to vector<1x32x8xbf16>
    %118 = vector.shape_cast %117 : vector<1x32x8xbf16> to vector<32x8xbf16>
    %119 = vector.extract_strided_slice %54 {offsets = [2, 0, 0], sizes = [1, 8, 32], strides = [1, 1, 1]} : vector<4x8x32xbf16> to vector<1x8x32xbf16>
    %120 = vector.shape_cast %119 : vector<1x8x32xbf16> to vector<8x32xbf16>
    %cst_49 = arith.constant dense<0.000000e+00> : vector<32x32xf32>
    %121 = tpu.matmul %118, %120, %cst_49 {dimension_numbers = #tpu.dot_dimension_numbers<[1], [0], [0], [1], [0, 0, 1, 1], [], []>} : vector<32x8xbf16>, vector<8x32xbf16>, vector<32x32xf32> -> vector<32x32xf32>
    %122 = arith.addf %116, %121 : vector<32x32xf32>
    %123 = vector.extract_strided_slice %103 {offsets = [3, 0, 0], sizes = [1, 32, 8], strides = [1, 1, 1]} : vector<4x32x8xbf16> to vector<1x32x8xbf16>
    %124 = vector.shape_cast %123 : vector<1x32x8xbf16> to vector<32x8xbf16>
    %125 = vector.extract_strided_slice %54 {offsets = [3, 0, 0], sizes = [1, 8, 32], strides = [1, 1, 1]} : vector<4x8x32xbf16> to vector<1x8x32xbf16>
    %126 = vector.shape_cast %125 : vector<1x8x32xbf16> to vector<8x32xbf16>
    %cst_50 = arith.constant dense<0.000000e+00> : vector<32x32xf32>
    %127 = tpu.matmul %124, %126, %cst_50 {dimension_numbers = #tpu.dot_dimension_numbers<[1], [0], [0], [1], [0, 0, 1, 1], [], []>} : vector<32x8xbf16>, vector<8x32xbf16>, vector<32x32xf32> -> vector<32x32xf32>
    %128 = arith.addf %122, %127 : vector<32x32xf32>
    %129 = vector.broadcast %55 : vector<1x32xf32> to vector<32x32xf32>
    %130 = arith.addf %128, %129 : vector<32x32xf32>
    %131 = arith.addf %1, %130 : vector<32x32xf32>
    %c0_51 = arith.constant 0 : index
    %c0_52 = arith.constant 0 : index
    %132 = vector.load %arg16[%c0_51, %c0_52] : memref<1x32xf32, #tpu.memory_space<vmem>>, vector<1x32xf32>
    %c0_53 = arith.constant 0 : index
    %c0_54 = arith.constant 0 : index
    %133 = vector.load %arg17[%c0_53, %c0_54] : memref<1x32xf32, #tpu.memory_space<vmem>>, vector<1x32xf32>
    %c0_55 = arith.constant 0 : index
    %c0_56 = arith.constant 0 : index
    %134 = vector.load %arg18[%c0_55, %c0_56] : memref<32x128xbf16, #tpu.memory_space<vmem>>, vector<32x128xbf16>
    %c0_57 = arith.constant 0 : index
    %c0_58 = arith.constant 0 : index
    %135 = vector.load %arg19[%c0_57, %c0_58] : memref<1x128xf32, #tpu.memory_space<vmem>>, vector<1x128xf32>
    %c0_59 = arith.constant 0 : index
    %c0_60 = arith.constant 0 : index
    %136 = vector.load %arg20[%c0_59, %c0_60] : memref<128x32xbf16, #tpu.memory_space<vmem>>, vector<128x32xbf16>
    %c0_61 = arith.constant 0 : index
    %c0_62 = arith.constant 0 : index
    %137 = vector.load %arg21[%c0_61, %c0_62] : memref<1x32xf32, #tpu.memory_space<vmem>>, vector<1x32xf32>
    %cst_63 = arith.constant dense<0.000000e+00> : vector<32xf32>
    %138 = vector.multi_reduction <add>, %131, %cst_63 [1] : vector<32x32xf32> to vector<32xf32>
    %139 = vector.shape_cast %138 : vector<32xf32> to vector<32x1xf32>
    %cst_64 = arith.constant 3.200000e+01 : f32
    %140 = vector.broadcast %cst_64 : f32 to vector<32x1xf32>
    %141 = arith.divf %139, %140 : vector<32x1xf32>
    %142 = vector.broadcast %141 : vector<32x1xf32> to vector<32x32xf32>
    %143 = arith.subf %131, %142 : vector<32x32xf32>
    %144 = arith.mulf %143, %143 : vector<32x32xf32>
    %cst_65 = arith.constant dense<0.000000e+00> : vector<32xf32>
    %145 = vector.multi_reduction <add>, %144, %cst_65 [1] : vector<32x32xf32> to vector<32xf32>
    %146 = vector.shape_cast %145 : vector<32xf32> to vector<32x1xf32>
    %cst_66 = arith.constant 3.200000e+01 : f32
    %147 = vector.broadcast %cst_66 : f32 to vector<32x1xf32>
    %148 = arith.divf %146, %147 : vector<32x1xf32>
    %cst_67 = arith.constant 9.99999974E-6 : f32
    %149 = vector.broadcast %cst_67 : f32 to vector<32x1xf32>
    %150 = arith.addf %148, %149 : vector<32x1xf32>
    %151 = math.rsqrt %150 : vector<32x1xf32>
    %152 = vector.broadcast %151 : vector<32x1xf32> to vector<32x32xf32>
    %153 = arith.mulf %143, %152 : vector<32x32xf32>
    %154 = vector.broadcast %132 : vector<1x32xf32> to vector<32x32xf32>
    %155 = arith.mulf %153, %154 : vector<32x32xf32>
    %156 = vector.broadcast %133 : vector<1x32xf32> to vector<32x32xf32>
    %157 = arith.addf %155, %156 : vector<32x32xf32>
    %158 = arith.truncf %157 : vector<32x32xf32> to vector<32x32xbf16>
    %cst_68 = arith.constant dense<0.000000e+00> : vector<32x128xf32>
    %159 = tpu.matmul %158, %134, %cst_68 {dimension_numbers = #tpu.dot_dimension_numbers<[1], [0], [0], [1], [0, 0, 1, 1], [], []>} : vector<32x32xbf16>, vector<32x128xbf16>, vector<32x128xf32> -> vector<32x128xf32>
    %160 = vector.broadcast %135 : vector<1x128xf32> to vector<32x128xf32>
    %161 = arith.addf %159, %160 : vector<32x128xf32>
    %cst_69 = arith.constant 5.000000e-01 : f32
    %162 = vector.broadcast %cst_69 : f32 to vector<32x128xf32>
    %163 = arith.mulf %162, %161 : vector<32x128xf32>
    %cst_70 = arith.constant 0.707106769 : f32
    %164 = vector.broadcast %cst_70 : f32 to vector<32x128xf32>
    %165 = arith.mulf %161, %164 : vector<32x128xf32>
    %166 = math.absf %165 : vector<32x128xf32>
    %cst_71 = arith.constant 0.327591091 : f32
    %167 = vector.broadcast %cst_71 : f32 to vector<32x128xf32>
    %168 = arith.mulf %167, %166 : vector<32x128xf32>
    %cst_72 = arith.constant 1.000000e+00 : f32
    %169 = vector.broadcast %cst_72 : f32 to vector<32x128xf32>
    %170 = arith.addf %169, %168 : vector<32x128xf32>
    %171 = tpu.reciprocal %170 {approx = true} : vector<32x128xf32> -> vector<32x128xf32>
    %cst_73 = arith.constant 1.06140542 : f32
    %172 = vector.broadcast %cst_73 : f32 to vector<32x128xf32>
    %173 = arith.mulf %172, %171 : vector<32x128xf32>
    %cst_74 = arith.constant -1.45315206 : f32
    %174 = vector.broadcast %cst_74 : f32 to vector<32x128xf32>
    %175 = arith.addf %173, %174 : vector<32x128xf32>
    %176 = arith.mulf %175, %171 : vector<32x128xf32>
    %cst_75 = arith.constant 1.42141378 : f32
    %177 = vector.broadcast %cst_75 : f32 to vector<32x128xf32>
    %178 = arith.addf %176, %177 : vector<32x128xf32>
    %179 = arith.mulf %178, %171 : vector<32x128xf32>
    %cst_76 = arith.constant -0.284496725 : f32
    %180 = vector.broadcast %cst_76 : f32 to vector<32x128xf32>
    %181 = arith.addf %179, %180 : vector<32x128xf32>
    %182 = arith.mulf %181, %171 : vector<32x128xf32>
    %cst_77 = arith.constant 0.254829586 : f32
    %183 = vector.broadcast %cst_77 : f32 to vector<32x128xf32>
    %184 = arith.addf %182, %183 : vector<32x128xf32>
    %185 = arith.mulf %184, %171 : vector<32x128xf32>
    %cst_78 = arith.constant 0.000000e+00 : f32
    %186 = vector.broadcast %cst_78 : f32 to vector<32x128xf32>
    %187 = arith.subf %186, %166 : vector<32x128xf32>
    %188 = arith.mulf %187, %166 : vector<32x128xf32>
    %189 = math.exp %188 : vector<32x128xf32>
    %190 = arith.mulf %185, %189 : vector<32x128xf32>
    %cst_79 = arith.constant 1.000000e+00 : f32
    %191 = vector.broadcast %cst_79 : f32 to vector<32x128xf32>
    %192 = arith.subf %191, %190 : vector<32x128xf32>
    %cst_80 = arith.constant 0.000000e+00 : f32
    %193 = vector.broadcast %cst_80 : f32 to vector<32x128xf32>
    %194 = arith.cmpf oge, %165, %193 : vector<32x128xf32>
    %cst_81 = arith.constant 0.000000e+00 : f32
    %195 = vector.broadcast %cst_81 : f32 to vector<32x128xf32>
    %196 = arith.subf %195, %192 : vector<32x128xf32>
    %197 = arith.select %194, %192, %196 : vector<32x128xi1>, vector<32x128xf32>
    %cst_82 = arith.constant 1.000000e+00 : f32
    %198 = vector.broadcast %cst_82 : f32 to vector<32x128xf32>
    %199 = arith.addf %198, %197 : vector<32x128xf32>
    %200 = arith.mulf %163, %199 : vector<32x128xf32>
    %201 = arith.truncf %200 : vector<32x128xf32> to vector<32x128xbf16>
    %cst_83 = arith.constant dense<0.000000e+00> : vector<32x32xf32>
    %202 = tpu.matmul %201, %136, %cst_83 {dimension_numbers = #tpu.dot_dimension_numbers<[1], [0], [0], [1], [0, 0, 1, 1], [], []>} : vector<32x128xbf16>, vector<128x32xbf16>, vector<32x32xf32> -> vector<32x32xf32>
    %203 = vector.broadcast %137 : vector<1x32xf32> to vector<32x32xf32>
    %204 = arith.addf %202, %203 : vector<32x32xf32>
    %205 = arith.addf %131, %204 : vector<32x32xf32>
    %c0_84 = arith.constant 0 : index
    %c0_85 = arith.constant 0 : index
    %206 = vector.load %arg22[%c0_84, %c0_85] : memref<1x32xf32, #tpu.memory_space<vmem>>, vector<1x32xf32>
    %c0_86 = arith.constant 0 : index
    %c0_87 = arith.constant 0 : index
    %207 = vector.load %arg23[%c0_86, %c0_87] : memref<1x32xf32, #tpu.memory_space<vmem>>, vector<1x32xf32>
    %cst_88 = arith.constant dense<0.000000e+00> : vector<32xf32>
    %208 = vector.multi_reduction <add>, %205, %cst_88 [1] : vector<32x32xf32> to vector<32xf32>
    %209 = vector.shape_cast %208 : vector<32xf32> to vector<32x1xf32>
    %cst_89 = arith.constant 3.200000e+01 : f32
    %210 = vector.broadcast %cst_89 : f32 to vector<32x1xf32>
    %211 = arith.divf %209, %210 : vector<32x1xf32>
    %212 = vector.broadcast %211 : vector<32x1xf32> to vector<32x32xf32>
    %213 = arith.subf %205, %212 : vector<32x32xf32>
    %214 = arith.mulf %213, %213 : vector<32x32xf32>
    %cst_90 = arith.constant dense<0.000000e+00> : vector<32xf32>
    %215 = vector.multi_reduction <add>, %214, %cst_90 [1] : vector<32x32xf32> to vector<32xf32>
    %216 = vector.shape_cast %215 : vector<32xf32> to vector<32x1xf32>
    %cst_91 = arith.constant 3.200000e+01 : f32
    %217 = vector.broadcast %cst_91 : f32 to vector<32x1xf32>
    %218 = arith.divf %216, %217 : vector<32x1xf32>
    %cst_92 = arith.constant 9.99999974E-6 : f32
    %219 = vector.broadcast %cst_92 : f32 to vector<32x1xf32>
    %220 = arith.addf %218, %219 : vector<32x1xf32>
    %221 = math.rsqrt %220 : vector<32x1xf32>
    %222 = vector.broadcast %221 : vector<32x1xf32> to vector<32x32xf32>
    %223 = arith.mulf %213, %222 : vector<32x32xf32>
    %224 = vector.broadcast %206 : vector<1x32xf32> to vector<32x32xf32>
    %225 = arith.mulf %223, %224 : vector<32x32xf32>
    %226 = vector.broadcast %207 : vector<1x32xf32> to vector<32x32xf32>
    %227 = arith.addf %225, %226 : vector<32x32xf32>
    %228 = arith.truncf %227 : vector<32x32xf32> to vector<32x32xbf16>
    %c0_93 = arith.constant 0 : index
    %c0_94 = arith.constant 0 : index
    %229 = vector.load %arg24[%c0_93, %c0_94] : memref<1x32xbf16, #tpu.memory_space<vmem>>, vector<1x32xbf16>
    %cst_95 = arith.constant dense<0.000000e+00> : vector<1x32xf32>
    %230 = tpu.matmul %229, %228, %cst_95 {dimension_numbers = #tpu.dot_dimension_numbers<[1], [1], [0], [0], [0, 0, 1, 0], [], []>} : vector<1x32xbf16>, vector<32x32xbf16>, vector<1x32xf32> -> vector<1x32xf32>
    %c0_96 = arith.constant 0 : index
    %c0_97 = arith.constant 0 : index
    %231 = vector.load %arg25[%c0_96, %c0_97] : memref<1x1xf32, #tpu.memory_space<vmem>>, vector<1x1xf32>
    %232 = vector.broadcast %231 : vector<1x1xf32> to vector<1x32xf32>
    %233 = arith.addf %230, %232 : vector<1x32xf32>
    %c0_98 = arith.constant 0 : index
    %c0_99 = arith.constant 0 : index
    %c0_100 = arith.constant 0 : index
    %234 = vector.load %arg26[%c0_98, %c0_99, %c0_100] : memref<1x1x32xf32, #tpu.memory_space<vmem>>, vector<1x1x32xf32>
    %235 = vector.shape_cast %234 : vector<1x1x32xf32> to vector<1x32xf32>
    %236 = vector.shape_cast %233 : vector<1x32xf32> to vector<1x1x32xf32>
    tpu.vector_store %arg26[%c0_98, %c0_99, %c0_100], %236 {strides = array<i32>} : memref<1x1x32xf32, #tpu.memory_space<vmem>>, vector<1x1x32xf32>,
    return
  }
  func.func @transform_0(%arg0: i32, %arg1: i32) -> (i32, i32, i32) {
    %c0_i32 = arith.constant 0 : i32
    %c0_i32_0 = arith.constant 0 : i32
    return %arg0, %arg1, %c0_i32 : i32, i32, i32
  }
  func.func @transform_1(%arg0: i32, %arg1: i32) -> (i32, i32, i32) {
    %c0_i32 = arith.constant 0 : i32
    %c0_i32_0 = arith.constant 0 : i32
    %c0_i32_1 = arith.constant 0 : i32
    return %arg0, %c0_i32, %c0_i32_0 : i32, i32, i32
  }
  func.func @transform_2(%arg0: i32, %arg1: i32) -> (i32, i32) {
    %c0_i32 = arith.constant 0 : i32
    %c0_i32_0 = arith.constant 0 : i32
    %c0_i32_1 = arith.constant 0 : i32
    return %c0_i32, %c0_i32_0 : i32, i32
  }
  func.func @transform_3(%arg0: i32, %arg1: i32) -> (i32, i32) {
    %c0_i32 = arith.constant 0 : i32
    %c0_i32_0 = arith.constant 0 : i32
    %c0_i32_1 = arith.constant 0 : i32
    return %c0_i32, %c0_i32_0 : i32, i32
  }
  func.func @transform_4(%arg0: i32, %arg1: i32) -> (i32, i32) {
    %c0_i32 = arith.constant 0 : i32
    %c0_i32_0 = arith.constant 0 : i32
    %c0_i32_1 = arith.constant 0 : i32
    return %c0_i32, %c0_i32_0 : i32, i32
  }
  func.func @transform_5(%arg0: i32, %arg1: i32) -> (i32, i32) {
    %c0_i32 = arith.constant 0 : i32
    %c0_i32_0 = arith.constant 0 : i32
    %c0_i32_1 = arith.constant 0 : i32
    return %c0_i32, %c0_i32_0 : i32, i32
  }
  func.func @transform_6(%arg0: i32, %arg1: i32) -> (i32, i32) {
    %c0_i32 = arith.constant 0 : i32
    %c0_i32_0 = arith.constant 0 : i32
    %c0_i32_1 = arith.constant 0 : i32
    return %c0_i32, %c0_i32_0 : i32, i32
  }
  func.func @transform_7(%arg0: i32, %arg1: i32) -> (i32, i32) {
    %c0_i32 = arith.constant 0 : i32
    %c0_i32_0 = arith.constant 0 : i32
    %c0_i32_1 = arith.constant 0 : i32
    return %c0_i32, %c0_i32_0 : i32, i32
  }
  func.func @transform_8(%arg0: i32, %arg1: i32) -> (i32, i32) {
    %c0_i32 = arith.constant 0 : i32
    %c0_i32_0 = arith.constant 0 : i32
    %c0_i32_1 = arith.constant 0 : i32
    return %c0_i32, %c0_i32_0 : i32, i32
  }
  func.func @transform_9(%arg0: i32, %arg1: i32) -> (i32, i32) {
    %c0_i32 = arith.constant 0 : i32
    %c0_i32_0 = arith.constant 0 : i32
    %c0_i32_1 = arith.constant 0 : i32
    return %c0_i32, %c0_i32_0 : i32, i32
  }
  func.func @transform_10(%arg0: i32, %arg1: i32) -> (i32, i32) {
    %c0_i32 = arith.constant 0 : i32
    %c0_i32_0 = arith.constant 0 : i32
    %c0_i32_1 = arith.constant 0 : i32
    return %c0_i32, %c0_i32_0 : i32, i32
  }
  func.func @transform_11(%arg0: i32, %arg1: i32) -> (i32, i32) {
    %c0_i32 = arith.constant 0 : i32
    %c0_i32_0 = arith.constant 0 : i32
    %c0_i32_1 = arith.constant 0 : i32
    return %c0_i32, %c0_i32_0 : i32, i32
  }
  func.func @transform_12(%arg0: i32, %arg1: i32) -> (i32, i32, i32) {
    %c0_i32 = arith.constant 0 : i32
    %c0_i32_0 = arith.constant 0 : i32
    %c0_i32_1 = arith.constant 0 : i32
    %c0_i32_2 = arith.constant 0 : i32
    return %c0_i32, %c0_i32_0, %c0_i32_1 : i32, i32, i32
  }
  func.func @transform_13(%arg0: i32, %arg1: i32) -> (i32, i32) {
    %c0_i32 = arith.constant 0 : i32
    %c0_i32_0 = arith.constant 0 : i32
    %c0_i32_1 = arith.constant 0 : i32
    return %c0_i32, %c0_i32_0 : i32, i32
  }
  func.func @transform_14(%arg0: i32, %arg1: i32) -> (i32, i32) {
    %c0_i32 = arith.constant 0 : i32
    %c0_i32_0 = arith.constant 0 : i32
    %c0_i32_1 = arith.constant 0 : i32
    return %c0_i32, %c0_i32_0 : i32, i32
  }
  func.func @transform_15(%arg0: i32, %arg1: i32) -> (i32, i32) {
    %c0_i32 = arith.constant 0 : i32
    %c0_i32_0 = arith.constant 0 : i32
    %c0_i32_1 = arith.constant 0 : i32
    return %c0_i32, %c0_i32_0 : i32, i32
  }
  func.func @transform_16(%arg0: i32, %arg1: i32) -> (i32, i32) {
    %c0_i32 = arith.constant 0 : i32
    %c0_i32_0 = arith.constant 0 : i32
    %c0_i32_1 = arith.constant 0 : i32
    return %c0_i32, %c0_i32_0 : i32, i32
  }
  func.func @transform_17(%arg0: i32, %arg1: i32) -> (i32, i32) {
    %c0_i32 = arith.constant 0 : i32
    %c0_i32_0 = arith.constant 0 : i32
    %c0_i32_1 = arith.constant 0 : i32
    return %c0_i32, %c0_i32_0 : i32, i32
  }
  func.func @transform_18(%arg0: i32, %arg1: i32) -> (i32, i32) {
    %c0_i32 = arith.constant 0 : i32
    %c0_i32_0 = arith.constant 0 : i32
    %c0_i32_1 = arith.constant 0 : i32
    return %c0_i32, %c0_i32_0 : i32, i32
  }
  func.func @transform_19(%arg0: i32, %arg1: i32) -> (i32, i32) {
    %c0_i32 = arith.constant 0 : i32
    %c0_i32_0 = arith.constant 0 : i32
    %c0_i32_1 = arith.constant 0 : i32
    return %c0_i32, %c0_i32_0 : i32, i32
  }
  func.func @transform_20(%arg0: i32, %arg1: i32) -> (i32, i32) {
    %c0_i32 = arith.constant 0 : i32
    %c0_i32_0 = arith.constant 0 : i32
    %c0_i32_1 = arith.constant 0 : i32
    return %c0_i32, %c0_i32_0 : i32, i32
  }
  func.func @transform_21(%arg0: i32, %arg1: i32) -> (i32, i32) {
    %c0_i32 = arith.constant 0 : i32
    %c0_i32_0 = arith.constant 0 : i32
    %c0_i32_1 = arith.constant 0 : i32
    return %c0_i32, %c0_i32_0 : i32, i32
  }
  func.func @transform_22(%arg0: i32, %arg1: i32) -> (i32, i32) {
    %c0_i32 = arith.constant 0 : i32
    %c0_i32_0 = arith.constant 0 : i32
    %c0_i32_1 = arith.constant 0 : i32
    return %c0_i32, %c0_i32_0 : i32, i32
  }
  func.func @transform_23(%arg0: i32, %arg1: i32) -> (i32, i32) {
    %c0_i32 = arith.constant 0 : i32
    %c0_i32_0 = arith.constant 0 : i32
    %c0_i32_1 = arith.constant 0 : i32
    return %c0_i32, %c0_i32_0 : i32, i32
  }
  func.func @transform_24(%arg0: i32, %arg1: i32) -> (i32, i32, i32) {
    %c0_i32 = arith.constant 0 : i32
    %c0_i32_0 = arith.constant 0 : i32
    return %arg0, %arg1, %c0_i32 : i32, i32, i32
  }
}

</mosaic_0001>

<bundles_post_ra>
// kernel: shape_as_latent_perceiver_forward.7
= control target key start
LH: loop header
LB: loop body
LE: loop exit
PB: predicated region body
PF: predicated region fallthrough
CT: control target
= control target key end

     0   :  { %vm99_vm0 = vcmask 1042432   ;;  %vm100_vm1 = vcmask 1043456   ;;  %v286_v3 = vmov 65535   ;;  %vm74_vm2 = vcmask 449536   ;;  %s442_s1 = inlined_call_operand.vmem [shape: bf16[55,32], index: 1, kind: input, shape index: {}]   ;;  %s443_s0 = inlined_call_operand.vmem [shape: f32[128,55], index: 0, kind: input, shape index: {}]   ;;  %s444_s2 = inlined_call_operand.vmem [shape: f32[1,32], index: 2, kind: input, shape index: {}]   ;;  %s445_s3 = inlined_call_operand.vmem [shape: f32[128,32], index: 3, kind: output, shape index: {}]  }
   0x1   :  { %v282_v0 = vld [vmem:[%s442_s1] sm:$0xff]   ;;  %v283_v1 = vld [vmem:[%s442_s1 + $0x8] sm:$0xff]   ;;  %v284_v2 = vld [vmem:[%s442_s1 + $0x10] sm:$0xff]   ;;  %v101_v4 = vsel %vm99_vm0, 4294967295, %v286_v3  ;;  %vm203_vm3 = vcmask 261120  }
   0x2   :  { %249 = vmatprep.subr.bf16.mxu0 %v282_v0  ;;  %273 = vmatprep.subr.bf16.mxu1 %v282_v0  ;;  %v285_v5 = vld [vmem:[%s442_s1 + $0x18] ss:$0 sps:$4 sm:$0xff]   ;;  %v15_v6 = vld [vmem:[%s443_s0] sm:$0xff]  ;;  %v16_v7 = vld [vmem:[%s443_s0 + $0x8] sm:$0xff]  ;;  %v102_v10 = vsel %vm100_vm1, %v101_v4, 0 }
   0x3   :  { %250 = vmatpush3.bf16.msra.mxu0 %v282_v0  ;;  %277 = vmatpush3.bf16.msra.mxu1 %v282_v0  ;;  %v23_v8 = vld [vmem:[%s443_s0 + $0x40] sm:$0xff]  ;;  %v24_v9 = vld [vmem:[%s443_s0 + $0x48] sm:$0xff]  ;;  %v31_v11 = vpack.c.bf16 %v16_v7, %v15_v6  ;;  %v104_v13 = vand.u32 %v285_v5, %v102_v10  ;;  %v17_v14 = vld [vmem:[%s443_s0 + $0x10] sm:$0xff] }
   0x4   :  { %251 = vmatprep.subr.bf16.mxu0 %v283_v1  ;;  %274 = vmatprep.subr.bf16.mxu1 %v283_v1  ;;  %v35_v12 = vpack.c.bf16 %v24_v9, %v23_v8  ;;  %v18_v15 = vld [vmem:[%s443_s0 + $0x18] sm:$0xff]  ;;  %v25_v16 = vld [vmem:[%s443_s0 + $0x50] sm:$0xff]  ;;  %v19_v18 = vld [vmem:[%s443_s0 + $0x20] sm:$0xff] }
   0x5   :  { %257 = vmatprep.mubr.msk.bf16.mxu0 %vm74_vm2, %v31_v11  ;;  %v26_v17 = vld [vmem:[%s443_s0 + $0x58] sm:$0xff]  ;;  %v20_v19 = vld [vmem:[%s443_s0 + $0x28] sm:$0xff]  ;;  %v27_v20 = vld [vmem:[%s443_s0 + $0x60] sm:$0xff]  ;;  %v32_v22 = vpack.c.bf16 %v18_v15, %v17_v14 }
   0x6   :  { %265 = vmatprep.mubr.msk.bf16.mxu1 %vm74_vm2, %v35_v12  ;;  %v28_v21 = vld [vmem:[%s443_s0 + $0x68] sm:$0xff]  ;;  %v36_v23 = vpack.c.bf16 %v26_v17, %v25_v16  ;;  %v33_v24 = vpack.c.bf16 %v20_v19, %v19_v18  ;;  %v21_v26 = vld [vmem:[%s443_s0 + $0x30] sm:$0xff]  ;;  %v22_v27 = vld [vmem:[%s443_s0 + $0x38] sm:$0xff] }
   0x7   :  { %252 = vmatpush3.bf16.msra.mxu0 %v283_v1  ;;  %278 = vmatpush3.bf16.msra.mxu1 %v283_v1  ;;  %v37_v25 = vpack.c.bf16 %v28_v21, %v27_v20  ;;  %v29_v28 = vld [vmem:[%s443_s0 + $0x70] sm:$0xff]  ;;  %v30_v29 = vld [vmem:[%s443_s0 + $0x78] sm:$0xff]  ;;  %v34_v30 = vpack.c.bf16 %v22_v27, %v21_v26  ;;  %v224_v32 = vld [vmem:[%s444_s2] ss:$0 sm:$0xff] }
   0x8   :  { %253 = vmatprep.subr.bf16.mxu0 %v284_v2  ;;  %275 = vmatprep.subr.bf16.mxu1 %v284_v2  ;;  %v38_v31 = vpack.c.bf16 %v30_v29, %v29_v28 }
   0xb   :  { %254 = vmatpush3.bf16.msra.mxu0 %v284_v2  ;;  %279 = vmatpush3.bf16.msra.mxu1 %v284_v2 }
   0xc   :  { %255 = vmatprep.subr.bf16.mxu0 %v104_v13  ;;  %276 = vmatprep.subr.bf16.mxu1 %v104_v13 }
   0xf   :  { %256 = vmatpush3.bf16.msra.mxu0 %v104_v13  ;;  %280 = vmatpush3.bf16.msra.mxu1 %v104_v13 }
  0x12   :  { %258 = vmatmul.mubr.msk.bf16.vlgmr.msra.gmra.mrb[0].mxu0 %vm74_vm2, %v32_v22  ;;  %266 = vmatmul.mubr.msk.bf16.vlgmr.msra.gmra.mrb[0].mxu1 %vm74_vm2, %v36_v23 }
  0x13   :  { %261 = vmatprep.mubr.msk.bf16.mxu0 %vm74_vm2, %v33_v24  ;;  %269 = vmatprep.mubr.msk.bf16.mxu1 %vm74_vm2, %v37_v25 }
  0x1a   :  { %262 = vmatmul.mubr.msk.bf16.gmra.mrb[4].mxu0 %vm74_vm2, %v34_v30  ;;  %270 = vmatmul.mubr.msk.bf16.gmra.mrb[4].mxu1 %vm74_vm2, %v38_v31 }
  0xe5   :  { %v259_v33 = vpop.f32.mrb[0].mxu0  ;;  %v267_v34 = vpop.f32.mrb[0].mxu1 }
  0xe6   :  { %v149_v35 = vadd.f32 %v259_v33, %v224_v32  ;;  %v181_v36 = vadd.f32 %v267_v34, %v224_v32  ;;  %v140_v37 = vpop.f32.mrb[1].mxu0  ;;  %v172_v38 = vpop.f32.mrb[1].mxu1 }
  0xe7   :  { %v141_v39 = vadd.f32 %v224_v32, %v140_v37  ;;  %v173_v40 = vadd.f32 %v224_v32, %v172_v38  ;;  %v260_v41 = vpop.f32.mrb[2].mxu0  ;;  %v268_v42 = vpop.f32.mrb[2].mxu1 }
  0xe8   :  { %206 = vst.msk [vmem:[%s445_s3 + $0x10] sm:$0xff] %vm203_vm3, %v149_v35  ;;  %214 = vst.msk [vmem:[%s445_s3 + $0x50] sm:$0xff] %vm203_vm3, %v181_v36  ;;  %v152_v43 = vadd.f32 %v260_v41, %v224_v32  ;;  %v184_v44 = vadd.f32 %v268_v42, %v224_v32  ;;  %v143_v45 = vpop.f32.mrb[3].mxu0  ;;  %v175_v46 = vpop.f32.mrb[3].mxu1 }
  0xe9   :  { %204 = vst.msk [vmem:[%s445_s3] sm:$0xff] %vm203_vm3, %v141_v39  ;;  %212 = vst.msk [vmem:[%s445_s3 + $0x40] sm:$0xff] %vm203_vm3, %v173_v40  ;;  %v144_v47 = vadd.f32 %v224_v32, %v143_v45  ;;  %v176_v48 = vadd.f32 %v224_v32, %v175_v46 }
  0xea   :  { %207 = vst.msk [vmem:[%s445_s3 + $0x18] sm:$0xff] %vm203_vm3, %v152_v43  ;;  %215 = vst.msk [vmem:[%s445_s3 + $0x58] sm:$0xff] %vm203_vm3, %v184_v44 }
  0xeb   :  { %205 = vst.msk [vmem:[%s445_s3 + $0x8] sm:$0xff] %vm203_vm3, %v144_v47  ;;  %213 = vst.msk [vmem:[%s445_s3 + $0x48] sm:$0xff] %vm203_vm3, %v176_v48 }
  0xed   :  { %v263_v49 = vpop.f32.mrb[4].mxu0  ;;  %v271_v50 = vpop.f32.mrb[4].mxu1 }
  0xee   :  { %v165_v51 = vadd.f32 %v263_v49, %v224_v32  ;;  %v197_v52 = vadd.f32 %v271_v50, %v224_v32  ;;  %v156_v53 = vpop.f32.mrb[5].mxu0  ;;  %v188_v54 = vpop.f32.mrb[5].mxu1 }
  0xef   :  { %v157_v55 = vadd.f32 %v224_v32, %v156_v53  ;;  %v189_v56 = vadd.f32 %v224_v32, %v188_v54  ;;  %v264_v57 = vpop.f32.mrb[6].mxu0  ;;  %v272_v58 = vpop.f32.mrb[6].mxu1 }
  0xf0   :  { %210 = vst.msk [vmem:[%s445_s3 + $0x30] sm:$0xff] %vm203_vm3, %v165_v51  ;;  %218 = vst.msk [vmem:[%s445_s3 + $0x70] sm:$0xff] %vm203_vm3, %v197_v52  ;;  %v168_v59 = vadd.f32 %v264_v57, %v224_v32  ;;  %v200_v60 = vadd.f32 %v272_v58, %v224_v32  ;;  %v159_v61 = vpop.f32.mrb[7].mxu0  ;;  %v191_v62 = vpop.f32.mrb[7].mxu1 }
  0xf1   :  { %208 = vst.msk [vmem:[%s445_s3 + $0x20] sm:$0xff] %vm203_vm3, %v157_v55  ;;  %216 = vst.msk [vmem:[%s445_s3 + $0x60] sm:$0xff] %vm203_vm3, %v189_v56  ;;  %v160_v63 = vadd.f32 %v224_v32, %v159_v61  ;;  %v192_v0 = vadd.f32 %v224_v32, %v191_v62 }
  0xf2   :  { %211 = vst.msk [vmem:[%s445_s3 + $0x38] sm:$0xff] %vm203_vm3, %v168_v59  ;;  %219 = vst.msk [vmem:[%s445_s3 + $0x78] sm:$0xff] %vm203_vm3, %v200_v60 }
  0xf3   :  { %209 = vst.msk [vmem:[%s445_s3 + $0x28] sm:$0xff] %vm203_vm3, %v160_v63  ;;  %217 = vst.msk [vmem:[%s445_s3 + $0x68] sm:$0xff] %vm203_vm3, %v192_v0 }

// kernel: shape_as_latent_perceiver_forward.10
= control target key start
LH: loop header
LB: loop body
LE: loop exit
PB: predicated region body
PF: predicated region fallthrough
CT: control target
= control target key end

     0   :  { %vm62_vm0 = vcmask 261120   ;;  %vm247_vm1 = vcmask 1043456   ;;  %vm198_vm2 = vcmask 64512   ;;  %s532_s4 = inlined_call_operand.vmem [shape: bf16[32,8], index: 4, kind: input, shape index: {}]   ;;  %s533_s0 = inlined_call_operand.vmem [shape: f32[32,32], index: 0, kind: input, shape index: {}]   ;;  %s534_s2 = inlined_call_operand.vmem [shape: bf16[32,8], index: 2, kind: input, shape index: {}]   ;;  %s535_s6 = inlined_call_operand.vmem [shape: bf16[8,32], index: 6, kind: input, shape index: {}]   ;;  %s536_s5 = inlined_call_operand.vmem [shape: f32[1,8], index: 5, kind: input, shape index: {}]   ;;  %s537_s3 = inlined_call_operand.vmem [shape: f32[1,8], index: 3, kind: input, shape index: {}]   ;;  %s538_s9 = inlined_call_operand.vmem [shape: f32[32,8], index: 9, kind: output, shape index: {1}]   ;;  %s539_s8 = inlined_call_operand.vmem [shape: f32[32,8], index: 8, kind: output, shape index: {0}]   ;;  %s540_s1 = inlined_call_operand.vmem [shape: f32[32,8], index: 1, kind: input, shape index: {}]   ;;  %s541_s7 = inlined_call_operand.vmem [shape: f32[1,32], index: 7, kind: input, shape index: {}]   ;;  %s542_s10 = inlined_call_operand.vmem [shape: f32[32,32], index: 10, kind: output, shape index: {2}]  }
   0x1   :  { %v363_v0 = vld [vmem:[%s532_s4] sm:$0xff]   ;;  %v364_v1 = vld [vmem:[%s532_s4 + $0x8] sm:$0xff]   ;;  %v35_v4 = vld [vmem:[%s533_s0 + $0x10] sm:$0xff] }
   0x2   :  { %348 = vmatprep.subr.bf16.mxu1 %v363_v0  ;;  %v33_v2 = vld [vmem:[%s533_s0] sm:$0xff]  ;;  %v34_v3 = vld [vmem:[%s533_s0 + $0x8] sm:$0xff]  ;;  %v36_v6 = vld [vmem:[%s533_s0 + $0x18] sm:$0xff] }
   0x3   :  { %349 = vmatpush3.bf16.msra.mxu1 %v363_v0  ;;  %v37_v5 = vpack.c.bf16 %v34_v3, %v33_v2  ;;  %v365_v7 = vld [vmem:[%s534_s2] sm:$0xff]   ;;  %v366_v8 = vld [vmem:[%s534_s2 + $0x8] sm:$0xff]   ;;  %v38_v9 = vpack.c.bf16 %v36_v6, %v35_v4  ;;  %v221_v46 = vld [vmem:[%s540_s1 + $0x10] sm:$0xff] }
   0x4   :  { %350 = vmatprep.subr.bf16.mxu1 %v364_v1  ;;  %340 = vmatprep.subr.bf16.mxu0 %v365_v7  ;;  %v233_v10 = vld [vmem:[%s535_s6] sm:$0xf]  ;;  %v222_v49 = vld [vmem:[%s540_s1 + $0x18] sm:$0xff]  ;;  %v220_v52 = vld [vmem:[%s540_s1 + $0x8] sm:$0xff] }
   0x5   :  { %352 = vmatprep.mubr.msk.bf16.mxu1 %vm62_vm0, %v37_v5  ;;  %344 = vmatprep.mubr.msk.bf16.mxu0 %vm62_vm0, %v37_v5  ;;  %v249_v11 = vsel %vm247_vm1, %v233_v10, 0  ;;  %v321_v12 = vld [vmem:[%s536_s5] ss:$0 sm:$0xff] }
   0x6   :  { %341 = vmatpush3.bf16.msra.mxu0 %v365_v7  ;;  %v316_v18 = vld [vmem:[%s537_s3] ss:$0 sm:$0xff] }
   0x7   :  { %351 = vmatpush3.bf16.msra.mxu1 %v364_v1  ;;  %342 = vmatprep.subr.bf16.mxu0 %v366_v8  ;;  %v219_v47 = vld [vmem:[%s540_s1] sm:$0xff] }
   0x8   :  { %v326_v0 = vld [vmem:[%s541_s7] ss:$0 sm:$0xff] }
   0xa   :  { %353 = vmatmul.mubr.msk.bf16.vlgmr.msra.gmra.mrb[0].mxu1 %vm62_vm0, %v38_v9  ;;  %343 = vmatpush3.bf16.msra.mxu0 %v366_v8 }
   0xb   :  { %362 = vmatprep.subr.msk.bf16.mxu0 %vm247_vm1, %v233_v10 }
   0xd   :  { %345 = vmatmul.mubr.msk.bf16.vlgmr.msra.gmra.mrb[0].mxu0 %vm62_vm0, %v38_v9 }
   0xe   :  { %357 = vmatpush3.bf16.msra.mxu0 %v249_v11 }
  0xdd   :  { %v354_v13 = vpop.f32.mrb[0].mxu1 }
  0xde   :  { %v184_v14 = vadd.f32 %v354_v13, %v321_v12  ;;  %v175_v15 = vpop.f32.mrb[1].mxu1 }
  0xdf   :  { %v176_v16 = vadd.f32 %v321_v12, %v175_v15  ;;  %v355_v17 = vpop.f32.mrb[2].mxu1 }
  0xe0   :  { %v192_v19 = vmax.f32 %v184_v14, -30.0  ;;  %v187_v20 = vadd.f32 %v355_v17, %v321_v12  ;;  %v178_v21 = vpop.f32.mrb[3].mxu1  ;;  %v346_v24 = vpop.f32.mrb[0].mxu0 }
  0xe1   :  { %v190_v22 = vmax.f32 %v176_v16, -30.0  ;;  %v179_v23 = vadd.f32 %v321_v12, %v178_v21  ;;  %v112_v27 = vadd.f32 %v346_v24, %v316_v18  ;;  %v103_v28 = vpop.f32.mrb[1].mxu0 }
  0xe2   :  { %v196_v25 = vmin.f32 %v192_v19, 20.0  ;;  %v193_v26 = vmax.f32 %v187_v20, -30.0  ;;  %v104_v31 = vadd.f32 %v316_v18, %v103_v28  ;;  %v347_v32 = vpop.f32.mrb[2].mxu0 }
  0xe3   :  { %v194_v29 = vmin.f32 %v190_v22, 20.0  ;;  %v191_v30 = vmax.f32 %v179_v23, -30.0  ;;  %201 = vst.msk [vmem:[%s539_s8 + $0x10] sm:$0xff] %vm198_vm2, %v112_v27  ;;  %v115_v35 = vadd.f32 %v347_v32, %v316_v18  ;;  %v106_v36 = vpop.f32.mrb[3].mxu0 }
  0xe4   :  { %205 = vst.msk [vmem:[%s538_s9 + $0x10] sm:$0xff] %vm198_vm2, %v196_v25  ;;  %v209_v33 = vmul.f32 0.5, %v196_v25  ;;  %v197_v34 = vmin.f32 %v193_v26, 20.0  ;;  %199 = vst.msk [vmem:[%s539_s8] sm:$0xff] %vm198_vm2, %v104_v31  ;;  %v107_v39 = vadd.f32 %v316_v18, %v106_v36 }
  0xe5   :  { %203 = vst.msk [vmem:[%s538_s9] sm:$0xff] %vm198_vm2, %v194_v29  ;;  %v207_v37 = vmul.f32 0.5, %v194_v29  ;;  %v195_v38 = vmin.f32 %v191_v30, 20.0  ;;  %202 = vst.msk [vmem:[%s539_s8 + $0x18] sm:$0xff] %vm198_vm2, %v115_v35 }
  0xe6   :  { %v215_v40 = vmul.f32 1.442695, %v209_v33  ;;  %206 = vst.msk [vmem:[%s538_s9 + $0x18] sm:$0xff] %vm198_vm2, %v197_v34  ;;  %v210_v41 = vmul.f32 0.5, %v197_v34  ;;  %200 = vst.msk [vmem:[%s539_s8 + $0x8] sm:$0xff] %vm198_vm2, %v107_v39 }
  0xe7   :  { %v211_v42 = vmul.f32 1.442695, %v207_v37  ;;  %204 = vst.msk [vmem:[%s538_s9 + $0x8] sm:$0xff] %vm198_vm2, %v195_v38  ;;  %v208_v43 = vmul.f32 0.5, %v195_v38 }
  0xe8   :  { %367 = vpow2.f32 %v215_v40  ;;  %v217_v44 = vmul.f32 1.442695, %v210_v41 }
  0xe9   :  { %369 = vpow2.f32 %v211_v42  ;;  %v213_v45 = vmul.f32 1.442695, %v208_v43 }
  0xea   :  { %371 = vpow2.f32 %v217_v44 }
  0xeb   :  { %373 = vpow2.f32 %v213_v45 }
  0xf2   :  { %v368_v48 = vpop.eup %367 }
  0xf3   :  { %v370_v50 = vpop.eup %369  ;;  %v225_v51 = vmul.f32 %v368_v48, %v221_v46 }
  0xf4   :  { %v372_v53 = vpop.eup %371  ;;  %v223_v54 = vmul.f32 %v370_v50, %v219_v47 }
  0xf5   :  { %v374_v55 = vpop.eup %373  ;;  %v229_v56 = vadd.f32 %v225_v51, %v112_v27  ;;  %v226_v57 = vmul.f32 %v372_v53, %v222_v49 }
  0xf6   :  { %v227_v58 = vadd.f32 %v223_v54, %v104_v31  ;;  %v224_v59 = vmul.f32 %v374_v55, %v220_v52 }
  0xf7   :  { %v230_v60 = vadd.f32 %v226_v57, %v115_v35 }
  0xf8   :  { %v228_v61 = vadd.f32 %v224_v59, %v107_v39 }
  0xf9   :  { %v232_v62 = vpack.c.bf16 %v230_v60, %v229_v56 }
  0xfa   :  { %v231_v63 = vpack.c.bf16 %v228_v61, %v227_v58 }
  0xfc   :  { %358 = vmatprep.mubr.msk.bf16.mxu0 %vm198_vm2, %v231_v63 }
  0xfd   :  { %359 = vmatmul.mubr.msk.bf16.vlgmr.msra.gmra.mrb[4].mxu0 %vm198_vm2, %v232_v62 }
 0x1d0   :  { %v360_v1 = vpop.f32.mrb[4].mxu0 }
 0x1d1   :  { %v294_v2 = vadd.f32 %v360_v1, %v326_v0  ;;  %v285_v3 = vpop.f32.mrb[5].mxu0 }
 0x1d2   :  { %v286_v4 = vadd.f32 %v326_v0, %v285_v3  ;;  %v361_v5 = vpop.f32.mrb[6].mxu0 }
 0x1d3   :  { %302 = vst.msk [vmem:[%s542_s10 + $0x10] sm:$0xff] %vm62_vm0, %v294_v2  ;;  %v297_v6 = vadd.f32 %v361_v5, %v326_v0  ;;  %v288_v7 = vpop.f32.mrb[7].mxu0 }
 0x1d4   :  { %300 = vst.msk [vmem:[%s542_s10] sm:$0xff] %vm62_vm0, %v286_v4  ;;  %v289_v8 = vadd.f32 %v326_v0, %v288_v7 }
 0x1d5   :  { %303 = vst.msk [vmem:[%s542_s10 + $0x18] sm:$0xff] %vm62_vm0, %v297_v6 }
 0x1d6   :  { %301 = vst.msk [vmem:[%s542_s10 + $0x8] sm:$0xff] %vm62_vm0, %v289_v8 }

// kernel: shape_as_latent_perceiver_forward.8
= control target key start
LH: loop header
LB: loop body
LE: loop exit
PB: predicated region body
PF: predicated region fallthrough
CT: control target
= control target key end

     0   :  { %s3161_s0 = inlined_call_operand.vmem [shape: f32[2,16,32], index: 0, kind: input, shape index: {}]   ;;  %s3162_s1 = inlined_call_operand.vmem [shape: f32[2,64,32], index: 1, kind: input, shape index: {}]   ;;  %s3163_s2 = inlined_call_operand.vmem [shape: f32[1,32], index: 2, kind: input, shape index: {}]   ;;  %s3164_s3 = inlined_call_operand.vmem [shape: f32[1,32], index: 3, kind: input, shape index: {}]   ;;  %s3165_s4 = inlined_call_operand.vmem [shape: f32[1,32], index: 4, kind: input, shape index: {}]   ;;  %s3166_s5 = inlined_call_operand.vmem [shape: f32[1,32], index: 5, kind: input, shape index: {}]   ;;  %s3167_s6 = inlined_call_operand.vmem [shape: bf16[32,32], index: 6, kind: input, shape index: {}]   ;;  %s3168_s7 = inlined_call_operand.vmem [shape: f32[32,1], index: 7, kind: input, shape index: {}]   ;;  %s3169_s8 = inlined_call_operand.vmem [shape: bf16[32,32], index: 8, kind: input, shape index: {}]   ;;  %s3170_s9 = inlined_call_operand.vmem [shape: f32[32,1], index: 9, kind: input, shape index: {}]   ;;  %s3171_s10 = inlined_call_operand.vmem [shape: bf16[32,32], index: 10, kind: input, shape index: {}]   ;;  %s3172_s11 = inlined_call_operand.vmem [shape: f32[32,1], index: 11, kind: input, shape index: {}]   ;;  %s3173_s12 = inlined_call_operand.vmem [shape: bf16[4,8,32], index: 12, kind: input, shape index: {}]   ;;  %s3174_s13 = inlined_call_operand.vmem [shape: f32[1,32], index: 13, kind: input, shape index: {}]   ;;  %s3175_s14 = inlined_call_operand.vmem [shape: f32[1,32], index: 14, kind: input, shape index: {}]   ;;  %s3176_s15 = inlined_call_operand.vmem [shape: f32[1,32], index: 15, kind: input, shape index: {}]   ;;  %s3177_s16 = inlined_call_operand.vmem [shape: bf16[32,128], index: 16, kind: input, shape index: {}]   ;;  %s3178_s17 = inlined_call_operand.vmem [shape: f32[1,128], index: 17, kind: input, shape index: {}]   ;;  %s3179_s18 = inlined_call_operand.vmem [shape: bf16[128,32], index: 18, kind: input, shape index: {}]   ;;  %s3180_s19 = inlined_call_operand.vmem [shape: f32[1,32], index: 19, kind: input, shape index: {}]   ;;  %s3181_s20 = inlined_call_operand.vmem [shape: f32[2,16,32], index: 20, kind: output, shape index: {}]  }
   0x1   :  { %3182 = sst [smem:[#allocation2_spill]] %s3161_s0 }
   0x2   :  { %3183 = sst [smem:[#allocation3_spill]] %s3162_s1  ;;  %s2783_s1 = smov 0  }
   0x3   :  { %3184 = sst [smem:[#allocation4_spill]] %s3163_s2 }
   0x4   :  { %3185 = sst [smem:[#allocation5_spill]] %s3164_s3 }
   0x5   :  { %3186 = sst [smem:[#allocation6_spill]] %s3165_s4 }
   0x6 LB: > { %s2310_s22 = sadd.s32 4294967295, %s2673_s1   ;;  %p2314_p0 = scmp.ge.s32.totalorder %s2673_s1, 1  ;;  %s2673_s1 = sphi %s2783_s1, %s30_s1  }
   0x7   : > { %p572_p1 = scmp.lt.s32.totalorder %s2673_s1, 3 }
   0x9   : > { %p573_p2 = pnand %p2314_p0, %p572_p1 }
   0xa   : > { %p635_p3 = scmp.lt.s32.totalorder (!%p573_p2), %s2310_s22, 1  ;;  %vm663_vm0 = vcmask (!%p573_p2), 261120   ;;  %s3187_s3 = sld [smem:[#allocation2_spill]] (!%p573_p2)  ;;  %vm2677_vm1 = vmmov (!%p573_p2), 0   ;;  %vm1289_vm2 = vcmask (!%p573_p2), 1043456   ;;  %vm1285_vm3 = vcmask (!%p573_p2), 64512  }
   0xb   : > { %576 = sbr.rel (%p573_p2) target bundleno = 2499 (0x9c3), region = 100  ;;  %s3188_s4 = sld [smem:[#allocation3_spill]] (!%p573_p2)  ;;  %vm1475_vm4 = vcmask (!%p573_p2), 523264  }
   0xc   : > { %s3190_s0 = sld [smem:[#allocation6_spill]] (!%p573_p2)  ;;  %s3191_s2 = sld [smem:[#allocation5_spill]] (!%p573_p2) }
  0x12   : > { %s3193_s22 = smov (!%p635_p3, %s2310_s22), 1 }
  0x13   : > { %s2367_s23 = sshll.u32 %s3193_s22, 4  ;;  %s2368_s24 = sshll.u32 %s3193_s22, 6 }
  0x14   : > { %s2800_s26 = scalar_lea.vmem %s3187_s3, %s2367_s23  ;;  %s644_s29 = scalar_lea.vmem %s3188_s4, %s2368_s24 }
  0x15   : > { %v651_v0 = vld [vmem:[%s2800_s26] sm:$0xff]  ;;  %v652_v2 = vld [vmem:[%s2800_s26 + $0x8] sm:$0xff]  ;;  %v655_v6 = vld [vmem:[%s644_s29 + $0x10] sm:$0xff]  ;;  %s3189_s4 = sld [smem:[#allocation4_spill]]  ;;  %s649_s27 = scalar_lea.vmem %s3181_s20, %s2367_s23 }
  0x16   : > { %v653_v1 = vld [vmem:[%s644_s29] sm:$0xff]  ;;  %v664_v3 = vsel %vm663_vm0, %v651_v0, 0.0  ;;  %v654_v5 = vld [vmem:[%s644_s29 + $0x8] sm:$0xff]  ;;  %v656_v7 = vld [vmem:[%s644_s29 + $0x18] sm:$0xff]  ;;  %v667_v8 = vsel %vm663_vm0, %v652_v2, 0.0  ;;  %v715_v10 = vsel %vm663_vm0, %v655_v6, 0.0 }
  0x17   : > { %v709_v4 = vsel %vm663_vm0, %v653_v1, 0.0  ;;  %665 = vadd.xlane.f32.xlu0 %v664_v3  ;;  %v712_v9 = vsel %vm663_vm0, %v654_v5, 0.0  ;;  %v718_v11 = vsel %vm663_vm0, %v656_v7, 0.0  ;;  %v657_v12 = vld [vmem:[%s644_s29 + $0x20] sm:$0xff]  ;;  %v658_v13 = vld [vmem:[%s644_s29 + $0x28] sm:$0xff]  ;;  %v659_v16 = vld [vmem:[%s644_s29 + $0x30] sm:$0xff] }
  0x18   : > { %710 = vadd.xlane.f32.xlu1 %v709_v4  ;;  %v721_v14 = vsel %vm663_vm0, %v657_v12, 0.0  ;;  %v724_v15 = vsel %vm663_vm0, %v658_v13, 0.0  ;;  %v660_v17 = vld [vmem:[%s644_s29 + $0x38] sm:$0xff]  ;;  %v727_v18 = vsel %vm663_vm0, %v659_v16, 0.0 }
  0x19   : > { %v730_v19 = vsel %vm663_vm0, %v660_v17, 0.0 }
  0x1b   : > { %668 = vadd.xlane.f32.xlu0 %v667_v8  ;;  %v2675_v8 = vmov 0  }
  0x1c   : > { %713 = vadd.xlane.f32.xlu1 %v712_v9  ;;  %2571 = vset.pattern.permute.xlu0 %v2675_v8  ;;  %v845_v9 = vld [vmem:[%s3168_s7] sm:$0xff] }
  0x1d   : > { %2572 = vset.pattern.permute.xlu1 %v2675_v8 }
  0x1f   : > { %716 = vadd.xlane.f32.xlu0 %v715_v10  ;;  %v847_v10 = vld [vmem:[%s3168_s7 + $0x10] sm:$0xff] }
  0x20   : > { %719 = vadd.xlane.f32.xlu1 %v718_v11  ;;  %v848_v11 = vld [vmem:[%s3168_s7 + $0x18] sm:$0xff] }
  0x23   : > { %722 = vadd.xlane.f32.xlu0 %v721_v14  ;;  %v855_v14 = vld [vmem:[%s3170_s9 + $0x10] sm:$0xff] }
  0x24   : > { %725 = vadd.xlane.f32.xlu1 %v724_v15  ;;  %v856_v15 = vld [vmem:[%s3170_s9 + $0x18] sm:$0xff] }
  0x27   : > { %728 = vadd.xlane.f32.xlu0 %v727_v18 }
  0x28   : > { %731 = vadd.xlane.f32.xlu1 %v730_v19 }
  0xa4   : > { %v666_v20 = vpop.xlane.xlu0 %665 }
  0xa5   : > { %v711_v21 = vpop.xlane.xlu1 %710  ;;  %v671_v22 = vmul.f32 0.03125, %v666_v20 }
  0xa6   : > { %v733_v23 = vmul.f32 0.03125, %v711_v21 }
  0xa7   : > { %v2817_v24 = vsub.f32 %v651_v0, %v671_v22 }
  0xa8   : > { %v2819_v25 = vsub.f32 %v653_v1, %v733_v23  ;;  %v669_v26 = vpop.xlane.xlu0 %668 }
  0xa9   : > { %v714_v27 = vpop.xlane.xlu1 %713  ;;  %v672_v28 = vmul.f32 0.03125, %v669_v26  ;;  %v675_v30 = vmul.f32 %v2817_v24, %v2817_v24 }
  0xaa   : > { %v734_v29 = vmul.f32 0.03125, %v714_v27  ;;  %v749_v31 = vmul.f32 %v2819_v25, %v2819_v25 }
  0xab   : > { %v2825_v32 = vsub.f32 %v652_v2, %v672_v28  ;;  %v677_v34 = vsel %vm663_vm0, %v675_v30, 0.0 }
  0xac   : > { %v2827_v33 = vsub.f32 %v654_v5, %v734_v29  ;;  %678 = vadd.xlane.f32.xlu0 %v677_v34  ;;  %v717_v35 = vpop.xlane.xlu0 %716  ;;  %v757_v37 = vsel %vm663_vm0, %v749_v31, 0.0 }
  0xad   : > { %v720_v36 = vpop.xlane.xlu1 %719  ;;  %v735_v38 = vmul.f32 0.03125, %v717_v35  ;;  %v676_v40 = vmul.f32 %v2825_v32, %v2825_v32 }
  0xae   : > { %v736_v39 = vmul.f32 0.03125, %v720_v36  ;;  %v750_v41 = vmul.f32 %v2827_v33, %v2827_v33 }
  0xaf   : > { %v2835_v42 = vsub.f32 %v655_v6, %v735_v38  ;;  %v680_v44 = vsel %vm663_vm0, %v676_v40, 0.0  ;;  %v2585_v6 = vld [vmem:[%s3167_s6] sm:$0xff]  }
  0xb0   : > { %v2837_v43 = vsub.f32 %v656_v7, %v736_v39  ;;  %758 = vadd.xlane.f32.xlu0 %v757_v37  ;;  %681 = vadd.xlane.f32.xlu1 %v680_v44  ;;  %v723_v45 = vpop.xlane.xlu0 %722  ;;  %v760_v47 = vsel %vm663_vm0, %v750_v41, 0.0  ;;  %v846_v7 = vld [vmem:[%s3168_s7 + $0x8] sm:$0xff] }
  0xb1   : > { %v726_v46 = vpop.xlane.xlu1 %725  ;;  %v737_v48 = vmul.f32 0.03125, %v723_v45  ;;  %v751_v50 = vmul.f32 %v2835_v42, %v2835_v42  ;;  %2423 = vmatprep.mubr.msk.bf16.mxu1 %vm663_vm0, %v2585_v6 }
  0xb2   : > { %v738_v49 = vmul.f32 0.03125, %v726_v46  ;;  %v752_v51 = vmul.f32 %v2837_v43, %v2837_v43 }
  0xb3   : > { %v2845_v52 = vsub.f32 %v657_v12, %v737_v48  ;;  %v763_v54 = vsel %vm663_vm0, %v751_v50, 0.0  ;;  %v853_v12 = vld [vmem:[%s3170_s9] sm:$0xff] }
  0xb4   : > { %v2847_v53 = vsub.f32 %v658_v13, %v738_v49  ;;  %761 = vadd.xlane.f32.xlu1 %v760_v47  ;;  %764 = vadd.xlane.f32.xlu0 %v763_v54  ;;  %v729_v55 = vpop.xlane.xlu0 %728  ;;  %v766_v57 = vsel %vm663_vm0, %v752_v51, 0.0  ;;  %v854_v13 = vld [vmem:[%s3170_s9 + $0x8] sm:$0xff]  ;;  %v2321_v49 = vld [vmem:[%s3189_s4] ss:$0 sm:$0xff] }
  0xb5   : > { %v732_v56 = vpop.xlane.xlu1 %731  ;;  %v739_v58 = vmul.f32 0.03125, %v729_v55  ;;  %v753_v60 = vmul.f32 %v2845_v52, %v2845_v52 }
  0xb6   : > { %v740_v59 = vmul.f32 0.03125, %v732_v56  ;;  %v754_v61 = vmul.f32 %v2847_v53, %v2847_v53 }
  0xb7   : > { %v2855_v62 = vsub.f32 %v659_v16, %v739_v58  ;;  %v769_v0 = vsel %vm663_vm0, %v753_v60, 0.0 }
  0xb8   : > { %v2857_v63 = vsub.f32 %v660_v17, %v740_v59  ;;  %767 = vadd.xlane.f32.xlu1 %v766_v57  ;;  %770 = vadd.xlane.f32.xlu0 %v769_v0  ;;  %v772_v1 = vsel %vm663_vm0, %v754_v61, 0.0  ;;  %v2322_v61 = vld [vmem:[%s3191_s2] ss:$0 sm:$0xff] }
  0xb9   : > { %v755_v2 = vmul.f32 %v2855_v62, %v2855_v62 }
  0xba   : > { %v756_v3 = vmul.f32 %v2857_v63, %v2857_v63 }
  0xbb   : > { %v775_v4 = vsel %vm663_vm0, %v755_v2, 0.0 }
  0xbc   : > { %773 = vadd.xlane.f32.xlu1 %v772_v1  ;;  %776 = vadd.xlane.f32.xlu0 %v775_v4  ;;  %v778_v5 = vsel %vm663_vm0, %v756_v3, 0.0 }
  0xc0   : > { %779 = vadd.xlane.f32.xlu1 %v778_v5 }
  0xd1   : > { %882 = vperm.xlu1 %2572, %v846_v7  }
  0xd2   : > { %877 = vperm.xlu0 %2571, %v845_v9  }
  0xd5   : > { %887 = vperm.xlu1 %2572, %v847_v10  }
  0xd9   : > { %892 = vperm.xlu1 %2572, %v848_v11  }
  0xdd   : > { %965 = vperm.xlu1 %2572, %v853_v12  }
  0xe1   : > { %970 = vperm.xlu1 %2572, %v854_v13  }
  0xe5   : > { %975 = vperm.xlu1 %2572, %v855_v14  }
  0xe9   : > { %980 = vperm.xlu1 %2572, %v856_v15  }
 0x139   : > { %v679_v16 = vpop.xlane.xlu0 %678 }
 0x13a   : > { %v683_v17 = vmul.f32 0.03125, %v679_v16 }
 0x13c   : > { %v685_v18 = vadd.f32 1e-05, %v683_v17 }
 0x13d   : > { %v682_v19 = vpop.xlane.xlu1 %681  ;;  %v759_v20 = vpop.xlane.xlu0 %758 }
 0x13e   : > { %2601 = vrsqrt.f32 %v685_v18  ;;  %v684_v21 = vmul.f32 0.03125, %v682_v19  ;;  %v781_v22 = vmul.f32 0.03125, %v759_v20  ;;  %v2586_v20 = vld [vmem:[%s3167_s6 + $0x8] sm:$0xff]  }
 0x140   : > { %v686_v23 = vadd.f32 1e-05, %v684_v21  ;;  %v789_v26 = vadd.f32 1e-05, %v781_v22 }
 0x141   : > { %v762_v27 = vpop.xlane.xlu1 %761  ;;  %v765_v28 = vpop.xlane.xlu0 %764 }
 0x142   : > { %2603 = vrsqrt.f32 %v686_v23  ;;  %v782_v29 = vmul.f32 0.03125, %v762_v27  ;;  %v783_v30 = vmul.f32 0.03125, %v765_v28 }
 0x143   : > { %2605 = vrsqrt.f32 %v789_v26 }
 0x144   : > { %v790_v31 = vadd.f32 1e-05, %v782_v29  ;;  %v791_v34 = vadd.f32 1e-05, %v783_v30 }
 0x145   : > { %v768_v35 = vpop.xlane.xlu1 %767  ;;  %v771_v36 = vpop.xlane.xlu0 %770 }
 0x146   : > { %2607 = vrsqrt.f32 %v790_v31  ;;  %v784_v37 = vmul.f32 0.03125, %v768_v35  ;;  %v785_v38 = vmul.f32 0.03125, %v771_v36 }
 0x147   : > { %2609 = vrsqrt.f32 %v791_v34 }
 0x148   : > { %v2602_v39 = vpop.eup %2601  ;;  %v792_v40 = vadd.f32 1e-05, %v784_v37  ;;  %v793_v41 = vadd.f32 1e-05, %v785_v38 }
 0x149   : > { %v774_v44 = vpop.xlane.xlu1 %773  ;;  %v777_v45 = vpop.xlane.xlu0 %776  ;;  %v689_v46 = vmul.f32 %v2602_v39, %v2817_v24  ;;  %v2323_v24 = vld [vmem:[%s3190_s0] ss:$0 sm:$0xff] }
 0x14a   : > { %2611 = vrsqrt.f32 %v792_v40  ;;  %v786_v47 = vmul.f32 0.03125, %v774_v44  ;;  %v787_v48 = vmul.f32 0.03125, %v777_v45  ;;  %v2588_v44 = vld [vmem:[%s3169_s8 + $0x8] sm:$0xff]   ;;  %v2589_v45 = vld [vmem:[%s3171_s10] sm:$0xff]  }
 0x14b   : > { %2613 = vrsqrt.f32 %v793_v41  ;;  %v697_v58 = vmul.f32 %v2321_v49, %v689_v46  ;;  %v2676_v46 = vmov 0.0   ;;  %2447 = vmatprep.mubr.msk.bf16.mxu0 %vm663_vm0, %v2589_v45 }
 0x14c   : > { %v2604_v50 = vpop.eup %2603  ;;  %v794_v51 = vadd.f32 1e-05, %v786_v47  ;;  %v795_v55 = vadd.f32 1e-05, %v787_v48  ;;  %v2590_v47 = vld [vmem:[%s3171_s10 + $0x8] sm:$0xff]  }
 0x14d   : > { %v2606_v54 = vpop.eup %2605  ;;  %v780_v56 = vpop.xlane.xlu1 %779  ;;  %v690_v57 = vmul.f32 %v2604_v50, %v2825_v32  ;;  %v705_v5 = vadd.f32 %v2322_v61, %v697_v58 }
 0x14e   : > { %v805_v59 = vmul.f32 %v2606_v54, %v2819_v25  ;;  %2615 = vrsqrt.f32 %v794_v51  ;;  %v788_v60 = vmul.f32 0.03125, %v780_v56  ;;  %v2324_v25 = vld [vmem:[%s3166_s5] ss:$0 sm:$0xff] }
 0x14f   : > { %v698_v0 = vmul.f32 %v2321_v49, %v690_v57  ;;  %2617 = vrsqrt.f32 %v795_v55 }
 0x150   : > { %v2608_v1 = vpop.eup %2607  ;;  %v796_v2 = vadd.f32 1e-05, %v788_v60  ;;  %v819_v3 = vmul.f32 %v2323_v24, %v805_v59 }
 0x151   : > { %v2610_v4 = vpop.eup %2609  ;;  %v806_v32 = vmul.f32 %v2608_v1, %v2827_v33  ;;  %v706_v6 = vadd.f32 %v2322_v61, %v698_v0  ;;  %v883_v48 = vpop.permute.xlu1 %882 }
 0x152   : > { %v807_v7 = vmul.f32 %v2610_v4, %v2835_v42  ;;  %2619 = vrsqrt.f32 %v796_v2  ;;  %v833_v11 = vadd.f32 %v2324_v25, %v819_v3  ;;  %v878_v50 = vpop.permute.xlu0 %877 }
 0x153   : > { %v870_v8 = vpack.c.bf16 %v706_v6, %v705_v5  ;;  %v820_v9 = vmul.f32 %v2323_v24, %v806_v32 }
 0x154   : > { %v2612_v10 = vpop.eup %2611  ;;  %v821_v15 = vmul.f32 %v2323_v24, %v807_v7 }
 0x155   : > { %v2614_v12 = vpop.eup %2613  ;;  %v808_v13 = vmul.f32 %v2612_v10, %v2837_v43  ;;  %2551 = vmatprep.subr.msk.bf16.mxu1 %vm663_vm0, %v870_v8  ;;  %v912_v33 = vsel %vm663_vm0, %v870_v8, 0  ;;  %v834_v14 = vadd.f32 %v2324_v25, %v820_v9  ;;  %v888_v49 = vpop.permute.xlu1 %887 }
 0x156   : > { %2422 = vmatpush3.bf16.xpose.msra.mxu1 %v912_v33  ;;  %v809_v16 = vmul.f32 %v2614_v12, %v2845_v52  ;;  %v835_v21 = vadd.f32 %v2324_v25, %v821_v15  ;;  %v2587_v52 = vld [vmem:[%s3169_s8] sm:$0xff]  }
 0x157   : > { %v871_v17 = vpack.c.bf16 %v834_v14, %v833_v11  ;;  %v822_v18 = vmul.f32 %v2323_v24, %v808_v13 }
 0x158   : > { %v2616_v42 = vpop.eup %2615 }
 0x159   : > { %v810_v19 = vmul.f32 %v2616_v42, %v2847_v53  ;;  %2552 = vmatprep.subr.msk.bf16.mxu1 %vm663_vm0, %v871_v17  ;;  %2556 = vmatprep.subr.msk.bf16.mxu0 %vm663_vm0, %v871_v17  ;;  %v1000_v43 = vsel %vm663_vm0, %v871_v17, 0  ;;  %v836_v22 = vadd.f32 %v2324_v25, %v822_v18  ;;  %v2618_v23 = vpop.eup %2617  ;;  %v823_v53 = vmul.f32 %v2323_v24, %v809_v16  ;;  %v893_v55 = vpop.permute.xlu1 %892 }
 0x15a   : > { %2440 = vmatpush3.bf16.xpose.msra.mxu0 %v1000_v43  ;;  %v811_v31 = vmul.f32 %v2618_v23, %v2855_v62 }
 0x15b   : > { %v872_v26 = vpack.c.bf16 %v836_v22, %v835_v21  ;;  %v824_v27 = vmul.f32 %v2323_v24, %v810_v19  ;;  %v837_v34 = vadd.f32 %v2324_v25, %v823_v53 }
 0x15c   : > { %v2620_v28 = vpop.eup %2619 }
 0x15d   : > { %v812_v29 = vmul.f32 %v2620_v28, %v2857_v63  ;;  %2424 = vmatmul.mubr.msk.bf16.vlgmr.msra.gmra.mrb[0].mxu1 %vm663_vm0, %v2586_v20  ;;  %2557 = vmatprep.subr.msk.bf16.mxu0 %vm663_vm0, %v872_v26  ;;  %v838_v30 = vadd.f32 %v2324_v25, %v824_v27  ;;  %v1003_v35 = vsel %vm663_vm0, %v872_v26, 0  ;;  %v825_v63 = vmul.f32 %v2323_v24, %v811_v31  ;;  %v966_v0 = vpop.permute.xlu1 %965 }
 0x15e   : > { %2428 = vmatpush3.bf16.xpose.msra.mxu1 %v1000_v43  ;;  %2435 = vmatprep.mubr.msk.bf16.mxu1 %vm663_vm0, %v2587_v52 }
 0x15f   : > { %2553 = vmatprep.subr.msk.bf16.mxu1 %vm663_vm0, %v872_v26  ;;  %v873_v36 = vpack.c.bf16 %v838_v30, %v837_v34  ;;  %v826_v37 = vmul.f32 %v2323_v24, %v812_v29  ;;  %v839_v39 = vadd.f32 %v2324_v25, %v825_v63 }
 0x161   : > { %v840_v38 = vadd.f32 %v2324_v25, %v826_v37  ;;  %v1006_v40 = vsel %vm663_vm0, %v873_v36, 0  ;;  %v971_v1 = vpop.permute.xlu1 %970 }
 0x162   : > { %2442 = vmatpush3.bf16.xpose.msra.mxu0 %v1003_v35 }
 0x163   : > { %2558 = vmatprep.subr.msk.bf16.mxu0 %vm663_vm0, %v873_v36  ;;  %v874_v41 = vpack.c.bf16 %v840_v38, %v839_v39 }
 0x165   : > { %v1009_v62 = vsel %vm663_vm0, %v874_v41, 0  ;;  %v976_v2 = vpop.permute.xlu1 %975 }
 0x166   : > { %2430 = vmatpush3.bf16.xpose.msra.mxu1 %v1003_v35 }
 0x167   : > { %2554 = vmatprep.subr.msk.bf16.mxu1 %vm663_vm0, %v873_v36 }
 0x169   : > { %v981_v32 = vpop.permute.xlu1 %980 }
 0x16a   : > { %2444 = vmatpush3.bf16.xpose.msra.mxu0 %v1006_v40 }
 0x16b   : > { %2559 = vmatprep.subr.msk.bf16.mxu0 %vm663_vm0, %v874_v41 }
 0x16e   : > { %2432 = vmatpush3.bf16.xpose.msra.mxu1 %v1006_v40 }
 0x16f   : > { %2555 = vmatprep.subr.msk.bf16.mxu1 %vm663_vm0, %v874_v41 }
 0x172   : > { %2446 = vmatpush3.bf16.xpose.msra.mxu0 %v1009_v62 }
 0x173   : > { %2469 = vmatprep.subr.bf16.mxu0 %v2676_v46 }
 0x176   : > { %2434 = vmatpush3.bf16.xpose.msra.mxu1 %v1009_v62 }
 0x177   : > { %2451 = vmatprep.subr.bf16.mxu1 %v2676_v46 }
 0x179   : > { %2448 = vmatmul.mubr.msk.bf16.vlgmr.msra.gmra.mrb[0].mxu0 %vm663_vm0, %v2590_v47 }
 0x17a   : > { %2471 = vmatprep.mubr.msk.bf16.mxu0 %vm2677_vm1, %v2676_v46 }
 0x17d   : > { %2436 = vmatmul.mubr.msk.bf16.vlgmr.msra.gmra.mrb[4].mxu1 %vm663_vm0, %v2588_v44 }
 0x17e   : > { %2453 = vmatprep.mubr.msk.bf16.mxu1 %vm2677_vm1, %v2676_v46 }
 0x230   : > { %v2425_v51 = vpop.f32.mrb[0].mxu1 }
 0x231   : > { %v948_v54 = vpop.f32.mrb[1].mxu1  ;;  %v957_v58 = vadd.f32 %v2425_v51, %v888_v49 }
 0x232   : > { %v949_v56 = vadd.f32 %v948_v54, %v878_v50  ;;  %v2426_v57 = vpop.f32.mrb[2].mxu1 }
 0x233   : > { %v960_v24 = vadd.f32 %v2426_v57, %v893_v55  ;;  %v951_v59 = vpop.f32.mrb[3].mxu1 }
 0x234   : > { %v952_v60 = vadd.f32 %v951_v59, %v883_v48  ;;  %1153 = vxpose.xlu1.b32.start.end [1/1] (short) (narrow) %v949_v56, 16 }
 0x235   : > { %v2573_v61 = vpack.i.bf16 %v960_v24, %v957_v58 }
 0x236   : > { %1185 = vxpose.xlu0.b32.start.end [1/1] (short) (narrow) %v952_v60, 16 }
 0x23b   : > { %2574 = vxpose.xlu0.b32.start.end [1/1] (short) (narrow) %v2573_v61, 16  ;;  %v861_v61 = vld [vmem:[%s3172_s11] sm:$0xff] }
 0x24c   : > { %v2977_v29 = vpop.f32.mrb[0].mxu0 }
 0x24d   : > { %v2979_v30 = vpop.f32.mrb[1].mxu0 }
 0x24e   : > { %v2981_v31 = vpop.f32.mrb[2].mxu0 }
 0x24f   : > { %v2983_v34 = vpop.f32.mrb[3].mxu0 }
 0x250   : > { %v2437_v3 = vpop.f32.mrb[4].mxu1 }
 0x251   : > { %v1045_v4 = vpop.f32.mrb[5].mxu1  ;;  %v1054_v18 = vadd.f32 %v2437_v3, %v976_v2 }
 0x252   : > { %v1046_v5 = vadd.f32 %v1045_v4, %v966_v0  ;;  %v2438_v6 = vpop.f32.mrb[6].mxu1  ;;  %v862_v0 = vld [vmem:[%s3172_s11 + $0x8] sm:$0xff] }
 0x253   : > { %v1057_v25 = vadd.f32 %v2438_v6, %v981_v32  ;;  %v1048_v7 = vpop.f32.mrb[7].mxu1  ;;  %v1147_v43 = vpack.c.bf16 %v1054_v18, %v1054_v18 }
 0x254   : > { %v1145_v8 = vpack.c.bf16 %v1046_v5, %v1046_v5  ;;  %v1049_v12 = vadd.f32 %v1048_v7, %v971_v1 }
 0x255   : > { %v1148_v9 = vpack.c.bf16 %v1057_v25, %v1057_v25  ;;  %v1385_v52 = vsel %vm1289_vm2, %v1147_v43, 0 }
 0x256   : > { %v1291_v10 = vsel %vm1289_vm2, %v1145_v8, 0  ;;  %v1146_v14 = vpack.c.bf16 %v1049_v12, %v1049_v12 }
 0x257   : > { %v1432_v11 = vsel %vm1289_vm2, %v1148_v9, 0  ;;  %2452 = vmatpush3.bf16.msra.mxu1 %v1291_v10 }
 0x258   : > { %2470 = vmatpush3.bf16.msra.mxu0 %v1432_v11  ;;  %2457 = vmatprep.subr.bf16.mxu1 %v2676_v46  ;;  %v1338_v42 = vsel %vm1289_vm2, %v1146_v14, 0 }
 0x259   : > { %2481 = vmatprep.subr.bf16.mxu0 %v2676_v46 }
 0x2b4   : > { %v1169_v13 = vpop.trf.xlu1 }
 0x2b6   : > { %v1201_v33 = vpop.trf.xlu0 }
 0x2b8   : > { %v1170_v15 = vpop.trf.xlu1 }
 0x2b9   : > { %v1281_v16 = vpack.c.bf16 %v1170_v15, %v1169_v13 }
 0x2ba   : > { %v1202_v17 = vpop.trf.xlu0 }
 0x2bb   : > { %2454 = vmatmul.mubr.msk.bf16.vlgmr.msra.gmra.mrb[8].mxu1 %vm1285_vm3, %v1281_v16  ;;  %v1282_v20 = vpack.c.bf16 %v1202_v17, %v1201_v33 }
 0x2bc   : > { %2458 = vmatpush3.bf16.msra.mxu1 %v1338_v42  ;;  %2459 = vmatprep.mubr.msk.bf16.mxu1 %vm2677_vm1, %v2676_v46 }
 0x2bd   : > { %2463 = vmatprep.subr.bf16.mxu1 %v2676_v46 }
 0x2be   : > { %v2575_v19 = vpop.trf.xlu0 }
 0x2bf   : > { %v2579_v21 = vunpack.i.h.bf16 %v2575_v19  ;;  %v2576_v26 = vunpack.i.l.bf16 %v2575_v19 }
 0x2c2   : > { %v2580_v22 = vpop.trf.xlu0 }
 0x2c3   : > { %v2584_v23 = vunpack.i.h.bf16 %v2580_v22  ;;  %2460 = vmatmul.mubr.msk.bf16.vlgmr.msra.gmra.mrb[12].mxu1 %vm1285_vm3, %v1282_v20  ;;  %v2581_v53 = vunpack.i.l.bf16 %v2580_v22 }
 0x2c4   : > { %2464 = vmatpush3.bf16.msra.mxu1 %v1385_v52  ;;  %2465 = vmatprep.mubr.msk.bf16.mxu1 %vm2677_vm1, %v2676_v46 }
 0x2c5   : > { %v1284_v27 = vpack.c.bf16 %v2584_v23, %v2579_v21  ;;  %2475 = vmatprep.subr.bf16.mxu1 %v2676_v46  ;;  %v1283_v28 = vpack.c.bf16 %v2581_v53, %v2576_v26 }
 0x2c7   : > { %2472 = vmatmul.mubr.msk.bf16.vlgmr.msra.gmra.mrb[4].mxu0 %vm1285_vm3, %v1284_v27 }
 0x2c8   : > { %2483 = vmatprep.mubr.msk.bf16.mxu0 %vm2677_vm1, %v2676_v46 }
 0x2cb   : > { %2466 = vmatmul.mubr.msk.bf16.vlgmr.msra.gmra.mrb[16].mxu1 %vm1285_vm3, %v1283_v28 }
 0x2cc   : > { %2477 = vmatprep.mubr.msk.bf16.mxu1 %vm2677_vm1, %v2676_v46 }
 0x38e   : > { %v1327_v35 = vpop.f32.mrb[8].mxu1 }
 0x38f   : > { %v2455_v36 = vpop.f32.mrb[9].mxu1  ;;  %v1476_v37 = vsel %vm1475_vm4, %v1327_v35, -inf }
 0x390   : > { %1477 = vmax.xlane.f32.xlu0 %v1476_v37  ;;  %v1330_v63 = vpop.f32.mrb[10].mxu1 }
 0x391   : > { %v2456_v38 = vpop.f32.mrb[11].mxu1  ;;  %v1479_v39 = vsel %vm1475_vm4, %v1330_v63, -inf }
 0x392   : > { %1480 = vmax.xlane.f32.xlu1 %v1479_v39 }
 0x396   : > { %v1374_v40 = vpop.f32.mrb[12].mxu1 }
 0x397   : > { %v2461_v41 = vpop.f32.mrb[13].mxu1  ;;  %v1482_v62 = vsel %vm1475_vm4, %v1374_v40, -inf }
 0x398   : > { %1483 = vmax.xlane.f32.xlu1 %v1482_v62  ;;  %v1377_v44 = vpop.f32.mrb[14].mxu1 }
 0x399   : > { %v2462_v45 = vpop.f32.mrb[15].mxu1  ;;  %v1485_v47 = vsel %vm1475_vm4, %v1377_v44, -inf }
 0x39a   : > { %1486 = vmax.xlane.f32.xlu0 %v1485_v47  ;;  %v1468_v48 = vpop.f32.mrb[4].mxu0 }
 0x39b   : > { %v2473_v49 = vpop.f32.mrb[5].mxu0  ;;  %v1494_v50 = vsel %vm1475_vm4, %v1468_v48, -inf }
 0x39c   : > { %1495 = vmax.xlane.f32.xlu1 %v1494_v50  ;;  %v1471_v51 = vpop.f32.mrb[6].mxu0  ;;  %v863_v49 = vld [vmem:[%s3172_s11 + $0x10] sm:$0xff]  ;;  %v864_v50 = vld [vmem:[%s3172_s11 + $0x18] sm:$0xff] }
 0x39d   : > { %v2474_v54 = vpop.f32.mrb[7].mxu0  ;;  %v1497_v60 = vsel %vm1475_vm4, %v1471_v51, -inf }
 0x39e   : > { %v1421_v55 = vpop.f32.mrb[16].mxu1 }
 0x39f   : > { %v2467_v56 = vpop.f32.mrb[17].mxu1  ;;  %v1488_v57 = vsel %vm1475_vm4, %v1421_v55, -inf }
 0x3a0   : > { %1489 = vmax.xlane.f32.xlu1 %v1488_v57  ;;  %v1424_v58 = vpop.f32.mrb[18].mxu1 }
 0x3a1   : > { %v2468_v24 = vpop.f32.mrb[19].mxu1  ;;  %v1491_v59 = vsel %vm1475_vm4, %v1424_v58, -inf }
 0x3a2   : > { %1492 = vmax.xlane.f32.xlu0 %v1491_v59 }
 0x3a6   : > { %1498 = vmax.xlane.f32.xlu0 %v1497_v60 }
 0x3b1   : > { %1062 = vperm.xlu1 %2572, %v861_v61  }
 0x3bc   : > { %1067 = vperm.xlu0 %2571, %v862_v0  }
 0x41d   : > { %v1478_v1 = vpop.xlane.xlu0 %1477 }
 0x41e   : > { %v1500_v2 = vsub.f32 %v1327_v35, %v1478_v1 }
 0x41f   : > { %v1481_v3 = vpop.xlane.xlu1 %1480 }
 0x420   : > { %v1508_v4 = vmul.f32 1.442695, %v1500_v2  ;;  %v1501_v32 = vsub.f32 %v1330_v63, %v1481_v3 }
 0x422   : > { %2621 = vpow2.f32 %v1508_v4  ;;  %v1510_v5 = vmul.f32 1.442695, %v1501_v32 }
 0x424   : > { %2623 = vpow2.f32 %v1510_v5 }
 0x425   : > { %v1484_v6 = vpop.xlane.xlu1 %1483 }
 0x426   : > { %v1502_v25 = vsub.f32 %v1374_v40, %v1484_v6 }
 0x427   : > { %v1487_v9 = vpop.xlane.xlu0 %1486 }
 0x428   : > { %v1512_v11 = vmul.f32 1.442695, %v1502_v25  ;;  %v1503_v19 = vsub.f32 %v1377_v44, %v1487_v9 }
 0x429   : > { %v1496_v7 = vpop.xlane.xlu1 %1495 }
 0x42a   : > { %v1506_v8 = vsub.f32 %v1468_v48, %v1496_v7  ;;  %v1514_v52 = vmul.f32 1.442695, %v1503_v19 }
 0x42c   : > { %v2999_v10 = vpop.eup %2621  ;;  %v1520_v12 = vmul.f32 1.442695, %v1506_v8 }
 0x42d   : > { %v1490_v13 = vpop.xlane.xlu1 %1489  ;;  %v1524_v33 = vsel %vm1475_vm4, %v2999_v10, 0.0 }
 0x42e   : > { %v2624_v14 = vpop.eup %2623  ;;  %2625 = vpow2.f32 %v1520_v12  ;;  %v1504_v15 = vsub.f32 %v1421_v55, %v1490_v13  ;;  %1525 = vadd.xlane.f32.xlu1 %v1524_v33 }
 0x42f   : > { %v1493_v16 = vpop.xlane.xlu0 %1492  ;;  %v1527_v17 = vsel %vm1475_vm4, %v2624_v14, 0.0  ;;  %2627 = vpow2.f32 %v1512_v11 }
 0x430   : > { %v1516_v18 = vmul.f32 1.442695, %v1504_v15  ;;  %1528 = vadd.xlane.f32.xlu0 %v1527_v17  ;;  %v1505_v23 = vsub.f32 %v1424_v58, %v1493_v16 }
 0x431   : > { %v1063_v42 = vpop.permute.xlu1 %1062 }
 0x432   : > { %v1131_v43 = vadd.f32 %v2979_v30, %v1063_v42  ;;  %2629 = vpow2.f32 %v1516_v18  ;;  %v1518_v30 = vmul.f32 1.442695, %v1505_v23  ;;  %v868_v23 = vld [vmem:[%s3173_s12 + $0xc] sm:$0xf] }
 0x433   : > { %v1499_v20 = vpop.xlane.xlu0 %1498 }
 0x434   : > { %v1149_v21 = vpack.c.bf16 %v1131_v43, %v1131_v43  ;;  %v1507_v22 = vsub.f32 %v1471_v51, %v1499_v20  ;;  %v865_v43 = vld [vmem:[%s3173_s12] sm:$0xf] }
 0x435   : > { %v1811_v20 = vsel %vm1289_vm2, %v865_v43, 0 }
 0x436   : > { %v1572_v26 = vsel %vm1475_vm4, %v1149_v21, 0  ;;  %v1522_v53 = vmul.f32 1.442695, %v1507_v22  ;;  %v866_v21 = vld [vmem:[%s3173_s12 + $0x4] sm:$0xf] }
 0x437   : > { %2476 = vmatpush3.bf16.xpose.msra.mxu1 %v1572_v26  ;;  %v1764_v22 = vsel %vm1289_vm2, %v866_v21, 0 }
 0x438   : > { %v3006_v27 = vpop.eup %2625  ;;  %2631 = vpow2.f32 %v1522_v53  ;;  %2487 = vmatprep.subr.bf16.mxu1 %v2676_v46 }
 0x439   : > { %v1542_v28 = vsel %vm1475_vm4, %v3006_v27, 0.0  ;;  %v2628_v35 = vpop.eup %2627  ;;  %2633 = vpow2.f32 %v1514_v52 }
 0x43a   : > { %1543 = vadd.xlane.f32.xlu1 %v1542_v28  ;;  %v1530_v63 = vsel %vm1475_vm4, %v2628_v35, 0.0  ;;  %2635 = vpow2.f32 %v1518_v30 }
 0x43b   : > { %v1068_v36 = vpop.permute.xlu0 %1067 }
 0x43c   : > { %v1134_v37 = vadd.f32 %v2983_v34, %v1068_v36  ;;  %v2630_v38 = vpop.eup %2629  ;;  %v867_v36 = vld [vmem:[%s3173_s12 + $0x8] sm:$0xf] }
 0x43d   : > { %v1536_v41 = vsel %vm1475_vm4, %v2630_v38, 0.0 }
 0x43e   : > { %v1150_v39 = vpack.c.bf16 %v1134_v37, %v1134_v37  ;;  %1531 = vadd.xlane.f32.xlu1 %v1530_v63 }
 0x440   : > { %v1619_v40 = vsel %vm1475_vm4, %v1150_v39, 0 }
 0x441   : > { %2482 = vmatpush3.bf16.xpose.msra.mxu0 %v1619_v40  ;;  %v1858_v40 = vsel %vm1289_vm2, %v867_v36, 0 }
 0x442   : > { %v3015_v62 = vpop.eup %2631  ;;  %1537 = vadd.xlane.f32.xlu1 %v1536_v41  ;;  %2493 = vmatprep.subr.bf16.mxu0 %v2676_v46 }
 0x443   : > { %v1545_v44 = vsel %vm1475_vm4, %v3015_v62, 0.0  ;;  %v2634_v34 = vpop.eup %2633 }
 0x444   : > { %1546 = vadd.xlane.f32.xlu0 %v1545_v44  ;;  %v1533_v45 = vsel %vm1475_vm4, %v2634_v34, 0.0  ;;  %v2636_v47 = vpop.eup %2635 }
 0x445   : > { %v1539_v48 = vsel %vm1475_vm4, %v2636_v47, 0.0 }
 0x448   : > { %1534 = vadd.xlane.f32.xlu0 %v1533_v45 }
 0x44c   : > { %1540 = vadd.xlane.f32.xlu0 %v1539_v48 }
 0x453   : > { %1072 = vperm.xlu1 %2572, %v863_v49  }
 0x462   : > { %1077 = vperm.xlu0 %2571, %v864_v50  }
 0x4bb   : > { %v1526_v51 = vpop.xlane.xlu1 %1525 }
 0x4bc   : > { %2637 = vrcp.f32 %v1526_v51 }
 0x4bd   : > { %v1529_v54 = vpop.xlane.xlu0 %1528 }
 0x4be   : > { %2639 = vrcp.f32 %v1529_v54 }
 0x4c6   : > { %v2638_v55 = vpop.eup %2637 }
 0x4c7   : > { %v1544_v56 = vpop.xlane.xlu1 %1543  ;;  %v1556_v58 = vmul.f32 %v2638_v55, %v2999_v10 }
 0x4c8   : > { %v2640_v57 = vpop.eup %2639 }
 0x4c9   : > { %v1557_v24 = vmul.f32 %v2640_v57, %v2624_v14 }
 0x4cb   : > { %v1532_v59 = vpop.xlane.xlu1 %1531  ;;  %v1564_v60 = vpack.c.bf16 %v1557_v24, %v1556_v58 }
 0x4cc   : > { %2641 = vrcp.f32 %v1532_v59 }
 0x4cd   : > { %2478 = vmatmul.mubr.msk.bf16.vlgmr.msra.gmra.mrb[20].mxu1 %vm1475_vm4, %v1564_v60 }
 0x4ce   : > { %2489 = vmatprep.mubr.msk.bf16.mxu1 %vm2677_vm1, %v2676_v46 }
 0x4cf   : > { %v1538_v61 = vpop.xlane.xlu1 %1537 }
 0x4d1   : > { %v1547_v0 = vpop.xlane.xlu0 %1546 }
 0x4d3   : > { %v1073_v1 = vpop.permute.xlu1 %1072 }
 0x4d4   : > { %v1139_v2 = vadd.f32 %v2977_v29, %v1073_v1 }
 0x4d5   : > { %v1535_v3 = vpop.xlane.xlu0 %1534 }
 0x4d6   : > { %v1151_v4 = vpack.c.bf16 %v1139_v2, %v1139_v2  ;;  %2643 = vrcp.f32 %v1535_v3  ;;  %v2642_v6 = vpop.eup %2641 }
 0x4d7   : > { %2645 = vrcp.f32 %v1538_v61  ;;  %v1558_v7 = vmul.f32 %v2642_v6, %v2628_v35  ;;  %v1907_v35 = vsel %vm1289_vm2, %v868_v23, 0 }
 0x4d8   : > { %v1666_v32 = vsel %vm1475_vm4, %v1151_v4, 0 }
 0x4d9   : > { %2488 = vmatpush3.bf16.xpose.msra.mxu1 %v1666_v32  ;;  %v1541_v5 = vpop.xlane.xlu0 %1540  ;;  %v2349_v32 = vld [vmem:[%s3174_s13] ss:$0 sm:$0xff] }
 0x4da   : > { %2647 = vrcp.f32 %v1541_v5  ;;  %2499 = vmatprep.subr.bf16.mxu1 %v2676_v46 }
 0x4db   : > { %2649 = vrcp.f32 %v1547_v0 }
 0x4dc   : > { %2651 = vrcp.f32 %v1544_v56 }
 0x4e0   : > { %v2644_v25 = vpop.eup %2643 }
 0x4e1   : > { %v1559_v8 = vmul.f32 %v2644_v25, %v2634_v34  ;;  %v1078_v9 = vpop.permute.xlu0 %1077  ;;  %v2646_v10 = vpop.eup %2645 }
 0x4e2   : > { %v1142_v29 = vadd.f32 %v2981_v31, %v1078_v9  ;;  %v1560_v14 = vmul.f32 %v2646_v10, %v2630_v38 }
 0x4e3   : > { %v1565_v11 = vpack.c.bf16 %v1559_v8, %v1558_v7 }
 0x4e4   : > { %v2648_v12 = vpop.eup %2647  ;;  %v1152_v13 = vpack.c.bf16 %v1142_v29, %v1142_v29 }
 0x4e5   : > { %v2650_v33 = vpop.eup %2649  ;;  %v1561_v15 = vmul.f32 %v2648_v12, %v2636_v47  ;;  %2484 = vmatmul.mubr.msk.bf16.vlgmr.msra.gmra.mrb[8].mxu0 %vm1475_vm4, %v1565_v11  ;;  %v2665_v12 = vld [vmem:[%s2800_s26] sm:$0xff] }
 0x4e6   : > { %v1713_v16 = vsel %vm1475_vm4, %v1152_v13, 0  ;;  %2495 = vmatprep.mubr.msk.bf16.mxu0 %vm2677_vm1, %v2676_v46  ;;  %v2652_v17 = vpop.eup %2651  ;;  %v1563_v42 = vmul.f32 %v2650_v33, %v3015_v62 }
 0x4e7   : > { %2494 = vmatpush3.bf16.xpose.msra.mxu0 %v1713_v16  ;;  %v1566_v18 = vpack.c.bf16 %v1561_v15, %v1560_v14  ;;  %v1562_v31 = vmul.f32 %v2652_v17, %v3006_v27  ;;  %v2666_v14 = vld [vmem:[%s2800_s26 + $0x8] sm:$0xff] }
 0x4e8   : > { %2505 = vmatprep.subr.bf16.mxu0 %v2676_v46 }
 0x4e9   : > { %2490 = vmatmul.mubr.msk.bf16.vlgmr.msra.gmra.mrb[24].mxu1 %vm1475_vm4, %v1566_v18  ;;  %v1567_v19 = vpack.c.bf16 %v1563_v42, %v1562_v31 }
 0x4ea   : > { %2501 = vmatprep.mubr.msk.bf16.mxu1 %vm2677_vm1, %v2676_v46  ;;  %2500 = vmatpush3.bf16.msra.mxu1 %v1764_v22 }
 0x4eb   : > { %2511 = vmatprep.subr.bf16.mxu1 %v2676_v46 }
 0x4ee   : > { %2496 = vmatmul.mubr.msk.bf16.vlgmr.msra.gmra.mrb[12].mxu0 %vm1475_vm4, %v1567_v19 }
 0x4ef   : > { %2507 = vmatprep.mubr.msk.bf16.mxu0 %vm2677_vm1, %v2676_v46  ;;  %2506 = vmatpush3.bf16.msra.mxu0 %v1811_v20 }
 0x4f0   : > { %2517 = vmatprep.subr.bf16.mxu0 %v2676_v46 }
 0x5a0   : > { %v1608_v52 = vpop.f32.mrb[20].mxu1 }
 0x5a1   : > { %v2479_v26 = vpop.f32.mrb[21].mxu1 }
 0x5a2   : > { %v1611_v53 = vpop.f32.mrb[22].mxu1  ;;  %v2591_v26 = vld [vmem:[%s3177_s16] sm:$0xff]  }
 0x5a3   : > { %v1756_v27 = vpack.c.bf16 %v1611_v53, %v1608_v52  ;;  %v2480_v28 = vpop.f32.mrb[23].mxu1  ;;  %v2592_v53 = vld [vmem:[%s3177_s16 + $0x8] sm:$0xff]  }
 0x5a5   : > { %2508 = vmatmul.mubr.msk.bf16.vlgmr.msra.gmra.mrb[16].mxu0 %vm1285_vm3, %v1756_v27 }
 0x5a6   : > { %2518 = vmatpush3.bf16.msra.mxu0 %v1907_v35  ;;  %2519 = vmatprep.mubr.msk.bf16.mxu0 %vm2677_vm1, %v2676_v46 }
 0x5a7   : > { %2531 = vmatprep.subr.bf16.mxu0 %v2676_v46 }
 0x5b8   : > { %v1655_v30 = vpop.f32.mrb[8].mxu0 }
 0x5b9   : > { %v2485_v37 = vpop.f32.mrb[9].mxu0 }
 0x5ba   : > { %v1658_v63 = vpop.f32.mrb[10].mxu0 }
 0x5bb   : > { %v1757_v38 = vpack.c.bf16 %v1658_v63, %v1655_v30  ;;  %v2486_v39 = vpop.f32.mrb[11].mxu0 }
 0x5bc   : > { %v1702_v41 = vpop.f32.mrb[24].mxu1 }
 0x5bd   : > { %v2491_v62 = vpop.f32.mrb[25].mxu1  ;;  %2502 = vmatmul.mubr.msk.bf16.vlgmr.msra.gmra.mrb[28].mxu1 %vm1285_vm3, %v1757_v38  ;;  %v2350_v38 = vld [vmem:[%s3175_s14] ss:$0 sm:$0xff] }
 0x5be   : > { %2512 = vmatpush3.bf16.msra.mxu1 %v1858_v40  ;;  %v1705_v44 = vpop.f32.mrb[26].mxu1  ;;  %2513 = vmatprep.mubr.msk.bf16.mxu1 %vm2677_vm1, %v2676_v46 }
 0x5bf   : > { %v1758_v34 = vpack.c.bf16 %v1705_v44, %v1702_v41  ;;  %v2492_v45 = vpop.f32.mrb[27].mxu1  ;;  %2523 = vmatprep.subr.bf16.mxu1 %v2676_v46  ;;  %v2351_v44 = vld [vmem:[%s3176_s15] ss:$0 sm:$0xff] }
 0x5c1   : > { %v1749_v47 = vpop.f32.mrb[12].mxu0 }
 0x5c2   : > { %v2497_v48 = vpop.f32.mrb[13].mxu0 }
 0x5c3   : > { %v1752_v49 = vpop.f32.mrb[14].mxu0 }
 0x5c4   : > { %v1759_v50 = vpack.c.bf16 %v1752_v49, %v1749_v47  ;;  %v2498_v51 = vpop.f32.mrb[15].mxu0  ;;  %v2593_v49 = vld [vmem:[%s3179_s18] sm:$0xff]  }
 0x5c5   : > { %2514 = vmatmul.mubr.msk.bf16.vlgmr.msra.gmra.mrb[32].mxu1 %vm1285_vm3, %v1758_v34  ;;  %v2595_v51 = vld [vmem:[%s3179_s18 + $0x10] sm:$0xff]  }
 0x5c6   : > { %2520 = vmatmul.mubr.msk.bf16.vlgmr.msra.gmra.mrb[20].mxu0 %vm1285_vm3, %v1759_v50  ;;  %2527 = vmatprep.mubr.msk.bf16.mxu1 %vm2677_vm1, %v2676_v46  ;;  %v2594_v50 = vld [vmem:[%s3179_s18 + $0x8] sm:$0xff]  }
 0x5c7   : > { %2547 = vmatprep.mubr.msk.bf16.mxu0 %vm2677_vm1, %v2676_v46  ;;  %2524 = vmatpush3.bf16.msra.mxu1 %v2591_v26 }
 0x5c8   : > { %2525 = vmatprep.subr.bf16.mxu1 %v2676_v46  ;;  %2532 = vmatpush3.bf16.msra.mxu0 %v2593_v49 }
 0x5c9   : > { %2533 = vmatprep.subr.bf16.mxu0 %v2676_v46 }
 0x5cb   : > { %2526 = vmatpush3.bf16.msra.mxu1 %v2592_v53 }
 0x5cc   : > { %2534 = vmatpush3.bf16.msra.mxu0 %v2594_v50 }
 0x5cd   : > { %2535 = vmatprep.subr.bf16.mxu0 %v2676_v46 }
 0x5d0   : > { %2536 = vmatpush3.bf16.msra.mxu0 %v2595_v51 }
 0x5d1   : > { %2537 = vmatprep.subr.bf16.mxu0 %v2676_v46 }
 0x678   : > { %v1847_v54 = vpop.f32.mrb[16].mxu0 }
 0x679   : > { %v2509_v55 = vpop.f32.mrb[17].mxu0 }
 0x67a   : > { %v1850_v56 = vpop.f32.mrb[18].mxu0  ;;  %v2597_v55 = vld [vmem:[%s3179_s18 + $0x20] sm:$0xff]  }
 0x67b   : > { %v2510_v57 = vpop.f32.mrb[19].mxu0 }
 0x67c   : > { %v2599_v57 = vld [vmem:[%s3179_s18 + $0x30] sm:$0xff]  }
 0x690   : > { %v1800_v58 = vpop.f32.mrb[28].mxu1 }
 0x691   : > { %v1848_v24 = vadd.f32 %v1847_v54, %v1800_v58  ;;  %v2503_v59 = vpop.f32.mrb[29].mxu1  ;;  %v2596_v54 = vld [vmem:[%s3179_s18 + $0x18] sm:$0xff]  }
 0x692   : > { %v1803_v60 = vpop.f32.mrb[30].mxu1  ;;  %2538 = vmatpush3.bf16.msra.mxu0 %v2596_v54  ;;  %v2600_v58 = vld [vmem:[%s3179_s18 + $0x38] sm:$0xff]  }
 0x693   : > { %v1851_v61 = vadd.f32 %v1850_v56, %v1803_v60  ;;  %v2504_v0 = vpop.f32.mrb[31].mxu1  ;;  %2539 = vmatprep.subr.bf16.mxu0 %v2676_v46  ;;  %v2598_v56 = vld [vmem:[%s3179_s18 + $0x28] sm:$0xff]  }
 0x696   : > { %2540 = vmatpush3.bf16.msra.mxu0 %v2597_v55  ;;  %v2356_v55 = vld [vmem:[%s3180_s19] ss:$0 sm:$0xff] }
 0x697   : > { %2541 = vmatprep.subr.bf16.mxu0 %v2676_v46 }
 0x698   : > { %v1894_v1 = vpop.f32.mrb[32].mxu1 }
 0x699   : > { %v1901_v2 = vadd.f32 %v1894_v1, %v1848_v24  ;;  %v2515_v3 = vpop.f32.mrb[33].mxu1  ;;  %v1943_v4 = vpop.f32.mrb[20].mxu0  ;;  %v2352_v24 = vld [vmem:[%s3178_s17] ss:$0 sm:$0xff] }
 0x69a   : > { %v1897_v5 = vpop.f32.mrb[34].mxu1  ;;  %v2521_v6 = vpop.f32.mrb[21].mxu0  ;;  %2542 = vmatpush3.bf16.msra.mxu0 %v2598_v56 }
 0x69b   : > { %v1950_v25 = vadd.f32 %v1943_v4, %v1901_v2  ;;  %v1902_v7 = vadd.f32 %v1897_v5, %v1851_v61  ;;  %v2516_v8 = vpop.f32.mrb[35].mxu1  ;;  %v1946_v9 = vpop.f32.mrb[22].mxu0  ;;  %2543 = vmatprep.subr.bf16.mxu0 %v2676_v46 }
 0x69c   : > { %v2522_v10 = vpop.f32.mrb[23].mxu0 }
 0x69d   : > { %v1958_v29 = vadd.f32 %v2349_v32, %v1950_v25  ;;  %v1951_v11 = vadd.f32 %v1946_v9, %v1902_v7 }
 0x69e   : > { %2544 = vmatpush3.bf16.msra.mxu0 %v2599_v57 }
 0x69f   : > { %v3085_v13 = vadd.f32 %v2665_v12, %v1958_v29  ;;  %v1959_v33 = vadd.f32 %v2349_v32, %v1951_v11  ;;  %2545 = vmatprep.subr.bf16.mxu0 %v2676_v46 }
 0x6a1   : > { %v3088_v15 = vadd.f32 %v2666_v14, %v1959_v33  ;;  %v1986_v16 = vsel %vm663_vm0, %v3085_v13, 0.0 }
 0x6a2   : > { %1987 = vadd.xlane.f32.xlu1 %v1986_v16  ;;  %2546 = vmatpush3.bf16.msra.mxu0 %v2600_v58 }
 0x6a3   : > { %v1989_v17 = vsel %vm663_vm0, %v3088_v15, 0.0 }
 0x6a4   : > { %1990 = vadd.xlane.f32.xlu0 %v1989_v17 }
 0x72f   : > { %v1988_v18 = vpop.xlane.xlu1 %1987 }
 0x730   : > { %v1992_v42 = vmul.f32 0.03125, %v1988_v18 }
 0x731   : > { %v1991_v31 = vpop.xlane.xlu0 %1990 }
 0x732   : > { %v1994_v19 = vsub.f32 %v3085_v13, %v1992_v42  ;;  %v1993_v43 = vmul.f32 0.03125, %v1991_v31 }
 0x734   : > { %v1995_v20 = vsub.f32 %v3088_v15, %v1993_v43  ;;  %v1996_v21 = vmul.f32 %v1994_v19, %v1994_v19 }
 0x736   : > { %v1998_v22 = vsel %vm663_vm0, %v1996_v21, 0.0  ;;  %v1997_v52 = vmul.f32 %v1995_v20, %v1995_v20 }
 0x737   : > { %1999 = vadd.xlane.f32.xlu1 %v1998_v22 }
 0x738   : > { %v2001_v23 = vsel %vm663_vm0, %v1997_v52, 0.0 }
 0x739   : > { %2002 = vadd.xlane.f32.xlu0 %v2001_v23 }
 0x7c4   : > { %v2000_v27 = vpop.xlane.xlu1 %1999 }
 0x7c5   : > { %v2004_v28 = vmul.f32 0.03125, %v2000_v27 }
 0x7c6   : > { %v2003_v35 = vpop.xlane.xlu0 %2002 }
 0x7c7   : > { %v2006_v30 = vadd.f32 1e-05, %v2004_v28  ;;  %v2005_v36 = vmul.f32 0.03125, %v2003_v35 }
 0x7c9   : > { %2653 = vrsqrt.f32 %v2006_v30  ;;  %v2007_v37 = vadd.f32 1e-05, %v2005_v36 }
 0x7cb   : > { %2655 = vrsqrt.f32 %v2007_v37 }
 0x7d3   : > { %v2654_v63 = vpop.eup %2653 }
 0x7d4   : > { %v2010_v39 = vmul.f32 %v2654_v63, %v1994_v19 }
 0x7d5   : > { %v2656_v40 = vpop.eup %2655 }
 0x7d6   : > { %v2018_v41 = vmul.f32 %v2350_v38, %v2010_v39  ;;  %v2011_v62 = vmul.f32 %v2656_v40, %v1995_v20 }
 0x7d8   : > { %v2019_v34 = vmul.f32 %v2350_v38, %v2011_v62  ;;  %v2026_v45 = vadd.f32 %v2351_v44, %v2018_v41 }
 0x7da   : > { %v2027_v47 = vadd.f32 %v2351_v44, %v2019_v34 }
 0x7dc   : > { %v2028_v48 = vpack.c.bf16 %v2027_v47, %v2026_v45 }
 0x7de   : > { %2528 = vmatmul.mubr.msk.bf16.vlgmr.msra.gmra.mrb[36].mxu1 %vm663_vm0, %v2028_v48 }
 0x8b1   : > { %v2084_v59 = vpop.f32.mrb[36].mxu1 }
 0x8b2   : > { %v2085_v60 = vadd.f32 %v2352_v24, %v2084_v59  ;;  %v2529_v61 = vpop.f32.mrb[37].mxu1 }
 0x8b3   : > { %v2087_v0 = vpop.f32.mrb[38].mxu1 }
 0x8b4   : > { %v2093_v1 = vmul.f32 0.70710677, %v2085_v60  ;;  %v2088_v2 = vadd.f32 %v2352_v24, %v2087_v0  ;;  %v2530_v3 = vpop.f32.mrb[39].mxu1  ;;  %v2091_v47 = vmul.f32 0.5, %v2085_v60 }
 0x8b6   : > { %v2095_v4 = vand.u32 2147483647, %v2093_v1  ;;  %v2094_v32 = vmul.f32 0.70710677, %v2088_v2  ;;  %vm2133_vm5 = vcmp.ge.f32.partialorder %v2093_v1, 0.0  ;;  %v2092_v48 = vmul.f32 0.5, %v2088_v2 }
 0x8b8   : > { %v2097_v5 = vmul.f32 0.3275911, %v2095_v4  ;;  %v2096_v46 = vand.u32 2147483647, %v2094_v32  ;;  %v2121_v8 = vsub.f32 0.0, %v2095_v4  ;;  %vm2134_vm6 = vcmp.ge.f32.partialorder %v2094_v32, 0.0 }
 0x8ba   : > { %v2099_v6 = vadd.f32 1.0, %v2097_v5  ;;  %v2098_v25 = vmul.f32 0.3275911, %v2096_v46  ;;  %v2122_v9 = vsub.f32 0.0, %v2096_v46  ;;  %v2123_v29 = vmul.f32 %v2121_v8, %v2095_v4 }
 0x8bc   : > { %2657 = vrcp.f32 %v2099_v6  ;;  %v2100_v7 = vadd.f32 1.0, %v2098_v25  ;;  %v2124_v14 = vmul.f32 %v2122_v9, %v2096_v46  ;;  %v2125_v16 = vmul.f32 1.442695, %v2123_v29 }
 0x8be   : > { %2659 = vrcp.f32 %v2100_v7  ;;  %v2127_v19 = vmul.f32 1.442695, %v2124_v14 }
 0x8bf   : > { %2661 = vpow2.f32 %v2125_v16 }
 0x8c0   : > { %2663 = vpow2.f32 %v2127_v19 }
 0x8c6   : > { %v2658_v10 = vpop.eup %2657 }
 0x8c7   : > { %v2103_v11 = vmul.f32 1.0614054, %v2658_v10 }
 0x8c8   : > { %v2660_v12 = vpop.eup %2659 }
 0x8c9   : > { %v2105_v33 = vadd.f32 -1.4531521, %v2103_v11  ;;  %v2104_v17 = vmul.f32 1.0614054, %v2660_v12  ;;  %v2662_v35 = vpop.eup %2661 }
 0x8ca   : > { %v2664_v63 = vpop.eup %2663 }
 0x8cb   : > { %v2107_v18 = vmul.f32 %v2658_v10, %v2105_v33  ;;  %v2106_v42 = vadd.f32 -1.4531521, %v2104_v17 }
 0x8cd   : > { %v2109_v31 = vadd.f32 1.4214138, %v2107_v18  ;;  %v2108_v43 = vmul.f32 %v2660_v12, %v2106_v42 }
 0x8cf   : > { %v2111_v20 = vmul.f32 %v2658_v10, %v2109_v31  ;;  %v2110_v21 = vadd.f32 1.4214138, %v2108_v43 }
 0x8d1   : > { %v2113_v22 = vadd.f32 -0.28449672, %v2111_v20  ;;  %v2112_v52 = vmul.f32 %v2660_v12, %v2110_v21 }
 0x8d3   : > { %v2115_v23 = vmul.f32 %v2658_v10, %v2113_v22  ;;  %v2114_v26 = vadd.f32 -0.28449672, %v2112_v52 }
 0x8d5   : > { %v2117_v53 = vadd.f32 0.2548296, %v2115_v23  ;;  %v2116_v27 = vmul.f32 %v2660_v12, %v2114_v26 }
 0x8d7   : > { %v2119_v28 = vmul.f32 %v2658_v10, %v2117_v53  ;;  %v2118_v30 = vadd.f32 0.2548296, %v2116_v27 }
 0x8d9   : > { %v2129_v36 = vmul.f32 %v2662_v35, %v2119_v28  ;;  %v2120_v37 = vmul.f32 %v2660_v12, %v2118_v30 }
 0x8db   : > { %v2131_v38 = vsub.f32 1.0, %v2129_v36  ;;  %v2130_v39 = vmul.f32 %v2664_v63, %v2120_v37 }
 0x8dd   : > { %v2135_v40 = vsub.f32 0.0, %v2131_v38  ;;  %v2132_v41 = vsub.f32 1.0, %v2130_v39 }
 0x8df   : > { %v2137_v62 = vsel %vm2133_vm5, %v2131_v38, %v2135_v40  ;;  %v2136_v44 = vsub.f32 0.0, %v2132_v41 }
 0x8e0   : > { %v2139_v34 = vadd.f32 1.0, %v2137_v62 }
 0x8e1   : > { %v2138_v45 = vsel %vm2134_vm6, %v2132_v41, %v2136_v44 }
 0x8e2   : > { %v2140_v49 = vadd.f32 1.0, %v2138_v45  ;;  %v2141_v50 = vmul.f32 %v2139_v34, %v2091_v47 }
 0x8e4   : > { %v2142_v51 = vmul.f32 %v2140_v49, %v2092_v48 }
 0x8e6   : > { %v2143_v54 = vpack.c.bf16 %v2142_v51, %v2141_v50 }
 0x8e8   : > { %2548 = vmatmul.mubr.bf16.vlgmr.msra.gmra.mrb[24].mxu0 %v2143_v54 }
 0x9bb   : > { %v2232_v56 = vpop.f32.mrb[24].mxu0 }
 0x9bc   : > { %v2233_v57 = vadd.f32 %v2356_v55, %v2232_v56  ;;  %v2549_v58 = vpop.f32.mrb[25].mxu0 }
 0x9bd   : > { %v2235_v24 = vpop.f32.mrb[26].mxu0 }
 0x9be   : > { %v2239_v59 = vadd.f32 %v2233_v57, %v3085_v13  ;;  %v2236_v60 = vadd.f32 %v2356_v55, %v2235_v24  ;;  %v2550_v61 = vpop.f32.mrb[27].mxu0 }
 0x9c0   : > { %2241 = vst.msk [vmem:[%s649_s27] sm:$0xff] %vm663_vm0, %v2239_v59  ;;  %v2240_v0 = vadd.f32 %v2236_v60, %v3088_v15 }
 0x9c2   : > { %2242 = vst.msk [vmem:[%s649_s27 + $0x8] sm:$0xff] %vm663_vm0, %v2240_v0 }
 0x9c3 PF: > { %s30_s1 = sadd.s32 1, %s2673_s1  }
 0x9c4   : > { %p27_p4 = scmp.ge.s32.totalorder %s30_s1, 4  }
 0x9c6   :  { %29 = sbr.rel (!%p27_p4) target bundleno = 6 (0x6), region = 133 }

// kernel: shape_as_latent_perceiver_forward.9
= control target key start
LH: loop header
LB: loop body
LE: loop exit
PB: predicated region body
PF: predicated region fallthrough
CT: control target
= control target key end

     0   :  { %s3035_s24 = smov 0   ;;  %s3037_s25 = smov 0   ;;  %s3395_s0 = inlined_call_operand.vmem [shape: f32[2,16,32], index: 0, kind: input, shape index: {}]   ;;  %s3396_s1 = inlined_call_operand.vmem [shape: f32[2,1,32], index: 1, kind: input, shape index: {}]   ;;  %s3397_s2 = inlined_call_operand.vmem [shape: f32[2,1,32], index: 2, kind: input, shape index: {}]   ;;  %s3398_s3 = inlined_call_operand.vmem [shape: bf16[2,32,32], index: 3, kind: input, shape index: {}]   ;;  %s3399_s4 = inlined_call_operand.vmem [shape: f32[2,32,1], index: 4, kind: input, shape index: {}]   ;;  %s3400_s5 = inlined_call_operand.vmem [shape: bf16[2,32,32], index: 5, kind: input, shape index: {}]   ;;  %s3401_s6 = inlined_call_operand.vmem [shape: f32[2,32,1], index: 6, kind: input, shape index: {}]   ;;  %s3402_s7 = inlined_call_operand.vmem [shape: bf16[2,32,32], index: 7, kind: input, shape index: {}]   ;;  %s3403_s8 = inlined_call_operand.vmem [shape: f32[2,32,1], index: 8, kind: input, shape index: {}]   ;;  %s3404_s9 = inlined_call_operand.vmem [shape: bf16[2,4,8,32], index: 9, kind: input, shape index: {}]   ;;  %s3405_s10 = inlined_call_operand.vmem [shape: f32[2,1,32], index: 10, kind: input, shape index: {}]   ;;  %s3406_s11 = inlined_call_operand.vmem [shape: f32[2,1,32], index: 11, kind: input, shape index: {}]   ;;  %s3407_s12 = inlined_call_operand.vmem [shape: f32[2,1,32], index: 12, kind: input, shape index: {}]   ;;  %s3408_s13 = inlined_call_operand.vmem [shape: bf16[2,32,128], index: 13, kind: input, shape index: {}]   ;;  %s3409_s14 = inlined_call_operand.vmem [shape: f32[2,1,128], index: 14, kind: input, shape index: {}]   ;;  %s3410_s15 = inlined_call_operand.vmem [shape: bf16[2,128,32], index: 15, kind: input, shape index: {}]   ;;  %s3411_s16 = inlined_call_operand.vmem [shape: f32[2,1,32], index: 16, kind: input, shape index: {}]   ;;  %s3412_s17 = inlined_call_operand.vmem [shape: f32[2,16,32], index: 17, kind: output, shape index: {}]  }
   0x1   :  { %3418 = sst [smem:[#allocation9_spill]] %s3395_s0  ;;  %s3039_s26 = smov 0  }
   0x2   :  { %3419 = sst [smem:[#allocation10_spill]] %s3396_s1  ;;  %s3041_s27 = smov 0  }
   0x3   :  { %3420 = sst [smem:[#allocation11_spill]] %s3397_s2  ;;  %s3043_s28 = smov 0  }
   0x4   :  { %3421 = sst [smem:[#allocation12_spill]] %s3398_s3 }
   0x5   :  { %3422 = sst [smem:[#allocation13_spill]] %s3399_s4 }
   0x6   :  { %3423 = sst [smem:[#allocation14_spill]] %s3400_s5 }
   0x7   :  { %3424 = sst [smem:[#allocation15_spill]] %s3401_s6 }
   0x8   :  { %3425 = sst [smem:[#allocation16_spill]] %s3402_s7 }
   0x9   :  { %3426 = sst [smem:[#allocation17_spill]] %s3403_s8 }
   0xa   :  { %3427 = sst [smem:[#allocation18_spill]] %s3404_s9 }
   0xb   :  { %3428 = sst [smem:[#allocation19_spill]] %s3405_s10 }
   0xc   :  { %3429 = sst [smem:[#allocation20_spill]] %s3407_s12 }
   0xd   :  { %3430 = sst [smem:[#allocation21_spill]] %s3410_s15 }
   0xe   :  { %3431 = sst [smem:[#allocation22_spill]] %s3411_s16 }
   0xf   :  { %3432 = sst [smem:[#allocation23_spill]] %s3412_s17 }
  0x10 LB: > { %3433 = sst [smem:[#allocation2_spill]] %s2924_s24  ;;  %s36_s29 = sadd.s32 1, %s2932_s26  ;;  %s2940_s28 = sphi %s3043_s28, %s27_s28   ;;  %s2936_s27 = sphi %s3041_s27, %s3471_s27   ;;  %s2932_s26 = sphi %s3039_s26, %s3470_s26   ;;  %s2928_s25 = sphi %s3037_s25, %s3469_s25   ;;  %s2924_s24 = sphi %s3035_s24, %s3468_s24  }
  0x11   : > { %3434 = sst [smem:[#allocation3_spill]] %s2932_s26  ;;  %s39_s0 = sadd.s32 1, %s2936_s27 }
  0x12   : > { %3435 = sst [smem:[#allocation4_spill]] %s2936_s27  ;;  %p37_p0 = scmp.ge.s32.totalorder %s36_s29, 2 }
  0x13   : > { %3436 = sst [smem:[#allocation5_spill]] %s2940_s28  ;;  %p2524_p1 = scmp.ge.s32.totalorder %s2940_s28, 1 }
  0x14   : > { %p645_p2 = scmp.lt.s32.totalorder %s2940_s28, 5  ;;  %s3473_s29 = smov (%p37_p0, %s36_s29), 0 }
  0x15   : > { %3437 = sst [smem:[#allocation6_spill]] %s3473_s29  ;;  %s3475_s0 = smov (!%p37_p0, %s39_s0), %s2936_s27 }
  0x16   : > { %p646_p3 = pnand %p2524_p1, %p645_p2  ;;  %p41_p4 = scmp.ge.s32.totalorder %s3475_s0, 2 }
  0x18   : > { %s3477_s0 = smov (%p41_p4, %s3475_s0), 0  ;;  %649 = sbr.rel (%p646_p3) target bundleno = 2533 (0x9e5), region = 88 }
  0x19   : > { %3438 = sst [smem:[#allocation7_spill]] %s3477_s0 }
  0x1f   : > { %p763_p5 = scmp.lt.s32.totalorder %s2928_s25, 1  ;;  %p768_p6 = scmp.lt.s32.totalorder %s2924_s24, 1 }
  0x20   : > { %s3439_s20 = sld [smem:[#allocation9_spill]]  ;;  %s3442_s3 = sld [smem:[#allocation12_spill]] }
  0x21   : > { %s3479_s25 = smov (!%p763_p5, %s2928_s25), 1  ;;  %s3443_s4 = sld [smem:[#allocation13_spill]] }
  0x22   : > { %s3069_s30 = scalar_select %p768_p6, %s2924_s24, 1 }
  0x23   : > { %s2592_s18 = sshll.u32 %s3479_s25, 4  ;;  %s3444_s5 = sld [smem:[#allocation14_spill]] }
  0x24   : > { %s2593_s24 = sshll.u32 %s3069_s30, 4  ;;  %s2594_s15 = sshll.u32 %s3069_s30, 5 }
  0x25   : > { %s3445_s6 = sld [smem:[#allocation15_spill]]  ;;  %s3446_s7 = sld [smem:[#allocation16_spill]] }
  0x26   : > { %s767_s21 = scalar_lea.vmem %s3439_s20, %s2592_s18  ;;  %s3086_s25 = scalar_lea.vmem %s3442_s3, %s2593_s24 }
  0x27   : > { %s3092_s20 = scalar_lea.vmem %s3443_s4, %s2594_s15  ;;  %s3448_s8 = sld [smem:[#allocation17_spill]] }
  0x28   : > { %s3449_s9 = sld [smem:[#allocation18_spill]]  ;;  %s3452_s26 = sld [smem:[#allocation21_spill]] }
  0x29   : > { %s3097_s23 = scalar_lea.vmem %s3444_s5, %s2593_s24  ;;  %s3453_s16 = sld [smem:[#allocation22_spill]] }
  0x2a   : > { %s3454_s12 = sld [smem:[#allocation23_spill]] }
  0x2b   : > { %s3102_s28 = scalar_lea.vmem %s3445_s6, %s2594_s15  ;;  %s3107_s29 = scalar_lea.vmem %s3446_s7, %s2593_s24 }
  0x2c   : > { %3447 = sst [smem:[#allocation8_spill]] %s3107_s29 }
  0x2d   : > { %s3112_s19 = scalar_lea.vmem %s3448_s8, %s2594_s15  ;;  %s3134_s15 = scalar_lea.vmem %s3408_s13, %s2593_s24 }
  0x2e   : > { %s3117_s22 = scalar_lea.vmem %s3449_s9, %s2593_s24  ;;  %s825_s8 = scalar_lea.vmem %s3409_s14, %s3069_s30 }
  0x2f   : > { %s2601_s9 = sshll.u32 %s3069_s30, 6  ;;  %s833_s7 = scalar_lea.vmem %s3453_s16, %s3069_s30 }
  0x30   : > { %s3144_s10 = scalar_lea.vmem %s3452_s26, %s2601_s9  ;;  %s3153_s2 = scalar_lea.vmem %s3454_s12, %s2592_s18 }
  0x31   : > { %s3455_s24 = sld [smem:[#allocation2_spill]] }
  0x37   : > { %p2547_p7 = scmp.ne.s32.totalorder %s3455_s24, 0 }
  0x38   : > { %v844_v0 = vld [vmem:[%s767_s21] sm:$0xff] (!%p2547_p7)  ;;  %vm846_vm0 = vcmask (!%p2547_p7), 261120   ;;  %v845_v1 = vld [vmem:[%s767_s21 + $0x8] sm:$0xff] (!%p2547_p7) }
  0x39   : > { %843 = sbr.rel (%p2547_p7) target bundleno = 64 (0x40), region = 92  ;;  %847 = vst.msk [vmem:[%s3153_s2] sm:$0xff] (!%p2547_p7), %vm846_vm0, %v844_v0  ;;  %848 = vst.msk [vmem:[%s3153_s2 + $0x8] sm:$0xff] (!%p2547_p7), %vm846_vm0, %v845_v1 }
  0x40 PF: > { %v3159_v2 = vld [vmem:[%s3153_s2] sm:$0xff]  ;;  %vm853_vm1 = vcmask 261120   ;;  %v3162_v3 = vld [vmem:[%s3153_s2 + $0x8] sm:$0xff]  ;;  %v2942_v18 = vmov 0   ;;  %v903_v20 = vld [vmem:[%s3092_s20 + $0x10] sm:$0xff]  ;;  %s3456_s29 = sld [smem:[#allocation10_spill]]  ;;  %s3463_s1 = scalar_lea.vmem %s3406_s11, %s3069_s30 }
  0x41   : > { %v854_v4 = vsel %vm853_vm1, %v3159_v2, 0.0  ;;  %v857_v5 = vsel %vm853_vm1, %v3162_v3, 0.0  ;;  %v2838_v16 = vld [vmem:[%s3086_s25] sm:$0xff]   ;;  %v902_v17 = vld [vmem:[%s3092_s20 + $0x8] sm:$0xff]  ;;  %2813 = vset.pattern.permute.xlu1 %v2942_v18  ;;  %2812 = vset.pattern.permute.xlu0 %v2942_v18  ;;  %v904_v21 = vld [vmem:[%s3092_s20 + $0x18] sm:$0xff]  ;;  %s3460_s16 = sld [smem:[#allocation8_spill]] }
  0x42   : > { %855 = vadd.xlane.f32.xlu0 %v854_v4  ;;  %2650 = vmatprep.mubr.msk.bf16.mxu1 %vm853_vm1, %v2838_v16  ;;  %v901_v19 = vld [vmem:[%s3092_s20] sm:$0xff]  ;;  %v910_v23 = vld [vmem:[%s3102_s28 + $0x8] sm:$0xff]  ;;  %v911_v24 = vld [vmem:[%s3102_s28 + $0x10] sm:$0xff]  ;;  %s3458_s20 = sld [smem:[#allocation11_spill]]  ;;  %v2943_v49 = vmov 0.0   ;;  %vm1329_vm2 = vcmask 1043456  }
  0x43   : > { %v909_v22 = vld [vmem:[%s3102_s28] sm:$0xff]  ;;  %v912_v25 = vld [vmem:[%s3102_s28 + $0x18] sm:$0xff]  ;;  %v2839_v44 = vld [vmem:[%s3086_s25 + $0x8] sm:$0xff]   ;;  %2672 = vmatprep.subr.bf16.mxu0 %v2943_v49  ;;  %vm2944_vm3 = vmmov 0   ;;  %vm1325_vm4 = vcmask 64512   ;;  %vm1515_vm5 = vcmask 130048  }
  0x44   : > { %v2840_v45 = vld [vmem:[%s3097_s23] sm:$0xff]   ;;  %v2841_v46 = vld [vmem:[%s3097_s23 + $0x8] sm:$0xff]   ;;  %2674 = vmatprep.mubr.msk.bf16.mxu0 %vm2944_vm3, %v2943_v49  ;;  %s3464_s0 = sld [smem:[#allocation20_spill]] }
  0x46   : > { %858 = vadd.xlane.f32.xlu0 %v857_v5  ;;  %s3457_s18 = scalar_lea.vmem %s3456_s29, %s3069_s30 }
  0x47   : > { %v2548_v34 = vld [vmem:[%s3457_s18] ss:$0 sm:$0xff]  ;;  %v2843_v48 = vld [vmem:[%s3460_s16 + $0x8] sm:$0xff]  }
  0x48   : > { %s3459_s26 = scalar_lea.vmem %s3458_s20, %s3069_s30  ;;  %v2842_v47 = vld [vmem:[%s3460_s16] sm:$0xff]  }
  0x49   : > { %v2549_v38 = vld [vmem:[%s3459_s26] ss:$0 sm:$0xff] }
  0x4a   : > { %s3465_s6 = scalar_lea.vmem %s3464_s0, %s3069_s30 }
  0x5c   : > { %929 = vperm.xlu0 %2812, %v901_v19  }
  0xcf   : > { %v856_v6 = vpop.xlane.xlu0 %855 }
  0xd0   : > { %v861_v7 = vmul.f32 0.03125, %v856_v6 }
  0xd2   : > { %v863_v8 = vsub.f32 %v3159_v2, %v861_v7 }
  0xd3   : > { %v859_v9 = vpop.xlane.xlu0 %858 }
  0xd4   : > { %v862_v10 = vmul.f32 0.03125, %v859_v9  ;;  %v865_v11 = vmul.f32 %v863_v8, %v863_v8 }
  0xd6   : > { %v864_v12 = vsub.f32 %v3162_v3, %v862_v10  ;;  %v867_v13 = vsel %vm853_vm1, %v865_v11, 0.0 }
  0xd7   : > { %868 = vadd.xlane.f32.xlu1 %v867_v13 }
  0xd8   : > { %v866_v14 = vmul.f32 %v864_v12, %v864_v12 }
  0xda   : > { %v870_v15 = vsel %vm853_vm1, %v866_v14, 0.0 }
  0xdb   : > { %871 = vadd.xlane.f32.xlu1 %v870_v15  ;;  %v930_v55 = vpop.permute.xlu0 %929 }
  0xec   : > { %934 = vperm.xlu1 %2813, %v902_v17  }
  0xf0   : > { %939 = vperm.xlu1 %2813, %v903_v20  }
  0xf4   : > { %944 = vperm.xlu1 %2813, %v904_v21  }
  0xf8   : > { %1017 = vperm.xlu1 %2813, %v909_v22  }
  0xfc   : > { %1022 = vperm.xlu1 %2813, %v910_v23  }
 0x100   : > { %1027 = vperm.xlu1 %2813, %v911_v24  }
 0x104   : > { %1032 = vperm.xlu1 %2813, %v912_v25  }
 0x164   : > { %v869_v26 = vpop.xlane.xlu1 %868 }
 0x165   : > { %v873_v27 = vmul.f32 0.03125, %v869_v26 }
 0x167   : > { %v875_v28 = vadd.f32 1e-05, %v873_v27 }
 0x168   : > { %v872_v29 = vpop.xlane.xlu1 %871 }
 0x169   : > { %2854 = vrsqrt.f32 %v875_v28  ;;  %v874_v30 = vmul.f32 0.03125, %v872_v29 }
 0x16b   : > { %v876_v31 = vadd.f32 1e-05, %v874_v30 }
 0x16c   : > { %v935_v50 = vpop.permute.xlu1 %934 }
 0x16d   : > { %2856 = vrsqrt.f32 %v876_v31 }
 0x170   : > { %v940_v51 = vpop.permute.xlu1 %939 }
 0x173   : > { %v2855_v32 = vpop.eup %2854 }
 0x174   : > { %v879_v33 = vmul.f32 %v2855_v32, %v863_v8  ;;  %v945_v52 = vpop.permute.xlu1 %944 }
 0x176   : > { %v887_v37 = vmul.f32 %v2548_v34, %v879_v33 }
 0x177   : > { %v2857_v35 = vpop.eup %2856 }
 0x178   : > { %v880_v36 = vmul.f32 %v2857_v35, %v864_v12  ;;  %v895_v40 = vadd.f32 %v2549_v38, %v887_v37  ;;  %v1018_v62 = vpop.permute.xlu1 %1017 }
 0x17a   : > { %v888_v39 = vmul.f32 %v2548_v34, %v880_v36 }
 0x17c   : > { %v896_v41 = vadd.f32 %v2549_v38, %v888_v39  ;;  %v1023_v7 = vpop.permute.xlu1 %1022 }
 0x17e   : > { %v926_v42 = vpack.c.bf16 %v896_v41, %v895_v40 }
 0x180   : > { %2766 = vmatprep.subr.msk.bf16.mxu1 %vm853_vm1, %v926_v42  ;;  %v964_v43 = vsel %vm853_vm1, %v926_v42, 0  ;;  %v1028_v18 = vpop.permute.xlu1 %1027 }
 0x181   : > { %2649 = vmatpush3.bf16.xpose.msra.mxu1 %v964_v43 }
 0x182   : > { %2767 = vmatprep.subr.msk.bf16.mxu1 %vm853_vm1, %v926_v42 }
 0x184   : > { %v1033_v19 = vpop.permute.xlu1 %1032 }
 0x188   : > { %2651 = vmatmul.mubr.msk.bf16.vlgmr.msra.gmra.mrb[0].mxu1 %vm853_vm1, %v2839_v44 }
 0x189   : > { %2655 = vmatpush3.bf16.xpose.msra.mxu1 %v964_v43  ;;  %2656 = vmatprep.mubr.msk.bf16.mxu1 %vm853_vm1, %v2840_v45 }
 0x18a   : > { %2768 = vmatprep.subr.msk.bf16.mxu1 %vm853_vm1, %v926_v42 }
 0x190   : > { %2657 = vmatmul.mubr.msk.bf16.vlgmr.msra.gmra.mrb[4].mxu1 %vm853_vm1, %v2841_v46 }
 0x191   : > { %2661 = vmatpush3.bf16.xpose.msra.mxu1 %v964_v43  ;;  %2662 = vmatprep.mubr.msk.bf16.mxu1 %vm853_vm1, %v2842_v47 }
 0x192   : > { %2666 = vmatprep.subr.bf16.mxu1 %v2943_v49 }
 0x198   : > { %2663 = vmatmul.mubr.msk.bf16.vlgmr.msra.gmra.mrb[8].mxu1 %vm853_vm1, %v2843_v48 }
 0x199   : > { %2668 = vmatprep.mubr.msk.bf16.mxu1 %vm2944_vm3, %v2943_v49 }
 0x25b   : > { %v2652_v53 = vpop.f32.mrb[0].mxu1 }
 0x25c   : > { %v1000_v54 = vpop.f32.mrb[1].mxu1  ;;  %v1009_v57 = vadd.f32 %v2652_v53, %v940_v51 }
 0x25d   : > { %v2653_v56 = vpop.f32.mrb[2].mxu1  ;;  %v1001_v60 = vadd.f32 %v1000_v54, %v930_v55 }
 0x25e   : > { %v1012_v58 = vadd.f32 %v2653_v56, %v945_v52  ;;  %v1003_v59 = vpop.f32.mrb[3].mxu1 }
 0x25f   : > { %v1004_v61 = vadd.f32 %v1003_v59, %v935_v50 }
 0x260   : > { %v2826_v63 = vpack.i.bf16 %v1012_v58, %v1009_v57 }
 0x261   : > { %v2814_v0 = vpack.i.bf16 %v1004_v61, %v1001_v60 }
 0x262   : > { %2827 = vxpose.xlu0.b32.start.end [1/1] (short) (narrow) %v2826_v63, 16 }
 0x263   : > { %v2658_v1 = vpop.f32.mrb[4].mxu1  ;;  %2815 = vxpose.xlu1.b32.start.end [1/1] (short) (narrow) %v2814_v0, 16 }
 0x264   : > { %v1085_v4 = vpop.f32.mrb[5].mxu1  ;;  %v1094_v20 = vadd.f32 %v2658_v1, %v1028_v18 }
 0x265   : > { %v1086_v5 = vadd.f32 %v1085_v4, %v1018_v62  ;;  %v2659_v6 = vpop.f32.mrb[6].mxu1 }
 0x266   : > { %v1088_v8 = vpop.f32.mrb[7].mxu1  ;;  %v1097_v21 = vadd.f32 %v2659_v6, %v1033_v19  ;;  %v1187_v24 = vpack.c.bf16 %v1094_v20, %v1094_v20  ;;  %v917_v6 = vld [vmem:[%s3112_s19] sm:$0xff] }
 0x267   : > { %v1185_v9 = vpack.c.bf16 %v1086_v5, %v1086_v5  ;;  %v1089_v10 = vadd.f32 %v1088_v8, %v1023_v7  ;;  %v918_v5 = vld [vmem:[%s3112_s19 + $0x8] sm:$0xff] }
 0x268   : > { %v1188_v25 = vpack.c.bf16 %v1097_v21, %v1097_v21  ;;  %v1425_v34 = vsel %vm1329_vm2, %v1187_v24, 0 }
 0x269   : > { %v1331_v11 = vsel %vm1329_vm2, %v1185_v9, 0  ;;  %v1186_v12 = vpack.c.bf16 %v1089_v10, %v1089_v10 }
 0x26a   : > { %2667 = vmatpush3.bf16.msra.mxu1 %v1331_v11  ;;  %v1472_v35 = vsel %vm1329_vm2, %v1188_v25, 0 }
 0x26b   : > { %v1378_v13 = vsel %vm1329_vm2, %v1186_v12, 0  ;;  %2678 = vmatprep.subr.bf16.mxu1 %v2943_v49  ;;  %v3216_v14 = vpop.f32.mrb[8].mxu1 }
 0x26c   : > { %2673 = vmatpush3.bf16.msra.mxu0 %v1378_v13  ;;  %v3218_v15 = vpop.f32.mrb[9].mxu1 }
 0x26d   : > { %2684 = vmatprep.subr.bf16.mxu0 %v2943_v49  ;;  %v3220_v16 = vpop.f32.mrb[10].mxu1 }
 0x26e   : > { %v3222_v17 = vpop.f32.mrb[11].mxu1 }
 0x2e2   : > { %v2828_v22 = vpop.trf.xlu0 }
 0x2e3   : > { %v2816_v23 = vpop.trf.xlu1  ;;  %v2832_v36 = vunpack.i.h.bf16 %v2828_v22  ;;  %v2829_v37 = vunpack.i.l.bf16 %v2828_v22 }
 0x2e4   : > { %v2820_v27 = vunpack.i.h.bf16 %v2816_v23  ;;  %v2817_v28 = vunpack.i.l.bf16 %v2816_v23 }
 0x2e6   : > { %v2833_v26 = vpop.trf.xlu0 }
 0x2e7   : > { %v2821_v29 = vpop.trf.xlu1  ;;  %v2837_v38 = vunpack.i.h.bf16 %v2833_v26  ;;  %v2834_v39 = vunpack.i.l.bf16 %v2833_v26 }
 0x2e8   : > { %v2825_v30 = vunpack.i.h.bf16 %v2821_v29  ;;  %v2822_v31 = vunpack.i.l.bf16 %v2821_v29 }
 0x2e9   : > { %v1323_v40 = vpack.c.bf16 %v2834_v39, %v2829_v37  ;;  %v1324_v41 = vpack.c.bf16 %v2837_v38, %v2832_v36 }
 0x2ea   : > { %v1321_v32 = vpack.c.bf16 %v2822_v31, %v2817_v28  ;;  %v1322_v33 = vpack.c.bf16 %v2825_v30, %v2820_v27 }
 0x2ec   : > { %2669 = vmatmul.mubr.msk.bf16.vlgmr.msra.gmra.mrb[12].mxu1 %vm1325_vm4, %v1321_v32  ;;  %2675 = vmatmul.mubr.msk.bf16.vlgmr.msra.gmra.mrb[0].mxu0 %vm1325_vm4, %v1322_v33 }
 0x2ed   : > { %2679 = vmatpush3.bf16.msra.mxu1 %v1425_v34  ;;  %2685 = vmatpush3.bf16.msra.mxu0 %v1472_v35 }
 0x2ee   : > { %2680 = vmatprep.mubr.msk.bf16.mxu1 %vm2944_vm3, %v2943_v49  ;;  %2686 = vmatprep.mubr.msk.bf16.mxu0 %vm2944_vm3, %v2943_v49 }
 0x2ef   : > { %2696 = vmatprep.subr.bf16.mxu0 %v2943_v49  ;;  %2690 = vmatprep.subr.bf16.mxu1 %v2943_v49 }
 0x2f4   : > { %2681 = vmatmul.mubr.msk.bf16.vlgmr.msra.gmra.mrb[16].mxu1 %vm1325_vm4, %v1323_v40  ;;  %2687 = vmatmul.mubr.msk.bf16.vlgmr.msra.gmra.mrb[4].mxu0 %vm1325_vm4, %v1324_v41 }
 0x2f5   : > { %2692 = vmatprep.mubr.msk.bf16.mxu1 %vm2944_vm3, %v2943_v49  ;;  %2698 = vmatprep.mubr.msk.bf16.mxu0 %vm2944_vm3, %v2943_v49 }
 0x3bf   : > { %v1367_v42 = vpop.f32.mrb[12].mxu1  ;;  %v1414_v43 = vpop.f32.mrb[0].mxu0 }
 0x3c0   : > { %v2670_v44 = vpop.f32.mrb[13].mxu1  ;;  %v2676_v45 = vpop.f32.mrb[1].mxu0  ;;  %v1516_v46 = vsel %vm1515_vm5, %v1367_v42, -inf  ;;  %v1522_v53 = vsel %vm1515_vm5, %v1414_v43, -inf }
 0x3c1   : > { %v1417_v47 = vpop.f32.mrb[2].mxu0  ;;  %1517 = vmax.xlane.f32.xlu0 %v1516_v46  ;;  %v1370_v48 = vpop.f32.mrb[14].mxu1 }
 0x3c2   : > { %v2671_v50 = vpop.f32.mrb[15].mxu1  ;;  %v2677_v51 = vpop.f32.mrb[3].mxu0  ;;  %v1519_v52 = vsel %vm1515_vm5, %v1370_v48, -inf  ;;  %v1525_v54 = vsel %vm1515_vm5, %v1417_v47, -inf }
 0x3c3   : > { %1520 = vmax.xlane.f32.xlu1 %v1519_v52 }
 0x3c5   : > { %1523 = vmax.xlane.f32.xlu0 %v1522_v53 }
 0x3c7   : > { %1526 = vmax.xlane.f32.xlu1 %v1525_v54  ;;  %v1461_v55 = vpop.f32.mrb[16].mxu1  ;;  %v1508_v56 = vpop.f32.mrb[4].mxu0 }
 0x3c8   : > { %v2682_v57 = vpop.f32.mrb[17].mxu1  ;;  %v2688_v58 = vpop.f32.mrb[5].mxu0  ;;  %v1528_v59 = vsel %vm1515_vm5, %v1461_v55, -inf  ;;  %v1534_v1 = vsel %vm1515_vm5, %v1508_v56, -inf }
 0x3c9   : > { %v1511_v60 = vpop.f32.mrb[6].mxu0  ;;  %1529 = vmax.xlane.f32.xlu0 %v1528_v59  ;;  %v1464_v61 = vpop.f32.mrb[18].mxu1  ;;  %v920_v58 = vld [vmem:[%s3112_s19 + $0x18] sm:$0xff]  ;;  %v919_v59 = vld [vmem:[%s3112_s19 + $0x10] sm:$0xff]  ;;  %s3461_s19 = sld [smem:[#allocation19_spill]] }
 0x3ca   : > { %v2683_v62 = vpop.f32.mrb[19].mxu1  ;;  %v2689_v63 = vpop.f32.mrb[7].mxu0  ;;  %v1531_v0 = vsel %vm1515_vm5, %v1464_v61, -inf  ;;  %v1537_v4 = vsel %vm1515_vm5, %v1511_v60, -inf }
 0x3cb   : > { %1532 = vmax.xlane.f32.xlu1 %v1531_v0 }
 0x3cd   : > { %1535 = vmax.xlane.f32.xlu0 %v1534_v1 }
 0x3cf   : > { %1538 = vmax.xlane.f32.xlu1 %v1537_v4 }
 0x3e0   : > { %1107 = vperm.xlu1 %2813, %v918_v5  }
 0x3e3   : > { %1102 = vperm.xlu0 %2812, %v917_v6  }
 0x44e   : > { %v1518_v7 = vpop.xlane.xlu0 %1517 }
 0x44f   : > { %v1540_v8 = vsub.f32 %v1367_v42, %v1518_v7 }
 0x450   : > { %v1521_v9 = vpop.xlane.xlu1 %1520 }
 0x451   : > { %v1548_v10 = vmul.f32 1.442695, %v1540_v8  ;;  %v1541_v11 = vsub.f32 %v1370_v48, %v1521_v9 }
 0x452   : > { %v1524_v12 = vpop.xlane.xlu0 %1523 }
 0x453   : > { %2858 = vpow2.f32 %v1548_v10  ;;  %v1550_v13 = vmul.f32 1.442695, %v1541_v11  ;;  %v1542_v18 = vsub.f32 %v1414_v43, %v1524_v12 }
 0x454   : > { %v1527_v19 = vpop.xlane.xlu1 %1526 }
 0x455   : > { %2860 = vpow2.f32 %v1550_v13  ;;  %v1552_v20 = vmul.f32 1.442695, %v1542_v18  ;;  %v1543_v21 = vsub.f32 %v1417_v47, %v1527_v19 }
 0x456   : > { %v1530_v22 = vpop.xlane.xlu0 %1529 }
 0x457   : > { %2862 = vpow2.f32 %v1552_v20  ;;  %v1554_v23 = vmul.f32 1.442695, %v1543_v21  ;;  %v1544_v24 = vsub.f32 %v1461_v55, %v1530_v22 }
 0x458   : > { %v1533_v25 = vpop.xlane.xlu1 %1532 }
 0x459   : > { %2864 = vpow2.f32 %v1554_v23  ;;  %v1556_v26 = vmul.f32 1.442695, %v1544_v24  ;;  %v1545_v27 = vsub.f32 %v1464_v61, %v1533_v25 }
 0x45a   : > { %v1536_v28 = vpop.xlane.xlu0 %1535 }
 0x45b   : > { %2866 = vpow2.f32 %v1556_v26  ;;  %v1558_v29 = vmul.f32 1.442695, %v1545_v27  ;;  %v1546_v30 = vsub.f32 %v1508_v56, %v1536_v28 }
 0x45c   : > { %v1539_v31 = vpop.xlane.xlu1 %1538 }
 0x45d   : > { %v2859_v32 = vpop.eup %2858  ;;  %2868 = vpow2.f32 %v1558_v29  ;;  %v1560_v33 = vmul.f32 1.442695, %v1546_v30  ;;  %v1547_v34 = vsub.f32 %v1511_v60, %v1539_v31 }
 0x45e   : > { %v1564_v35 = vsel %vm1515_vm5, %v2859_v32, 0.0 }
 0x45f   : > { %v2861_v36 = vpop.eup %2860  ;;  %2870 = vpow2.f32 %v1560_v33  ;;  %v1562_v37 = vmul.f32 1.442695, %v1547_v34  ;;  %1565 = vadd.xlane.f32.xlu0 %v1564_v35 }
 0x460   : > { %v1108_v38 = vpop.permute.xlu1 %1107  ;;  %v1567_v39 = vsel %vm1515_vm5, %v2861_v36, 0.0 }
 0x461   : > { %v2863_v40 = vpop.eup %2862  ;;  %2872 = vpow2.f32 %v1562_v37  ;;  %v1174_v41 = vadd.f32 %v3222_v17, %v1108_v38  ;;  %1568 = vadd.xlane.f32.xlu1 %v1567_v39  ;;  %v922_v38 = vld [vmem:[%s3117_s22 + $0x4] sm:$0xf] }
 0x462   : > { %v1103_v42 = vpop.permute.xlu0 %1102  ;;  %v1570_v43 = vsel %vm1515_vm5, %v2863_v40, 0.0  ;;  %v1804_v39 = vsel %vm1329_vm2, %v922_v38, 0 }
 0x463   : > { %v2865_v44 = vpop.eup %2864  ;;  %v1190_v45 = vpack.c.bf16 %v1174_v41, %v1174_v41  ;;  %v1171_v46 = vadd.f32 %v3218_v15, %v1103_v42  ;;  %1571 = vadd.xlane.f32.xlu0 %v1570_v43  ;;  %v924_v41 = vld [vmem:[%s3117_s22 + $0xc] sm:$0xf] }
 0x464   : > { %v1573_v47 = vsel %vm1515_vm5, %v2865_v44, 0.0 }
 0x465   : > { %v3256_v48 = vpop.eup %2866  ;;  %v1659_v50 = vsel %vm1515_vm5, %v1190_v45, 0  ;;  %v1189_v51 = vpack.c.bf16 %v1171_v46, %v1171_v46  ;;  %1574 = vadd.xlane.f32.xlu1 %v1573_v47  ;;  %v1947_v46 = vsel %vm1329_vm2, %v924_v41, 0  ;;  %v2845_v41 = vld [vmem:[%s3134_s15 + $0x8] sm:$0xff]  }
 0x466   : > { %2697 = vmatpush3.bf16.xpose.msra.mxu0 %v1659_v50  ;;  %v1576_v17 = vsel %vm1515_vm5, %v3256_v48, 0.0 }
 0x467   : > { %v3261_v52 = vpop.eup %2868  ;;  %v1612_v53 = vsel %vm1515_vm5, %v1189_v51, 0  ;;  %1577 = vadd.xlane.f32.xlu0 %v1576_v17  ;;  %2708 = vmatprep.subr.bf16.mxu0 %v2943_v49 }
 0x468   : > { %2691 = vmatpush3.bf16.xpose.msra.mxu1 %v1612_v53  ;;  %v1579_v15 = vsel %vm1515_vm5, %v3261_v52, 0.0 }
 0x469   : > { %v2871_v54 = vpop.eup %2870  ;;  %1580 = vadd.xlane.f32.xlu1 %v1579_v15  ;;  %2702 = vmatprep.subr.bf16.mxu1 %v2943_v49 }
 0x46a   : > { %v1582_v56 = vsel %vm1515_vm5, %v2871_v54, 0.0 }
 0x46b   : > { %v2873_v55 = vpop.eup %2872 }
 0x46c   : > { %v1585_v57 = vsel %vm1515_vm5, %v2873_v55, 0.0 }
 0x46d   : > { %1583 = vadd.xlane.f32.xlu1 %v1582_v56  ;;  %1586 = vadd.xlane.f32.xlu0 %v1585_v57 }
 0x47e   : > { %1117 = vperm.xlu1 %2813, %v920_v58  }
 0x483   : > { %1112 = vperm.xlu0 %2812, %v919_v59  }
 0x4ec   : > { %v1566_v60 = vpop.xlane.xlu0 %1565 }
 0x4ed   : > { %2874 = vrcp.f32 %v1566_v60 }
 0x4ee   : > { %v1569_v61 = vpop.xlane.xlu1 %1568 }
 0x4ef   : > { %2876 = vrcp.f32 %v1569_v61 }
 0x4f0   : > { %v1572_v62 = vpop.xlane.xlu0 %1571 }
 0x4f1   : > { %2878 = vrcp.f32 %v1572_v62 }
 0x4f2   : > { %v1575_v63 = vpop.xlane.xlu1 %1574 }
 0x4f3   : > { %2880 = vrcp.f32 %v1575_v63 }
 0x4f4   : > { %v1578_v0 = vpop.xlane.xlu0 %1577 }
 0x4f6   : > { %v1581_v1 = vpop.xlane.xlu1 %1580 }
 0x4f7   : > { %v2875_v4 = vpop.eup %2874  ;;  %2882 = vrcp.f32 %v1581_v1 }
 0x4f8   : > { %v1596_v6 = vmul.f32 %v2875_v4, %v2859_v32 }
 0x4f9   : > { %v2877_v5 = vpop.eup %2876 }
 0x4fa   : > { %v1597_v7 = vmul.f32 %v2877_v5, %v2861_v36  ;;  %v1587_v8 = vpop.xlane.xlu0 %1586  ;;  %v1584_v9 = vpop.xlane.xlu1 %1583  ;;  %v921_v36 = vld [vmem:[%s3117_s22] sm:$0xf] }
 0x4fb   : > { %v2879_v10 = vpop.eup %2878  ;;  %2884 = vrcp.f32 %v1587_v8  ;;  %v1851_v37 = vsel %vm1329_vm2, %v921_v36, 0 }
 0x4fc   : > { %2886 = vrcp.f32 %v1584_v9  ;;  %v1604_v11 = vpack.c.bf16 %v1597_v7, %v1596_v6  ;;  %v1598_v13 = vmul.f32 %v2879_v10, %v2863_v40 }
 0x4fd   : > { %v2881_v12 = vpop.eup %2880  ;;  %2888 = vrcp.f32 %v1578_v0 }
 0x4fe   : > { %v1599_v18 = vmul.f32 %v2881_v12, %v2865_v44  ;;  %2693 = vmatmul.mubr.msk.bf16.vlgmr.msra.gmra.mrb[20].mxu1 %vm1515_vm5, %v1604_v11  ;;  %v1118_v19 = vpop.permute.xlu1 %1117 }
 0x4ff   : > { %v1182_v20 = vadd.f32 %v3220_v16, %v1118_v19  ;;  %2704 = vmatprep.mubr.msk.bf16.mxu1 %vm2944_vm3, %v2943_v49 }
 0x500   : > { %v1605_v21 = vpack.c.bf16 %v1599_v18, %v1598_v13 }
 0x501   : > { %v1192_v22 = vpack.c.bf16 %v1182_v20, %v1182_v20  ;;  %v2883_v26 = vpop.eup %2882 }
 0x502   : > { %v1113_v23 = vpop.permute.xlu0 %1112  ;;  %2699 = vmatmul.mubr.msk.bf16.vlgmr.msra.gmra.mrb[8].mxu0 %vm1515_vm5, %v1605_v21 }
 0x503   : > { %v1753_v24 = vsel %vm1515_vm5, %v1192_v22, 0  ;;  %v1179_v25 = vadd.f32 %v3216_v14, %v1113_v23  ;;  %2710 = vmatprep.mubr.msk.bf16.mxu0 %vm2944_vm3, %v2943_v49  ;;  %v1601_v14 = vmul.f32 %v2883_v26, %v3261_v52 }
 0x504   : > { %2709 = vmatpush3.bf16.xpose.msra.mxu0 %v1753_v24 }
 0x505   : > { %v2885_v27 = vpop.eup %2884  ;;  %v1191_v28 = vpack.c.bf16 %v1179_v25, %v1179_v25  ;;  %2720 = vmatprep.subr.bf16.mxu0 %v2943_v49 }
 0x506   : > { %v2887_v16 = vpop.eup %2886  ;;  %v1603_v29 = vmul.f32 %v2885_v27, %v2873_v55 }
 0x507   : > { %v1602_v30 = vmul.f32 %v2887_v16, %v2871_v54  ;;  %v1706_v31 = vsel %vm1515_vm5, %v1191_v28, 0  ;;  %v2889_v32 = vpop.eup %2888 }
 0x508   : > { %2703 = vmatpush3.bf16.xpose.msra.mxu1 %v1706_v31  ;;  %v1600_v34 = vmul.f32 %v2889_v32, %v3256_v48  ;;  %v923_v48 = vld [vmem:[%s3117_s22 + $0x8] sm:$0xf]  ;;  %s3462_s22 = scalar_lea.vmem %s3461_s19, %s3069_s30 }
 0x509   : > { %v1607_v33 = vpack.c.bf16 %v1603_v29, %v1602_v30  ;;  %2714 = vmatprep.subr.bf16.mxu1 %v2943_v49  ;;  %v1898_v53 = vsel %vm1329_vm2, %v923_v48, 0  ;;  %v2574_v22 = vld [vmem:[%s3462_s22] ss:$0 sm:$0xff] }
 0x50a   : > { %v1606_v35 = vpack.c.bf16 %v1601_v14, %v1600_v34 }
 0x50b   : > { %2711 = vmatmul.mubr.msk.bf16.vlgmr.msra.gmra.mrb[12].mxu0 %vm1515_vm5, %v1607_v33 }
 0x50c   : > { %2722 = vmatprep.mubr.msk.bf16.mxu0 %vm2944_vm3, %v2943_v49  ;;  %2721 = vmatpush3.bf16.msra.mxu0 %v1851_v37 }
 0x50d   : > { %2732 = vmatprep.subr.bf16.mxu0 %v2943_v49 }
 0x50f   : > { %2705 = vmatmul.mubr.msk.bf16.vlgmr.msra.gmra.mrb[24].mxu1 %vm1515_vm5, %v1606_v35 }
 0x510   : > { %2716 = vmatprep.mubr.msk.bf16.mxu1 %vm2944_vm3, %v2943_v49  ;;  %2715 = vmatpush3.bf16.msra.mxu1 %v1804_v39 }
 0x511   : > { %2726 = vmatprep.subr.bf16.mxu1 %v2943_v49 }
 0x5d1   : > { %v1648_v40 = vpop.f32.mrb[20].mxu1 }
 0x5d2   : > { %v2694_v42 = vpop.f32.mrb[21].mxu1 }
 0x5d3   : > { %v1651_v43 = vpop.f32.mrb[22].mxu1 }
 0x5d4   : > { %v1796_v44 = vpack.c.bf16 %v1651_v43, %v1648_v40  ;;  %v2695_v45 = vpop.f32.mrb[23].mxu1  ;;  %v2844_v40 = vld [vmem:[%s3134_s15] sm:$0xff]  }
 0x5d5   : > { %v1695_v47 = vpop.f32.mrb[8].mxu0 }
 0x5d6   : > { %v2700_v50 = vpop.f32.mrb[9].mxu0  ;;  %2723 = vmatmul.mubr.msk.bf16.vlgmr.msra.gmra.mrb[16].mxu0 %vm1325_vm4, %v1796_v44 }
 0x5d7   : > { %v1698_v51 = vpop.f32.mrb[10].mxu0  ;;  %2733 = vmatpush3.bf16.msra.mxu0 %v1947_v46  ;;  %2734 = vmatprep.mubr.msk.bf16.mxu0 %vm2944_vm3, %v2943_v49  ;;  %v2575_v50 = vld [vmem:[%s3463_s1] ss:$0 sm:$0xff] }
 0x5d8   : > { %v1797_v17 = vpack.c.bf16 %v1698_v51, %v1695_v47  ;;  %v2701_v52 = vpop.f32.mrb[11].mxu0  ;;  %2746 = vmatprep.subr.bf16.mxu0 %v2943_v49 }
 0x5da   : > { %2717 = vmatmul.mubr.msk.bf16.vlgmr.msra.gmra.mrb[28].mxu1 %vm1325_vm4, %v1797_v17 }
 0x5db   : > { %2727 = vmatpush3.bf16.msra.mxu1 %v1898_v53  ;;  %2728 = vmatprep.mubr.msk.bf16.mxu1 %vm2944_vm3, %v2943_v49 }
 0x5dc   : > { %2738 = vmatprep.subr.bf16.mxu1 %v2943_v49 }
 0x5de   : > { %v1789_v15 = vpop.f32.mrb[12].mxu0 }
 0x5df   : > { %v2712_v54 = vpop.f32.mrb[13].mxu0 }
 0x5e0   : > { %v1792_v55 = vpop.f32.mrb[14].mxu0 }
 0x5e1   : > { %v1799_v56 = vpack.c.bf16 %v1792_v55, %v1789_v15  ;;  %v2713_v57 = vpop.f32.mrb[15].mxu0  ;;  %v2576_v15 = vld [vmem:[%s3465_s6] ss:$0 sm:$0xff] }
 0x5e2   : > { %v1742_v58 = vpop.f32.mrb[24].mxu1 }
 0x5e3   : > { %v2706_v59 = vpop.f32.mrb[25].mxu1  ;;  %2735 = vmatmul.mubr.msk.bf16.vlgmr.msra.gmra.mrb[20].mxu0 %vm1325_vm4, %v1799_v56 }
 0x5e4   : > { %v1745_v60 = vpop.f32.mrb[26].mxu1  ;;  %2762 = vmatprep.mubr.msk.bf16.mxu0 %vm2944_vm3, %v2943_v49  ;;  %v2847_v59 = vld [vmem:[%s3144_s10 + $0x8] sm:$0xff]  }
 0x5e5   : > { %v1798_v61 = vpack.c.bf16 %v1745_v60, %v1742_v58  ;;  %v2707_v62 = vpop.f32.mrb[27].mxu1  ;;  %v2846_v58 = vld [vmem:[%s3144_s10] sm:$0xff]   ;;  %v2848_v60 = vld [vmem:[%s3144_s10 + $0x10] sm:$0xff]  }
 0x5e6   : > { %2747 = vmatpush3.bf16.msra.mxu0 %v2846_v58  ;;  %v2850_v62 = vld [vmem:[%s3144_s10 + $0x20] sm:$0xff]  }
 0x5e7   : > { %2729 = vmatmul.mubr.msk.bf16.vlgmr.msra.gmra.mrb[32].mxu1 %vm1325_vm4, %v1798_v61  ;;  %2748 = vmatprep.subr.bf16.mxu0 %v2943_v49  ;;  %v2849_v61 = vld [vmem:[%s3144_s10 + $0x18] sm:$0xff]  }
 0x5e8   : > { %2742 = vmatprep.mubr.msk.bf16.mxu1 %vm2944_vm3, %v2943_v49  ;;  %2739 = vmatpush3.bf16.msra.mxu1 %v2844_v40 }
 0x5e9   : > { %2740 = vmatprep.subr.bf16.mxu1 %v2943_v49 }
 0x5ea   : > { %2749 = vmatpush3.bf16.msra.mxu0 %v2847_v59 }
 0x5eb   : > { %2750 = vmatprep.subr.bf16.mxu0 %v2943_v49 }
 0x5ec   : > { %2741 = vmatpush3.bf16.msra.mxu1 %v2845_v41 }
 0x5ee   : > { %2751 = vmatpush3.bf16.msra.mxu0 %v2848_v60 }
 0x5ef   : > { %2752 = vmatprep.subr.bf16.mxu0 %v2943_v49 }
 0x5f2   : > { %2753 = vmatpush3.bf16.msra.mxu0 %v2849_v61 }
 0x5f3   : > { %2754 = vmatprep.subr.bf16.mxu0 %v2943_v49 }
 0x5f6   : > { %2755 = vmatpush3.bf16.msra.mxu0 %v2850_v62  ;;  %v2581_v62 = vld [vmem:[%s833_s7] ss:$0 sm:$0xff] }
 0x5f7   : > { %2756 = vmatprep.subr.bf16.mxu0 %v2943_v49 }
 0x6a9   : > { %v1887_v63 = vpop.f32.mrb[16].mxu0 }
 0x6aa   : > { %v2724_v0 = vpop.f32.mrb[17].mxu0 }
 0x6ab   : > { %v1890_v1 = vpop.f32.mrb[18].mxu0  ;;  %v2852_v0 = vld [vmem:[%s3144_s10 + $0x30] sm:$0xff]  }
 0x6ac   : > { %v2725_v4 = vpop.f32.mrb[19].mxu0 }
 0x6ad   : > { %v1840_v5 = vpop.f32.mrb[28].mxu1  ;;  %v2577_v4 = vld [vmem:[%s825_s8] ss:$0 sm:$0xff] }
 0x6ae   : > { %v1888_v6 = vadd.f32 %v1887_v63, %v1840_v5  ;;  %v2718_v7 = vpop.f32.mrb[29].mxu1  ;;  %v2851_v63 = vld [vmem:[%s3144_s10 + $0x28] sm:$0xff]  }
 0x6af   : > { %v1843_v8 = vpop.f32.mrb[30].mxu1  ;;  %2757 = vmatpush3.bf16.msra.mxu0 %v2851_v63 }
 0x6b0   : > { %v1891_v9 = vadd.f32 %v1890_v1, %v1843_v8  ;;  %v2719_v10 = vpop.f32.mrb[31].mxu1  ;;  %2758 = vmatprep.subr.bf16.mxu0 %v2943_v49  ;;  %v2853_v1 = vld [vmem:[%s3144_s10 + $0x38] sm:$0xff]  }
 0x6b3   : > { %2759 = vmatpush3.bf16.msra.mxu0 %v2852_v0 }
 0x6b4   : > { %2760 = vmatprep.subr.bf16.mxu0 %v2943_v49 }
 0x6b6   : > { %v1983_v11 = vpop.f32.mrb[20].mxu0 }
 0x6b7   : > { %v2736_v12 = vpop.f32.mrb[21].mxu0  ;;  %2761 = vmatpush3.bf16.msra.mxu0 %v2853_v1 }
 0x6b8   : > { %v1986_v13 = vpop.f32.mrb[22].mxu0 }
 0x6b9   : > { %v2737_v18 = vpop.f32.mrb[23].mxu0 }
 0x6ba   : > { %v1934_v19 = vpop.f32.mrb[32].mxu1 }
 0x6bb   : > { %v1941_v20 = vadd.f32 %v1934_v19, %v1888_v6  ;;  %v2730_v21 = vpop.f32.mrb[33].mxu1 }
 0x6bc   : > { %v1937_v23 = vpop.f32.mrb[34].mxu1 }
 0x6bd   : > { %v1990_v24 = vadd.f32 %v1983_v11, %v1941_v20  ;;  %v1942_v25 = vadd.f32 %v1937_v23, %v1891_v9  ;;  %v2731_v26 = vpop.f32.mrb[35].mxu1 }
 0x6bf   : > { %v1998_v27 = vadd.f32 %v2574_v22, %v1990_v24  ;;  %v1991_v28 = vadd.f32 %v1986_v13, %v1942_v25 }
 0x6c1   : > { %v1999_v16 = vadd.f32 %v2574_v22, %v1991_v28  ;;  %v3322_v29 = vadd.f32 %v1998_v27, %v3159_v2 }
 0x6c3   : > { %v2026_v30 = vsel %vm853_vm1, %v3322_v29, 0.0  ;;  %v3327_v31 = vadd.f32 %v1999_v16, %v3162_v3 }
 0x6c4   : > { %2027 = vadd.xlane.f32.xlu1 %v2026_v30 }
 0x6c5   : > { %v2029_v32 = vsel %vm853_vm1, %v3327_v31, 0.0 }
 0x6c6   : > { %2030 = vadd.xlane.f32.xlu0 %v2029_v32 }
 0x751   : > { %v2028_v14 = vpop.xlane.xlu1 %2027 }
 0x752   : > { %v2032_v33 = vmul.f32 0.03125, %v2028_v14 }
 0x753   : > { %v2031_v34 = vpop.xlane.xlu0 %2030 }
 0x754   : > { %v2034_v35 = vsub.f32 %v3322_v29, %v2032_v33  ;;  %v2033_v2 = vmul.f32 0.03125, %v2031_v34 }
 0x756   : > { %v2035_v36 = vsub.f32 %v3327_v31, %v2033_v2  ;;  %v2036_v37 = vmul.f32 %v2034_v35, %v2034_v35 }
 0x758   : > { %v2038_v38 = vsel %vm853_vm1, %v2036_v37, 0.0  ;;  %v2037_v3 = vmul.f32 %v2035_v36, %v2035_v36 }
 0x759   : > { %2039 = vadd.xlane.f32.xlu0 %v2038_v38 }
 0x75a   : > { %v2041_v39 = vsel %vm853_vm1, %v2037_v3, 0.0 }
 0x75b   : > { %2042 = vadd.xlane.f32.xlu1 %v2041_v39 }
 0x7e6   : > { %v2040_v42 = vpop.xlane.xlu0 %2039 }
 0x7e7   : > { %v2044_v43 = vmul.f32 0.03125, %v2040_v42 }
 0x7e8   : > { %v2043_v44 = vpop.xlane.xlu1 %2042 }
 0x7e9   : > { %v2046_v45 = vadd.f32 1e-05, %v2044_v43  ;;  %v2045_v46 = vmul.f32 0.03125, %v2043_v44 }
 0x7eb   : > { %2890 = vrsqrt.f32 %v2046_v45  ;;  %v2047_v47 = vadd.f32 1e-05, %v2045_v46 }
 0x7ed   : > { %2892 = vrsqrt.f32 %v2047_v47 }
 0x7f5   : > { %v2891_v48 = vpop.eup %2890 }
 0x7f6   : > { %v2050_v51 = vmul.f32 %v2891_v48, %v2034_v35 }
 0x7f7   : > { %v2893_v17 = vpop.eup %2892 }
 0x7f8   : > { %v2058_v52 = vmul.f32 %v2575_v50, %v2050_v51  ;;  %v2051_v53 = vmul.f32 %v2893_v17, %v2035_v36 }
 0x7fa   : > { %v2059_v54 = vmul.f32 %v2575_v50, %v2051_v53  ;;  %v2066_v55 = vadd.f32 %v2576_v15, %v2058_v52 }
 0x7fc   : > { %v2067_v56 = vadd.f32 %v2576_v15, %v2059_v54 }
 0x7fe   : > { %v2068_v57 = vpack.c.bf16 %v2067_v56, %v2066_v55 }
 0x800   : > { %2743 = vmatmul.mubr.msk.bf16.vlgmr.msra.gmra.mrb[36].mxu1 %vm853_vm1, %v2068_v57 }
 0x8d3   : > { %v2124_v5 = vpop.f32.mrb[36].mxu1 }
 0x8d4   : > { %v2125_v6 = vadd.f32 %v2577_v4, %v2124_v5  ;;  %v2744_v7 = vpop.f32.mrb[37].mxu1 }
 0x8d5   : > { %v2127_v8 = vpop.f32.mrb[38].mxu1 }
 0x8d6   : > { %v2133_v9 = vmul.f32 0.70710677, %v2125_v6  ;;  %v2128_v10 = vadd.f32 %v2577_v4, %v2127_v8  ;;  %v2745_v11 = vpop.f32.mrb[39].mxu1  ;;  %v2131_v56 = vmul.f32 0.5, %v2125_v6 }
 0x8d8   : > { %v2135_v12 = vand.u32 2147483647, %v2133_v9  ;;  %v2134_v13 = vmul.f32 0.70710677, %v2128_v10  ;;  %vm2173_vm6 = vcmp.ge.f32.partialorder %v2133_v9, 0.0  ;;  %v2132_v57 = vmul.f32 0.5, %v2128_v10 }
 0x8da   : > { %v2137_v18 = vmul.f32 0.3275911, %v2135_v12  ;;  %v2136_v19 = vand.u32 2147483647, %v2134_v13  ;;  %v2161_v22 = vsub.f32 0.0, %v2135_v12  ;;  %vm2174_vm7 = vcmp.ge.f32.partialorder %v2134_v13, 0.0 }
 0x8dc   : > { %v2139_v20 = vadd.f32 1.0, %v2137_v18  ;;  %v2138_v49 = vmul.f32 0.3275911, %v2136_v19  ;;  %v2162_v23 = vsub.f32 0.0, %v2136_v19  ;;  %v2163_v25 = vmul.f32 %v2161_v22, %v2135_v12 }
 0x8de   : > { %2894 = vrcp.f32 %v2139_v20  ;;  %v2140_v21 = vadd.f32 1.0, %v2138_v49  ;;  %v2164_v16 = vmul.f32 %v2162_v23, %v2136_v19  ;;  %v2165_v30 = vmul.f32 1.442695, %v2163_v25 }
 0x8e0   : > { %2896 = vrcp.f32 %v2140_v21  ;;  %v2167_v35 = vmul.f32 1.442695, %v2164_v16 }
 0x8e1   : > { %2898 = vpow2.f32 %v2165_v30 }
 0x8e2   : > { %2900 = vpow2.f32 %v2167_v35 }
 0x8e8   : > { %v2895_v24 = vpop.eup %2894 }
 0x8e9   : > { %v2143_v26 = vmul.f32 1.0614054, %v2895_v24 }
 0x8ea   : > { %v2897_v27 = vpop.eup %2896 }
 0x8eb   : > { %v2145_v28 = vadd.f32 -1.4531521, %v2143_v26  ;;  %v2144_v32 = vmul.f32 1.0614054, %v2897_v27  ;;  %v2899_v44 = vpop.eup %2898 }
 0x8ec   : > { %v2901_v48 = vpop.eup %2900 }
 0x8ed   : > { %v2147_v14 = vmul.f32 %v2895_v24, %v2145_v28  ;;  %v2146_v33 = vadd.f32 -1.4531521, %v2144_v32 }
 0x8ef   : > { %v2149_v34 = vadd.f32 1.4214138, %v2147_v14  ;;  %v2148_v2 = vmul.f32 %v2897_v27, %v2146_v33 }
 0x8f1   : > { %v2151_v36 = vmul.f32 %v2895_v24, %v2149_v34  ;;  %v2150_v37 = vadd.f32 1.4214138, %v2148_v2 }
 0x8f3   : > { %v2153_v38 = vadd.f32 -0.28449672, %v2151_v36  ;;  %v2152_v3 = vmul.f32 %v2897_v27, %v2150_v37 }
 0x8f5   : > { %v2155_v39 = vmul.f32 %v2895_v24, %v2153_v38  ;;  %v2154_v40 = vadd.f32 -0.28449672, %v2152_v3 }
 0x8f7   : > { %v2157_v41 = vadd.f32 0.2548296, %v2155_v39  ;;  %v2156_v42 = vmul.f32 %v2897_v27, %v2154_v40 }
 0x8f9   : > { %v2159_v43 = vmul.f32 %v2895_v24, %v2157_v41  ;;  %v2158_v45 = vadd.f32 0.2548296, %v2156_v42 }
 0x8fb   : > { %v2169_v46 = vmul.f32 %v2899_v44, %v2159_v43  ;;  %v2160_v47 = vmul.f32 %v2897_v27, %v2158_v45 }
 0x8fd   : > { %v2171_v50 = vsub.f32 1.0, %v2169_v46  ;;  %v2170_v51 = vmul.f32 %v2901_v48, %v2160_v47 }
 0x8ff   : > { %v2175_v17 = vsub.f32 0.0, %v2171_v50  ;;  %v2172_v52 = vsub.f32 1.0, %v2170_v51 }
 0x901   : > { %v2177_v53 = vsel %vm2173_vm6, %v2171_v50, %v2175_v17  ;;  %v2176_v15 = vsub.f32 0.0, %v2172_v52 }
 0x902   : > { %v2179_v54 = vadd.f32 1.0, %v2177_v53 }
 0x903   : > { %v2178_v55 = vsel %vm2174_vm7, %v2172_v52, %v2176_v15 }
 0x904   : > { %v2180_v58 = vadd.f32 1.0, %v2178_v55  ;;  %v2181_v59 = vmul.f32 %v2179_v54, %v2131_v56 }
 0x906   : > { %v2182_v60 = vmul.f32 %v2180_v58, %v2132_v57 }
 0x908   : > { %v2183_v61 = vpack.c.bf16 %v2182_v60, %v2181_v59 }
 0x90a   : > { %2763 = vmatmul.mubr.bf16.vlgmr.msra.gmra.mrb[24].mxu0 %v2183_v61 }
 0x9dd   : > { %v2272_v63 = vpop.f32.mrb[24].mxu0 }
 0x9de   : > { %v2273_v0 = vadd.f32 %v2581_v62, %v2272_v63  ;;  %v2764_v1 = vpop.f32.mrb[25].mxu0 }
 0x9df   : > { %v2275_v4 = vpop.f32.mrb[26].mxu0 }
 0x9e0   : > { %v2279_v5 = vadd.f32 %v2273_v0, %v3322_v29  ;;  %v2276_v7 = vadd.f32 %v2581_v62, %v2275_v4  ;;  %v2765_v6 = vpop.f32.mrb[27].mxu0 }
 0x9e2   : > { %2281 = vst.msk [vmem:[%s3153_s2] sm:$0xff] %vm853_vm1, %v2279_v5  ;;  %v2280_v8 = vadd.f32 %v2276_v7, %v3327_v31 }
 0x9e4   : > { %2282 = vst.msk [vmem:[%s3153_s2 + $0x8] sm:$0xff] %vm853_vm1, %v2280_v8 }
 0x9e5 PF: > { %s3467_s9 = sld [smem:[#allocation5_spill]]  ;;  %s3468_s24 = sld [smem:[#allocation3_spill]] }
 0x9e6   : > { %s3469_s25 = sld [smem:[#allocation4_spill]]  ;;  %s3470_s26 = sld [smem:[#allocation6_spill]] }
 0x9e7   : > { %s3471_s27 = sld [smem:[#allocation7_spill]] }
 0x9eb   : > { %s27_s28 = sadd.s32 1, %s3467_s9  }
 0x9ec   : > { %p24_p8 = scmp.ge.s32.totalorder %s27_s28, 6  }
 0x9ee   :  { %26 = sbr.rel (!%p24_p8) target bundleno = 16 (0x10), region = 170 }

// kernel: shape_as_latent_perceiver_forward.12
= control target key start
LH: loop header
LB: loop body
LE: loop exit
PB: predicated region body
PF: predicated region fallthrough
CT: control target
= control target key end

     0   :  { %vm75_vm0 = vcmask 1040384   ;;  %vm76_vm1 = vcmask 1041408   ;;  %v206_v3 = vmov 65535   ;;  %vm62_vm2 = vcmask 416768   ;;  %s302_s1 = inlined_call_operand.vmem [shape: bf16[51,32], index: 1, kind: input, shape index: {}]   ;;  %s303_s0 = inlined_call_operand.vmem [shape: f32[64,51], index: 0, kind: input, shape index: {}]   ;;  %s304_s2 = inlined_call_operand.vmem [shape: f32[1,32], index: 2, kind: input, shape index: {}]   ;;  %s305_s3 = inlined_call_operand.vmem [shape: f32[64,32], index: 3, kind: output, shape index: {}]  }
   0x1   :  { %v202_v0 = vld [vmem:[%s302_s1] sm:$0xff]   ;;  %v203_v1 = vld [vmem:[%s302_s1 + $0x8] sm:$0xff]   ;;  %v204_v2 = vld [vmem:[%s302_s1 + $0x10] sm:$0xff]   ;;  %v77_v4 = vsel %vm75_vm0, 4294967295, %v206_v3  ;;  %vm147_vm3 = vcmask 261120  }
   0x2   :  { %177 = vmatprep.subr.bf16.mxu0 %v202_v0  ;;  %193 = vmatprep.subr.bf16.mxu1 %v202_v0  ;;  %v205_v5 = vld [vmem:[%s302_s1 + $0x18] ss:$0 sps:$4 sm:$0x33]   ;;  %v15_v6 = vld [vmem:[%s303_s0] sm:$0xff]  ;;  %v16_v7 = vld [vmem:[%s303_s0 + $0x8] sm:$0xff]  ;;  %v78_v10 = vsel %vm76_vm1, %v77_v4, 0 }
   0x3   :  { %178 = vmatpush3.bf16.msra.mxu0 %v202_v0  ;;  %197 = vmatpush3.bf16.msra.mxu1 %v202_v0  ;;  %v19_v8 = vld [vmem:[%s303_s0 + $0x20] sm:$0xff]  ;;  %v20_v9 = vld [vmem:[%s303_s0 + $0x28] sm:$0xff]  ;;  %v23_v11 = vpack.c.bf16 %v16_v7, %v15_v6  ;;  %v80_v13 = vand.u32 %v205_v5, %v78_v10  ;;  %v17_v14 = vld [vmem:[%s303_s0 + $0x10] sm:$0xff] }
   0x4   :  { %179 = vmatprep.subr.bf16.mxu0 %v203_v1  ;;  %194 = vmatprep.subr.bf16.mxu1 %v203_v1  ;;  %v25_v12 = vpack.c.bf16 %v20_v9, %v19_v8  ;;  %v18_v15 = vld [vmem:[%s303_s0 + $0x18] sm:$0xff]  ;;  %v21_v16 = vld [vmem:[%s303_s0 + $0x30] sm:$0xff]  ;;  %v160_v20 = vld [vmem:[%s304_s2] ss:$0 sm:$0xff] }
   0x5   :  { %185 = vmatprep.mubr.msk.bf16.mxu0 %vm62_vm2, %v23_v11  ;;  %v22_v17 = vld [vmem:[%s303_s0 + $0x38] sm:$0xff]  ;;  %v24_v18 = vpack.c.bf16 %v18_v15, %v17_v14 }
   0x6   :  { %189 = vmatprep.mubr.msk.bf16.mxu1 %vm62_vm2, %v25_v12  ;;  %v26_v19 = vpack.c.bf16 %v22_v17, %v21_v16 }
   0x7   :  { %180 = vmatpush3.bf16.msra.mxu0 %v203_v1  ;;  %198 = vmatpush3.bf16.msra.mxu1 %v203_v1 }
   0x8   :  { %181 = vmatprep.subr.bf16.mxu0 %v204_v2  ;;  %195 = vmatprep.subr.bf16.mxu1 %v204_v2 }
   0xb   :  { %182 = vmatpush3.bf16.msra.mxu0 %v204_v2  ;;  %199 = vmatpush3.bf16.msra.mxu1 %v204_v2 }
   0xc   :  { %183 = vmatprep.subr.bf16.mxu0 %v80_v13  ;;  %196 = vmatprep.subr.bf16.mxu1 %v80_v13 }
   0xf   :  { %184 = vmatpush3.bf16.msra.mxu0 %v80_v13  ;;  %200 = vmatpush3.bf16.msra.mxu1 %v80_v13 }
  0x12   :  { %186 = vmatmul.mubr.msk.bf16.vlgmr.msra.gmra.mrb[0].mxu0 %vm62_vm2, %v24_v18  ;;  %190 = vmatmul.mubr.msk.bf16.vlgmr.msra.gmra.mrb[0].mxu1 %vm62_vm2, %v26_v19 }
  0xe5   :  { %v187_v21 = vpop.f32.mrb[0].mxu0  ;;  %v191_v22 = vpop.f32.mrb[0].mxu1 }
  0xe6   :  { %v125_v23 = vadd.f32 %v187_v21, %v160_v20  ;;  %v141_v24 = vadd.f32 %v191_v22, %v160_v20  ;;  %v116_v25 = vpop.f32.mrb[1].mxu0  ;;  %v132_v26 = vpop.f32.mrb[1].mxu1 }
  0xe7   :  { %v117_v27 = vadd.f32 %v160_v20, %v116_v25  ;;  %v133_v28 = vadd.f32 %v160_v20, %v132_v26  ;;  %v188_v29 = vpop.f32.mrb[2].mxu0  ;;  %v192_v30 = vpop.f32.mrb[2].mxu1 }
  0xe8   :  { %150 = vst.msk [vmem:[%s305_s3 + $0x10] sm:$0xff] %vm147_vm3, %v125_v23  ;;  %154 = vst.msk [vmem:[%s305_s3 + $0x30] sm:$0xff] %vm147_vm3, %v141_v24  ;;  %v128_v31 = vadd.f32 %v188_v29, %v160_v20  ;;  %v144_v32 = vadd.f32 %v192_v30, %v160_v20  ;;  %v119_v33 = vpop.f32.mrb[3].mxu0  ;;  %v135_v34 = vpop.f32.mrb[3].mxu1 }
  0xe9   :  { %148 = vst.msk [vmem:[%s305_s3] sm:$0xff] %vm147_vm3, %v117_v27  ;;  %152 = vst.msk [vmem:[%s305_s3 + $0x20] sm:$0xff] %vm147_vm3, %v133_v28  ;;  %v120_v35 = vadd.f32 %v160_v20, %v119_v33  ;;  %v136_v36 = vadd.f32 %v160_v20, %v135_v34 }
  0xea   :  { %151 = vst.msk [vmem:[%s305_s3 + $0x18] sm:$0xff] %vm147_vm3, %v128_v31  ;;  %155 = vst.msk [vmem:[%s305_s3 + $0x38] sm:$0xff] %vm147_vm3, %v144_v32 }
  0xeb   :  { %149 = vst.msk [vmem:[%s305_s3 + $0x8] sm:$0xff] %vm147_vm3, %v120_v35  ;;  %153 = vst.msk [vmem:[%s305_s3 + $0x28] sm:$0xff] %vm147_vm3, %v136_v36 }

// kernel: shape_as_latent_perceiver_forward.13
= control target key start
LH: loop header
LB: loop body
LE: loop exit
PB: predicated region body
PF: predicated region fallthrough
CT: control target
= control target key end

     0   :  { %s4199_s0 = inlined_call_operand.vmem [shape: f32[2,32,32], index: 0, kind: input, shape index: {}]   ;;  %s4200_s1 = inlined_call_operand.vmem [shape: f32[2,16,32], index: 1, kind: input, shape index: {}]   ;;  %s4201_s2 = inlined_call_operand.vmem [shape: f32[1,32], index: 2, kind: input, shape index: {}]   ;;  %s4202_s3 = inlined_call_operand.vmem [shape: f32[1,32], index: 3, kind: input, shape index: {}]   ;;  %s4203_s4 = inlined_call_operand.vmem [shape: f32[1,32], index: 4, kind: input, shape index: {}]   ;;  %s4204_s5 = inlined_call_operand.vmem [shape: f32[1,32], index: 5, kind: input, shape index: {}]   ;;  %s4205_s6 = inlined_call_operand.vmem [shape: bf16[32,32], index: 6, kind: input, shape index: {}]   ;;  %s4206_s7 = inlined_call_operand.vmem [shape: f32[32,1], index: 7, kind: input, shape index: {}]   ;;  %s4207_s8 = inlined_call_operand.vmem [shape: bf16[32,32], index: 8, kind: input, shape index: {}]   ;;  %s4208_s9 = inlined_call_operand.vmem [shape: f32[32,1], index: 9, kind: input, shape index: {}]   ;;  %s4209_s10 = inlined_call_operand.vmem [shape: bf16[32,32], index: 10, kind: input, shape index: {}]   ;;  %s4210_s11 = inlined_call_operand.vmem [shape: f32[32,1], index: 11, kind: input, shape index: {}]   ;;  %s4211_s12 = inlined_call_operand.vmem [shape: bf16[4,8,32], index: 12, kind: input, shape index: {}]   ;;  %s4212_s13 = inlined_call_operand.vmem [shape: f32[1,32], index: 13, kind: input, shape index: {}]   ;;  %s4213_s14 = inlined_call_operand.vmem [shape: f32[1,32], index: 14, kind: input, shape index: {}]   ;;  %s4214_s15 = inlined_call_operand.vmem [shape: f32[1,32], index: 15, kind: input, shape index: {}]   ;;  %s4215_s16 = inlined_call_operand.vmem [shape: bf16[32,128], index: 16, kind: input, shape index: {}]   ;;  %s4216_s17 = inlined_call_operand.vmem [shape: f32[1,128], index: 17, kind: input, shape index: {}]   ;;  %s4217_s18 = inlined_call_operand.vmem [shape: bf16[128,32], index: 18, kind: input, shape index: {}]   ;;  %s4218_s19 = inlined_call_operand.vmem [shape: f32[1,32], index: 19, kind: input, shape index: {}]   ;;  %s4219_s20 = inlined_call_operand.vmem [shape: f32[1,32], index: 20, kind: input, shape index: {}]   ;;  %s4220_s21 = inlined_call_operand.vmem [shape: f32[1,32], index: 21, kind: input, shape index: {}]   ;;  %s4221_s22 = inlined_call_operand.vmem [shape: bf16[1,32], index: 22, kind: input, shape index: {}]   ;;  %s4222_s23 = inlined_call_operand.<no memory space> [shape: f32[1,1], index: 23, kind: input, shape index: {}]   ;;  %s4223_s24 = inlined_call_operand.hbm [shape: f32[2,1,32], index: 24, kind: output, shape index: {}]  }
   0x1   :  { %4235 = sst [smem:[#allocation13_spill]] %s4199_s0  ;;  %v29_v0 = vstv %s4222_s23 }
   0x2   :  { %4236 = sst [smem:[#allocation14_spill]] %s4200_s1  ;;  %30 = vst [vmem:[#allocation2] sm:$0x1] %v29_v0 }
   0x3   :  { %4237 = sst [smem:[#allocation15_spill]] %s4201_s2 }
   0x4   :  { %4238 = sst [smem:[#allocation16_spill]] %s4202_s3 }
   0x5   :  { %4239 = sst [smem:[#allocation17_spill]] %s4203_s4 }
   0x6   :  { %4240 = sst [smem:[#allocation18_spill]] %s4204_s5 }
   0x7   :  { %4241 = sst [smem:[#allocation19_spill]] %s4205_s6 }
   0x8   :  { %4242 = sst [smem:[#allocation20_spill]] %s4206_s7 }
   0x9   :  { %4243 = sst [smem:[#allocation21_spill]] %s4207_s8 }
   0xa   :  { %4244 = sst [smem:[#allocation22_spill]] %s4223_s24 }
   0xb   :  { %31 = vsyncpa [#allocation4], 0 }
   0xc   :  { %33 = vsyncpa [#allocation4 + $0x1], 0  ;;  %s3600_s27 = smov 0   ;;  %s3602_s28 = smov 0  }
   0xd   :  { %s3604_s6 = smov 0   ;;  %s3606_s2 = smov 0  }
   0xe   :  { %s3608_s29 = smov 0   ;;  %s3610_s0 = smov 0  }
   0xf LB: > { %4245 = sst [smem:[#allocation6_spill]] %s3446_s27  ;;  %s2885_s23 = sadd.s32 4294967295, %s3466_s0   ;;  %s3466_s0 = sphi %s3610_s0, %s39_s0   ;;  %s3462_s29 = sphi %s3608_s29, %s4271_s29   ;;  %s3458_s2 = sphi %s3606_s2, %s4270_s2   ;;  %s3454_s6 = sphi %s3604_s6, %s4269_s6   ;;  %s3450_s28 = sphi %s3602_s28, %s4273_s28   ;;  %s3446_s27 = sphi %s3600_s27, %s4272_s27  }
  0x10   : > { %4246 = sst [smem:[#allocation7_spill]] %s3454_s6  ;;  %s2886_s7 = sadd.s32 4294967294, %s3466_s0  }
  0x11   : > { %4247 = sst [smem:[#allocation8_spill]] %s3462_s29  ;;  %s51_s30 = sadd.s32 1, %s3462_s29 }
  0x12   : > { %4248 = sst [smem:[#allocation9_spill]] %s3466_s0  ;;  %s576_s3 = sadd.s32 1, %s3454_s6 }
  0x13   : > { %p53_p0 = scmp.ge.s32.totalorder %s51_s30, 2  ;;  %p586_p1 = scmp.ne.s32.totalorder %s3454_s6, %s3450_s28 }
  0x14   : > { %p587_p2 = scmp.eq.s32.totalorder %s2885_s23, 1  ;;  %p592_p3 = scmp.ne.s32.totalorder %s3450_s28, %s3446_s27 }
  0x15   : > { %s4275_s30 = smov (%p53_p0, %s51_s30), 0  ;;  %p593_p5 = scmp.eq.s32.totalorder %s2886_s7, 1 }
  0x16   : > { %4249 = sst [smem:[#allocation10_spill]] %s4275_s30  ;;  %p3640_p4 = por %p587_p2, %p586_p1 }
  0x17   : > { %s571_s8 = ssub.s32 %s3462_s29, %s4275_s30  ;;  %p2889_p6 = scmp.ge.s32.totalorder %s3466_s0, 1 }
  0x18   : > { %p574_p7 = scmp.eq.s32.totalorder %s571_s8, 0  ;;  %p3647_p8 = por %p593_p5, %p592_p3 }
  0x19   : > { %p698_p9 = scmp.lt.s32.totalorder %s3466_s0, 3 }
  0x1a   : > { %s4251_s4 = scalar_select %p3647_p8, 1, 0 }
  0x1b   : > { %s3653_s1 = scalar_select %p574_p7, %s3454_s6, %s576_s3  }
  0x1c   : > { %4252 = sst [smem:[#allocation11_spill]] %s4251_s4  ;;  %p699_p10 = pnand %p2889_p6, %p698_p9 }
  0x1d   : > { %4253 = sst [smem:[#allocation12_spill]] %s3653_s1  ;;  %p773_p11 = scmp.lt.s32.totalorder (!%p699_p10), %s3458_s2, 1  ;;  %vm796_vm0 = vcmask (!%p699_p10), 261120   ;;  %v3468_v46 = vmov (!%p699_p10), 0   ;;  %v929_v49 = vld [vmem:[%s4208_s9 + $0x18] sm:$0xff] (!%p699_p10)  ;;  %v927_v51 = vld [vmem:[%s4208_s9 + $0x8] sm:$0xff] (!%p699_p10) }
  0x1e   : > { %702 = sbr.rel (%p699_p10) target bundleno = 3191 (0xc77), region = 116  ;;  %s4254_s29 = sld [smem:[#allocation13_spill]] (!%p699_p10)  ;;  %3237 = vset.pattern.permute.xlu1 (!%p699_p10), %v3468_v46  ;;  %3236 = vset.pattern.permute.xlu0 (!%p699_p10), %v3468_v46  ;;  %v926_v52 = vld [vmem:[%s4208_s9] sm:$0xff] (!%p699_p10)  ;;  %v928_v53 = vld [vmem:[%s4208_s9 + $0x10] sm:$0xff] (!%p699_p10)  ;;  %vm1361_vm1 = vcmask (!%p699_p10), 1043456   ;;  %vm1354_vm2 = vcmask (!%p699_p10), 64512  }
  0x1f   : > { %s4255_s4 = sld [smem:[#allocation14_spill]] (!%p699_p10)  ;;  %s4261_s7 = sld [smem:[#allocation16_spill]] (!%p699_p10)  ;;  %vm1588_vm3 = vcmask (!%p699_p10), 130048   ;;  %vm3470_vm8 = vmmov (!%p699_p10), 0   ;;  %vm2787_vm9 = vcmask (!%p699_p10), 253952  }
  0x20   : > { %s4262_s24 = sld [smem:[#allocation17_spill]] (!%p699_p10)  ;;  %s2954_s27 = sshll.u32 (!%p699_p10), %s3458_s2, 4 }
  0x21   : > { %s3471_s1 = smov (!%p699_p10), [#allocation3]  }
  0x25   : > { %s774_s5 = scalar_select %p773_p11, %s3458_s2, 1 }
  0x27   : > { %s2957_s26 = sshll.u32 %s774_s5, 5  ;;  %s2958_s23 = sshll.u32 %s774_s5, 4 }
  0x28   : > { %s3660_s8 = scalar_lea.vmem %s4254_s29, %s2957_s26  ;;  %s786_s3 = scalar_lea.vmem %s4255_s4, %s2958_s23 }
  0x29   : > { %v788_v1 = vld [vmem:[%s3660_s8] sm:$0xff]  ;;  %v790_v2 = vld [vmem:[%s3660_s8 + $0x10] sm:$0xff]  ;;  %v789_v3 = vld [vmem:[%s3660_s8 + $0x8] sm:$0xff]  ;;  %s4256_s29 = sld [smem:[#allocation19_spill]]  ;;  %s4258_s26 = sld [smem:[#allocation21_spill]] }
  0x2a   : > { %v797_v4 = vsel %vm796_vm0, %v788_v1, 0.0  ;;  %v803_v5 = vsel %vm796_vm0, %v790_v2, 0.0  ;;  %v791_v6 = vld [vmem:[%s3660_s8 + $0x18] sm:$0xff]  ;;  %v792_v7 = vld [vmem:[%s786_s3] sm:$0xff]  ;;  %v793_v8 = vld [vmem:[%s786_s3 + $0x8] sm:$0xff]  ;;  %v800_v9 = vsel %vm796_vm0, %v789_v3, 0.0 }
  0x2b   : > { %798 = vadd.xlane.f32.xlu0 %v797_v4  ;;  %804 = vadd.xlane.f32.xlu1 %v803_v5  ;;  %v806_v10 = vsel %vm796_vm0, %v791_v6, 0.0  ;;  %v872_v11 = vsel %vm796_vm0, %v792_v7, 0.0  ;;  %v875_v12 = vsel %vm796_vm0, %v793_v8, 0.0  ;;  %s4259_s3 = sld [smem:[#allocation20_spill]]  ;;  %s4260_s4 = sld [smem:[#allocation15_spill]] }
  0x2c   : > { %s4264_s23 = sld [smem:[#allocation22_spill]] }
  0x2f   : > { %801 = vadd.xlane.f32.xlu0 %v800_v9  ;;  %807 = vadd.xlane.f32.xlu1 %v806_v10  ;;  %s4257_s30 = smov %s4256_s29  ;;  %v3260_v43 = vld [vmem:[%s4256_s29] sm:$0xff]   ;;  %s4263_s29 = sld [smem:[#allocation18_spill]] }
  0x30   : > { %v3261_v44 = vld [vmem:[%s4258_s26] sm:$0xff]   ;;  %3026 = vmatprep.mubr.msk.bf16.mxu0 %vm796_vm0, %v3260_v43  ;;  %v3263_v43 = vld [vmem:[%s4258_s26 + $0x8] sm:$0xff]  }
  0x31   : > { %3032 = vmatprep.mubr.msk.bf16.mxu1 %vm796_vm0, %v3261_v44  ;;  %v918_v45 = vld [vmem:[%s4259_s3] sm:$0xff]  ;;  %v919_v47 = vld [vmem:[%s4259_s3 + $0x8] sm:$0xff]  ;;  %v920_v48 = vld [vmem:[%s4259_s3 + $0x10] sm:$0xff] }
  0x32   : > { %v921_v50 = vld [vmem:[%s4259_s3 + $0x18] sm:$0xff]  ;;  %v2894_v10 = vld [vmem:[%s4260_s4] ss:$0 sm:$0xff] }
  0x33   : > { %873 = vadd.xlane.f32.xlu0 %v872_v11  ;;  %876 = vadd.xlane.f32.xlu1 %v875_v12  ;;  %v3264_v44 = vld [vmem:[%s4209_s10] sm:$0xff]  }
  0xb8   : > { %v799_v13 = vpop.xlane.xlu0 %798  ;;  %v805_v14 = vpop.xlane.xlu1 %804 }
  0xb9   : > { %v810_v15 = vmul.f32 0.03125, %v799_v13  ;;  %v812_v16 = vmul.f32 0.03125, %v805_v14 }
  0xbb   : > { %v3675_v17 = vsub.f32 %v788_v1, %v810_v15  ;;  %v3677_v18 = vsub.f32 %v790_v2, %v812_v16  ;;  %v2895_v16 = vld [vmem:[%s4261_s7] ss:$0 sm:$0xff]  ;;  %s4152_s7 = scalar_lea.hbm %s4264_s23, %s2954_s27 }
  0xbc   : > { %v802_v19 = vpop.xlane.xlu0 %801  ;;  %v808_v20 = vpop.xlane.xlu1 %807 }
  0xbd   : > { %v811_v21 = vmul.f32 0.03125, %v802_v19  ;;  %v813_v22 = vmul.f32 0.03125, %v808_v20  ;;  %v818_v23 = vmul.f32 %v3675_v17, %v3675_v17  ;;  %v820_v24 = vmul.f32 %v3677_v18, %v3677_v18 }
  0xbf   : > { %v3683_v25 = vsub.f32 %v789_v3, %v811_v21  ;;  %v3685_v26 = vsub.f32 %v791_v6, %v813_v22  ;;  %v822_v27 = vsel %vm796_vm0, %v818_v23, 0.0  ;;  %v828_v30 = vsel %vm796_vm0, %v820_v24, 0.0 }
  0xc0   : > { %823 = vadd.xlane.f32.xlu0 %v822_v27  ;;  %v874_v28 = vpop.xlane.xlu0 %873  ;;  %v877_v29 = vpop.xlane.xlu1 %876  ;;  %v2896_v27 = vld [vmem:[%s4262_s24] ss:$0 sm:$0xff]  ;;  %s770_s24 = sand.u32 1, %s3450_s28  }
  0xc1   : > { %v878_v31 = vmul.f32 0.03125, %v874_v28  ;;  %v879_v32 = vmul.f32 0.03125, %v877_v29  ;;  %v819_v33 = vmul.f32 %v3683_v25, %v3683_v25  ;;  %v821_v34 = vmul.f32 %v3685_v26, %v3685_v26  ;;  %s771_s0 = scalar_lea.vmem [#allocation3], %s770_s24  ;;  %s2790_s2 = scalar_lea.sflag [#allocation4], %s770_s24 }
  0xc3   : > { %v3693_v35 = vsub.f32 %v792_v7, %v878_v31  ;;  %v3695_v36 = vsub.f32 %v793_v8, %v879_v32  ;;  %v825_v37 = vsel %vm796_vm0, %v819_v33, 0.0  ;;  %v831_v38 = vsel %vm796_vm0, %v821_v34, 0.0  ;;  %v2897_v34 = vld [vmem:[%s4263_s29] ss:$0 sm:$0xff]  ;;  %s2803_s29 = sshll.u32 %s771_s0, 4  ;;  %s4154_s29 = int_to_ptr.vmem [resolvable:$true] %s2803_s29 }
  0xc4   : > { %829 = vadd.xlane.f32.xlu0 %v828_v30  ;;  %826 = vadd.xlane.f32.xlu1 %v825_v37  ;;  %s3388_s6 = scalar_lea.vmem %s4154_s29, 16 }
  0xc5   : > { %v882_v39 = vmul.f32 %v3693_v35, %v3693_v35  ;;  %v883_v40 = vmul.f32 %v3695_v36, %v3695_v36  ;;  %p3389_p12 = scmp.ne.s32.totalorder %s4154_s29, %s3388_s6 }
  0xc7   : > { %v884_v41 = vsel %vm796_vm0, %v882_v39, 0.0  ;;  %v887_v42 = vsel %vm796_vm0, %v883_v40, 0.0  ;;  %p3390_p13 = pnand %p3389_p12, %p3640_p4 }
  0xc8   : > { %832 = vadd.xlane.f32.xlu1 %v831_v38  ;;  %885 = vadd.xlane.f32.xlu0 %v884_v41 }
  0xc9   : > { %p3391_p0 = pneg %p3390_p13 }
  0xcc   : > { %888 = vadd.xlane.f32.xlu1 %v887_v42 }
  0xdd   : > { %948 = vperm.xlu1 %3237, %v918_v45   ;;  %v3265_v45 = vld [vmem:[%s4209_s10 + $0x8] sm:$0xff]  }
  0xde   : > { %953 = vperm.xlu0 %3236, %v919_v47  }
  0xe1   : > { %958 = vperm.xlu1 %3237, %v920_v48  }
  0xe2   : > { %1054 = vperm.xlu0 %3236, %v929_v49  }
  0xe5   : > { %963 = vperm.xlu1 %3237, %v921_v50  }
  0xe9   : > { %1044 = vperm.xlu1 %3237, %v927_v51  }
  0xed   : > { %1039 = vperm.xlu1 %3237, %v926_v52  }
  0xf1   : > { %1049 = vperm.xlu1 %3237, %v928_v53  }
 0x14d   : > { %v824_v54 = vpop.xlane.xlu0 %823 }
 0x14e   : > { %v834_v55 = vmul.f32 0.03125, %v824_v54 }
 0x150   : > { %v838_v56 = vadd.f32 1e-05, %v834_v55 }
 0x151   : > { %v827_v57 = vpop.xlane.xlu1 %826  ;;  %v830_v58 = vpop.xlane.xlu0 %829 }
 0x152   : > { %3276 = vrsqrt.f32 %v838_v56  ;;  %v835_v59 = vmul.f32 0.03125, %v827_v57  ;;  %v836_v60 = vmul.f32 0.03125, %v830_v58 }
 0x154   : > { %v839_v61 = vadd.f32 1e-05, %v835_v59  ;;  %v840_v62 = vadd.f32 1e-05, %v836_v60 }
 0x155   : > { %v833_v63 = vpop.xlane.xlu1 %832  ;;  %v886_v0 = vpop.xlane.xlu0 %885 }
 0x156   : > { %3278 = vrsqrt.f32 %v839_v61  ;;  %v837_v1 = vmul.f32 0.03125, %v833_v63  ;;  %v890_v2 = vmul.f32 0.03125, %v886_v0 }
 0x157   : > { %3280 = vrsqrt.f32 %v840_v62 }
 0x158   : > { %v841_v3 = vadd.f32 1e-05, %v837_v1  ;;  %v892_v4 = vadd.f32 1e-05, %v890_v2 }
 0x159   : > { %v889_v5 = vpop.xlane.xlu1 %888 }
 0x15a   : > { %3282 = vrsqrt.f32 %v841_v3  ;;  %v891_v6 = vmul.f32 0.03125, %v889_v5 }
 0x15b   : > { %3284 = vrsqrt.f32 %v892_v4 }
 0x15c   : > { %v3277_v7 = vpop.eup %3276  ;;  %v893_v8 = vadd.f32 1e-05, %v891_v6 }
 0x15d   : > { %v846_v9 = vmul.f32 %v3277_v7, %v3675_v17  ;;  %v949_v46 = vpop.permute.xlu1 %948  ;;  %v954_v51 = vpop.permute.xlu0 %953 }
 0x15e   : > { %3286 = vrsqrt.f32 %v893_v8 }
 0x15f   : > { %v856_v14 = vmul.f32 %v2894_v10, %v846_v9 }
 0x160   : > { %v3279_v11 = vpop.eup %3278 }
 0x161   : > { %v3281_v12 = vpop.eup %3280  ;;  %v847_v13 = vmul.f32 %v3279_v11, %v3683_v25  ;;  %v866_v23 = vadd.f32 %v2895_v16, %v856_v14  ;;  %v959_v47 = vpop.permute.xlu1 %958 }
 0x162   : > { %v848_v15 = vmul.f32 %v3281_v12, %v3677_v18  ;;  %v1055_v53 = vpop.permute.xlu0 %1054 }
 0x163   : > { %v857_v19 = vmul.f32 %v2894_v10, %v847_v13 }
 0x164   : > { %v3283_v20 = vpop.eup %3282  ;;  %v858_v21 = vmul.f32 %v2894_v10, %v848_v15 }
 0x165   : > { %v3285_v17 = vpop.eup %3284  ;;  %v849_v22 = vmul.f32 %v3283_v20, %v3685_v26  ;;  %v867_v24 = vadd.f32 %v2895_v16, %v857_v19  ;;  %v964_v48 = vpop.permute.xlu1 %963 }
 0x166   : > { %v896_v25 = vmul.f32 %v3285_v17, %v3693_v35  ;;  %v868_v30 = vadd.f32 %v2895_v16, %v858_v21 }
 0x167   : > { %v943_v28 = vpack.c.bf16 %v867_v24, %v866_v23  ;;  %v859_v18 = vmul.f32 %v2894_v10, %v849_v22 }
 0x168   : > { %v3287_v29 = vpop.eup %3286  ;;  %v904_v26 = vmul.f32 %v2896_v27, %v896_v25 }
 0x169   : > { %3162 = vmatprep.subr.msk.bf16.mxu0 %vm796_vm0, %v943_v28  ;;  %v983_v31 = vsel %vm796_vm0, %v943_v28, 0  ;;  %v869_v32 = vadd.f32 %v2895_v16, %v859_v18  ;;  %v897_v33 = vmul.f32 %v3287_v29, %v3695_v36  ;;  %v3262_v36 = vld [vmem:[%s4257_s30 + $0x8] sm:$0xff]   ;;  %v1045_v49 = vpop.permute.xlu1 %1044 }
 0x16a   : > { %3023 = vmatpush3.bf16.xpose.msra.mxu0 %v983_v31  ;;  %v912_v35 = vadd.f32 %v2897_v34, %v904_v26 }
 0x16b   : > { %v944_v37 = vpack.c.bf16 %v869_v32, %v868_v30  ;;  %v905_v38 = vmul.f32 %v2896_v27, %v897_v33 }
 0x16d   : > { %3163 = vmatprep.subr.msk.bf16.mxu0 %vm796_vm0, %v944_v37  ;;  %v913_v39 = vadd.f32 %v2897_v34, %v905_v38  ;;  %v986_v41 = vsel %vm796_vm0, %v944_v37, 0  ;;  %v1040_v50 = vpop.permute.xlu1 %1039 }
 0x16f   : > { %v945_v40 = vpack.c.bf16 %v913_v39, %v912_v35 }
 0x171   : > { %3164 = vmatprep.subr.msk.bf16.mxu1 %vm796_vm0, %v945_v40  ;;  %v1074_v42 = vsel %vm796_vm0, %v945_v40, 0  ;;  %v1050_v52 = vpop.permute.xlu1 %1049 }
 0x172   : > { %3025 = vmatpush3.bf16.xpose.msra.mxu0 %v986_v41  ;;  %3031 = vmatpush3.bf16.xpose.msra.mxu1 %v1074_v42 }
 0x173   : > { %3165 = vmatprep.subr.msk.bf16.mxu1 %vm796_vm0, %v945_v40 }
 0x179   : > { %3027 = vmatmul.mubr.msk.bf16.vlgmr.msra.gmra.mrb[0].mxu0 %vm796_vm0, %v3262_v36  ;;  %3033 = vmatmul.mubr.msk.bf16.vlgmr.msra.gmra.mrb[0].mxu1 %vm796_vm0, %v3263_v43 }
 0x17a   : > { %3037 = vmatpush3.bf16.xpose.msra.mxu1 %v1074_v42  ;;  %3038 = vmatprep.mubr.msk.bf16.mxu1 %vm796_vm0, %v3264_v44 }
 0x181   : > { %3039 = vmatmul.mubr.msk.bf16.vlgmr.msra.gmra.mrb[4].mxu1 %vm796_vm0, %v3265_v45 }
 0x24c   : > { %v3028_v54 = vpop.f32.mrb[0].mxu0  ;;  %v3034_v55 = vpop.f32.mrb[0].mxu1 }
 0x24d   : > { %v1031_v56 = vadd.f32 %v3028_v54, %v959_v47  ;;  %v1022_v57 = vpop.f32.mrb[1].mxu0  ;;  %v1110_v58 = vpop.f32.mrb[1].mxu1  ;;  %v1119_v59 = vadd.f32 %v3034_v55, %v1050_v52 }
 0x24e   : > { %v1111_v60 = vadd.f32 %v1110_v58, %v1040_v50  ;;  %v3029_v61 = vpop.f32.mrb[2].mxu0  ;;  %v3035_v62 = vpop.f32.mrb[2].mxu1  ;;  %v1023_v63 = vadd.f32 %v1022_v57, %v949_v46 }
 0x24f   : > { %v1212_v0 = vpack.c.bf16 %v1119_v59, %v1119_v59  ;;  %1282 = vxpose.xlu0.b32.start.end [1/1] (short) (narrow) %v1031_v56, 32  ;;  %v1025_v1 = vpop.f32.mrb[3].mxu0  ;;  %v1113_v2 = vpop.f32.mrb[3].mxu1  ;;  %v1122_v6 = vadd.f32 %v3035_v62, %v1055_v53  ;;  %v1034_v12 = vadd.f32 %v3029_v61, %v964_v48 }
 0x250   : > { %v1210_v3 = vpack.c.bf16 %v1111_v60, %v1111_v60  ;;  %v1026_v4 = vadd.f32 %v1025_v1, %v954_v51  ;;  %v1114_v5 = vadd.f32 %v1113_v2, %v1045_v49 }
 0x251   : > { %v1213_v11 = vpack.c.bf16 %v1122_v6, %v1122_v6  ;;  %v1479_v42 = vsel %vm1361_vm1, %v1212_v0, 0 }
 0x252   : > { %v1363_v7 = vsel %vm1361_vm1, %v1210_v3, 0  ;;  %v3238_v8 = vpack.i.bf16 %v1023_v63, %v1026_v4  ;;  %v1211_v9 = vpack.c.bf16 %v1114_v5, %v1114_v5  ;;  %3166 = vmatprep.subr.msk.bf16.mxu0 %vm1361_vm1, %v1210_v3 }
 0x253   : > { %3043 = vmatpush3.bf16.msra.mxu0 %v1363_v7  ;;  %v1537_v36 = vsel %vm1361_vm1, %v1213_v11, 0 }
 0x254   : > { %v1421_v10 = vsel %vm1361_vm1, %v1211_v9, 0  ;;  %3167 = vmatprep.subr.msk.bf16.mxu1 %vm1361_vm1, %v1211_v9  ;;  %3168 = vmatprep.subr.msk.bf16.mxu0 %vm1361_vm1, %v1212_v0  ;;  %v3784_v13 = vpop.f32.mrb[4].mxu1 }
 0x255   : > { %3239 = vxpose.xlu1.b32.start.end [1/1] (short) (narrow) %v3238_v8, 32  ;;  %3049 = vmatpush3.bf16.msra.mxu1 %v1421_v10  ;;  %v3786_v14 = vpop.f32.mrb[5].mxu1 }
 0x256   : > { %3169 = vmatprep.subr.msk.bf16.mxu1 %vm1361_vm1, %v1213_v11  ;;  %v3788_v15 = vpop.f32.mrb[6].mxu1 }
 0x257   : > { %v3790_v16 = vpop.f32.mrb[7].mxu1 }
 0x25c   : > { %1314 = vxpose.xlu0.b32.start.end [1/1] (short) (narrow) %v1034_v12, 32 }
 0x2cf   : > { %v1298_v19 = vpop.trf.xlu0 }
 0x2d3   : > { %v1299_v20 = vpop.trf.xlu0 }
 0x2d4   : > { %v1350_v35 = vpack.c.bf16 %v1299_v20, %v1298_v19  ;;  %v935_v20 = vld [vmem:[%s4210_s11 + $0x8] sm:$0xff] }
 0x2d5   : > { %v3240_v21 = vpop.trf.xlu1 }
 0x2d6   : > { %v3244_v22 = vunpack.i.h.bf16 %v3240_v21  ;;  %v3241_v23 = vunpack.i.l.bf16 %v3240_v21 }
 0x2d7   : > { %v1300_v17 = vpop.trf.xlu0 }
 0x2d9   : > { %v3245_v24 = vpop.trf.xlu1 }
 0x2da   : > { %v3249_v27 = vunpack.i.h.bf16 %v3245_v24  ;;  %v3246_v25 = vunpack.i.l.bf16 %v3245_v24 }
 0x2db   : > { %v1301_v28 = vpop.trf.xlu0 }
 0x2dc   : > { %v1346_v18 = vpack.c.bf16 %v3249_v27, %v3244_v22  ;;  %v1348_v29 = vpack.c.bf16 %v3246_v25, %v3241_v23  ;;  %v1351_v44 = vpack.c.bf16 %v1301_v28, %v1300_v17  ;;  %v934_v17 = vld [vmem:[%s4210_s11] sm:$0xff] }
 0x2dd   : > { %v3250_v30 = vpop.trf.xlu1 }
 0x2de   : > { %3044 = vmatprep.mubr.msk.bf16.mxu0 %vm1354_vm2, %v1346_v18  ;;  %3050 = vmatprep.mubr.msk.bf16.mxu1 %vm1354_vm2, %v1348_v29  ;;  %v3254_v32 = vunpack.i.h.bf16 %v3250_v30  ;;  %v3251_v33 = vunpack.i.l.bf16 %v3250_v30 }
 0x2df   : > { %v1330_v31 = vpop.trf.xlu0 }
 0x2e1   : > { %v3255_v26 = vpop.trf.xlu1 }
 0x2e2   : > { %v3259_v34 = vunpack.i.h.bf16 %v3255_v26  ;;  %v3256_v37 = vunpack.i.l.bf16 %v3255_v26 }
 0x2e3   : > { %v1331_v38 = vpop.trf.xlu0 }
 0x2e4   : > { %v1347_v39 = vpack.c.bf16 %v3259_v34, %v3254_v32  ;;  %v1349_v40 = vpack.c.bf16 %v3256_v37, %v3251_v33  ;;  %v1352_v41 = vpack.c.bf16 %v1331_v38, %v1330_v31 }
 0x2e6   : > { %3045 = vmatmul.mubr.msk.bf16.vlgmr.msra.gmra.mrb[4].mxu0 %vm1354_vm2, %v1347_v39  ;;  %3051 = vmatmul.mubr.msk.bf16.vlgmr.msra.gmra.mrb[8].mxu1 %vm1354_vm2, %v1349_v40 }
 0x2e7   : > { %3055 = vmatpush3.bf16.msra.mxu0 %v1479_v42  ;;  %3061 = vmatpush3.bf16.msra.mxu1 %v1537_v36  ;;  %v1332_v43 = vpop.trf.xlu0 }
 0x2e8   : > { %3056 = vmatprep.mubr.msk.bf16.mxu0 %vm1354_vm2, %v1350_v35  ;;  %3062 = vmatprep.mubr.msk.bf16.mxu1 %vm1354_vm2, %v1352_v41 }
 0x2eb   : > { %v1333_v45 = vpop.trf.xlu0 }
 0x2ec   : > { %v1353_v46 = vpack.c.bf16 %v1333_v45, %v1332_v43 }
 0x2ee   : > { %3057 = vmatmul.mubr.msk.bf16.vlgmr.msra.gmra.mrb[8].mxu0 %vm1354_vm2, %v1351_v44  ;;  %3063 = vmatmul.mubr.msk.bf16.vlgmr.msra.gmra.mrb[12].mxu1 %vm1354_vm2, %v1353_v46 }
 0x3b9   : > { %v3802_v47 = vpop.f32.mrb[4].mxu0  ;;  %v3052_v48 = vpop.f32.mrb[8].mxu1 }
 0x3ba   : > { %v3804_v49 = vpop.f32.mrb[5].mxu0  ;;  %v1457_v50 = vpop.f32.mrb[9].mxu1  ;;  %v1607_v57 = vsel %vm1588_vm3, %v3052_v48, -inf  ;;  %v1595_v9 = vsel %vm1588_vm3, %v3802_v47, -inf }
 0x3bb   : > { %v3806_v51 = vpop.f32.mrb[6].mxu0  ;;  %v3808_v52 = vpop.f32.mrb[10].mxu1  ;;  %v1601_v53 = vsel %vm1588_vm3, %v1457_v50, -inf  ;;  %v1589_v5 = vsel %vm1588_vm3, %v3804_v49, -inf }
 0x3bc   : > { %v3811_v54 = vpop.f32.mrb[7].mxu0  ;;  %1602 = vmax.xlane.f32.xlu1 %v1601_v53  ;;  %v3813_v55 = vpop.f32.mrb[11].mxu1  ;;  %v1598_v59 = vsel %vm1588_vm3, %v3806_v51, -inf  ;;  %v1610_v0 = vsel %vm1588_vm3, %v3808_v52, -inf }
 0x3bd   : > { %v1604_v56 = vsel %vm1588_vm3, %v3813_v55, -inf  ;;  %v1592_v7 = vsel %vm1588_vm3, %v3811_v54, -inf }
 0x3be   : > { %1605 = vmax.xlane.f32.xlu0 %v1604_v56 }
 0x3c0   : > { %1608 = vmax.xlane.f32.xlu1 %v1607_v57 }
 0x3c1   : > { %v3818_v58 = vpop.f32.mrb[8].mxu0  ;;  %v3822_v60 = vpop.f32.mrb[12].mxu1 }
 0x3c2   : > { %1599 = vmax.xlane.f32.xlu0 %v1598_v59  ;;  %v3824_v61 = vpop.f32.mrb[9].mxu0  ;;  %v3826_v62 = vpop.f32.mrb[13].mxu1  ;;  %v1619_v11 = vsel %vm1588_vm3, %v3818_v58, -inf  ;;  %v1631_v19 = vsel %vm1588_vm3, %v3822_v60, -inf }
 0x3c3   : > { %v3828_v63 = vpop.f32.mrb[10].mxu0  ;;  %v3832_v1 = vpop.f32.mrb[14].mxu1  ;;  %v1613_v12 = vsel %vm1588_vm3, %v3824_v61, -inf  ;;  %v1625_v21 = vsel %vm1588_vm3, %v3826_v62, -inf }
 0x3c4   : > { %1611 = vmax.xlane.f32.xlu1 %v1610_v0  ;;  %v1518_v2 = vpop.f32.mrb[11].mxu0  ;;  %v3834_v3 = vpop.f32.mrb[15].mxu1  ;;  %v1622_v6 = vsel %vm1588_vm3, %v3828_v63, -inf  ;;  %v1634_v8 = vsel %vm1588_vm3, %v3832_v1, -inf }
 0x3c5   : > { %v1616_v4 = vsel %vm1588_vm3, %v1518_v2, -inf  ;;  %v1628_v10 = vsel %vm1588_vm3, %v3834_v3, -inf }
 0x3c6   : > { %1617 = vmax.xlane.f32.xlu0 %v1616_v4 }
 0x3c8   : > { %1590 = vmax.xlane.f32.xlu1 %v1589_v5 }
 0x3ca   : > { %1623 = vmax.xlane.f32.xlu0 %v1622_v6 }
 0x3cc   : > { %1593 = vmax.xlane.f32.xlu1 %v1592_v7 }
 0x3ce   : > { %1635 = vmax.xlane.f32.xlu0 %v1634_v8 }
 0x3d0   : > { %1596 = vmax.xlane.f32.xlu1 %v1595_v9 }
 0x3d2   : > { %1629 = vmax.xlane.f32.xlu0 %v1628_v10 }
 0x3d4   : > { %1620 = vmax.xlane.f32.xlu1 %v1619_v11 }
 0x3d8   : > { %1614 = vmax.xlane.f32.xlu1 %v1613_v12 }
 0x3dc   : > { %1632 = vmax.xlane.f32.xlu1 %v1631_v19 }
 0x3ed   : > { %1132 = vperm.xlu1 %3237, %v935_v20  }
 0x411   : > { %1626 = vmax.xlane.f32.xlu1 %v1625_v21 }
 0x422   : > { %1127 = vperm.xlu1 %3237, %v934_v17  }
 0x449   : > { %v1603_v22 = vpop.xlane.xlu1 %1602 }
 0x44a   : > { %v1641_v24 = vsub.f32 %v1457_v50, %v1603_v22 }
 0x44b   : > { %v1606_v23 = vpop.xlane.xlu0 %1605 }
 0x44c   : > { %v1661_v18 = vmul.f32 1.442695, %v1641_v24  ;;  %v1642_v5 = vsub.f32 %v3813_v55, %v1606_v23 }
 0x44d   : > { %v1609_v27 = vpop.xlane.xlu1 %1608 }
 0x44e   : > { %v1643_v25 = vsub.f32 %v3052_v48, %v1609_v27 }
 0x44f   : > { %v1600_v28 = vpop.xlane.xlu0 %1599 }
 0x450   : > { %v1665_v29 = vmul.f32 1.442695, %v1643_v25  ;;  %v1640_v36 = vsub.f32 %v3806_v51, %v1600_v28 }
 0x451   : > { %v1612_v30 = vpop.xlane.xlu1 %1611 }
 0x452   : > { %3288 = vpow2.f32 %v1665_v29  ;;  %v1659_v50 = vmul.f32 1.442695, %v1640_v36  ;;  %v1644_v51 = vsub.f32 %v3808_v52, %v1612_v30  ;;  %v937_v36 = vld [vmem:[%s4210_s11 + $0x18] sm:$0xff] }
 0x453   : > { %v1618_v31 = vpop.xlane.xlu0 %1617  ;;  %3290 = vpow2.f32 %v1661_v18 }
 0x454   : > { %v1646_v32 = vsub.f32 %v1518_v2, %v1618_v31  ;;  %v1667_v6 = vmul.f32 1.442695, %v1644_v51 }
 0x455   : > { %v1591_v33 = vpop.xlane.xlu1 %1590 }
 0x456   : > { %v1671_v26 = vmul.f32 1.442695, %v1646_v32  ;;  %v1637_v38 = vsub.f32 %v3804_v49, %v1591_v33 }
 0x457   : > { %v3866_v35 = vpop.xlane.xlu0 %1623 }
 0x458   : > { %3292 = vpow2.f32 %v1671_v26  ;;  %v1653_v43 = vmul.f32 1.442695, %v1637_v38  ;;  %v1648_v24 = vsub.f32 %v3828_v63, %v3866_v35 }
 0x459   : > { %v1594_v34 = vpop.xlane.xlu1 %1593 }
 0x45a   : > { %v1638_v53 = vsub.f32 %v3811_v54, %v1594_v34  ;;  %v1675_v29 = vmul.f32 1.442695, %v1648_v24 }
 0x45b   : > { %v1636_v49 = vpop.xlane.xlu0 %1635 }
 0x45c   : > { %v3863_v37 = vpop.eup %3288  ;;  %v1655_v57 = vmul.f32 1.442695, %v1638_v53  ;;  %v1652_v59 = vsub.f32 %v3832_v1, %v1636_v49 }
 0x45d   : > { %v1597_v39 = vpop.xlane.xlu1 %1596  ;;  %v1703_v40 = vsel %vm1588_vm3, %v3863_v37, 0.0  ;;  %v3870_v41 = vpop.eup %3290 }
 0x45e   : > { %v1639_v42 = vsub.f32 %v3802_v47, %v1597_v39  ;;  %1704 = vadd.xlane.f32.xlu1 %v1703_v40  ;;  %v1697_v46 = vsel %vm1588_vm3, %v3870_v41, 0.0  ;;  %v1683_v54 = vmul.f32 1.442695, %v1652_v59 }
 0x45f   : > { %v1630_v0 = vpop.xlane.xlu0 %1629 }
 0x460   : > { %v1657_v44 = vmul.f32 1.442695, %v1639_v42  ;;  %v1650_v8 = vsub.f32 %v3834_v3, %v1630_v0 }
 0x461   : > { %v1621_v45 = vpop.xlane.xlu1 %1620 }
 0x462   : > { %v3876_v48 = vpop.eup %3292  ;;  %3294 = vpow2.f32 %v1657_v44  ;;  %1698 = vadd.xlane.f32.xlu1 %v1697_v46  ;;  %v1679_v55 = vmul.f32 1.442695, %v1650_v8  ;;  %v1647_v12 = vsub.f32 %v3818_v58, %v1621_v45  ;;  %v936_v44 = vld [vmem:[%s4210_s11 + $0x10] sm:$0xff] }
 0x463   : > { %3296 = vpow2.f32 %v1653_v43  ;;  %v1712_v47 = vsel %vm1588_vm3, %v3876_v48, 0.0 }
 0x464   : > { %3298 = vpow2.f32 %v1659_v50 }
 0x465   : > { %v1615_v56 = vpop.xlane.xlu1 %1614  ;;  %3300 = vpow2.f32 %v1655_v57 }
 0x466   : > { %1713 = vadd.xlane.f32.xlu1 %v1712_v47  ;;  %v1645_v17 = vsub.f32 %v3824_v61, %v1615_v56 }
 0x468   : > { %v1669_v27 = vmul.f32 1.442695, %v1645_v17 }
 0x469   : > { %v1633_v2 = vpop.xlane.xlu1 %1632 }
 0x46a   : > { %v1651_v4 = vsub.f32 %v3822_v60, %v1633_v2  ;;  %v1663_v60 = vmul.f32 1.442695, %v1642_v5 }
 0x46c   : > { %v3885_v7 = vpop.eup %3294  ;;  %v1681_v9 = vmul.f32 1.442695, %v1651_v4 }
 0x46d   : > { %v1133_v10 = vpop.permute.xlu1 %1132  ;;  %v1691_v52 = vsel %vm1588_vm3, %v3885_v7, 0.0  ;;  %v3890_v11 = vpop.eup %3296 }
 0x46e   : > { %3302 = vpow2.f32 %v1681_v9  ;;  %v1199_v1 = vadd.f32 %v3790_v16, %v1133_v10  ;;  %1692 = vadd.xlane.f32.xlu0 %v1691_v52  ;;  %v1685_v3 = vsel %vm1588_vm3, %v3890_v11, 0.0  ;;  %v3896_v20 = vpop.eup %3298  ;;  %v1673_v16 = vmul.f32 1.442695, %v1647_v12 }
 0x46f   : > { %3304 = vpow2.f32 %v1667_v6  ;;  %v1694_v58 = vsel %vm1588_vm3, %v3896_v20, 0.0  ;;  %v3903_v22 = vpop.eup %3300 }
 0x470   : > { %3306 = vpow2.f32 %v1683_v54  ;;  %v1215_v19 = vpack.c.bf16 %v1199_v1, %v1199_v1  ;;  %v1688_v28 = vsel %vm1588_vm3, %v3903_v22, 0.0 }
 0x471   : > { %3308 = vpow2.f32 %v1663_v60 }
 0x472   : > { %v1838_v21 = vsel %vm1588_vm3, %v1215_v19, 0  ;;  %3171 = vmatprep.subr.msk.bf16.mxu1 %vm1588_vm3, %v1215_v19  ;;  %1686 = vadd.xlane.f32.xlu0 %v1685_v3  ;;  %3310 = vpow2.f32 %v1679_v55 }
 0x473   : > { %3073 = vmatpush3.bf16.xpose.msra.mxu1 %v1838_v21  ;;  %3312 = vpow2.f32 %v1673_v16 }
 0x474   : > { %3314 = vpow2.f32 %v1669_v27 }
 0x475   : > { %3316 = vpow2.f32 %v1675_v29 }
 0x476   : > { %1695 = vadd.xlane.f32.xlu0 %v1694_v58 }
 0x478   : > { %v3905_v23 = vpop.eup %3302 }
 0x479   : > { %v3909_v25 = vpop.eup %3304  ;;  %v1727_v61 = vsel %vm1588_vm3, %v3905_v23, 0.0 }
 0x47a   : > { %v3915_v18 = vpop.eup %3306  ;;  %1689 = vadd.xlane.f32.xlu0 %v1688_v28  ;;  %1728 = vadd.xlane.f32.xlu1 %v1727_v61  ;;  %v1706_v63 = vsel %vm1588_vm3, %v3909_v25, 0.0 }
 0x47b   : > { %v3917_v30 = vpop.eup %3308  ;;  %v1730_v31 = vsel %vm1588_vm3, %v3915_v18, 0.0 }
 0x47c   : > { %v3923_v32 = vpop.eup %3310  ;;  %v1700_v33 = vsel %vm1588_vm3, %v3917_v30, 0.0 }
 0x47d   : > { %v1724_v26 = vsel %vm1588_vm3, %v3923_v32, 0.0  ;;  %v3929_v34 = vpop.eup %3312 }
 0x47e   : > { %1707 = vadd.xlane.f32.xlu0 %v1706_v63  ;;  %1731 = vadd.xlane.f32.xlu1 %v1730_v31  ;;  %v1715_v38 = vsel %vm1588_vm3, %v3929_v34, 0.0  ;;  %v3933_v35 = vpop.eup %3314 }
 0x47f   : > { %v1709_v39 = vsel %vm1588_vm3, %v3933_v35, 0.0  ;;  %v3937_v40 = vpop.eup %3316 }
 0x480   : > { %v1718_v42 = vsel %vm1588_vm3, %v3937_v40, 0.0 }
 0x482   : > { %1701 = vadd.xlane.f32.xlu0 %v1700_v33  ;;  %1725 = vadd.xlane.f32.xlu1 %v1724_v26 }
 0x486   : > { %1716 = vadd.xlane.f32.xlu0 %v1715_v38 }
 0x48a   : > { %1710 = vadd.xlane.f32.xlu0 %v1709_v39 }
 0x48e   : > { %1719 = vadd.xlane.f32.xlu0 %v1718_v42 }
 0x493   : > { %1142 = vperm.xlu1 %3237, %v937_v36  }
 0x49e   : > { %v1627_v43 = vpop.xlane.xlu1 %1626 }
 0x49f   : > { %v1649_v53 = vsub.f32 %v3826_v62, %v1627_v43 }
 0x4a1   : > { %v1677_v56 = vmul.f32 1.442695, %v1649_v53 }
 0x4a2   : > { %v1128_v45 = vpop.permute.xlu1 %1127 }
 0x4a3   : > { %v1196_v46 = vadd.f32 %v3786_v14, %v1128_v45  ;;  %3318 = vpow2.f32 %v1677_v56 }
 0x4a4   : > { %1137 = vperm.xlu0 %3236, %v936_v44  }
 0x4a5   : > { %v1214_v49 = vpack.c.bf16 %v1196_v46, %v1196_v46 }
 0x4a7   : > { %v1780_v50 = vsel %vm1588_vm3, %v1214_v49, 0  ;;  %3170 = vmatprep.subr.msk.bf16.mxu0 %vm1588_vm3, %v1214_v49 }
 0x4a8   : > { %3067 = vmatpush3.bf16.xpose.msra.mxu0 %v1780_v50 }
 0x4ad   : > { %v3951_v47 = vpop.eup %3318 }
 0x4ae   : > { %v1721_v51 = vsel %vm1588_vm3, %v3951_v47, 0.0 }
 0x4c3   : > { %1722 = vadd.xlane.f32.xlu0 %v1721_v51 }
 0x4eb   : > { %v1705_v57 = vpop.xlane.xlu1 %1704 }
 0x4ef   : > { %v1699_v14 = vpop.xlane.xlu1 %1698 }
 0x4f3   : > { %v1714_v2 = vpop.xlane.xlu1 %1713 }
 0x4fb   : > { %v1693_v59 = vpop.xlane.xlu0 %1692 }
 0x4ff   : > { %v1687_v0 = vpop.xlane.xlu0 %1686 }
 0x503   : > { %v1696_v4 = vpop.xlane.xlu0 %1695 }
 0x504   : > { %3320 = vrcp.f32 %v1696_v4 }
 0x505   : > { %3322 = vrcp.f32 %v1687_v0 }
 0x506   : > { %3324 = vrcp.f32 %v1693_v59 }
 0x507   : > { %v1729_v5 = vpop.xlane.xlu1 %1728  ;;  %v1690_v6 = vpop.xlane.xlu0 %1689 }
 0x508   : > { %3326 = vrcp.f32 %v1690_v6 }
 0x509   : > { %3328 = vrcp.f32 %v1729_v5 }
 0x50b   : > { %v1732_v62 = vpop.xlane.xlu1 %1731  ;;  %v1708_v54 = vpop.xlane.xlu0 %1707 }
 0x50c   : > { %3330 = vrcp.f32 %v1732_v62 }
 0x50d   : > { %3332 = vrcp.f32 %v1708_v54 }
 0x50e   : > { %3334 = vrcp.f32 %v1699_v14  ;;  %v3321_v10 = vpop.eup %3320 }
 0x50f   : > { %v3955_v8 = vpop.xlane.xlu1 %1725  ;;  %v1702_v9 = vpop.xlane.xlu0 %1701  ;;  %3336 = vrcp.f32 %v1705_v57  ;;  %v1752_v55 = vmul.f32 %v3321_v10, %v3896_v20 }
 0x510   : > { %v3323_v52 = vpop.eup %3322  ;;  %3338 = vrcp.f32 %v1702_v9 }
 0x511   : > { %v3325_v1 = vpop.eup %3324  ;;  %v1749_v16 = vmul.f32 %v3323_v52, %v3890_v11  ;;  %3340 = vrcp.f32 %v1714_v2 }
 0x512   : > { %v3327_v60 = vpop.eup %3326  ;;  %v1751_v58 = vmul.f32 %v3325_v1, %v3885_v7 }
 0x513   : > { %v1143_v12 = vpop.permute.xlu1 %1142  ;;  %v1717_v19 = vpop.xlane.xlu0 %1716  ;;  %v1750_v17 = vmul.f32 %v3327_v60, %v3903_v22 }
 0x514   : > { %v3329_v3 = vpop.eup %3328  ;;  %v1207_v21 = vadd.f32 %v3788_v15, %v1143_v12  ;;  %v1766_v63 = vpack.c.bf16 %v1752_v55, %v1751_v58  ;;  %v940_v55 = vld [vmem:[%s4211_s12 + $0x8] sm:$0xf]  ;;  %v941_v58 = vld [vmem:[%s4211_s12 + $0xc] sm:$0xf] }
 0x515   : > { %v1765_v28 = vpack.c.bf16 %v1750_v17, %v1749_v16  ;;  %v1763_v61 = vmul.f32 %v3329_v3, %v3905_v23 }
 0x516   : > { %v3331_v24 = vpop.eup %3330  ;;  %v1217_v27 = vpack.c.bf16 %v1207_v21, %v1207_v21  ;;  %v2136_v21 = vsel %vm1361_vm1, %v940_v55, 0 }
 0x517   : > { %v1764_v29 = vmul.f32 %v3331_v24, %v3915_v18  ;;  %v1711_v20 = vpop.xlane.xlu0 %1710  ;;  %v3333_v31 = vpop.eup %3332  ;;  %3068 = vmatprep.mubr.msk.bf16.mxu0 %vm1588_vm3, %v1765_v28 }
 0x518   : > { %3342 = vrcp.f32 %v1711_v20  ;;  %3173 = vmatprep.subr.msk.bf16.mxu1 %vm1588_vm3, %v1217_v27  ;;  %v3335_v15 = vpop.eup %3334  ;;  %3069 = vmatmul.mubr.msk.bf16.vlgmr.msra.gmra.mrb[12].mxu0 %vm1588_vm3, %v1766_v63  ;;  %v1756_v33 = vmul.f32 %v3333_v31, %v3909_v25  ;;  %v1954_v43 = vsel %vm1588_vm3, %v1217_v27, 0  ;;  %v2198_v27 = vsel %vm1361_vm1, %v941_v58, 0 }
 0x519   : > { %v1772_v7 = vpack.c.bf16 %v1764_v29, %v1763_v61  ;;  %v3337_v11 = vpop.eup %3336  ;;  %v1753_v23 = vmul.f32 %v3335_v15, %v3870_v41  ;;  %v2934_v15 = vld [vmem:[%s4212_s13] ss:$0 sm:$0xff] }
 0x51a   : > { %v3339_v22 = vpop.eup %3338  ;;  %v1755_v38 = vmul.f32 %v3337_v11, %v3863_v37 }
 0x51b   : > { %v1720_v26 = vpop.xlane.xlu0 %1719  ;;  %v1754_v18 = vmul.f32 %v3339_v22, %v3917_v30  ;;  %v3341_v36 = vpop.eup %3340 }
 0x51c   : > { %3344 = vrcp.f32 %v1720_v26  ;;  %v1768_v42 = vpack.c.bf16 %v1756_v33, %v1755_v38  ;;  %v1758_v30 = vmul.f32 %v3341_v36, %v3876_v48 }
 0x51d   : > { %v1767_v39 = vpack.c.bf16 %v1754_v18, %v1753_v23  ;;  %3346 = vrcp.f32 %v1717_v19  ;;  %v3384_v18 = vld [vmem:[%s3660_s8] sm:$0xff] }
 0x51e   : > { %3348 = vrcp.f32 %v3955_v8 }
 0x51f   : > { %3074 = vmatprep.mubr.msk.bf16.mxu1 %vm1588_vm3, %v1767_v39 }
 0x520   : > { %3075 = vmatmul.mubr.msk.bf16.vlgmr.msra.gmra.mrb[16].mxu1 %vm1588_vm3, %v1768_v42  ;;  %v3385_v42 = vld [vmem:[%s3660_s8 + $0x10] sm:$0xff] }
 0x521   : > { %3085 = vmatpush3.bf16.xpose.msra.mxu1 %v1954_v43 }
 0x522   : > { %v3343_v44 = vpop.eup %3342 }
 0x523   : > { %v1138_v25 = vpop.permute.xlu0 %1137  ;;  %v1757_v41 = vmul.f32 %v3343_v44, %v3933_v35  ;;  %v3386_v44 = vld [vmem:[%s3660_s8 + $0x8] sm:$0xff] }
 0x524   : > { %v1204_v37 = vadd.f32 %v3784_v13, %v1138_v25 }
 0x525   : > { %v1769_v45 = vpack.c.bf16 %v1758_v30, %v1757_v41 }
 0x526   : > { %v1216_v46 = vpack.c.bf16 %v1204_v37, %v1204_v37  ;;  %v3345_v49 = vpop.eup %3344  ;;  %v3387_v37 = vld [vmem:[%s3660_s8 + $0x18] sm:$0xff]  ;;  %s3392_s8 = sshll.u32 %s3471_s1, 4  ;;  %s3393_s8 = int_to_ptr.vmem [resolvable:$false] %s3392_s8 }
 0x527   : > { %3080 = vmatprep.mubr.msk.bf16.mxu0 %vm1588_vm3, %v1769_v45  ;;  %v3347_v53 = vpop.eup %3346  ;;  %v1760_v56 = vmul.f32 %v3345_v49, %v3937_v40  ;;  %s3394_s4 = scalar_lea.vmem %s3393_s8, 32  ;;  %p3395_p1 = scmp.lt.s32.totalorder %s4154_s29, %s3393_s8 }
 0x528   : > { %v1896_v50 = vsel %vm1588_vm3, %v1216_v46, 0  ;;  %3172 = vmatprep.subr.msk.bf16.mxu0 %vm1588_vm3, %v1216_v46  ;;  %v1759_v51 = vmul.f32 %v3347_v53, %v3929_v34  ;;  %v3349_v48 = vpop.eup %3348  ;;  %v939_v34 = vld [vmem:[%s4211_s12 + $0x4] sm:$0xf]  ;;  %p3396_p2 = scmp.lt.s32.totalorder %s3394_s4, %s3388_s6 }
 0x529   : > { %3079 = vmatpush3.bf16.xpose.msra.mxu0 %v1896_v50  ;;  %v1762_v14 = vmul.f32 %v3349_v48, %v3923_v32  ;;  %v2020_v40 = vsel %vm1361_vm1, %v939_v34, 0 }
 0x52a   : > { %v1770_v35 = vpack.c.bf16 %v1760_v56, %v1759_v51  ;;  %3174 = vmatprep.subr.msk.bf16.mxu0 %vm1361_vm1, %v939_v34  ;;  %p3397_p3 = por %p3396_p2, %p3395_p1 }
 0x52c   : > { %p3398_p5 = pnand %p3397_p3, %p3391_p0 }
 0x530   : > { %3081 = vmatmul.mubr.msk.bf16.vlgmr.msra.gmra.mrb[16].mxu0 %vm1588_vm3, %v1770_v35 }
 0x531   : > { %3091 = vmatpush3.bf16.msra.mxu0 %v2020_v40 }
 0x550   : > { %v1723_v13 = vpop.xlane.xlu0 %1722 }
 0x551   : > { %3350 = vrcp.f32 %v1723_v13 }
 0x55b   : > { %v3351_v57 = vpop.eup %3350 }
 0x55c   : > { %v1761_v59 = vmul.f32 %v3351_v57, %v3951_v47  ;;  %v938_v47 = vld [vmem:[%s4211_s12] sm:$0xf] }
 0x55d   : > { %3175 = vmatprep.subr.msk.bf16.mxu0 %vm1361_vm1, %v938_v47  ;;  %v2078_v60 = vsel %vm1361_vm1, %v938_v47, 0 }
 0x55e   : > { %v1771_v0 = vpack.c.bf16 %v1762_v14, %v1761_v59 }
 0x560   : > { %3086 = vmatprep.mubr.msk.bf16.mxu1 %vm1588_vm3, %v1771_v0 }
 0x561   : > { %3087 = vmatmul.mubr.msk.bf16.vlgmr.msra.gmra.mrb[20].mxu1 %vm1588_vm3, %v1772_v7 }
 0x5eb   : > { %v3070_v32 = vpop.f32.mrb[12].mxu0 }
 0x5ec   : > { %v1816_v2 = vpop.f32.mrb[13].mxu0 }
 0x5ed   : > { %v3071_v4 = vpop.f32.mrb[14].mxu0 }
 0x5ee   : > { %v2006_v5 = vpack.c.bf16 %v3071_v4, %v3070_v32  ;;  %v1819_v6 = vpop.f32.mrb[15].mxu0 }
 0x5ef   : > { %v2005_v62 = vpack.c.bf16 %v1819_v6, %v1816_v2 }
 0x5f3   : > { %v3076_v54 = vpop.f32.mrb[16].mxu1 }
 0x5f4   : > { %v1874_v8 = vpop.f32.mrb[17].mxu1 }
 0x5f5   : > { %v3077_v9 = vpop.f32.mrb[18].mxu1 }
 0x5f6   : > { %v2008_v10 = vpack.c.bf16 %v3077_v9, %v3076_v54  ;;  %v1877_v52 = vpop.f32.mrb[19].mxu1  ;;  %v3266_v54 = vld [vmem:[%s4215_s16] sm:$0xff]  }
 0x5f7   : > { %v2007_v1 = vpack.c.bf16 %v1877_v52, %v1874_v8  ;;  %3114 = vmatprep.subr.bf16.mxu1 %v3266_v54  ;;  %v3267_v8 = vld [vmem:[%s4215_s16 + $0x8] sm:$0xff]  }
 0x5f8   : > { %3115 = vmatpush3.bf16.msra.mxu1 %v3266_v54 }
 0x5f9   : > { %3092 = vmatprep.mubr.msk.bf16.mxu0 %vm1354_vm2, %v2007_v1  ;;  %3116 = vmatprep.subr.bf16.mxu1 %v3267_v8 }
 0x5fa   : > { %3093 = vmatmul.mubr.msk.bf16.vlgmr.msra.gmra.mrb[20].mxu0 %vm1354_vm2, %v2008_v10 }
 0x5fb   : > { %3098 = vmatprep.mubr.msk.bf16.mxu0 %vm1354_vm2, %v2005_v62  ;;  %3097 = vmatpush3.bf16.msra.mxu0 %v2078_v60 }
 0x5fc   : > { %3176 = vmatprep.subr.msk.bf16.mxu0 %vm1361_vm1, %v940_v55  ;;  %3117 = vmatpush3.bf16.msra.mxu1 %v3267_v8 }
 0x603   : > { %v3082_v12 = vpop.f32.mrb[16].mxu0 }
 0x604   : > { %v1932_v19 = vpop.f32.mrb[17].mxu0 }
 0x605   : > { %v3083_v3 = vpop.f32.mrb[18].mxu0 }
 0x606   : > { %v2010_v16 = vpack.c.bf16 %v3083_v3, %v3082_v12  ;;  %v1935_v17 = vpop.f32.mrb[19].mxu0  ;;  %3099 = vmatmul.mubr.msk.bf16.vlgmr.msra.gmra.mrb[20].mxu0 %vm1354_vm2, %v2006_v5 }
 0x607   : > { %v2009_v24 = vpack.c.bf16 %v1935_v17, %v1932_v19  ;;  %3103 = vmatpush3.bf16.msra.mxu0 %v2136_v21 }
 0x608   : > { %3177 = vmatprep.subr.msk.bf16.mxu0 %vm1361_vm1, %v941_v58 }
 0x609   : > { %3104 = vmatprep.mubr.msk.bf16.mxu0 %vm1354_vm2, %v2009_v24 }
 0x612   : > { %3105 = vmatmul.mubr.msk.bf16.vlgmr.msra.gmra.mrb[20].mxu0 %vm1354_vm2, %v2010_v16 }
 0x613   : > { %3109 = vmatpush3.bf16.msra.mxu0 %v2198_v27 }
 0x634   : > { %v3088_v28 = vpop.f32.mrb[20].mxu1 }
 0x635   : > { %v1990_v61 = vpop.f32.mrb[21].mxu1 }
 0x636   : > { %v3089_v29 = vpop.f32.mrb[22].mxu1 }
 0x637   : > { %v2012_v20 = vpack.c.bf16 %v3089_v29, %v3088_v28  ;;  %v1993_v63 = vpop.f32.mrb[23].mxu1 }
 0x638   : > { %v2011_v31 = vpack.c.bf16 %v1993_v63, %v1990_v61  ;;  %v2935_v61 = vld [vmem:[%s4213_s14] ss:$0 sm:$0xff] }
 0x63a   : > { %3110 = vmatprep.mubr.msk.bf16.mxu0 %vm1354_vm2, %v2011_v31 }
 0x63b   : > { %3111 = vmatmul.mubr.msk.bf16.vlgmr.msra.gmra.mrb[20].mxu0 %vm1354_vm2, %v2012_v20 }
 0x70e   : > { %v3112_v7 = vpop.f32.mrb[20].mxu0 }
 0x70f   : > { %v2234_v11 = vpop.f32.mrb[21].mxu0  ;;  %v2261_v22 = vadd.f32 %v3112_v7, %v2934_v15  ;;  %v2936_v7 = vld [vmem:[%s4214_s15] ss:$0 sm:$0xff] }
 0x710   : > { %v2259_v33 = vadd.f32 %v2934_v15, %v2234_v11  ;;  %v3113_v26 = vpop.f32.mrb[22].mxu0 }
 0x711   : > { %v2237_v23 = vpop.f32.mrb[23].mxu0  ;;  %v4023_v36 = vadd.f32 %v3385_v42, %v2261_v22  ;;  %v2262_v43 = vadd.f32 %v3113_v26, %v2934_v15 }
 0x712   : > { %v4020_v38 = vadd.f32 %v3384_v18, %v2259_v33  ;;  %v2260_v39 = vadd.f32 %v2934_v15, %v2237_v23 }
 0x713   : > { %v4033_v45 = vadd.f32 %v3387_v37, %v2262_v43  ;;  %v2297_v46 = vsel %vm796_vm0, %v4023_v36, 0.0  ;;  %v3271_v37 = vld [vmem:[%s4217_s18 + $0x18] sm:$0xff]  }
 0x714   : > { %v4026_v25 = vadd.f32 %v3386_v44, %v2260_v39  ;;  %v2291_v41 = vsel %vm796_vm0, %v4020_v38, 0.0  ;;  %v3268_v44 = vld [vmem:[%s4217_s18] sm:$0xff]  }
 0x715   : > { %2292 = vadd.xlane.f32.xlu0 %v2291_v41  ;;  %v2300_v49 = vsel %vm796_vm0, %v4033_v45, 0.0  ;;  %3122 = vmatprep.subr.bf16.mxu1 %v3268_v44  ;;  %v3269_v41 = vld [vmem:[%s4217_s18 + $0x8] sm:$0xff]  }
 0x716   : > { %v2294_v30 = vsel %vm796_vm0, %v4026_v25, 0.0 }
 0x717   : > { %2295 = vadd.xlane.f32.xlu1 %v2294_v30  ;;  %v3270_v30 = vld [vmem:[%s4217_s18 + $0x10] sm:$0xff]  }
 0x719   : > { %2298 = vadd.xlane.f32.xlu0 %v2297_v46  ;;  %v3272_v46 = vld [vmem:[%s4217_s18 + $0x20] sm:$0xff]  }
 0x71d   : > { %2301 = vadd.xlane.f32.xlu0 %v2300_v49  ;;  %v3273_v49 = vld [vmem:[%s4217_s18 + $0x28] sm:$0xff]  }
 0x7a2   : > { %v2293_v50 = vpop.xlane.xlu0 %2292 }
 0x7a3   : > { %v2303_v53 = vmul.f32 0.03125, %v2293_v50  ;;  %v3274_v50 = vld [vmem:[%s4217_s18 + $0x30] sm:$0xff]  }
 0x7a4   : > { %v2296_v56 = vpop.xlane.xlu1 %2295 }
 0x7a5   : > { %v2307_v13 = vsub.f32 %v4020_v38, %v2303_v53  ;;  %v2304_v48 = vmul.f32 0.03125, %v2296_v56  ;;  %v3275_v53 = vld [vmem:[%s4217_s18 + $0x38] sm:$0xff]   ;;  %v2937_v56 = vld [vmem:[%s4216_s17] ss:$0 sm:$0xff] }
 0x7a6   : > { %v2299_v51 = vpop.xlane.xlu0 %2298 }
 0x7a7   : > { %v2305_v35 = vmul.f32 0.03125, %v2299_v51  ;;  %v2308_v0 = vsub.f32 %v4026_v25, %v2304_v48  ;;  %v2311_v47 = vmul.f32 %v2307_v13, %v2307_v13 }
 0x7a9   : > { %v2309_v57 = vsub.f32 %v4023_v36, %v2305_v35  ;;  %v2315_v2 = vsel %vm796_vm0, %v2311_v47, 0.0  ;;  %v2312_v4 = vmul.f32 %v2308_v0, %v2308_v0 }
 0x7aa   : > { %v2302_v59 = vpop.xlane.xlu0 %2301 }
 0x7ab   : > { %v2313_v14 = vmul.f32 %v2309_v57, %v2309_v57  ;;  %v2306_v34 = vmul.f32 0.03125, %v2302_v59  ;;  %v2318_v5 = vsel %vm796_vm0, %v2312_v4, 0.0 }
 0x7ad   : > { %v2321_v40 = vsel %vm796_vm0, %v2313_v14, 0.0  ;;  %v2310_v32 = vsub.f32 %v4033_v45, %v2306_v34 }
 0x7ae   : > { %2322 = vadd.xlane.f32.xlu0 %v2321_v40 }
 0x7af   : > { %v2314_v6 = vmul.f32 %v2310_v32, %v2310_v32 }
 0x7b1   : > { %v2324_v62 = vsel %vm796_vm0, %v2314_v6, 0.0 }
 0x7b2   : > { %2316 = vadd.xlane.f32.xlu0 %v2315_v2 }
 0x7b6   : > { %2319 = vadd.xlane.f32.xlu0 %v2318_v5 }
 0x7ba   : > { %2325 = vadd.xlane.f32.xlu0 %v2324_v62 }
 0x83b   : > { %v2323_v9 = vpop.xlane.xlu0 %2322 }
 0x83c   : > { %v2329_v10 = vmul.f32 0.03125, %v2323_v9 }
 0x83e   : > { %v2333_v60 = vadd.f32 1e-05, %v2329_v10 }
 0x83f   : > { %v2317_v52 = vpop.xlane.xlu0 %2316 }
 0x840   : > { %v2327_v1 = vmul.f32 0.03125, %v2317_v52 }
 0x842   : > { %v2331_v55 = vadd.f32 1e-05, %v2327_v1 }
 0x843   : > { %v2320_v12 = vpop.xlane.xlu0 %2319 }
 0x844   : > { %3352 = vrsqrt.f32 %v2331_v55  ;;  %v2328_v19 = vmul.f32 0.03125, %v2320_v12 }
 0x845   : > { %3354 = vrsqrt.f32 %v2333_v60 }
 0x846   : > { %v2332_v3 = vadd.f32 1e-05, %v2328_v19 }
 0x847   : > { %v2326_v21 = vpop.xlane.xlu0 %2325 }
 0x848   : > { %3356 = vrsqrt.f32 %v2332_v3  ;;  %v2330_v16 = vmul.f32 0.03125, %v2326_v21 }
 0x84a   : > { %v2334_v17 = vadd.f32 1e-05, %v2330_v16 }
 0x84c   : > { %3358 = vrsqrt.f32 %v2334_v17 }
 0x84e   : > { %v3353_v58 = vpop.eup %3352 }
 0x84f   : > { %v2339_v24 = vmul.f32 %v3353_v58, %v2307_v13  ;;  %v3355_v27 = vpop.eup %3354 }
 0x850   : > { %v2341_v29 = vmul.f32 %v3355_v27, %v2309_v57 }
 0x851   : > { %v2349_v63 = vmul.f32 %v2935_v61, %v2339_v24 }
 0x852   : > { %v3357_v28 = vpop.eup %3356  ;;  %v2351_v11 = vmul.f32 %v2935_v61, %v2341_v29 }
 0x853   : > { %v2340_v20 = vmul.f32 %v3357_v28, %v2308_v0  ;;  %v2359_v33 = vadd.f32 %v2936_v7, %v2349_v63 }
 0x854   : > { %v2361_v39 = vadd.f32 %v2936_v7, %v2351_v11 }
 0x855   : > { %v2350_v31 = vmul.f32 %v2935_v61, %v2340_v20 }
 0x856   : > { %v3359_v15 = vpop.eup %3358 }
 0x857   : > { %v2342_v22 = vmul.f32 %v3359_v15, %v2310_v32  ;;  %v2360_v26 = vadd.f32 %v2936_v7, %v2350_v31 }
 0x859   : > { %v2352_v23 = vmul.f32 %v2935_v61, %v2342_v22  ;;  %v2363_v18 = vpack.c.bf16 %v2360_v26, %v2359_v33 }
 0x85b   : > { %3118 = vmatprep.mubr.msk.bf16.mxu1 %vm796_vm0, %v2363_v18  ;;  %v2362_v42 = vadd.f32 %v2936_v7, %v2352_v23 }
 0x85d   : > { %v2364_v43 = vpack.c.bf16 %v2362_v42, %v2361_v39 }
 0x85f   : > { %3119 = vmatmul.mubr.msk.bf16.vlgmr.msra.gmra.mrb[24].mxu1 %vm796_vm0, %v2364_v43 }
 0x860   : > { %3123 = vmatpush3.bf16.msra.mxu1 %v3268_v44 }
 0x861   : > { %3124 = vmatprep.subr.bf16.mxu1 %v3269_v41 }
 0x864   : > { %3125 = vmatpush3.bf16.msra.mxu1 %v3269_v41 }
 0x865   : > { %3126 = vmatprep.subr.bf16.mxu1 %v3270_v30 }
 0x868   : > { %3127 = vmatpush3.bf16.msra.mxu1 %v3270_v30 }
 0x869   : > { %3128 = vmatprep.subr.bf16.mxu1 %v3271_v37 }
 0x86c   : > { %3129 = vmatpush3.bf16.msra.mxu1 %v3271_v37 }
 0x86d   : > { %3130 = vmatprep.subr.bf16.mxu1 %v3272_v46 }
 0x870   : > { %3131 = vmatpush3.bf16.msra.mxu1 %v3272_v46 }
 0x871   : > { %3132 = vmatprep.subr.bf16.mxu1 %v3273_v49 }
 0x874   : > { %3133 = vmatpush3.bf16.msra.mxu1 %v3273_v49 }
 0x875   : > { %3134 = vmatprep.subr.bf16.mxu1 %v3274_v50 }
 0x878   : > { %3135 = vmatpush3.bf16.msra.mxu1 %v3274_v50 }
 0x879   : > { %3136 = vmatprep.subr.bf16.mxu1 %v3275_v53 }
 0x87c   : > { %3137 = vmatpush3.bf16.msra.mxu1 %v3275_v53 }
 0x932   : > { %v3120_v51 = vpop.f32.mrb[24].mxu1 }
 0x933   : > { %v4088_v35 = vadd.f32 %v3120_v51, %v2937_v56  ;;  %v2423_v13 = vpop.f32.mrb[25].mxu1 }
 0x934   : > { %v4090_v48 = vadd.f32 %v2937_v56, %v2423_v13  ;;  %v3121_v57 = vpop.f32.mrb[26].mxu1 }
 0x935   : > { %v4093_v59 = vmul.f32 0.70710677, %v4088_v35  ;;  %v4095_v14 = vadd.f32 %v3121_v57, %v2937_v56  ;;  %v2426_v0 = vpop.f32.mrb[27].mxu1 }
 0x936   : > { %v4098_v34 = vmul.f32 0.70710677, %v4090_v48  ;;  %v4100_v40 = vadd.f32 %v2937_v56, %v2426_v0 }
 0x937   : > { %v2448_v47 = vand.u32 2147483647, %v4093_v59  ;;  %v4104_v32 = vmul.f32 0.70710677, %v4095_v14  ;;  %vm2524_vm4 = vcmp.ge.f32.partialorder %v4093_v59, 0.0 }
 0x938   : > { %v2446_v2 = vand.u32 2147483647, %v4098_v34  ;;  %v4108_v4 = vmul.f32 0.70710677, %v4100_v40  ;;  %vm2522_vm5 = vcmp.ge.f32.partialorder %v4098_v34, 0.0 }
 0x939   : > { %v2452_v5 = vmul.f32 0.3275911, %v2448_v47  ;;  %v2449_v6 = vand.u32 2147483647, %v4104_v32  ;;  %v2500_v55 = vsub.f32 0.0, %v2448_v47  ;;  %vm2525_vm6 = vcmp.ge.f32.partialorder %v4104_v32, 0.0 }
 0x93a   : > { %v2450_v62 = vmul.f32 0.3275911, %v2446_v2  ;;  %v2447_v54 = vand.u32 2147483647, %v4108_v4  ;;  %v2498_v12 = vsub.f32 0.0, %v2446_v2  ;;  %vm2523_vm7 = vcmp.ge.f32.partialorder %v4108_v4, 0.0 }
 0x93b   : > { %v2456_v8 = vadd.f32 1.0, %v2452_v5  ;;  %v2453_v9 = vmul.f32 0.3275911, %v2449_v6  ;;  %v2504_v3 = vmul.f32 %v2500_v55, %v2448_v47  ;;  %v2501_v21 = vsub.f32 0.0, %v2449_v6 }
 0x93c   : > { %v2454_v10 = vadd.f32 1.0, %v2450_v62  ;;  %v2451_v52 = vmul.f32 0.3275911, %v2447_v54  ;;  %v2502_v58 = vmul.f32 %v2498_v12, %v2446_v2  ;;  %v2499_v27 = vsub.f32 0.0, %v2447_v54 }
 0x93d   : > { %3360 = vrcp.f32 %v2456_v8  ;;  %v2457_v1 = vadd.f32 1.0, %v2453_v9  ;;  %v2510_v29 = vmul.f32 1.442695, %v2504_v3  ;;  %v2505_v63 = vmul.f32 %v2501_v21, %v2449_v6 }
 0x93e   : > { %3362 = vrcp.f32 %v2454_v10  ;;  %v2455_v60 = vadd.f32 1.0, %v2451_v52  ;;  %v2506_v15 = vmul.f32 1.442695, %v2502_v58  ;;  %v2503_v33 = vmul.f32 %v2499_v27, %v2447_v54 }
 0x93f   : > { %3364 = vrcp.f32 %v2457_v1  ;;  %v2512_v42 = vmul.f32 1.442695, %v2505_v63 }
 0x940   : > { %3366 = vrcp.f32 %v2455_v60  ;;  %v2508_v37 = vmul.f32 1.442695, %v2503_v33 }
 0x941   : > { %3368 = vpow2.f32 %v2510_v29 }
 0x942   : > { %3370 = vpow2.f32 %v2506_v15 }
 0x943   : > { %3372 = vpow2.f32 %v2512_v42 }
 0x944   : > { %3374 = vpow2.f32 %v2508_v37 }
 0x947   : > { %v3361_v19 = vpop.eup %3360 }
 0x948   : > { %v3363_v16 = vpop.eup %3362  ;;  %v2464_v17 = vmul.f32 1.0614054, %v3361_v19 }
 0x949   : > { %v2462_v24 = vmul.f32 1.0614054, %v3363_v16  ;;  %v3365_v61 = vpop.eup %3364 }
 0x94a   : > { %v2468_v28 = vadd.f32 -1.4531521, %v2464_v17  ;;  %v2465_v7 = vmul.f32 1.0614054, %v3365_v61  ;;  %v3367_v11 = vpop.eup %3366 }
 0x94b   : > { %v2466_v20 = vadd.f32 -1.4531521, %v2462_v24  ;;  %v2463_v18 = vmul.f32 1.0614054, %v3367_v11  ;;  %v3369_v8 = vpop.eup %3368 }
 0x94c   : > { %v2472_v31 = vmul.f32 %v3361_v19, %v2468_v28  ;;  %v2469_v23 = vadd.f32 -1.4531521, %v2465_v7  ;;  %v3371_v10 = vpop.eup %3370 }
 0x94d   : > { %v2470_v22 = vmul.f32 %v3363_v16, %v2466_v20  ;;  %v2467_v41 = vadd.f32 -1.4531521, %v2463_v18  ;;  %v3373_v17 = vpop.eup %3372  ;;  %v2438_v18 = vmul.f32 0.5, %v4090_v48 }
 0x94e   : > { %v2476_v26 = vadd.f32 1.4214138, %v2472_v31  ;;  %v2473_v44 = vmul.f32 %v3365_v61, %v2469_v23  ;;  %v3375_v29 = vpop.eup %3374  ;;  %v2441_v23 = vmul.f32 0.5, %v4095_v14  ;;  %v2942_v14 = vld [vmem:[%s4218_s19] ss:$0 sm:$0xff] }
 0x94f   : > { %v2474_v39 = vadd.f32 1.4214138, %v2470_v22  ;;  %v2471_v50 = vmul.f32 %v3367_v11, %v2467_v41 }
 0x950   : > { %v2480_v43 = vmul.f32 %v3361_v19, %v2476_v26  ;;  %v2477_v49 = vadd.f32 1.4214138, %v2473_v44 }
 0x951   : > { %v2478_v30 = vmul.f32 %v3363_v16, %v2474_v39  ;;  %v2475_v13 = vadd.f32 1.4214138, %v2471_v50 }
 0x952   : > { %v2484_v46 = vadd.f32 -0.28449672, %v2480_v43  ;;  %v2481_v51 = vmul.f32 %v3365_v61, %v2477_v49  ;;  %v2439_v43 = vmul.f32 0.5, %v4100_v40 }
 0x953   : > { %v2482_v53 = vadd.f32 -0.28449672, %v2478_v30  ;;  %v2479_v2 = vmul.f32 %v3367_v11, %v2475_v13 }
 0x954   : > { %v2488_v56 = vmul.f32 %v3361_v19, %v2484_v46  ;;  %v2485_v47 = vadd.f32 -0.28449672, %v2481_v51 }
 0x955   : > { %v2486_v57 = vmul.f32 %v3363_v16, %v2482_v53  ;;  %v2483_v54 = vadd.f32 -0.28449672, %v2479_v2 }
 0x956   : > { %v2492_v0 = vadd.f32 0.2548296, %v2488_v56  ;;  %v2489_v62 = vmul.f32 %v3365_v61, %v2485_v47 }
 0x957   : > { %v2490_v5 = vadd.f32 0.2548296, %v2486_v57  ;;  %v2487_v60 = vmul.f32 %v3367_v11, %v2483_v54 }
 0x958   : > { %v2496_v6 = vmul.f32 %v3361_v19, %v2492_v0  ;;  %v2493_v1 = vadd.f32 0.2548296, %v2489_v62 }
 0x959   : > { %v2494_v9 = vmul.f32 %v3363_v16, %v2490_v5  ;;  %v2491_v21 = vadd.f32 0.2548296, %v2487_v60 }
 0x95a   : > { %v2516_v52 = vmul.f32 %v3369_v8, %v2496_v6  ;;  %v2497_v3 = vmul.f32 %v3365_v61, %v2493_v1  ;;  %v2440_v61 = vmul.f32 0.5, %v4088_v35 }
 0x95b   : > { %v2514_v55 = vmul.f32 %v3371_v10, %v2494_v9  ;;  %v2495_v28 = vmul.f32 %v3367_v11, %v2491_v21 }
 0x95c   : > { %v2520_v12 = vsub.f32 1.0, %v2516_v52  ;;  %v2517_v27 = vmul.f32 %v3373_v17, %v2497_v3 }
 0x95d   : > { %v2518_v58 = vsub.f32 1.0, %v2514_v55  ;;  %v2515_v16 = vmul.f32 %v3375_v29, %v2495_v28  ;;  %v3469_v28 = vmov 0.0  }
 0x95e   : > { %v2528_v24 = vsub.f32 0.0, %v2520_v12  ;;  %v2521_v63 = vsub.f32 1.0, %v2517_v27  ;;  %v2728_v27 = vld [vmem:[#allocation2] sm:$0x1]  ;;  %3142 = vmatprep.subr.bf16.mxu0 %v3469_v28  ;;  %3146 = vmatprep.mubr.msk.bf16.mxu0 %vm3470_vm8, %v3469_v28 }
 0x95f   : > { %v2526_v19 = vsub.f32 0.0, %v2518_v58  ;;  %v2519_v7 = vsub.f32 1.0, %v2515_v16 }
 0x960   : > { %v2532_v20 = vsel %vm2524_vm4, %v2520_v12, %v2528_v24  ;;  %v2529_v15 = vsub.f32 0.0, %v2521_v63 }
 0x961   : > { %v2530_v31 = vsel %vm2522_vm5, %v2518_v58, %v2526_v19  ;;  %v2536_v22 = vadd.f32 1.0, %v2532_v20  ;;  %v2527_v26 = vsub.f32 0.0, %v2519_v7 }
 0x962   : > { %v2533_v33 = vsel %vm2525_vm6, %v2521_v63, %v2529_v15  ;;  %v2534_v11 = vadd.f32 1.0, %v2530_v31 }
 0x963   : > { %v2537_v59 = vadd.f32 1.0, %v2533_v33  ;;  %v2531_v39 = vsel %vm2523_vm7, %v2519_v7, %v2527_v26  ;;  %v2540_v34 = vmul.f32 %v2536_v22, %v2440_v61 }
 0x964   : > { %v2535_v44 = vadd.f32 1.0, %v2531_v39  ;;  %v2538_v41 = vmul.f32 %v2534_v11, %v2438_v18 }
 0x965   : > { %v2541_v42 = vmul.f32 %v2537_v59, %v2441_v23  ;;  %v2951_v59 = vld [vmem:[%s4219_s20] ss:$0 sm:$0xff] }
 0x966   : > { %v2539_v30 = vmul.f32 %v2535_v44, %v2439_v43 }
 0x967   : > { %v2543_v32 = vpack.c.bf16 %v2541_v42, %v2540_v34  ;;  %v2952_v42 = vld [vmem:[%s4220_s21] ss:$0 sm:$0xff] }
 0x968   : > { %v2542_v35 = vpack.c.bf16 %v2539_v30, %v2538_v41 }
 0x96a   : > { %3138 = vmatprep.mubr.bf16.mxu1 %v2542_v35 }
 0x96b   : > { %3139 = vmatmul.mubr.bf16.vlgmr.msra.gmra.mrb[28].mxu1 %v2543_v32 }
 0xa3e   : > { %v3140_v37 = vpop.f32.mrb[28].mxu1 }
 0xa3f   : > { %v2632_v4 = vpop.f32.mrb[29].mxu1  ;;  %v2641_v51 = vadd.f32 %v3140_v37, %v2942_v14 }
 0xa40   : > { %v2633_v46 = vadd.f32 %v2942_v14, %v2632_v4  ;;  %v3141_v48 = vpop.f32.mrb[30].mxu1 }
 0xa41   : > { %v2644_v49 = vadd.f32 %v3141_v48, %v2942_v14  ;;  %v2635_v50 = vpop.f32.mrb[31].mxu1  ;;  %v2649_v2 = vadd.f32 %v2641_v51, %v4023_v36  ;;  %v2734_v51 = vlaneseq }
 0xa42   : > { %v2636_v53 = vadd.f32 %v2942_v14, %v2635_v50  ;;  %v2647_v40 = vadd.f32 %v2633_v46, %v4020_v38 }
 0xa43   : > { %v2650_v56 = vadd.f32 %v2644_v49, %v4033_v45  ;;  %v2659_v5 = vsel %vm796_vm0, %v2649_v2, 0.0 }
 0xa44   : > { %v2653_v13 = vsel %vm796_vm0, %v2647_v40, 0.0  ;;  %v2648_v57 = vadd.f32 %v2636_v53, %v4026_v25 }
 0xa45   : > { %2654 = vadd.xlane.f32.xlu0 %v2653_v13  ;;  %v2662_v0 = vsel %vm796_vm0, %v2650_v56, 0.0  ;;  %v2735_v13 = vshrl.u32 %v2734_v51, 7 }
 0xa46   : > { %2663 = vadd.xlane.f32.xlu1 %v2662_v0  ;;  %v2656_v47 = vsel %vm796_vm0, %v2648_v57, 0.0 }
 0xa49   : > { %2657 = vadd.xlane.f32.xlu0 %v2656_v47 }
 0xa4d   : > { %2660 = vadd.xlane.f32.xlu0 %v2659_v5 }
 0xad2   : > { %v2655_v38 = vpop.xlane.xlu0 %2654 }
 0xad3   : > { %v2665_v6 = vmul.f32 0.03125, %v2655_v38  ;;  %v2664_v45 = vpop.xlane.xlu1 %2663 }
 0xad4   : > { %v2668_v54 = vmul.f32 0.03125, %v2664_v45 }
 0xad5   : > { %v2669_v62 = vsub.f32 %v2647_v40, %v2665_v6 }
 0xad6   : > { %v2658_v8 = vpop.xlane.xlu0 %2657  ;;  %v2672_v10 = vsub.f32 %v2650_v56, %v2668_v54  ;;  %v2727_v56 = vld [vmem:[%s4221_s22] sm:$0x1] }
 0xad7   : > { %v2666_v9 = vmul.f32 0.03125, %v2658_v8  ;;  %v2673_v25 = vmul.f32 %v2669_v62, %v2669_v62 }
 0xad8   : > { %v2676_v21 = vmul.f32 %v2672_v10, %v2672_v10 }
 0xad9   : > { %v2670_v52 = vsub.f32 %v2648_v57, %v2666_v9  ;;  %v2677_v1 = vsel %vm796_vm0, %v2673_v25, 0.0  ;;  %v2736_v57 = vsub.s32 0, %v2735_v13 }
 0xada   : > { %2678 = vadd.xlane.f32.xlu0 %v2677_v1  ;;  %v2661_v60 = vpop.xlane.xlu0 %2660  ;;  %v2686_v58 = vsel %vm796_vm0, %v2676_v21, 0.0 }
 0xadb   : > { %v2667_v55 = vmul.f32 0.03125, %v2661_v60  ;;  %v2674_v36 = vmul.f32 %v2670_v52, %v2670_v52 }
 0xadd   : > { %v2671_v12 = vsub.f32 %v2649_v2, %v2667_v55  ;;  %v2680_v3 = vsel %vm796_vm0, %v2674_v36, 0.0 }
 0xade   : > { %2681 = vadd.xlane.f32.xlu1 %v2680_v3 }
 0xadf   : > { %v2675_v17 = vmul.f32 %v2671_v12, %v2671_v12 }
 0xae1   : > { %v2683_v24 = vsel %vm796_vm0, %v2675_v17, 0.0 }
 0xae2   : > { %2687 = vadd.xlane.f32.xlu1 %v2686_v58  ;;  %2684 = vadd.xlane.f32.xlu0 %v2683_v24 }
 0xaf8   : > { %2731 = vperm.xlu0 %3236, %v2728_v27  }
 0xb67   : > { %v2679_v29 = vpop.xlane.xlu0 %2678 }
 0xb68   : > { %v2689_v19 = vmul.f32 0.03125, %v2679_v29 }
 0xb6a   : > { %v2693_v20 = vadd.f32 1e-05, %v2689_v19 }
 0xb6b   : > { %v2682_v63 = vpop.xlane.xlu1 %2681 }
 0xb6c   : > { %3376 = vrsqrt.f32 %v2693_v20  ;;  %v2690_v16 = vmul.f32 0.03125, %v2682_v63 }
 0xb6e   : > { %v2694_v31 = vadd.f32 1e-05, %v2690_v16 }
 0xb6f   : > { %v2688_v15 = vpop.xlane.xlu1 %2687  ;;  %v2685_v7 = vpop.xlane.xlu0 %2684 }
 0xb70   : > { %3378 = vrsqrt.f32 %v2694_v31  ;;  %v2692_v22 = vmul.f32 0.03125, %v2688_v15  ;;  %v2691_v61 = vmul.f32 0.03125, %v2685_v7 }
 0xb72   : > { %v2696_v33 = vadd.f32 1e-05, %v2692_v22  ;;  %v2695_v26 = vadd.f32 1e-05, %v2691_v61 }
 0xb74   : > { %3380 = vrsqrt.f32 %v2696_v33 }
 0xb75   : > { %3382 = vrsqrt.f32 %v2695_v26 }
 0xb76   : > { %v3377_v11 = vpop.eup %3376 }
 0xb77   : > { %v2701_v23 = vmul.f32 %v3377_v11, %v2669_v62  ;;  %v2732_v0 = vpop.permute.xlu0 %2731 }
 0xb78   : > { %v2737_v47 = vrot.slane %v2732_v0, %v2736_v57 }
 0xb79   : > { %v2711_v34 = vmul.f32 %v2951_v59, %v2701_v23 }
 0xb7a   : > { %v3379_v18 = vpop.eup %3378 }
 0xb7b   : > { %v2702_v39 = vmul.f32 %v3379_v18, %v2670_v52  ;;  %v2721_v32 = vadd.f32 %v2952_v42, %v2711_v34 }
 0xb7d   : > { %v2712_v43 = vmul.f32 %v2951_v59, %v2702_v39 }
 0xb7e   : > { %v3381_v44 = vpop.eup %3380 }
 0xb7f   : > { %v3383_v41 = vpop.eup %3382  ;;  %v2722_v30 = vadd.f32 %v2952_v42, %v2712_v43  ;;  %v2704_v35 = vmul.f32 %v3381_v44, %v2672_v10 }
 0xb80   : > { %v2703_v14 = vmul.f32 %v3383_v41, %v2671_v12 }
 0xb81   : > { %v2725_v37 = vpack.c.bf16 %v2722_v30, %v2721_v32  ;;  %v2714_v4 = vmul.f32 %v2951_v59, %v2704_v35 }
 0xb82   : > { %v2713_v46 = vmul.f32 %v2951_v59, %v2703_v14 }
 0xb83   : > { %v2742_v48 = vsel %vm796_vm0, %v2725_v37, 0  ;;  %v2724_v49 = vadd.f32 %v2952_v42, %v2714_v4 }
 0xb84   : > { %3143 = vmatpush3.bf16.xpose.msra.mxu0 %v2742_v48  ;;  %v2723_v50 = vadd.f32 %v2952_v42, %v2713_v46 }
 0xb85   : > { %3144 = vmatprep.subr.bf16.mxu0 %v3469_v28 }
 0xb86   : > { %v2726_v53 = vpack.c.bf16 %v2724_v49, %v2723_v50 }
 0xb88   : > { %v2745_v40 = vsel %vm796_vm0, %v2726_v53, 0 }
 0xb8c   : > { %3145 = vmatpush3.bf16.xpose.msra.mxu0 %v2745_v40 }
 0xb93   : > { %3147 = vmatmul.mubr.msk.bf16.vlgmr.msra.gmra.mrb[24].mxu0 %vm796_vm0, %v2727_v56 }
 0xc66   : > { %v2781_v2 = vpop.f32.mrb[24].mxu0 }
 0xc67   : > { %v2782_v5 = vadd.f32 %v2781_v2, %v2737_v47  ;;  %v3148_v38 = vpop.f32.mrb[25].mxu0 }
 0xc68   : > { %v2784_v6 = vpop.f32.mrb[26].mxu0 }
 0xc69   : > { %v3149_v45 = vpop.f32.mrb[27].mxu0  ;;  %2788 = vst.msk [vmem:[%s771_s0] sm:$0x1] %vm2787_vm9, %v2782_v5 }
 0xc6a   : > { %3401 = shalt.err (!%p3398_p5)
}
 0xc6b   : > { %s3402_s24 = scalar_lea.hbm %s4152_s7, 16  ;;  %s3406_s5 = scalar_lea.hbm %s4264_s23, 32 }
 0xc6c   : > { %p3403_p6 = scmp.ne.s32.totalorder %s4152_s7, %s3402_s24  ;;  %p3407_p10 = scmp.lt.u32.totalorder %s4152_s7, %s4264_s23 }
 0xc6d   : > { %p3408_p11 = scmp.lt.u32.totalorder %s3406_s5, %s3402_s24  ;;  %p3410_p13 = scmp.lt.u32.totalorder %s3402_s24, %s4152_s7 }
 0xc6e   : > { %p3404_p7 = pnand %p3403_p6, %p3640_p4 }
 0xc6f   : > { %p3409_p12 = por %p3408_p11, %p3407_p10 }
 0xc70   : > { %p3405_p9 = pneg %p3404_p7 }
 0xc71   : > { %p3411_p0 = por %p3410_p13, %p3409_p12 }
 0xc73   : > { %p3412_p1 = pnand %p3411_p0, %p3405_p9 }
 0xc75   : > { %3415 = shalt.err (!%p3412_p1)
}
 0xc76   : > { %3178 = dma.vmem_to_hbm [thread:$0]  (%p3640_p4), %s4154_s29, 16, %s4152_s7, %s2790_s2  }
 0xc77 PF: > { %s4265_s6 = sld [smem:[#allocation9_spill]]  ;;  %s4266_s4 = sld [smem:[#allocation6_spill]] }
 0xc7d   : > { %p3184_p2 = scmp.ge.s32.totalorder %s4265_s6, 2  ;;  %s2815_s0 = sand.u32 1, %s4266_s4  }
 0xc7e   : > { %s2816_s1 = scalar_lea.sflag [#allocation4], %s2815_s0 }
 0xc7f   : > { %p3181_p3 = pnand %p3184_p2, %p3647_p8 }
 0xc81   : > { %3441 = dma.done.wait (!%p3181_p3), %s2816_s1, 16  }
 0xc82   : > { %3443 = vsyncadd (!%p3181_p3), %s2816_s1, 4294967280  ;;  %s39_s0 = sadd.s32 1, %s4265_s6   ;;  %s4268_s24 = sld [smem:[#allocation7_spill]] }
 0xc83   : > { %p36_p5 = scmp.ge.s32.totalorder %s39_s0, 4   ;;  %s4269_s6 = sld [smem:[#allocation12_spill]] }
 0xc84   : > { %s4270_s2 = sld [smem:[#allocation8_spill]]  ;;  %s4271_s29 = sld [smem:[#allocation10_spill]] }
 0xc85   : > { %s4272_s27 = smov %s3450_s28  ;;  %38 = sbr.rel (!%p36_p5) target bundleno = 15 (0xf), region = 154 }
 0xc88   : > { %s4273_s28 = smov %s4268_s24 }
 0xc8c   :  { %2820 = vsyncpa [#allocation4], 1 }
 0xc8d   :  { %2822 = vsyncpa [#allocation4 + $0x1], 1 }

</bundles_post_ra>
